<compile_context>
chip_gen: v7x
topology: tpu7x:2x2x1
jax: 0.10.0
libtpu: 0.0.40
codegen_flags: <defaults>
</compile_context>

<pallas_src>
import functools

import jax
import jax.numpy as jnp
from jax.experimental import pallas as pl
from jax.experimental.pallas import tpu as pltpu

LANE = 128


# ------------------- wrapper-side im2col (pool-friendly order) --------------

def _im2col_3x3_pool_order(x_nhwc):
    """3x3/pad-1 patches, rows ordered (w-parity, h, w//2).

    The ordering makes the horizontal stage of the kernel's 2x2 max-pool an
    aligned half-block max over the M dimension instead of a
    sublane-interleaved reduce.  Channel order of K is (dy, dx, cin), i.e.
    matches w_hwio.reshape(9*Cin, Cout).
    """
    B, H, W, C = x_nhwc.shape
    xp = jnp.pad(x_nhwc, ((0, 0), (1, 1), (1, 1), (0, 0)))
    cols = jnp.concatenate(
        [xp[:, dy:dy + H, dx:dx + W, :] for dy in range(3) for dx in range(3)],
        axis=-1)                                            # (B, H, W, 9C)
    cols = cols.reshape(B, H, W // 2, 2, 9 * C)
    cols = jnp.transpose(cols, (0, 3, 1, 2, 4))             # (B, 2, H, W/2, 9C)
    return cols.reshape(B, H * W, 9 * C)


# ---------------- Conv2d 3x3 (pad 1) + ReLU + MaxPool2x2, fused -------------

def _conv_relu_pool_kernel(cols_ref, w_ref, b_ref, o_ref, *, H, W, Cout):
    # cols_ref: (1, H*W, K)      im2col rows, ordered (w-parity, h, w//2)
    # w_ref:    (K, Cout)        K = 9*Cin, channel order (dy, dx, cin)
    # b_ref:    (1, Cout)
    # o_ref:    (1, H//2, (W//2)*Cout)   lane-dense NHWC bytes
    y = jnp.dot(cols_ref[0], w_ref[...],
                preferred_element_type=jnp.float32)          # (H*W, Cout)
    y = jnp.maximum(y + b_ref[...], 0.0)                     # bias + ReLU (f32)

    # 2x2 max-pool, stride 2 — both stages are aligned half-block maxes:
    half = (H * W) // 2
    # horizontal pairs: first half = even-w pixels, second half = odd-w
    y = jnp.maximum(y[:half, :], y[half:, :])                # (H*W/2, Cout)
    # vertical pairs: rows are (h, w') h-major; fold to (H/2, W, C) so the
    # two halves of the middle axis are even-h / odd-h rows
    y = y.reshape(H // 2, W, Cout)
    y = jnp.maximum(y[:, :W // 2, :], y[:, W // 2:, :])      # (H/2, W/2, Cout)

    # lane-dense store (last dim (W//2)*Cout = 512, multiple of 128)
    o_ref[...] = y.reshape(1, H // 2, (W // 2) * Cout)


def conv_relu_pool(cols, w_flat, b, *, H, W, Cout):
    """cols: (B, H*W, 9*Cin) from _im2col_3x3_pool_order.
    Returns (B, H//2, (W//2)*Cout) — same bytes as NHWC (B, H/2, W/2, Cout)."""
    B, _, K = cols.shape
    Ho, Wo = H // 2, W // 2
    kernel = functools.partial(_conv_relu_pool_kernel, H=H, W=W, Cout=Cout)
    return pl.pallas_call(
        kernel,
        grid=(B,),
        in_specs=[
            pl.BlockSpec((1, H * W, K), lambda bb: (bb, 0, 0)),
            pl.BlockSpec((K, Cout), lambda bb: (0, 0)),
            pl.BlockSpec((1, Cout), lambda bb: (0, 0)),
        ],
        out_specs=pl.BlockSpec((1, Ho, Wo * Cout), lambda bb: (bb, 0, 0)),
        out_shape=jax.ShapeDtypeStruct((B, Ho, Wo * Cout), jnp.float32),
        compiler_params=pltpu.CompilerParams(
            dimension_semantics=("parallel",)),
    )(cols, w_flat, b.reshape(1, Cout))


# --------------- Fused MLP head: fc1 -> ReLU -> fc2 (one kernel) ------------

def _mlp_kernel(x_ref, w1_ref, b1_ref, w2_ref, b2_ref, o_ref, acc_ref):
    # Grid: (batch blocks [parallel], fc1-output-column blocks [arbitrary]).
    #   logits = sum_j relu(x @ W1[:, j-tile] + b1[j-tile]) @ W2[j-tile, :]
    # bf16 dot inputs, f32 accumulation; all elementwise math stays f32.
    j = pl.program_id(1)

    @pl.when(j == 0)
    def _():
        acc_ref[...] = jnp.zeros_like(acc_ref)

    h = jnp.maximum(
        jnp.dot(x_ref[...], w1_ref[...], preferred_element_type=jnp.float32)
        + b1_ref[...],
        0.0,
    )
    acc_ref[...] += jnp.dot(h.astype(w2_ref.dtype), w2_ref[...],
                            preferred_element_type=jnp.float32)

    @pl.when(j == pl.num_programs(1) - 1)
    def _():
        o_ref[...] = acc_ref[...] + b2_ref[...]


def _pick_batch_block(B):
    # Small batches: single block (a 1-sized parallel axis is free).  Larger
    # batches: give v7x megacore >=2 blocks on the parallel axis.
    if B < 16:
        return B
    for cand in (128, 64, 32, 16, 8):
        if B % cand == 0:
            return cand
    return B


def mlp_head(x, w1, b1, w2_padded, b2_padded, *, tile_n=256):
    B, K = x.shape
    N1 = w1.shape[1]                 # hidden width (512)
    NP = w2_padded.shape[1]          # lane-padded class count (128)
    assert N1 % tile_n == 0
    bm = _pick_batch_block(B)
    assert B % bm == 0

    return pl.pallas_call(
        _mlp_kernel,
        grid=(B // bm, N1 // tile_n),
        in_specs=[
            pl.BlockSpec((bm, K), lambda i, j: (i, 0)),
            pl.BlockSpec((K, tile_n), lambda i, j: (0, j)),
            pl.BlockSpec((1, tile_n), lambda i, j: (0, j)),
            pl.BlockSpec((tile_n, NP), lambda i, j: (j, 0)),
            pl.BlockSpec((1, NP), lambda i, j: (0, 0)),
        ],
        out_specs=pl.BlockSpec((bm, NP), lambda i, j: (i, 0)),
        out_shape=jax.ShapeDtypeStruct((B, NP), jnp.float32),
        scratch_shapes=[pltpu.VMEM((bm, NP), jnp.float32)],
        compiler_params=pltpu.CompilerParams(
            dimension_semantics=("parallel", "arbitrary")),
    )(x, w1, b1.reshape(1, N1), w2_padded, b2_padded.reshape(1, NP))


# --------------------------- Parameters & forward ---------------------------

def init_params(key, num_classes=10):
    ks = jax.random.split(key, 4)
    s = 0.05
    conv1_w = s * jax.random.normal(ks[0], (3, 3, 3, 32), jnp.float32)
    conv2_w = s * jax.random.normal(ks[1], (3, 3, 32, 64), jnp.float32)
    fc1_w = s * jax.random.normal(ks[2], (8 * 8 * 64, 512), jnp.float32)
    fc2_w = s * jax.random.normal(ks[3], (512, num_classes), jnp.float32)
    return {
        # Conv weights in HWIO layout (PyTorch OIHW -> transpose(2,3,1,0)).
        "conv1_w": conv1_w,
        "conv1_b": jnp.zeros((32,), jnp.float32),
        "conv2_w": conv2_w,
        "conv2_b": jnp.zeros((64,), jnp.float32),
        # fc1 rows in NHWC-flatten (H, W, C) order (PyTorch CHW-flatten rows
        # would need permuting offline).  bf16 weights; f32 acc in-kernel.
        "fc1_w": fc1_w.astype(jnp.bfloat16),
        "fc1_b": jnp.zeros((512,), jnp.float32),
        # Classifier lane-padded to 128 output columns (dense vst); wrapper
        # slices back to num_classes.  One-time, offline.
        "fc2_w_pad": jnp.pad(
            fc2_w, ((0, 0), (0, LANE - num_classes))).astype(jnp.bfloat16),
        "fc2_b_pad": jnp.pad(jnp.zeros((num_classes,), jnp.float32),
                             ((0, LANE - num_classes),)),
    }


def cnn_cifar_forward(x_nchw, params, *, num_classes=10):
    B = x_nchw.shape[0]
    x = jnp.transpose(x_nchw, (0, 2, 3, 1))                     # NCHW -> NHWC

    # conv1 + ReLU + pool : (B,32,32,3) -> (B,16,16,32), stored as (B,16,512)
    cols1 = _im2col_3x3_pool_order(x)                           # (B, 1024, 27)
    y1 = conv_relu_pool(cols1, params["conv1_w"].reshape(27, 32),
                        params["conv1_b"], H=32, W=32, Cout=32)

    # conv2 + ReLU + pool : (B,16,16,32) -> (B,8,8,64), stored as (B,8,512)
    cols2 = _im2col_3x3_pool_order(y1.reshape(B, 16, 16, 32))   # (B, 256, 288)
    y2 = conv_relu_pool(cols2, params["conv2_w"].reshape(288, 64),
                        params["conv2_b"], H=16, W=16, Cout=64)

    # fused fc1 -> ReLU -> fc2 (bf16 dot inputs, f32 accumulation)
    feats = y2.reshape(B, 8 * 8 * 64).astype(jnp.bfloat16)
    logits_padded = mlp_head(feats, params["fc1_w"], params["fc1_b"],
                             params["fc2_w_pad"], params["fc2_b_pad"])
    return logits_padded[:, :num_classes]


# ---------------------------------- Main ------------------------------------

if __name__ == "__main__":
    key = jax.random.PRNGKey(0)
    k_x, k_p = jax.random.split(key)

    B, NUM_CLASSES = 2, 10
    x = jax.random.normal(k_x, (B, 3, 32, 32), jnp.float32)    # CIFAR-10 shape
    params = init_params(k_p, num_classes=NUM_CLASSES)

    fwd = jax.jit(functools.partial(cnn_cifar_forward, num_classes=NUM_CLASSES))
    logits = fwd(x, params)
    jax.block_until_ready(logits)

    assert logits.shape == (B, NUM_CLASSES), logits.shape
    assert logits.dtype == jnp.float32
    assert bool(jnp.all(jnp.isfinite(logits)))

    print("KERNEL_OK")
</pallas_src>

<mosaic_0001>
module attributes {stable_mosaic.version = 11 : i64} {
  func.func @_conv_relu_pool_kernel(%arg0: i32, %arg1: memref<1x1024x27xf32, #tpu.memory_space<vmem>>, %arg2: memref<27x32xf32, #tpu.memory_space<vmem>>, %arg3: memref<1x32xf32, #tpu.memory_space<vmem>>, %arg4: memref<1x16x512xf32, #tpu.memory_space<vmem>>) attributes {dimension_semantics = [#tpu.dimension_semantics<parallel>], iteration_bounds = array<i64: 2>, scalar_prefetch = 0 : i64, scratch_operands = 0 : i64, tpu.core_type = #tpu.core_type<tc>, window_params = [{transform_indices = @transform_0, window_bounds = array<i64: 1, 1024, 27>}, {pipeline_mode = #tpu.pipeline_mode<synchronous>, transform_indices = @transform_1, window_bounds = array<i64: 27, 32>}, {pipeline_mode = #tpu.pipeline_mode<synchronous>, transform_indices = @transform_2, window_bounds = array<i64: 1, 32>}, {transform_indices = @transform_3, window_bounds = array<i64: 1, 16, 512>}]} {
    %c0 = arith.constant 0 : index
    %c0_0 = arith.constant 0 : index
    %c0_1 = arith.constant 0 : index
    %0 = vector.load %arg1[%c0, %c0_0, %c0_1] : memref<1x1024x27xf32, #tpu.memory_space<vmem>>, vector<1x1024x27xf32>
    %1 = vector.shape_cast %0 : vector<1x1024x27xf32> to vector<1024x27xf32>
    %c0_2 = arith.constant 0 : index
    %c0_3 = arith.constant 0 : index
    %2 = vector.load %arg2[%c0_2, %c0_3] : memref<27x32xf32, #tpu.memory_space<vmem>>, vector<27x32xf32>
    %cst = arith.constant dense<0.000000e+00> : vector<1024x32xf32>
    %3 = tpu.matmul %1, %2, %cst {dimension_numbers = #tpu.dot_dimension_numbers<[1], [0], [0], [1], [0, 0, 1, 1], [], []>} : vector<1024x27xf32>, vector<27x32xf32>, vector<1024x32xf32> -> vector<1024x32xf32>
    %c0_4 = arith.constant 0 : index
    %c0_5 = arith.constant 0 : index
    %4 = vector.load %arg3[%c0_4, %c0_5] : memref<1x32xf32, #tpu.memory_space<vmem>>, vector<1x32xf32>
    %5 = vector.broadcast %4 : vector<1x32xf32> to vector<1024x32xf32>
    %6 = arith.addf %3, %5 : vector<1024x32xf32>
    %cst_6 = arith.constant 0.000000e+00 : f32
    %7 = vector.broadcast %cst_6 : f32 to vector<1024x32xf32>
    %8 = arith.maximumf %6, %7 : vector<1024x32xf32>
    %9 = vector.extract_strided_slice %8 {offsets = [0, 0], sizes = [512, 32], strides = [1, 1]} : vector<1024x32xf32> to vector<512x32xf32>
    %10 = vector.extract_strided_slice %8 {offsets = [512, 0], sizes = [512, 32], strides = [1, 1]} : vector<1024x32xf32> to vector<512x32xf32>
    %11 = arith.maximumf %9, %10 : vector<512x32xf32>
    %12 = vector.shape_cast %11 : vector<512x32xf32> to vector<16x32x32xf32>
    %13 = vector.extract_strided_slice %12 {offsets = [0, 0, 0], sizes = [16, 16, 32], strides = [1, 1, 1]} : vector<16x32x32xf32> to vector<16x16x32xf32>
    %14 = vector.extract_strided_slice %12 {offsets = [0, 16, 0], sizes = [16, 16, 32], strides = [1, 1, 1]} : vector<16x32x32xf32> to vector<16x16x32xf32>
    %15 = arith.maximumf %13, %14 : vector<16x16x32xf32>
    %16 = vector.shape_cast %15 : vector<16x16x32xf32> to vector<1x16x512xf32>
    %c0_7 = arith.constant 0 : index
    %c0_8 = arith.constant 0 : index
    %c0_9 = arith.constant 0 : index
    %17 = vector.load %arg4[%c0_7, %c0_8, %c0_9] : memref<1x16x512xf32, #tpu.memory_space<vmem>>, vector<1x16x512xf32>
    tpu.vector_store %arg4[%c0_7, %c0_8, %c0_9], %16 {strides = array<i32>} : memref<1x16x512xf32, #tpu.memory_space<vmem>>, vector<1x16x512xf32>,
    return
  }
  func.func @transform_0(%arg0: i32) -> (i32, i32, i32) {
    %c0_i32 = arith.constant 0 : i32
    %c0_i32_0 = arith.constant 0 : i32
    %c0_i32_1 = arith.constant 0 : i32
    return %arg0, %c0_i32, %c0_i32_0 : i32, i32, i32
  }
  func.func @transform_1(%arg0: i32) -> (i32, i32) {
    %c0_i32 = arith.constant 0 : i32
    %c0_i32_0 = arith.constant 0 : i32
    %c0_i32_1 = arith.constant 0 : i32
    return %c0_i32, %c0_i32_0 : i32, i32
  }
  func.func @transform_2(%arg0: i32) -> (i32, i32) {
    %c0_i32 = arith.constant 0 : i32
    %c0_i32_0 = arith.constant 0 : i32
    %c0_i32_1 = arith.constant 0 : i32
    return %c0_i32, %c0_i32_0 : i32, i32
  }
  func.func @transform_3(%arg0: i32) -> (i32, i32, i32) {
    %c0_i32 = arith.constant 0 : i32
    %c0_i32_0 = arith.constant 0 : i32
    %c0_i32_1 = arith.constant 0 : i32
    return %arg0, %c0_i32, %c0_i32_0 : i32, i32, i32
  }
}

module attributes {stable_mosaic.version = 11 : i64} {
  func.func @_conv_relu_pool_kernel(%arg0: i32, %arg1: memref<1x256x288xf32, #tpu.memory_space<vmem>>, %arg2: memref<288x64xf32, #tpu.memory_space<vmem>>, %arg3: memref<1x64xf32, #tpu.memory_space<vmem>>, %arg4: memref<1x8x512xf32, #tpu.memory_space<vmem>>) attributes {dimension_semantics = [#tpu.dimension_semantics<parallel>], iteration_bounds = array<i64: 2>, scalar_prefetch = 0 : i64, scratch_operands = 0 : i64, tpu.core_type = #tpu.core_type<tc>, window_params = [{transform_indices = @transform_0, window_bounds = array<i64: 1, 256, 288>}, {pipeline_mode = #tpu.pipeline_mode<synchronous>, transform_indices = @transform_1, window_bounds = array<i64: 288, 64>}, {pipeline_mode = #tpu.pipeline_mode<synchronous>, transform_indices = @transform_2, window_bounds = array<i64: 1, 64>}, {transform_indices = @transform_3, window_bounds = array<i64: 1, 8, 512>}]} {
    %c0 = arith.constant 0 : index
    %c0_0 = arith.constant 0 : index
    %c0_1 = arith.constant 0 : index
    %0 = vector.load %arg1[%c0, %c0_0, %c0_1] : memref<1x256x288xf32, #tpu.memory_space<vmem>>, vector<1x256x288xf32>
    %1 = vector.shape_cast %0 : vector<1x256x288xf32> to vector<256x288xf32>
    %c0_2 = arith.constant 0 : index
    %c0_3 = arith.constant 0 : index
    %2 = vector.load %arg2[%c0_2, %c0_3] : memref<288x64xf32, #tpu.memory_space<vmem>>, vector<288x64xf32>
    %cst = arith.constant dense<0.000000e+00> : vector<256x64xf32>
    %3 = tpu.matmul %1, %2, %cst {dimension_numbers = #tpu.dot_dimension_numbers<[1], [0], [0], [1], [0, 0, 1, 1], [], []>} : vector<256x288xf32>, vector<288x64xf32>, vector<256x64xf32> -> vector<256x64xf32>
    %c0_4 = arith.constant 0 : index
    %c0_5 = arith.constant 0 : index
    %4 = vector.load %arg3[%c0_4, %c0_5] : memref<1x64xf32, #tpu.memory_space<vmem>>, vector<1x64xf32>
    %5 = vector.broadcast %4 : vector<1x64xf32> to vector<256x64xf32>
    %6 = arith.addf %3, %5 : vector<256x64xf32>
    %cst_6 = arith.constant 0.000000e+00 : f32
    %7 = vector.broadcast %cst_6 : f32 to vector<256x64xf32>
    %8 = arith.maximumf %6, %7 : vector<256x64xf32>
    %9 = vector.extract_strided_slice %8 {offsets = [0, 0], sizes = [128, 64], strides = [1, 1]} : vector<256x64xf32> to vector<128x64xf32>
    %10 = vector.extract_strided_slice %8 {offsets = [128, 0], sizes = [128, 64], strides = [1, 1]} : vector<256x64xf32> to vector<128x64xf32>
    %11 = arith.maximumf %9, %10 : vector<128x64xf32>
    %12 = vector.shape_cast %11 : vector<128x64xf32> to vector<8x16x64xf32>
    %13 = vector.extract_strided_slice %12 {offsets = [0, 0, 0], sizes = [8, 8, 64], strides = [1, 1, 1]} : vector<8x16x64xf32> to vector<8x8x64xf32>
    %14 = vector.extract_strided_slice %12 {offsets = [0, 8, 0], sizes = [8, 8, 64], strides = [1, 1, 1]} : vector<8x16x64xf32> to vector<8x8x64xf32>
    %15 = arith.maximumf %13, %14 : vector<8x8x64xf32>
    %16 = vector.shape_cast %15 : vector<8x8x64xf32> to vector<1x8x512xf32>
    %c0_7 = arith.constant 0 : index
    %c0_8 = arith.constant 0 : index
    %c0_9 = arith.constant 0 : index
    %17 = vector.load %arg4[%c0_7, %c0_8, %c0_9] : memref<1x8x512xf32, #tpu.memory_space<vmem>>, vector<1x8x512xf32>
    tpu.vector_store %arg4[%c0_7, %c0_8, %c0_9], %16 {strides = array<i32>} : memref<1x8x512xf32, #tpu.memory_space<vmem>>, vector<1x8x512xf32>,
    return
  }
  func.func @transform_0(%arg0: i32) -> (i32, i32, i32) {
    %c0_i32 = arith.constant 0 : i32
    %c0_i32_0 = arith.constant 0 : i32
    %c0_i32_1 = arith.constant 0 : i32
    return %arg0, %c0_i32, %c0_i32_0 : i32, i32, i32
  }
  func.func @transform_1(%arg0: i32) -> (i32, i32) {
    %c0_i32 = arith.constant 0 : i32
    %c0_i32_0 = arith.constant 0 : i32
    %c0_i32_1 = arith.constant 0 : i32
    return %c0_i32, %c0_i32_0 : i32, i32
  }
  func.func @transform_2(%arg0: i32) -> (i32, i32) {
    %c0_i32 = arith.constant 0 : i32
    %c0_i32_0 = arith.constant 0 : i32
    %c0_i32_1 = arith.constant 0 : i32
    return %c0_i32, %c0_i32_0 : i32, i32
  }
  func.func @transform_3(%arg0: i32) -> (i32, i32, i32) {
    %c0_i32 = arith.constant 0 : i32
    %c0_i32_0 = arith.constant 0 : i32
    %c0_i32_1 = arith.constant 0 : i32
    return %arg0, %c0_i32, %c0_i32_0 : i32, i32, i32
  }
}

module attributes {stable_mosaic.version = 11 : i64} {
  func.func @_mlp_kernel(%arg0: i32, %arg1: i32, %arg2: memref<2x4096xbf16, #tpu.memory_space<vmem>>, %arg3: memref<4096x256xbf16, #tpu.memory_space<vmem>>, %arg4: memref<1x256xf32, #tpu.memory_space<vmem>>, %arg5: memref<256x128xbf16, #tpu.memory_space<vmem>>, %arg6: memref<1x128xf32, #tpu.memory_space<vmem>>, %arg7: memref<2x128xf32, #tpu.memory_space<vmem>>, %arg8: memref<2x128xf32, #tpu.memory_space<vmem>>) attributes {dimension_semantics = [#tpu.dimension_semantics<parallel>, #tpu.dimension_semantics<arbitrary>], iteration_bounds = array<i64: 1, 2>, scalar_prefetch = 0 : i64, scratch_operands = 1 : i64, tpu.core_type = #tpu.core_type<tc>, window_params = [{transform_indices = @transform_0, window_bounds = array<i64: 2, 4096>}, {transform_indices = @transform_1, window_bounds = array<i64: 4096, 256>}, {transform_indices = @transform_2, window_bounds = array<i64: 1, 256>}, {transform_indices = @transform_3, window_bounds = array<i64: 256, 128>}, {pipeline_mode = #tpu.pipeline_mode<synchronous>, transform_indices = @transform_4, window_bounds = array<i64: 1, 128>}, {transform_indices = @transform_5, window_bounds = array<i64: 2, 128>}]} {
    %c0_i32 = arith.constant 0 : i32
    %0 = arith.cmpi eq, %arg1, %c0_i32 : i32
    %1 = arith.extui %0 : i1 to i32
    %c0_i32_0 = arith.constant 0 : i32
    %2 = arith.cmpi ne, %1, %c0_i32_0 : i32
    scf.if %2 {
      %cst_15 = arith.constant 0.000000e+00 : f32
      %20 = vector.broadcast %cst_15 : f32 to vector<2x128xf32>
      %c0_16 = arith.constant 0 : index
      %c0_17 = arith.constant 0 : index
      %21 = vector.load %arg8[%c0_16, %c0_17] : memref<2x128xf32, #tpu.memory_space<vmem>>, vector<2x128xf32>
      tpu.vector_store %arg8[%c0_16, %c0_17], %20 {strides = array<i32>} : memref<2x128xf32, #tpu.memory_space<vmem>>, vector<2x128xf32>,
    } else {
    }
    %c0 = arith.constant 0 : index
    %c0_1 = arith.constant 0 : index
    %3 = vector.load %arg2[%c0, %c0_1] : memref<2x4096xbf16, #tpu.memory_space<vmem>>, vector<2x4096xbf16>
    %c0_2 = arith.constant 0 : index
    %c0_3 = arith.constant 0 : index
    %4 = vector.load %arg3[%c0_2, %c0_3] : memref<4096x256xbf16, #tpu.memory_space<vmem>>, vector<4096x256xbf16>
    %cst = arith.constant dense<0.000000e+00> : vector<2x256xf32>
    %5 = tpu.matmul %3, %4, %cst {dimension_numbers = #tpu.dot_dimension_numbers<[1], [0], [0], [1], [0, 0, 1, 1], [], []>} : vector<2x4096xbf16>, vector<4096x256xbf16>, vector<2x256xf32> -> vector<2x256xf32>
    %c0_4 = arith.constant 0 : index
    %c0_5 = arith.constant 0 : index
    %6 = vector.load %arg4[%c0_4, %c0_5] : memref<1x256xf32, #tpu.memory_space<vmem>>, vector<1x256xf32>
    %7 = vector.broadcast %6 : vector<1x256xf32> to vector<2x256xf32>
    %8 = arith.addf %5, %7 : vector<2x256xf32>
    %cst_6 = arith.constant 0.000000e+00 : f32
    %9 = vector.broadcast %cst_6 : f32 to vector<2x256xf32>
    %10 = arith.maximumf %8, %9 : vector<2x256xf32>
    %c0_7 = arith.constant 0 : index
    %c0_8 = arith.constant 0 : index
    %11 = vector.load %arg8[%c0_7, %c0_8] : memref<2x128xf32, #tpu.memory_space<vmem>>, vector<2x128xf32>
    %12 = arith.truncf %10 : vector<2x256xf32> to vector<2x256xbf16>
    %c0_9 = arith.constant 0 : index
    %c0_10 = arith.constant 0 : index
    %13 = vector.load %arg5[%c0_9, %c0_10] : memref<256x128xbf16, #tpu.memory_space<vmem>>, vector<256x128xbf16>
    %cst_11 = arith.constant dense<0.000000e+00> : vector<2x128xf32>
    %14 = tpu.matmul %12, %13, %cst_11 {dimension_numbers = #tpu.dot_dimension_numbers<[1], [0], [0], [1], [0, 0, 1, 1], [], []>} : vector<2x256xbf16>, vector<256x128xbf16>, vector<2x128xf32> -> vector<2x128xf32>
    %15 = arith.addf %11, %14 : vector<2x128xf32>
    %c0_12 = arith.constant 0 : index
    %c0_13 = arith.constant 0 : index
    %16 = vector.load %arg8[%c0_12, %c0_13] : memref<2x128xf32, #tpu.memory_space<vmem>>, vector<2x128xf32>
    tpu.vector_store %arg8[%c0_12, %c0_13], %15 {strides = array<i32>} : memref<2x128xf32, #tpu.memory_space<vmem>>, vector<2x128xf32>,
    %c1_i32 = arith.constant 1 : i32
    %17 = arith.cmpi eq, %arg1, %c1_i32 : i32
    %18 = arith.extui %17 : i1 to i32
    %c0_i32_14 = arith.constant 0 : i32
    %19 = arith.cmpi ne, %18, %c0_i32_14 : i32
    scf.if %19 {
      %c0_15 = arith.constant 0 : index
      %c0_16 = arith.constant 0 : index
      %20 = vector.load %arg8[%c0_15, %c0_16] : memref<2x128xf32, #tpu.memory_space<vmem>>, vector<2x128xf32>
      %c0_17 = arith.constant 0 : index
      %c0_18 = arith.constant 0 : index
      %21 = vector.load %arg6[%c0_17, %c0_18] : memref<1x128xf32, #tpu.memory_space<vmem>>, vector<1x128xf32>
      %22 = vector.broadcast %21 : vector<1x128xf32> to vector<2x128xf32>
      %23 = arith.addf %20, %22 : vector<2x128xf32>
      %c0_19 = arith.constant 0 : index
      %c0_20 = arith.constant 0 : index
      %24 = vector.load %arg7[%c0_19, %c0_20] : memref<2x128xf32, #tpu.memory_space<vmem>>, vector<2x128xf32>
      tpu.vector_store %arg7[%c0_19, %c0_20], %23 {strides = array<i32>} : memref<2x128xf32, #tpu.memory_space<vmem>>, vector<2x128xf32>,
    } else {
    }
    return
  }
  func.func @transform_0(%arg0: i32, %arg1: i32) -> (i32, i32) {
    %c0_i32 = arith.constant 0 : i32
    %c0_i32_0 = arith.constant 0 : i32
    return %arg0, %c0_i32 : i32, i32
  }
  func.func @transform_1(%arg0: i32, %arg1: i32) -> (i32, i32) {
    %c0_i32 = arith.constant 0 : i32
    %c0_i32_0 = arith.constant 0 : i32
    return %c0_i32, %arg1 : i32, i32
  }
  func.func @transform_2(%arg0: i32, %arg1: i32) -> (i32, i32) {
    %c0_i32 = arith.constant 0 : i32
    %c0_i32_0 = arith.constant 0 : i32
    return %c0_i32, %arg1 : i32, i32
  }
  func.func @transform_3(%arg0: i32, %arg1: i32) -> (i32, i32) {
    %c0_i32 = arith.constant 0 : i32
    %c0_i32_0 = arith.constant 0 : i32
    return %arg1, %c0_i32 : i32, i32
  }
  func.func @transform_4(%arg0: i32, %arg1: i32) -> (i32, i32) {
    %c0_i32 = arith.constant 0 : i32
    %c0_i32_0 = arith.constant 0 : i32
    %c0_i32_1 = arith.constant 0 : i32
    return %c0_i32, %c0_i32_0 : i32, i32
  }
  func.func @transform_5(%arg0: i32, %arg1: i32) -> (i32, i32) {
    %c0_i32 = arith.constant 0 : i32
    %c0_i32_0 = arith.constant 0 : i32
    return %arg0, %c0_i32 : i32, i32
  }
}

</mosaic_0001>

<bundles_post_ra>
// kernel: cnn_cifar_forward.3
= control target key start
LH: loop header
LB: loop body
LE: loop exit
PB: predicated region body
PF: predicated region fallthrough
CT: control target
= control target key end

     0   :  { %8 = vsyncpa [#allocation3], 0  ;;  %s2967_s12 = smov 0   ;;  %s3890_s0 = inlined_call_operand.vmem [shape: f32[2,1024,27], index: 0, kind: input, shape index: {}]   ;;  %s3891_s1 = inlined_call_operand.vmem [shape: f32[27,32], index: 1, kind: input, shape index: {}]   ;;  %s3892_s2 = inlined_call_operand.hbm [shape: f32[1,32], index: 2, kind: input, shape index: {}]   ;;  %s3893_s3 = inlined_call_operand.vmem [shape: f32[2,16,512], index: 3, kind: output, shape index: {}]  }
   0x1 LB: > { %s2973_s13 = sadd.s32 4294967295, %s2938_s12   ;;  %p2385_p0 = scmp.ge.s32.totalorder %s2938_s12, 1  ;;  %s2938_s12 = sphi %s2967_s12, %s14_s12  }
   0x2   : > { %p113_p1 = scmp.lt.s32.totalorder %s2938_s12, 3  ;;  %p3894_p3 = scmp.eq.s32.totalorder %s2973_s13, 0 }
   0x3   : > { %s2940_s15 = smov [#allocation2]   ;;  %s2900_s20 = scalar_lea.hbm %s3892_s2, 16 }
   0x4   : > { %p2977_p2 = pnand %p2385_p0, %p113_p1  ;;  %s129_s16 = sshll.u32 %s2940_s15, 4  ;;  %s130_s16 = int_to_ptr.vmem [resolvable:$true] %s129_s16 }
   0x5   : > { %p2901_p6 = scmp.ne.s32.totalorder %s3892_s2, %s2900_s20  ;;  %p2907_p10 = scmp.lt.u32.totalorder %s2900_s20, %s3892_s2 }
   0x6   : > { %s3896_s14 = scalar_select %p2977_p2, 1, 0 }
   0x7   : > { %p2878_p4 = pneg %p2977_p2 }
   0x9   : > { %p2986_p5 = pnand %p3894_p3, %p2878_p4 }
   0xb   : > { %p2902_p7 = pneg %p2986_p5 }
   0xd   : > { %p2903_p8 = pnand %p2902_p7, %p2901_p6 }
   0xf   : > { %p2904_p9 = pneg %p2903_p8 }
  0x11   : > { %p2909_p11 = pnand %p2907_p10, %p2904_p9 }
  0x13   : > { %2912 = shalt.err (!%p2909_p11)
}
  0x14   : > { %s2913_s25 = scalar_lea.vmem %s130_s16, 16  ;;  %s2920_s26 = scalar_lea.vmem %s130_s16, 32 }
  0x15   : > { %p2914_p12 = scmp.ne.s32.totalorder %s130_s16, %s2913_s25  ;;  %p2921_p1 = scmp.lt.s32.totalorder %s130_s16, %s130_s16 }
  0x16   : > { %p2922_p4 = scmp.lt.s32.totalorder %s2920_s26, %s2913_s25 }
  0x17   : > { %p2916_p13 = pnand %p2914_p12, %p2902_p7 }
  0x18   : > { %p2923_p3 = por %p2922_p4, %p2921_p1 }
  0x19   : > { %p2917_p0 = pneg %p2916_p13 }
  0x1b   : > { %p2924_p2 = pnand %p2923_p3, %p2917_p0 }
  0x1d   : > { %2927 = shalt.err (!%p2924_p2)
}
  0x1e   : > { %2881 = dma.hbm_to_vmem [thread:$0]  (!%p2986_p5), %s3892_s2, 16, %s130_s16, [#allocation3]  }
  0x1f   : > { %p3898_p6 = scmp.ne.s32.totalorder %s3896_s14, 0 }
  0x20   : > { %p3899_p8 = scmp.eq.s32.totalorder (!%p3898_p6), %s2973_s13, 0 }
  0x21   : > { %150 = sbr.rel (%p3898_p6) target bundleno = 564 (0x234), region = 32 }
  0x28   : > { %2933 = dma.done.wait (%p3899_p8), [#allocation3], 16   ;;  %p3900_p7 = pmov %p3899_p8 }
  0x29   : > { %p174_p9 = scmp.lt.s32.totalorder %s2973_s13, 1  ;;  %vm708_vm0 = vcmask 1042432   ;;  %vm323_vm1 = vcmask 220160   ;;  %v312_v0 = vld [vmem:[%s3891_s1] sm:$0xff]  ;;  %v313_v1 = vld [vmem:[%s3891_s1 + $0x8] sm:$0xff]  ;;  %v314_v2 = vld [vmem:[%s3891_s1 + $0x10] sm:$0xff] }
  0x2a   : > { %2935 = vsyncadd (%p3900_p7), [#allocation3], 4294967280  ;;  %v2860_v3 = vpack.c.bf16 %v313_v1, %v312_v0  ;;  %v315_v4 = vld [vmem:[%s3891_s1 + $0x18] sm:$0x7]  ;;  %vm2941_vm2 = vmmov 1   ;;  %s2944_s16 = smov 32  }
  0x2b   : > { %s3902_s13 = smov (!%p174_p9, %s2973_s13), 1  ;;  %v2864_v7 = vpack.c.bf16 %v315_v4, %v314_v2  ;;  %vm2865_vm3 = vmpackc.low %vm708_vm0, %vm2941_vm2  ;;  %s2945_s17 = smov 64   ;;  %vm2281_vm4 = vcmask 261120   ;;  %vm2284_vm5 = vcmask 523264   ;;  %vm2287_vm6 = vcmask 785408  }
  0x2c   : > { %s2526_s29 = sshll.u32 %s3902_s13, 10  ;;  %2861 = vmatprep.subr.bf16.mxu0 %v2860_v3  ;;  %2870 = vmatprep.subr.bf16.mxu1 %v2860_v3  ;;  %s2946_s18 = smov 96  }
  0x2d   : > { %s3020_s5 = scalar_lea.vmem %s3890_s0, %s2526_s29  ;;  %2863 = vmatpush3.bf16.msra.mxu0 %v2860_v3  ;;  %2872 = vmatpush3.bf16.msra.mxu1 %v2860_v3  ;;  %s2527_s19 = sshll.u32 %s3902_s13, 6 }
  0x2e   : > { %v184_v5 = vld [vmem:[%s3020_s5] sm:$0xff]  ;;  %2866 = vmatprep.subr.msk.bf16.mxu0 %vm2865_vm3, %v2864_v7  ;;  %2871 = vmatprep.subr.msk.bf16.mxu1 %vm2865_vm3, %v2864_v7  ;;  %v185_v8 = vld [vmem:[%s3020_s5 + $0x8] sm:$0xff]  ;;  %v186_v10 = vld [vmem:[%s3020_s5 + $0x10] sm:$0xff]  ;;  %s3836_s22 = scalar_lea.vmem %s3893_s3, %s2527_s19 }
  0x2f   : > { %v248_v6 = vld [vmem:[%s3020_s5 + $0x200] sm:$0xff]  ;;  %2668 = vmatprep.mubr.msk.f32.mxu0 %vm323_vm1, %v184_v5  ;;  %v249_v9 = vld [vmem:[%s3020_s5 + $0x208] sm:$0xff]  ;;  %v250_v11 = vld [vmem:[%s3020_s5 + $0x210] sm:$0xff] }
  0x30   : > { %2764 = vmatprep.mubr.msk.f32.mxu1 %vm323_vm1, %v248_v6  ;;  %v187_v12 = vld [vmem:[%s3020_s5 + $0x18] sm:$0xff]  ;;  %v188_v14 = vld [vmem:[%s3020_s5 + $0x20] sm:$0xff]  ;;  %v189_v16 = vld [vmem:[%s3020_s5 + $0x28] sm:$0xff] }
  0x31   : > { %2869 = vmatpush3.bf16.msk.msra.mxu0 %vm2865_vm3, %v2864_v7  ;;  %2873 = vmatpush3.bf16.msk.msra.mxu1 %vm2865_vm3, %v2864_v7  ;;  %v251_v13 = vld [vmem:[%s3020_s5 + $0x218] sm:$0xff]  ;;  %v252_v15 = vld [vmem:[%s3020_s5 + $0x220] sm:$0xff]  ;;  %v253_v17 = vld [vmem:[%s3020_s5 + $0x228] sm:$0xff] }
  0x32   : > { %v190_v18 = vld [vmem:[%s3020_s5 + $0x30] sm:$0xff]  ;;  %v191_v20 = vld [vmem:[%s3020_s5 + $0x38] sm:$0xff]  ;;  %v192_v22 = vld [vmem:[%s3020_s5 + $0x40] sm:$0xff] }
  0x33   : > { %v254_v19 = vld [vmem:[%s3020_s5 + $0x230] sm:$0xff]  ;;  %v255_v21 = vld [vmem:[%s3020_s5 + $0x238] sm:$0xff]  ;;  %v256_v23 = vld [vmem:[%s3020_s5 + $0x240] sm:$0xff] }
  0x34   : > { %2669 = vmatmul.mubr.msk.f32.vlgmr.msra.gmra.mrb[0].mxu0 %vm323_vm1, %v185_v8  ;;  %2765 = vmatmul.mubr.msk.f32.vlgmr.msra.gmra.mrb[0].mxu1 %vm323_vm1, %v249_v9  ;;  %v193_v24 = vld [vmem:[%s3020_s5 + $0x48] sm:$0xff]  ;;  %v194_v26 = vld [vmem:[%s3020_s5 + $0x50] sm:$0xff]  ;;  %v195_v28 = vld [vmem:[%s3020_s5 + $0x58] sm:$0xff] }
  0x35   : > { %2671 = vmatprep.mubr.msk.f32.mxu0 %vm323_vm1, %v186_v10  ;;  %2767 = vmatprep.mubr.msk.f32.mxu1 %vm323_vm1, %v250_v11  ;;  %v257_v25 = vld [vmem:[%s3020_s5 + $0x248] sm:$0xff]  ;;  %v258_v27 = vld [vmem:[%s3020_s5 + $0x250] sm:$0xff]  ;;  %v259_v29 = vld [vmem:[%s3020_s5 + $0x258] sm:$0xff] }
  0x36   : > { %v196_v30 = vld [vmem:[%s3020_s5 + $0x60] sm:$0xff]  ;;  %v197_v32 = vld [vmem:[%s3020_s5 + $0x68] sm:$0xff]  ;;  %v198_v34 = vld [vmem:[%s3020_s5 + $0x70] sm:$0xff] }
  0x37   : > { %v260_v31 = vld [vmem:[%s3020_s5 + $0x260] sm:$0xff]  ;;  %v261_v33 = vld [vmem:[%s3020_s5 + $0x268] sm:$0xff]  ;;  %v262_v35 = vld [vmem:[%s3020_s5 + $0x270] sm:$0xff] }
  0x38   : > { %2672 = vmatmul.mubr.msk.f32.gmra.mrb[2].mxu0 %vm323_vm1, %v187_v12  ;;  %2768 = vmatmul.mubr.msk.f32.gmra.mrb[2].mxu1 %vm323_vm1, %v251_v13  ;;  %v199_v36 = vld [vmem:[%s3020_s5 + $0x78] sm:$0xff]  ;;  %v200_v38 = vld [vmem:[%s3020_s5 + $0x80] sm:$0xff]  ;;  %v201_v40 = vld [vmem:[%s3020_s5 + $0x88] sm:$0xff] }
  0x39   : > { %2674 = vmatprep.mubr.msk.f32.mxu0 %vm323_vm1, %v188_v14  ;;  %2770 = vmatprep.mubr.msk.f32.mxu1 %vm323_vm1, %v252_v15  ;;  %v263_v37 = vld [vmem:[%s3020_s5 + $0x278] sm:$0xff]  ;;  %v264_v39 = vld [vmem:[%s3020_s5 + $0x280] sm:$0xff]  ;;  %v265_v41 = vld [vmem:[%s3020_s5 + $0x288] sm:$0xff] }
  0x3a   : > { %v202_v42 = vld [vmem:[%s3020_s5 + $0x90] sm:$0xff]  ;;  %v203_v44 = vld [vmem:[%s3020_s5 + $0x98] sm:$0xff]  ;;  %v204_v46 = vld [vmem:[%s3020_s5 + $0xa0] sm:$0xff] }
  0x3b   : > { %v266_v43 = vld [vmem:[%s3020_s5 + $0x290] sm:$0xff]  ;;  %v267_v45 = vld [vmem:[%s3020_s5 + $0x298] sm:$0xff]  ;;  %v268_v47 = vld [vmem:[%s3020_s5 + $0x2a0] sm:$0xff] }
  0x3c   : > { %2675 = vmatmul.mubr.msk.f32.gmra.mrb[4].mxu0 %vm323_vm1, %v189_v16  ;;  %2771 = vmatmul.mubr.msk.f32.gmra.mrb[4].mxu1 %vm323_vm1, %v253_v17  ;;  %v205_v48 = vld [vmem:[%s3020_s5 + $0xa8] sm:$0xff]  ;;  %v206_v50 = vld [vmem:[%s3020_s5 + $0xb0] sm:$0xff]  ;;  %v207_v52 = vld [vmem:[%s3020_s5 + $0xb8] sm:$0xff] }
  0x3d   : > { %2677 = vmatprep.mubr.msk.f32.mxu0 %vm323_vm1, %v190_v18  ;;  %2773 = vmatprep.mubr.msk.f32.mxu1 %vm323_vm1, %v254_v19  ;;  %v269_v49 = vld [vmem:[%s3020_s5 + $0x2a8] sm:$0xff]  ;;  %v270_v51 = vld [vmem:[%s3020_s5 + $0x2b0] sm:$0xff]  ;;  %v271_v53 = vld [vmem:[%s3020_s5 + $0x2b8] sm:$0xff] }
  0x3e   : > { %v208_v54 = vld [vmem:[%s3020_s5 + $0xc0] sm:$0xff]  ;;  %v209_v56 = vld [vmem:[%s3020_s5 + $0xc8] sm:$0xff]  ;;  %v210_v58 = vld [vmem:[%s3020_s5 + $0xd0] sm:$0xff] }
  0x3f   : > { %v272_v55 = vld [vmem:[%s3020_s5 + $0x2c0] sm:$0xff]  ;;  %v273_v57 = vld [vmem:[%s3020_s5 + $0x2c8] sm:$0xff]  ;;  %v274_v59 = vld [vmem:[%s3020_s5 + $0x2d0] sm:$0xff] }
  0x40   : > { %2678 = vmatmul.mubr.msk.f32.gmra.mrb[6].mxu0 %vm323_vm1, %v191_v20  ;;  %2774 = vmatmul.mubr.msk.f32.gmra.mrb[6].mxu1 %vm323_vm1, %v255_v21  ;;  %v211_v60 = vld [vmem:[%s3020_s5 + $0xd8] sm:$0xff]  ;;  %v212_v62 = vld [vmem:[%s3020_s5 + $0xe0] sm:$0xff]  ;;  %v213_v0 = vld [vmem:[%s3020_s5 + $0xe8] sm:$0xff] }
  0x41   : > { %2680 = vmatprep.mubr.msk.f32.mxu0 %vm323_vm1, %v192_v22  ;;  %2776 = vmatprep.mubr.msk.f32.mxu1 %vm323_vm1, %v256_v23  ;;  %v275_v61 = vld [vmem:[%s3020_s5 + $0x2d8] sm:$0xff]  ;;  %v276_v63 = vld [vmem:[%s3020_s5 + $0x2e0] sm:$0xff]  ;;  %v277_v1 = vld [vmem:[%s3020_s5 + $0x2e8] sm:$0xff] }
  0x42   : > { %v214_v2 = vld [vmem:[%s3020_s5 + $0xf0] sm:$0xff]  ;;  %v215_v4 = vld [vmem:[%s3020_s5 + $0xf8] sm:$0xff]  ;;  %v216_v6 = vld [vmem:[%s3020_s5 + $0x100] sm:$0xff] }
  0x43   : > { %v278_v3 = vld [vmem:[%s3020_s5 + $0x2f0] sm:$0xff]  ;;  %v279_v5 = vld [vmem:[%s3020_s5 + $0x2f8] sm:$0xff]  ;;  %v280_v7 = vld [vmem:[%s3020_s5 + $0x300] sm:$0xff] }
  0x44   : > { %2681 = vmatmul.mubr.msk.f32.gmra.mrb[8].mxu0 %vm323_vm1, %v193_v24  ;;  %2777 = vmatmul.mubr.msk.f32.gmra.mrb[8].mxu1 %vm323_vm1, %v257_v25  ;;  %v217_v8 = vld [vmem:[%s3020_s5 + $0x108] sm:$0xff]  ;;  %v218_v10 = vld [vmem:[%s3020_s5 + $0x110] sm:$0xff]  ;;  %v219_v12 = vld [vmem:[%s3020_s5 + $0x118] sm:$0xff] }
  0x45   : > { %2683 = vmatprep.mubr.msk.f32.mxu0 %vm323_vm1, %v194_v26  ;;  %2779 = vmatprep.mubr.msk.f32.mxu1 %vm323_vm1, %v258_v27  ;;  %v281_v9 = vld [vmem:[%s3020_s5 + $0x308] sm:$0xff]  ;;  %v282_v11 = vld [vmem:[%s3020_s5 + $0x310] sm:$0xff]  ;;  %v283_v13 = vld [vmem:[%s3020_s5 + $0x318] sm:$0xff] }
  0x46   : > { %v220_v14 = vld [vmem:[%s3020_s5 + $0x120] sm:$0xff]  ;;  %v221_v16 = vld [vmem:[%s3020_s5 + $0x128] sm:$0xff]  ;;  %v222_v18 = vld [vmem:[%s3020_s5 + $0x130] sm:$0xff] }
  0x47   : > { %v284_v15 = vld [vmem:[%s3020_s5 + $0x320] sm:$0xff]  ;;  %v285_v17 = vld [vmem:[%s3020_s5 + $0x328] sm:$0xff]  ;;  %v286_v19 = vld [vmem:[%s3020_s5 + $0x330] sm:$0xff] }
  0x48   : > { %2684 = vmatmul.mubr.msk.f32.gmra.mrb[10].mxu0 %vm323_vm1, %v195_v28  ;;  %2780 = vmatmul.mubr.msk.f32.gmra.mrb[10].mxu1 %vm323_vm1, %v259_v29  ;;  %v223_v20 = vld [vmem:[%s3020_s5 + $0x138] sm:$0xff]  ;;  %v224_v22 = vld [vmem:[%s3020_s5 + $0x140] sm:$0xff]  ;;  %v225_v24 = vld [vmem:[%s3020_s5 + $0x148] sm:$0xff] }
  0x49   : > { %2686 = vmatprep.mubr.msk.f32.mxu0 %vm323_vm1, %v196_v30  ;;  %2782 = vmatprep.mubr.msk.f32.mxu1 %vm323_vm1, %v260_v31  ;;  %v287_v21 = vld [vmem:[%s3020_s5 + $0x338] sm:$0xff]  ;;  %v288_v23 = vld [vmem:[%s3020_s5 + $0x340] sm:$0xff]  ;;  %v289_v25 = vld [vmem:[%s3020_s5 + $0x348] sm:$0xff] }
  0x4a   : > { %v226_v26 = vld [vmem:[%s3020_s5 + $0x150] sm:$0xff]  ;;  %v227_v28 = vld [vmem:[%s3020_s5 + $0x158] sm:$0xff]  ;;  %v228_v30 = vld [vmem:[%s3020_s5 + $0x160] sm:$0xff] }
  0x4b   : > { %v290_v27 = vld [vmem:[%s3020_s5 + $0x350] sm:$0xff]  ;;  %v291_v29 = vld [vmem:[%s3020_s5 + $0x358] sm:$0xff]  ;;  %v292_v31 = vld [vmem:[%s3020_s5 + $0x360] sm:$0xff] }
  0x4c   : > { %2687 = vmatmul.mubr.msk.f32.gmra.mrb[12].mxu0 %vm323_vm1, %v197_v32  ;;  %2783 = vmatmul.mubr.msk.f32.gmra.mrb[12].mxu1 %vm323_vm1, %v261_v33  ;;  %v229_v32 = vld [vmem:[%s3020_s5 + $0x168] sm:$0xff] }
  0x4d   : > { %2689 = vmatprep.mubr.msk.f32.mxu0 %vm323_vm1, %v198_v34  ;;  %2785 = vmatprep.mubr.msk.f32.mxu1 %vm323_vm1, %v262_v35  ;;  %v293_v33 = vld [vmem:[%s3020_s5 + $0x368] sm:$0xff]  ;;  %v230_v34 = vld [vmem:[%s3020_s5 + $0x170] sm:$0xff] }
  0x4e   : > { %v294_v35 = vld [vmem:[%s3020_s5 + $0x370] sm:$0xff] }
  0x50   : > { %2690 = vmatmul.mubr.msk.f32.gmra.mrb[14].mxu0 %vm323_vm1, %v199_v36  ;;  %2786 = vmatmul.mubr.msk.f32.gmra.mrb[14].mxu1 %vm323_vm1, %v263_v37  ;;  %v231_v36 = vld [vmem:[%s3020_s5 + $0x178] sm:$0xff] }
  0x51   : > { %2692 = vmatprep.mubr.msk.f32.mxu0 %vm323_vm1, %v200_v38  ;;  %2788 = vmatprep.mubr.msk.f32.mxu1 %vm323_vm1, %v264_v39  ;;  %v295_v37 = vld [vmem:[%s3020_s5 + $0x378] sm:$0xff]  ;;  %v232_v38 = vld [vmem:[%s3020_s5 + $0x180] sm:$0xff] }
  0x52   : > { %v296_v39 = vld [vmem:[%s3020_s5 + $0x380] sm:$0xff] }
  0x54   : > { %2693 = vmatmul.mubr.msk.f32.gmra.mrb[16].mxu0 %vm323_vm1, %v201_v40  ;;  %2789 = vmatmul.mubr.msk.f32.gmra.mrb[16].mxu1 %vm323_vm1, %v265_v41  ;;  %v233_v40 = vld [vmem:[%s3020_s5 + $0x188] sm:$0xff] }
  0x55   : > { %2695 = vmatprep.mubr.msk.f32.mxu0 %vm323_vm1, %v202_v42  ;;  %2791 = vmatprep.mubr.msk.f32.mxu1 %vm323_vm1, %v266_v43  ;;  %v297_v41 = vld [vmem:[%s3020_s5 + $0x388] sm:$0xff]  ;;  %v234_v42 = vld [vmem:[%s3020_s5 + $0x190] sm:$0xff] }
  0x56   : > { %v298_v43 = vld [vmem:[%s3020_s5 + $0x390] sm:$0xff] }
  0x58   : > { %2696 = vmatmul.mubr.msk.f32.gmra.mrb[18].mxu0 %vm323_vm1, %v203_v44  ;;  %2792 = vmatmul.mubr.msk.f32.gmra.mrb[18].mxu1 %vm323_vm1, %v267_v45  ;;  %v235_v44 = vld [vmem:[%s3020_s5 + $0x198] sm:$0xff] }
  0x59   : > { %2698 = vmatprep.mubr.msk.f32.mxu0 %vm323_vm1, %v204_v46  ;;  %2794 = vmatprep.mubr.msk.f32.mxu1 %vm323_vm1, %v268_v47  ;;  %v299_v45 = vld [vmem:[%s3020_s5 + $0x398] sm:$0xff]  ;;  %v236_v46 = vld [vmem:[%s3020_s5 + $0x1a0] sm:$0xff] }
  0x5a   : > { %v300_v47 = vld [vmem:[%s3020_s5 + $0x3a0] sm:$0xff] }
  0x5c   : > { %2699 = vmatmul.mubr.msk.f32.gmra.mrb[20].mxu0 %vm323_vm1, %v205_v48  ;;  %2795 = vmatmul.mubr.msk.f32.gmra.mrb[20].mxu1 %vm323_vm1, %v269_v49  ;;  %v237_v48 = vld [vmem:[%s3020_s5 + $0x1a8] sm:$0xff] }
  0x5d   : > { %2701 = vmatprep.mubr.msk.f32.mxu0 %vm323_vm1, %v206_v50  ;;  %2797 = vmatprep.mubr.msk.f32.mxu1 %vm323_vm1, %v270_v51  ;;  %v301_v49 = vld [vmem:[%s3020_s5 + $0x3a8] sm:$0xff]  ;;  %v238_v50 = vld [vmem:[%s3020_s5 + $0x1b0] sm:$0xff] }
  0x5e   : > { %v302_v51 = vld [vmem:[%s3020_s5 + $0x3b0] sm:$0xff] }
  0x60   : > { %2702 = vmatmul.mubr.msk.f32.gmra.mrb[22].mxu0 %vm323_vm1, %v207_v52  ;;  %2798 = vmatmul.mubr.msk.f32.gmra.mrb[22].mxu1 %vm323_vm1, %v271_v53  ;;  %v239_v52 = vld [vmem:[%s3020_s5 + $0x1b8] sm:$0xff] }
  0x61   : > { %2704 = vmatprep.mubr.msk.f32.mxu0 %vm323_vm1, %v208_v54  ;;  %2800 = vmatprep.mubr.msk.f32.mxu1 %vm323_vm1, %v272_v55  ;;  %v303_v53 = vld [vmem:[%s3020_s5 + $0x3b8] sm:$0xff]  ;;  %v240_v54 = vld [vmem:[%s3020_s5 + $0x1c0] sm:$0xff] }
  0x62   : > { %v304_v55 = vld [vmem:[%s3020_s5 + $0x3c0] sm:$0xff] }
  0x64   : > { %2705 = vmatmul.mubr.msk.f32.gmra.mrb[24].mxu0 %vm323_vm1, %v209_v56  ;;  %2801 = vmatmul.mubr.msk.f32.gmra.mrb[24].mxu1 %vm323_vm1, %v273_v57  ;;  %v241_v56 = vld [vmem:[%s3020_s5 + $0x1c8] sm:$0xff] }
  0x65   : > { %2707 = vmatprep.mubr.msk.f32.mxu0 %vm323_vm1, %v210_v58  ;;  %2803 = vmatprep.mubr.msk.f32.mxu1 %vm323_vm1, %v274_v59  ;;  %v305_v57 = vld [vmem:[%s3020_s5 + $0x3c8] sm:$0xff]  ;;  %v242_v58 = vld [vmem:[%s3020_s5 + $0x1d0] sm:$0xff] }
  0x66   : > { %v306_v59 = vld [vmem:[%s3020_s5 + $0x3d0] sm:$0xff] }
  0x68   : > { %2708 = vmatmul.mubr.msk.f32.gmra.mrb[26].mxu0 %vm323_vm1, %v211_v60  ;;  %2804 = vmatmul.mubr.msk.f32.gmra.mrb[26].mxu1 %vm323_vm1, %v275_v61  ;;  %v243_v60 = vld [vmem:[%s3020_s5 + $0x1d8] sm:$0xff] }
  0x69   : > { %2710 = vmatprep.mubr.msk.f32.mxu0 %vm323_vm1, %v212_v62  ;;  %2806 = vmatprep.mubr.msk.f32.mxu1 %vm323_vm1, %v276_v63  ;;  %v307_v61 = vld [vmem:[%s3020_s5 + $0x3d8] sm:$0xff]  ;;  %v244_v62 = vld [vmem:[%s3020_s5 + $0x1e0] sm:$0xff] }
  0x6a   : > { %v308_v63 = vld [vmem:[%s3020_s5 + $0x3e0] sm:$0xff] }
  0x6c   : > { %2711 = vmatmul.mubr.msk.f32.gmra.mrb[28].mxu0 %vm323_vm1, %v213_v0  ;;  %2807 = vmatmul.mubr.msk.f32.gmra.mrb[28].mxu1 %vm323_vm1, %v277_v1  ;;  %v245_v0 = vld [vmem:[%s3020_s5 + $0x1e8] sm:$0xff] }
  0x6d   : > { %2713 = vmatprep.mubr.msk.f32.mxu0 %vm323_vm1, %v214_v2  ;;  %2809 = vmatprep.mubr.msk.f32.mxu1 %vm323_vm1, %v278_v3  ;;  %v309_v1 = vld [vmem:[%s3020_s5 + $0x3e8] sm:$0xff]  ;;  %v246_v2 = vld [vmem:[%s3020_s5 + $0x1f0] sm:$0xff] }
  0x6e   : > { %v310_v3 = vld [vmem:[%s3020_s5 + $0x3f0] sm:$0xff] }
  0x70   : > { %2714 = vmatmul.mubr.msk.f32.gmra.mrb[30].mxu0 %vm323_vm1, %v215_v4  ;;  %2810 = vmatmul.mubr.msk.f32.gmra.mrb[30].mxu1 %vm323_vm1, %v279_v5  ;;  %v247_v4 = vld [vmem:[%s3020_s5 + $0x1f8] sm:$0xff] }
  0x71   : > { %2716 = vmatprep.mubr.msk.f32.mxu0 %vm323_vm1, %v216_v6  ;;  %2812 = vmatprep.mubr.msk.f32.mxu1 %vm323_vm1, %v280_v7  ;;  %v311_v5 = vld [vmem:[%s3020_s5 + $0x3f8] sm:$0xff]  ;;  %v3290_v6 = vld [vmem:[#allocation2] ss:$0 sm:$0xff] }
  0x74   : > { %2717 = vmatmul.mubr.msk.f32.gmra.mrb[32].mxu0 %vm323_vm1, %v217_v8  ;;  %2813 = vmatmul.mubr.msk.f32.gmra.mrb[32].mxu1 %vm323_vm1, %v281_v9 }
  0x75   : > { %2719 = vmatprep.mubr.msk.f32.mxu0 %vm323_vm1, %v218_v10  ;;  %2815 = vmatprep.mubr.msk.f32.mxu1 %vm323_vm1, %v282_v11 }
  0x78   : > { %2720 = vmatmul.mubr.msk.f32.gmra.mrb[34].mxu0 %vm323_vm1, %v219_v12  ;;  %2816 = vmatmul.mubr.msk.f32.gmra.mrb[34].mxu1 %vm323_vm1, %v283_v13 }
  0x79   : > { %2722 = vmatprep.mubr.msk.f32.mxu0 %vm323_vm1, %v220_v14  ;;  %2818 = vmatprep.mubr.msk.f32.mxu1 %vm323_vm1, %v284_v15 }
  0x7c   : > { %2723 = vmatmul.mubr.msk.f32.gmra.mrb[36].mxu0 %vm323_vm1, %v221_v16  ;;  %2819 = vmatmul.mubr.msk.f32.gmra.mrb[36].mxu1 %vm323_vm1, %v285_v17 }
  0x7d   : > { %2725 = vmatprep.mubr.msk.f32.mxu0 %vm323_vm1, %v222_v18  ;;  %2821 = vmatprep.mubr.msk.f32.mxu1 %vm323_vm1, %v286_v19 }
  0x80   : > { %2726 = vmatmul.mubr.msk.f32.gmra.mrb[38].mxu0 %vm323_vm1, %v223_v20  ;;  %2822 = vmatmul.mubr.msk.f32.gmra.mrb[38].mxu1 %vm323_vm1, %v287_v21 }
  0x81   : > { %2728 = vmatprep.mubr.msk.f32.mxu0 %vm323_vm1, %v224_v22  ;;  %2824 = vmatprep.mubr.msk.f32.mxu1 %vm323_vm1, %v288_v23 }
  0x84   : > { %2729 = vmatmul.mubr.msk.f32.gmra.mrb[40].mxu0 %vm323_vm1, %v225_v24  ;;  %2825 = vmatmul.mubr.msk.f32.gmra.mrb[40].mxu1 %vm323_vm1, %v289_v25 }
  0x85   : > { %2731 = vmatprep.mubr.msk.f32.mxu0 %vm323_vm1, %v226_v26  ;;  %2827 = vmatprep.mubr.msk.f32.mxu1 %vm323_vm1, %v290_v27 }
  0x88   : > { %2732 = vmatmul.mubr.msk.f32.gmra.mrb[42].mxu0 %vm323_vm1, %v227_v28  ;;  %2828 = vmatmul.mubr.msk.f32.gmra.mrb[42].mxu1 %vm323_vm1, %v291_v29 }
  0x89   : > { %2734 = vmatprep.mubr.msk.f32.mxu0 %vm323_vm1, %v228_v30  ;;  %2830 = vmatprep.mubr.msk.f32.mxu1 %vm323_vm1, %v292_v31 }
  0x8c   : > { %2735 = vmatmul.mubr.msk.f32.gmra.mrb[44].mxu0 %vm323_vm1, %v229_v32  ;;  %2831 = vmatmul.mubr.msk.f32.gmra.mrb[44].mxu1 %vm323_vm1, %v293_v33 }
  0x8d   : > { %2737 = vmatprep.mubr.msk.f32.mxu0 %vm323_vm1, %v230_v34  ;;  %2833 = vmatprep.mubr.msk.f32.mxu1 %vm323_vm1, %v294_v35 }
  0x90   : > { %2738 = vmatmul.mubr.msk.f32.gmra.mrb[46].mxu0 %vm323_vm1, %v231_v36  ;;  %2834 = vmatmul.mubr.msk.f32.gmra.mrb[46].mxu1 %vm323_vm1, %v295_v37 }
  0x91   : > { %2740 = vmatprep.mubr.msk.f32.mxu0 %vm323_vm1, %v232_v38  ;;  %2836 = vmatprep.mubr.msk.f32.mxu1 %vm323_vm1, %v296_v39 }
  0x94   : > { %2741 = vmatmul.mubr.msk.f32.gmra.mrb[48].mxu0 %vm323_vm1, %v233_v40  ;;  %2837 = vmatmul.mubr.msk.f32.gmra.mrb[48].mxu1 %vm323_vm1, %v297_v41 }
  0x95   : > { %2743 = vmatprep.mubr.msk.f32.mxu0 %vm323_vm1, %v234_v42  ;;  %2839 = vmatprep.mubr.msk.f32.mxu1 %vm323_vm1, %v298_v43 }
  0x98   : > { %2744 = vmatmul.mubr.msk.f32.gmra.mrb[50].mxu0 %vm323_vm1, %v235_v44  ;;  %2840 = vmatmul.mubr.msk.f32.gmra.mrb[50].mxu1 %vm323_vm1, %v299_v45 }
  0x99   : > { %2746 = vmatprep.mubr.msk.f32.mxu0 %vm323_vm1, %v236_v46  ;;  %2842 = vmatprep.mubr.msk.f32.mxu1 %vm323_vm1, %v300_v47 }
  0x9c   : > { %2747 = vmatmul.mubr.msk.f32.gmra.mrb[52].mxu0 %vm323_vm1, %v237_v48  ;;  %2843 = vmatmul.mubr.msk.f32.gmra.mrb[52].mxu1 %vm323_vm1, %v301_v49 }
  0x9d   : > { %2749 = vmatprep.mubr.msk.f32.mxu0 %vm323_vm1, %v238_v50  ;;  %2845 = vmatprep.mubr.msk.f32.mxu1 %vm323_vm1, %v302_v51 }
  0xa0   : > { %2750 = vmatmul.mubr.msk.f32.gmra.mrb[54].mxu0 %vm323_vm1, %v239_v52  ;;  %2846 = vmatmul.mubr.msk.f32.gmra.mrb[54].mxu1 %vm323_vm1, %v303_v53 }
  0xa1   : > { %2752 = vmatprep.mubr.msk.f32.mxu0 %vm323_vm1, %v240_v54  ;;  %2848 = vmatprep.mubr.msk.f32.mxu1 %vm323_vm1, %v304_v55 }
  0xa4   : > { %2753 = vmatmul.mubr.msk.f32.gmra.mrb[56].mxu0 %vm323_vm1, %v241_v56  ;;  %2849 = vmatmul.mubr.msk.f32.gmra.mrb[56].mxu1 %vm323_vm1, %v305_v57 }
  0xa5   : > { %2755 = vmatprep.mubr.msk.f32.mxu0 %vm323_vm1, %v242_v58  ;;  %2851 = vmatprep.mubr.msk.f32.mxu1 %vm323_vm1, %v306_v59 }
  0xa8   : > { %2756 = vmatmul.mubr.msk.f32.gmra.mrb[58].mxu0 %vm323_vm1, %v243_v60  ;;  %2852 = vmatmul.mubr.msk.f32.gmra.mrb[58].mxu1 %vm323_vm1, %v307_v61 }
  0xa9   : > { %2758 = vmatprep.mubr.msk.f32.mxu0 %vm323_vm1, %v244_v62  ;;  %2854 = vmatprep.mubr.msk.f32.mxu1 %vm323_vm1, %v308_v63 }
  0xac   : > { %2759 = vmatmul.mubr.msk.f32.gmra.mrb[60].mxu0 %vm323_vm1, %v245_v0  ;;  %2855 = vmatmul.mubr.msk.f32.gmra.mrb[60].mxu1 %vm323_vm1, %v309_v1 }
  0xad   : > { %2761 = vmatprep.mubr.msk.f32.mxu0 %vm323_vm1, %v246_v2  ;;  %2857 = vmatprep.mubr.msk.f32.mxu1 %vm323_vm1, %v310_v3 }
  0xb0   : > { %2762 = vmatmul.mubr.msk.f32.gmra.mrb[62].mxu0 %vm323_vm1, %v247_v4  ;;  %2858 = vmatmul.mubr.msk.f32.gmra.mrb[62].mxu1 %vm323_vm1, %v311_v5 }
 0x107   : > { %v2670_v7 = vpop.f32.mrb[0].mxu0  ;;  %v2766_v8 = vpop.f32.mrb[0].mxu1 }
 0x108   : > { %v784_v9 = vadd.f32 %v2670_v7, %v3290_v6  ;;  %v1104_v10 = vadd.f32 %v2766_v8, %v3290_v6  ;;  %v778_v11 = vpop.f32.mrb[1].mxu0  ;;  %v1098_v12 = vpop.f32.mrb[1].mxu1 }
 0x109   : > { %v779_v13 = vadd.f32 %v3290_v6, %v778_v11  ;;  %v1099_v14 = vadd.f32 %v3290_v6, %v1098_v12 }
 0x10a   : > { %v1418_v15 = vmax.f32 %v784_v9, 0.0  ;;  %v1482_v16 = vmax.f32 %v1104_v10, 0.0 }
 0x10b   : > { %v1417_v17 = vmax.f32 %v779_v13, 0.0  ;;  %v1481_v18 = vmax.f32 %v1099_v14, 0.0  ;;  %v2673_v19 = vpop.f32.mrb[2].mxu0  ;;  %v2769_v20 = vpop.f32.mrb[2].mxu1 }
 0x10c   : > { %v1546_v21 = vmax.f32 %v1418_v15, %v1482_v16  ;;  %v794_v22 = vadd.f32 %v2673_v19, %v3290_v6  ;;  %v1114_v23 = vadd.f32 %v2769_v20, %v3290_v6  ;;  %v788_v24 = vpop.f32.mrb[3].mxu0  ;;  %v1108_v25 = vpop.f32.mrb[3].mxu1 }
 0x10d   : > { %v1545_v26 = vmax.f32 %v1417_v17, %v1481_v18  ;;  %v789_v27 = vadd.f32 %v3290_v6, %v788_v24  ;;  %v1109_v28 = vadd.f32 %v3290_v6, %v1108_v25 }
 0x10e   : > { %v1420_v29 = vmax.f32 %v794_v22, 0.0  ;;  %v1484_v30 = vmax.f32 %v1114_v23, 0.0 }
 0x10f   : > { %v1419_v31 = vmax.f32 %v789_v27, 0.0  ;;  %v1483_v32 = vmax.f32 %v1109_v28, 0.0  ;;  %v2676_v33 = vpop.f32.mrb[4].mxu0  ;;  %v2772_v34 = vpop.f32.mrb[4].mxu1  ;;  %v2942_v28 = vmov 1983009808  }
 0x110   : > { %v1548_v35 = vmax.f32 %v1420_v29, %v1484_v30  ;;  %v804_v36 = vadd.f32 %v2676_v33, %v3290_v6  ;;  %v1124_v37 = vadd.f32 %v2772_v34, %v3290_v6  ;;  %v798_v38 = vpop.f32.mrb[5].mxu0  ;;  %v1118_v39 = vpop.f32.mrb[5].mxu1  ;;  %v1644_v29 = vunpack.c.l.s4 %v2942_v28 }
 0x111   : > { %v1547_v40 = vmax.f32 %v1419_v31, %v1483_v32  ;;  %v799_v41 = vadd.f32 %v3290_v6, %v798_v38  ;;  %v1119_v42 = vadd.f32 %v3290_v6, %v1118_v39  ;;  %v1646_v30 = vlaneseq }
 0x112   : > { %v3304_v43 = vmax.f32 %v1546_v21, %v1548_v35  ;;  %v1422_v44 = vmax.f32 %v804_v36, 0.0  ;;  %v1486_v45 = vmax.f32 %v1124_v37, 0.0 }
 0x113   : > { %v3306_v46 = vmax.f32 %v1545_v26, %v1547_v40  ;;  %v1421_v47 = vmax.f32 %v799_v41, 0.0  ;;  %v1485_v48 = vmax.f32 %v1119_v42, 0.0  ;;  %v2679_v49 = vpop.f32.mrb[6].mxu0  ;;  %v2775_v50 = vpop.f32.mrb[6].mxu1 }
 0x114   : > { %v1550_v51 = vmax.f32 %v1422_v44, %v1486_v45  ;;  %v814_v52 = vadd.f32 %v2679_v49, %v3290_v6  ;;  %v1134_v53 = vadd.f32 %v2775_v50, %v3290_v6  ;;  %v808_v54 = vpop.f32.mrb[7].mxu0  ;;  %v1128_v55 = vpop.f32.mrb[7].mxu1  ;;  %v1645_v45 = vunpack.c.0.s8 %v1644_v29 }
 0x115   : > { %v1549_v56 = vmax.f32 %v1421_v47, %v1485_v48  ;;  %v809_v57 = vadd.f32 %v3290_v6, %v808_v54  ;;  %v1129_v58 = vadd.f32 %v3290_v6, %v1128_v55  ;;  %v3330_v49 = vshrl.u32 %v1646_v30, 7 }
 0x116   : > { %v1424_v59 = vmax.f32 %v814_v52, 0.0  ;;  %v1488_v60 = vmax.f32 %v1134_v53, 0.0 }
 0x117   : > { %v1423_v61 = vmax.f32 %v809_v57, 0.0  ;;  %v1487_v62 = vmax.f32 %v1129_v58, 0.0  ;;  %v2682_v63 = vpop.f32.mrb[8].mxu0  ;;  %v2778_v0 = vpop.f32.mrb[8].mxu1 }
 0x118   : > { %v1552_v1 = vmax.f32 %v1424_v59, %v1488_v60  ;;  %v824_v2 = vadd.f32 %v2682_v63, %v3290_v6  ;;  %v1144_v3 = vadd.f32 %v2778_v0, %v3290_v6  ;;  %v818_v4 = vpop.f32.mrb[9].mxu0  ;;  %v1138_v5 = vpop.f32.mrb[9].mxu1 }
 0x119   : > { %v1551_v7 = vmax.f32 %v1423_v61, %v1487_v62  ;;  %v819_v8 = vadd.f32 %v3290_v6, %v818_v4  ;;  %v1139_v9 = vadd.f32 %v3290_v6, %v1138_v5  ;;  %v3347_v4 = vsub.s32 %v1645_v45, %v3330_v49 }
 0x11a   : > { %v3316_v10 = vmax.f32 %v1550_v51, %v1552_v1  ;;  %v1426_v11 = vmax.f32 %v824_v2, 0.0  ;;  %v1490_v12 = vmax.f32 %v1144_v3, 0.0 }
 0x11b   : > { %v3318_v13 = vmax.f32 %v1549_v56, %v1551_v7  ;;  %v1425_v14 = vmax.f32 %v819_v8, 0.0  ;;  %v1489_v15 = vmax.f32 %v1139_v9, 0.0  ;;  %v2685_v16 = vpop.f32.mrb[10].mxu0  ;;  %v2781_v17 = vpop.f32.mrb[10].mxu1 }
 0x11c   : > { %v1554_v18 = vmax.f32 %v1426_v11, %v1490_v12  ;;  %v834_v19 = vadd.f32 %v2685_v16, %v3290_v6  ;;  %v1154_v20 = vadd.f32 %v2781_v17, %v3290_v6  ;;  %v828_v21 = vpop.f32.mrb[11].mxu0  ;;  %v1148_v22 = vpop.f32.mrb[11].mxu1 }
 0x11d   : > { %v1553_v23 = vmax.f32 %v1425_v14, %v1489_v15  ;;  %v829_v24 = vadd.f32 %v3290_v6, %v828_v21  ;;  %v1149_v25 = vadd.f32 %v3290_v6, %v1148_v22 }
 0x11e   : > { %v1428_v26 = vmax.f32 %v834_v19, 0.0  ;;  %v1492_v27 = vmax.f32 %v1154_v20, 0.0 }
 0x11f   : > { %v1427_v31 = vmax.f32 %v829_v24, 0.0  ;;  %v1491_v32 = vmax.f32 %v1149_v25, 0.0  ;;  %v2688_v33 = vpop.f32.mrb[12].mxu0  ;;  %v2784_v34 = vpop.f32.mrb[12].mxu1 }
 0x120   : > { %v1556_v35 = vmax.f32 %v1428_v26, %v1492_v27  ;;  %v844_v36 = vadd.f32 %v2688_v33, %v3290_v6  ;;  %v1164_v37 = vadd.f32 %v2784_v34, %v3290_v6  ;;  %v838_v38 = vpop.f32.mrb[13].mxu0  ;;  %v1158_v39 = vpop.f32.mrb[13].mxu1 }
 0x121   : > { %v1555_v40 = vmax.f32 %v1427_v31, %v1491_v32  ;;  %v839_v41 = vadd.f32 %v3290_v6, %v838_v38  ;;  %v1159_v42 = vadd.f32 %v3290_v6, %v1158_v39 }
 0x122   : > { %v3328_v44 = vmax.f32 %v1554_v18, %v1556_v35  ;;  %v1430_v47 = vmax.f32 %v844_v36, 0.0  ;;  %v1494_v48 = vmax.f32 %v1164_v37, 0.0 }
 0x123   : > { %v3332_v50 = vmax.f32 %v1553_v23, %v1555_v40  ;;  %v1429_v51 = vmax.f32 %v839_v41, 0.0  ;;  %v1493_v52 = vmax.f32 %v1159_v42, 0.0  ;;  %v2691_v53 = vpop.f32.mrb[14].mxu0  ;;  %v2787_v54 = vpop.f32.mrb[14].mxu1  ;;  %v2943_v23 = vmov 1934713408  }
 0x124   : > { %v1913_v55 = vcombine.low %v3304_v43, %v3328_v44  ;;  %v1914_v56 = vcombine.high %v3304_v43, %v3328_v44  ;;  %v1558_v57 = vmax.f32 %v1430_v47, %v1494_v48  ;;  %v854_v58 = vadd.f32 %v2691_v53, %v3290_v6  ;;  %v848_v59 = vpop.f32.mrb[15].mxu0  ;;  %v1168_v60 = vpop.f32.mrb[15].mxu1 }
 0x125   : > { %v1641_v61 = vcombine.low %v3306_v46, %v3332_v50  ;;  %v1642_v62 = vcombine.high %v3306_v46, %v3332_v50  ;;  %v1557_v63 = vmax.f32 %v1429_v51, %v1493_v52  ;;  %v1174_v0 = vadd.f32 %v2787_v54, %v3290_v6 }
 0x126   : > { %v1432_v1 = vmax.f32 %v854_v58, 0.0  ;;  %v849_v2 = vadd.f32 %v3290_v6, %v848_v59  ;;  %v1169_v3 = vadd.f32 %v3290_v6, %v1168_v60  ;;  %v3353_v24 = vunpack.c.l.s4 %v2943_v23 }
 0x127   : > { %v1496_v5 = vmax.f32 %v1174_v0, 0.0  ;;  %v2694_v7 = vpop.f32.mrb[16].mxu0  ;;  %v2790_v8 = vpop.f32.mrb[16].mxu1  ;;  %v3356_v30 = vrot.slane %v1913_v55, %v3347_v4  ;;  %v3370_v55 = vrot.slane %v1642_v62, %v3347_v4 }
 0x128   : > { %v1431_v9 = vmax.f32 %v849_v2, 0.0  ;;  %v1495_v11 = vmax.f32 %v1169_v3, 0.0  ;;  %v864_v12 = vadd.f32 %v2694_v7, %v3290_v6  ;;  %v1184_v14 = vadd.f32 %v2790_v8, %v3290_v6  ;;  %v858_v15 = vpop.f32.mrb[17].mxu0  ;;  %v1178_v16 = vpop.f32.mrb[17].mxu1 }
 0x129   : > { %v1560_v17 = vmax.f32 %v1432_v1, %v1496_v5  ;;  %v859_v18 = vadd.f32 %v3290_v6, %v858_v15  ;;  %v1179_v19 = vadd.f32 %v3290_v6, %v1178_v16  ;;  %v3390_v8 = vrot.slane %v1914_v56, %v3347_v4 }
 0x12a   : > { %v1559_v20 = vmax.f32 %v1431_v9, %v1495_v11  ;;  %v1434_v21 = vmax.f32 %v864_v12, 0.0  ;;  %v1498_v22 = vmax.f32 %v1184_v14, 0.0 }
 0x12b   : > { %v1616_v25 = vmax.f32 %v1558_v57, %v1560_v17  ;;  %v1433_v26 = vmax.f32 %v859_v18, 0.0  ;;  %v1497_v27 = vmax.f32 %v1179_v19, 0.0  ;;  %v2697_v28 = vpop.f32.mrb[18].mxu0  ;;  %v2793_v29 = vpop.f32.mrb[18].mxu1 }
 0x12c   : > { %v1615_v31 = vmax.f32 %v1557_v63, %v1559_v20  ;;  %v1562_v32 = vmax.f32 %v1434_v21, %v1498_v22  ;;  %v874_v33 = vadd.f32 %v2697_v28, %v3290_v6  ;;  %v1194_v34 = vadd.f32 %v2793_v29, %v3290_v6  ;;  %v868_v35 = vpop.f32.mrb[19].mxu0  ;;  %v1188_v36 = vpop.f32.mrb[19].mxu1 }
 0x12d   : > { %v1929_v37 = vcombine.low %v3316_v10, %v1616_v25  ;;  %v1930_v38 = vcombine.high %v3316_v10, %v1616_v25  ;;  %v1561_v39 = vmax.f32 %v1433_v26, %v1497_v27  ;;  %v869_v40 = vadd.f32 %v3290_v6, %v868_v35 }
 0x12e   : > { %v1657_v41 = vcombine.low %v3318_v13, %v1615_v31  ;;  %v1658_v42 = vcombine.high %v3318_v13, %v1615_v31  ;;  %v1436_v45 = vmax.f32 %v874_v33, 0.0  ;;  %v1500_v47 = vmax.f32 %v1194_v34, 0.0 }
 0x12f   : > { %v1435_v48 = vmax.f32 %v869_v40, 0.0  ;;  %v1189_v51 = vadd.f32 %v3290_v6, %v1188_v36  ;;  %v2700_v52 = vpop.f32.mrb[20].mxu0  ;;  %v2796_v53 = vpop.f32.mrb[20].mxu1  ;;  %v3367_v54 = vrot.slane %v1929_v37, %v3347_v4  ;;  %v3373_v10 = vrot.slane %v1930_v38, %v3347_v4 }
 0x130   : > { %v1564_v57 = vmax.f32 %v1436_v45, %v1500_v47  ;;  %v884_v58 = vadd.f32 %v2700_v52, %v3290_v6  ;;  %v1204_v13 = vadd.f32 %v2796_v53, %v3290_v6  ;;  %v878_v59 = vpop.f32.mrb[21].mxu0  ;;  %v1198_v60 = vpop.f32.mrb[21].mxu1  ;;  %v3384_v7 = vrot.slane %v1658_v42, %v3347_v4 }
 0x131   : > { %v1499_v63 = vmax.f32 %v1189_v51, 0.0  ;;  %v879_v0 = vadd.f32 %v3290_v6, %v878_v59  ;;  %v1199_v1 = vadd.f32 %v3290_v6, %v1198_v60  ;;  %v1977_v2 = vcombine.low %v3356_v30, %v3367_v54 }
 0x132   : > { %v3381_v62 = vmax.f32 %v1562_v32, %v1564_v57  ;;  %v1438_v3 = vmax.f32 %v884_v58, 0.0  ;;  %v1502_v5 = vmax.f32 %v1204_v13, 0.0  ;;  %v1721_v21 = vcombine.low %v3370_v55, %v3384_v7 }
 0x133   : > { %v1563_v9 = vmax.f32 %v1435_v48, %v1499_v63  ;;  %v1437_v11 = vmax.f32 %v879_v0, 0.0  ;;  %v1501_v12 = vmax.f32 %v1199_v1, 0.0  ;;  %v2703_v14 = vpop.f32.mrb[22].mxu0  ;;  %v2799_v15 = vpop.f32.mrb[22].mxu1  ;;  %v3401_v23 = vrot.slane %v1657_v41, %v3347_v4 }
 0x134   : > { %v1566_v16 = vmax.f32 %v1438_v3, %v1502_v5  ;;  %v894_v17 = vadd.f32 %v2703_v14, %v3290_v6  ;;  %v1214_v18 = vadd.f32 %v2799_v15, %v3290_v6  ;;  %v888_v19 = vpop.f32.mrb[23].mxu0  ;;  %v1208_v20 = vpop.f32.mrb[23].mxu1  ;;  %v1993_v27 = vcombine.low %v3390_v8, %v3373_v10 }
 0x135   : > { %v3396_v22 = vmax.f32 %v1561_v39, %v1563_v9  ;;  %v1565_v43 = vmax.f32 %v1437_v11, %v1501_v12  ;;  %v889_v44 = vadd.f32 %v3290_v6, %v888_v19  ;;  %v1209_v56 = vadd.f32 %v3290_v6, %v1208_v20 }
 0x136   : > { %v1440_v25 = vmax.f32 %v894_v17, 0.0  ;;  %v1504_v26 = vmax.f32 %v1214_v18, 0.0  ;;  %v1978_v33 = vcombine.high %v3356_v30, %v3367_v54  ;;  %v1994_v34 = vcombine.high %v3390_v8, %v3373_v10 }
 0x137   : > { %v1439_v28 = vmax.f32 %v889_v44, 0.0  ;;  %v1503_v29 = vmax.f32 %v1209_v56, 0.0  ;;  %v2706_v31 = vpop.f32.mrb[24].mxu0  ;;  %v2802_v32 = vpop.f32.mrb[24].mxu1  ;;  %v1709_v40 = vunpack.c.0.s8 %v3353_v24  ;;  %v3416_v41 = vrot.slane %v1641_v61, %v3347_v4 }
 0x138   : > { %v1568_v35 = vmax.f32 %v1440_v25, %v1504_v26  ;;  %v904_v36 = vadd.f32 %v2706_v31, %v3290_v6  ;;  %v1224_v37 = vadd.f32 %v2802_v32, %v3290_v6  ;;  %v898_v38 = vpop.f32.mrb[25].mxu0  ;;  %v1218_v39 = vpop.f32.mrb[25].mxu1  ;;  %v1722_v14 = vcombine.high %v3370_v55, %v3384_v7 }
 0x139   : > { %v1567_v42 = vmax.f32 %v1439_v28, %v1503_v29  ;;  %v899_v45 = vadd.f32 %v3290_v6, %v898_v38  ;;  %v1219_v47 = vadd.f32 %v3290_v6, %v1218_v39  ;;  %v1705_v46 = vcombine.low %v3416_v41, %v3401_v23 }
 0x13a   : > { %v3420_v48 = vmax.f32 %v1566_v16, %v1568_v35  ;;  %v1442_v51 = vmax.f32 %v904_v36, 0.0  ;;  %v1506_v52 = vmax.f32 %v1224_v37, 0.0  ;;  %v1706_v0 = vcombine.high %v3416_v41, %v3401_v23 }
 0x13b   : > { %v3422_v53 = vmax.f32 %v1565_v43, %v1567_v42  ;;  %v1441_v57 = vmax.f32 %v899_v45, 0.0  ;;  %v1505_v58 = vmax.f32 %v1219_v47, 0.0  ;;  %v2709_v24 = vpop.f32.mrb[26].mxu0  ;;  %v2805_v13 = vpop.f32.mrb[26].mxu1  ;;  %v3433_v9 = vsub.s32 %v1709_v40, %v3330_v49 }
 0x13c   : > { %v1570_v50 = vmax.f32 %v1442_v51, %v1506_v52  ;;  %v914_v61 = vadd.f32 %v2709_v24, %v3290_v6  ;;  %v1234_v59 = vadd.f32 %v2805_v13, %v3290_v6  ;;  %v908_v60 = vpop.f32.mrb[27].mxu0  ;;  %v1228_v63 = vpop.f32.mrb[27].mxu1 }
 0x13d   : > { %v1569_v1 = vmax.f32 %v1441_v57, %v1505_v58  ;;  %v909_v3 = vadd.f32 %v3290_v6, %v908_v60  ;;  %v1229_v5 = vadd.f32 %v3290_v6, %v1228_v63  ;;  %v3445_v28 = vrot.slane %v1977_v2, %v3433_v9 }
 0x13e   : > { %v1444_v11 = vmax.f32 %v914_v61, 0.0  ;;  %v1508_v12 = vmax.f32 %v1234_v59, 0.0  ;;  %v3451_v35 = vrot.slane %v1721_v21, %v3433_v9  ;;  %v3454_v42 = vrot.slane %v1993_v27, %v3433_v9 }
 0x13f   : > { %v1443_v15 = vmax.f32 %v909_v3, 0.0  ;;  %v1507_v16 = vmax.f32 %v1229_v5, 0.0  ;;  %v2712_v17 = vpop.f32.mrb[28].mxu0  ;;  %v2808_v18 = vpop.f32.mrb[28].mxu1  ;;  %v3480_v3 = vrot.slane %v1705_v46, %v3433_v9 }
 0x140   : > { %v1572_v19 = vmax.f32 %v1444_v11, %v1508_v12  ;;  %v924_v20 = vadd.f32 %v2712_v17, %v3290_v6  ;;  %v1244_v43 = vadd.f32 %v2808_v18, %v3290_v6  ;;  %v918_v44 = vpop.f32.mrb[29].mxu0  ;;  %v1238_v56 = vpop.f32.mrb[29].mxu1 }
 0x141   : > { %v1571_v25 = vmax.f32 %v1443_v15, %v1507_v16  ;;  %v919_v49 = vadd.f32 %v3290_v6, %v918_v44  ;;  %v1239_v26 = vadd.f32 %v3290_v6, %v1238_v56 }
 0x142   : > { %v1622_v29 = vmax.f32 %v1570_v50, %v1572_v19  ;;  %v1446_v31 = vmax.f32 %v924_v20, 0.0  ;;  %v1510_v32 = vmax.f32 %v1244_v43, 0.0 }
 0x143   : > { %v1621_v36 = vmax.f32 %v1569_v1, %v1571_v25  ;;  %v1445_v37 = vmax.f32 %v919_v49, 0.0  ;;  %v1509_v38 = vmax.f32 %v1239_v26, 0.0  ;;  %v2715_v39 = vpop.f32.mrb[30].mxu0  ;;  %v2811_v40 = vpop.f32.mrb[30].mxu1  ;;  %v3477_v1 = vrot.slane %v1994_v34, %v3433_v9 }
 0x144   : > { %v1945_v2 = vcombine.low %v3381_v62, %v1622_v29  ;;  %v1946_v45 = vcombine.high %v3381_v62, %v1622_v29  ;;  %v1574_v47 = vmax.f32 %v1446_v31, %v1510_v32  ;;  %v934_v51 = vadd.f32 %v2715_v39, %v3290_v6  ;;  %v928_v52 = vpop.f32.mrb[31].mxu0  ;;  %v1248_v57 = vpop.f32.mrb[31].mxu1 }
 0x145   : > { %v1673_v21 = vcombine.low %v3396_v22, %v1621_v36  ;;  %v1674_v58 = vcombine.high %v3396_v22, %v1621_v36  ;;  %v1573_v24 = vmax.f32 %v1445_v37, %v1509_v38  ;;  %v1254_v13 = vadd.f32 %v2811_v40, %v3290_v6 }
 0x146   : > { %v1448_v50 = vmax.f32 %v934_v51, 0.0  ;;  %v929_v27 = vadd.f32 %v3290_v6, %v928_v52  ;;  %v1249_v61 = vadd.f32 %v3290_v6, %v1248_v57  ;;  %v3468_v62 = vrot.slane %v1978_v33, %v3433_v9 }
 0x147   : > { %v3471_v59 = vrot.slane %v1946_v45, %v3347_v4  ;;  %v1512_v60 = vmax.f32 %v1254_v13, 0.0  ;;  %v2718_v63 = vpop.f32.mrb[32].mxu0  ;;  %v2814_v22 = vpop.f32.mrb[32].mxu1  ;;  %v3485_v15 = vrot.slane %v1673_v21, %v3347_v4  ;;  %v3490_v18 = vrot.slane %v1945_v2, %v3347_v4 }
 0x148   : > { %v1447_v5 = vmax.f32 %v929_v27, 0.0  ;;  %v1511_v11 = vmax.f32 %v1249_v61, 0.0  ;;  %v944_v30 = vadd.f32 %v2718_v63, %v3290_v6  ;;  %v1264_v54 = vadd.f32 %v2814_v22, %v3290_v6  ;;  %v938_v33 = vpop.f32.mrb[33].mxu0  ;;  %v1258_v12 = vpop.f32.mrb[33].mxu1 }
 0x149   : > { %v1576_v16 = vmax.f32 %v1448_v50, %v1512_v60  ;;  %v939_v17 = vadd.f32 %v3290_v6, %v938_v33  ;;  %v1259_v10 = vadd.f32 %v3290_v6, %v1258_v12  ;;  %v3493_v25 = vrot.slane %v1674_v58, %v3347_v4 }
 0x14a   : > { %v1575_v8 = vmax.f32 %v1447_v5, %v1511_v11  ;;  %v1450_v34 = vmax.f32 %v944_v30, 0.0  ;;  %v1514_v46 = vmax.f32 %v1264_v54, 0.0 }
 0x14b   : > { %v1624_v19 = vmax.f32 %v1574_v47, %v1576_v16  ;;  %v1449_v20 = vmax.f32 %v939_v17, 0.0  ;;  %v1513_v43 = vmax.f32 %v1259_v10, 0.0  ;;  %v2721_v44 = vpop.f32.mrb[34].mxu0  ;;  %v2817_v56 = vpop.f32.mrb[34].mxu1 }
 0x14c   : > { %v1623_v49 = vmax.f32 %v1573_v24, %v1575_v8  ;;  %v1578_v26 = vmax.f32 %v1450_v34, %v1514_v46  ;;  %v954_v29 = vadd.f32 %v2721_v44, %v3290_v6  ;;  %v1274_v31 = vadd.f32 %v2817_v56, %v3290_v6  ;;  %v948_v32 = vpop.f32.mrb[35].mxu0  ;;  %v1268_v36 = vpop.f32.mrb[35].mxu1 }
 0x14d   : > { %v1961_v37 = vcombine.low %v3420_v48, %v1624_v19  ;;  %v1962_v38 = vcombine.high %v3420_v48, %v1624_v19  ;;  %v1577_v39 = vmax.f32 %v1449_v20, %v1513_v43  ;;  %v949_v40 = vadd.f32 %v3290_v6, %v948_v32 }
 0x14e   : > { %v1689_v2 = vcombine.low %v3422_v53, %v1623_v49  ;;  %v1690_v45 = vcombine.high %v3422_v53, %v1623_v49  ;;  %v1452_v47 = vmax.f32 %v954_v29, 0.0  ;;  %v1516_v51 = vmax.f32 %v1274_v31, 0.0 }
 0x14f   : > { %v3503_v52 = vrot.slane %v1962_v38, %v3347_v4  ;;  %v1451_v57 = vmax.f32 %v949_v40, 0.0  ;;  %v1269_v21 = vadd.f32 %v3290_v6, %v1268_v36  ;;  %v2724_v58 = vpop.f32.mrb[36].mxu0  ;;  %v2820_v24 = vpop.f32.mrb[36].mxu1  ;;  %v3507_v13 = vrot.slane %v1961_v37, %v3347_v4 }
 0x150   : > { %v3510_v48 = vrot.slane %v1689_v2, %v3347_v4  ;;  %v1580_v50 = vmax.f32 %v1452_v47, %v1516_v51  ;;  %v964_v27 = vadd.f32 %v2724_v58, %v3290_v6  ;;  %v1284_v53 = vadd.f32 %v2820_v24, %v3290_v6  ;;  %v958_v61 = vpop.f32.mrb[37].mxu0  ;;  %v1278_v60 = vpop.f32.mrb[37].mxu1 }
 0x151   : > { %v1515_v63 = vmax.f32 %v1269_v21, 0.0  ;;  %v959_v22 = vadd.f32 %v3290_v6, %v958_v61  ;;  %v1279_v5 = vadd.f32 %v3290_v6, %v1278_v60  ;;  %v2009_v11 = vcombine.low %v3490_v18, %v3507_v13 }
 0x152   : > { %v3518_v30 = vmax.f32 %v1578_v26, %v1580_v50  ;;  %v1454_v54 = vmax.f32 %v964_v27, 0.0  ;;  %v1518_v33 = vmax.f32 %v1284_v53, 0.0  ;;  %v3521_v12 = vrot.slane %v1690_v45, %v3347_v4 }
 0x153   : > { %v1579_v16 = vmax.f32 %v1451_v57, %v1515_v63  ;;  %v1453_v17 = vmax.f32 %v959_v22, 0.0  ;;  %v1517_v10 = vmax.f32 %v1279_v5, 0.0  ;;  %v2727_v8 = vpop.f32.mrb[38].mxu0  ;;  %v2823_v34 = vpop.f32.mrb[38].mxu1  ;;  %v3524_v46 = vrot.slane %v2009_v11, %v3433_v9 }
 0x154   : > { %v1582_v19 = vmax.f32 %v1454_v54, %v1518_v33  ;;  %v974_v20 = vadd.f32 %v2727_v8, %v3290_v6  ;;  %v1294_v43 = vadd.f32 %v2823_v34, %v3290_v6  ;;  %v968_v44 = vpop.f32.mrb[39].mxu0  ;;  %v1288_v56 = vpop.f32.mrb[39].mxu1  ;;  %v1753_v49 = vcombine.low %v3493_v25, %v3521_v12 }
 0x155   : > { %v3530_v26 = vmax.f32 %v1577_v39, %v1579_v16  ;;  %v1581_v29 = vmax.f32 %v1453_v17, %v1517_v10  ;;  %v969_v31 = vadd.f32 %v3290_v6, %v968_v44  ;;  %v1289_v32 = vadd.f32 %v3290_v6, %v1288_v56 }
 0x156   : > { %v1456_v36 = vmax.f32 %v974_v20, 0.0  ;;  %v1520_v37 = vmax.f32 %v1294_v43, 0.0  ;;  %v2042_v38 = vcombine.high %v3445_v28, %v3524_v46  ;;  %v2041_v40 = vcombine.low %v3445_v28, %v3524_v46 }
 0x157   : > { %v1455_v2 = vmax.f32 %v969_v31, 0.0  ;;  %v1519_v45 = vmax.f32 %v1289_v32, 0.0  ;;  %v2730_v47 = vpop.f32.mrb[40].mxu0  ;;  %v2826_v51 = vpop.f32.mrb[40].mxu1  ;;  %v3539_v39 = vrot.slane %v1753_v49, %v3433_v9  ;;  %v2025_v57 = vcombine.low %v3471_v59, %v3503_v52 }
 0x158   : > { %v1584_v21 = vmax.f32 %v1456_v36, %v1520_v37  ;;  %2235 = vrot.lane.b32.xlu0 %v2042_v38, %s2944_s16  ;;  %v984_v58 = vadd.f32 %v2730_v47, %v3290_v6  ;;  %v1304_v24 = vadd.f32 %v2826_v51, %v3290_v6  ;;  %v978_v50 = vpop.f32.mrb[41].mxu0  ;;  %v1298_v27 = vpop.f32.mrb[41].mxu1  ;;  %v2010_v53 = vcombine.high %v3490_v18, %v3507_v13 }
 0x159   : > { %v1583_v61 = vmax.f32 %v1455_v2, %v1519_v45  ;;  %v1774_v60 = vcombine.high %v3451_v35, %v3539_v39  ;;  %v1773_v63 = vcombine.low %v3451_v35, %v3539_v39  ;;  %v979_v22 = vadd.f32 %v3290_v6, %v978_v50 }
 0x15a   : > { %v3553_v5 = vmax.f32 %v1582_v19, %v1584_v21  ;;  %v1458_v11 = vmax.f32 %v984_v58, 0.0  ;;  %v1522_v54 = vmax.f32 %v1304_v24, 0.0  ;;  %v1299_v33 = vadd.f32 %v3290_v6, %v1298_v27 }
 0x15b   : > { %v3556_v16 = vmax.f32 %v1581_v29, %v1583_v61  ;;  %2211 = vrot.lane.b32.xlu1 %v1774_v60, %s2944_s16  ;;  %v1457_v18 = vmax.f32 %v979_v22, 0.0  ;;  %v3560_v13 = vrot.slane %v2025_v57, %v3433_v9  ;;  %v2733_v17 = vpop.f32.mrb[42].mxu0  ;;  %v2829_v10 = vpop.f32.mrb[42].mxu1  ;;  %v3563_v8 = vrot.slane %v2010_v53, %v3433_v9 }
 0x15c   : > { %v1586_v34 = vmax.f32 %v1458_v11, %v1522_v54  ;;  %v1521_v19 = vmax.f32 %v1299_v33, 0.0  ;;  %v994_v20 = vadd.f32 %v2733_v17, %v3290_v6  ;;  %v1314_v43 = vadd.f32 %v2829_v10, %v3290_v6  ;;  %v988_v44 = vpop.f32.mrb[43].mxu0  ;;  %v1308_v56 = vpop.f32.mrb[43].mxu1 }
 0x15d   : > { %v2046_v49 = vcombine.high %v3454_v42, %v3560_v13  ;;  %v989_v29 = vadd.f32 %v3290_v6, %v988_v44  ;;  %v1309_v31 = vadd.f32 %v3290_v6, %v1308_v56  ;;  %v2043_v32 = vcombine.low %v3468_v62, %v3563_v8 }
 0x15e   : > { %v1585_v36 = vmax.f32 %v1457_v18, %v1521_v19  ;;  %v1460_v37 = vmax.f32 %v994_v20, 0.0  ;;  %v1524_v38 = vmax.f32 %v1314_v43, 0.0  ;;  %v2026_v2 = vcombine.high %v3471_v59, %v3503_v52 }
 0x15f   : > { %2259 = vrot.lane.b32.xlu0 %v2046_v49, %s2944_s16  ;;  %v1459_v45 = vmax.f32 %v989_v29, 0.0  ;;  %v1523_v47 = vmax.f32 %v1309_v31, 0.0  ;;  %v2736_v51 = vpop.f32.mrb[44].mxu0  ;;  %v2832_v57 = vpop.f32.mrb[44].mxu1  ;;  %v2044_v21 = vcombine.high %v3468_v62, %v3563_v8  ;;  %v1737_v58 = vcombine.low %v3485_v15, %v3510_v48 }
 0x160   : > { %v1588_v24 = vmax.f32 %v1460_v37, %v1524_v38  ;;  %v1004_v50 = vadd.f32 %v2736_v51, %v3290_v6  ;;  %v1324_v27 = vadd.f32 %v2832_v57, %v3290_v6  ;;  %v998_v53 = vpop.f32.mrb[45].mxu0  ;;  %v1318_v61 = vpop.f32.mrb[45].mxu1  ;;  %v3583_v59 = vrot.slane %v2026_v2, %v3433_v9 }
 0x161   : > { %v1587_v52 = vmax.f32 %v1459_v45, %v1523_v47  ;;  %v999_v60 = vadd.f32 %v3290_v6, %v998_v53  ;;  %v1319_v22 = vadd.f32 %v3290_v6, %v1318_v61  ;;  %v3588_v62 = vrot.slane %v1737_v58, %v3433_v9 }
 0x162   : > { %v1630_v11 = vmax.f32 %v1586_v34, %v1588_v24  ;;  %v1462_v54 = vmax.f32 %v1004_v50, 0.0  ;;  %v1526_v33 = vmax.f32 %v1324_v27, 0.0  ;;  %v2047_v18 = vcombine.low %v3477_v1, %v3583_v59 }
 0x163   : > { %v3592_v17 = vmax.f32 %v1585_v36, %v1587_v52  ;;  %2243 = vrot.lane.b32.xlu0 %v2043_v32, %s2945_s17  ;;  %v1461_v10 = vmax.f32 %v999_v60, 0.0  ;;  %v1525_v8 = vmax.f32 %v1319_v22, 0.0  ;;  %v2739_v19 = vpop.f32.mrb[46].mxu0  ;;  %v2835_v20 = vpop.f32.mrb[46].mxu1  ;;  %v1770_v43 = vcombine.high %v3480_v3, %v3588_v62 }
 0x164   : > { %v2049_v44 = vcombine.low %v3518_v30, %v1630_v11  ;;  %v2050_v34 = vcombine.high %v3518_v30, %v1630_v11  ;;  %v1590_v56 = vmax.f32 %v1462_v54, %v1526_v33  ;;  %v1014_v49 = vadd.f32 %v2739_v19, %v3290_v6  ;;  %v1008_v29 = vpop.f32.mrb[47].mxu0  ;;  %v1328_v31 = vpop.f32.mrb[47].mxu1 }
 0x165   : > { %v1777_v36 = vcombine.low %v3530_v26, %v3592_v17  ;;  %v1778_v32 = vcombine.high %v3530_v26, %v3592_v17  ;;  %v1589_v37 = vmax.f32 %v1461_v10, %v1525_v8  ;;  %v1334_v38 = vadd.f32 %v2835_v20, %v3290_v6 }
 0x166   : > { %v1464_v2 = vmax.f32 %v1014_v49, 0.0  ;;  %v1009_v45 = vadd.f32 %v3290_v6, %v1008_v29  ;;  %v3610_v30 = vrot.slane %v1706_v0, %v3433_v9  ;;  %v3616_v47 = vrot.slane %v1722_v14, %v3433_v9 }
 0x167   : > { %v3619_v51 = vrot.slane %v2049_v44, %v3347_v4  ;;  %v3622_v57 = vrot.slane %v2050_v34, %v3347_v4  ;;  %2267 = vrot.lane.b32.xlu0 %v2047_v18, %s2945_s17  ;;  %v1528_v58 = vmax.f32 %v1334_v38, 0.0  ;;  %v1329_v24 = vadd.f32 %v3290_v6, %v1328_v31  ;;  %v2742_v23 = vpop.f32.mrb[48].mxu0  ;;  %v2838_v41 = vpop.f32.mrb[48].mxu1 }
 0x168   : > { %v1463_v0 = vmax.f32 %v1009_v45, 0.0  ;;  %v1024_v50 = vadd.f32 %v2742_v23, %v3290_v6  ;;  %v1344_v55 = vadd.f32 %v2838_v41, %v3290_v6  ;;  %v1018_v7 = vpop.f32.mrb[49].mxu0  ;;  %v1338_v14 = vpop.f32.mrb[49].mxu1  ;;  %v1738_v27 = vcombine.high %v3485_v15, %v3510_v48 }
 0x169   : > { %v1592_v53 = vmax.f32 %v1464_v2, %v1528_v58  ;;  %v1527_v61 = vmax.f32 %v1329_v24, 0.0  ;;  %v1019_v52 = vadd.f32 %v3290_v6, %v1018_v7  ;;  %v1339_v60 = vadd.f32 %v3290_v6, %v1338_v14 }
 0x16a   : > { %v1466_v22 = vmax.f32 %v1024_v50, 0.0  ;;  %v1530_v11 = vmax.f32 %v1344_v55, 0.0  ;;  %v3633_v54 = vrot.slane %v1738_v27, %v3433_v9  ;;  %v1754_v33 = vcombine.high %v3493_v25, %v3521_v12 }
 0x16b   : > { %v1632_v18 = vmax.f32 %v1590_v56, %v1592_v53  ;;  %v1591_v10 = vmax.f32 %v1463_v0, %v1527_v61  ;;  %2251 = vrot.lane.b32.xlu0 %v2044_v21, %s2946_s18  ;;  %v1465_v15 = vmax.f32 %v1019_v52, 0.0  ;;  %v1529_v48 = vmax.f32 %v1339_v60, 0.0  ;;  %v2745_v8 = vpop.f32.mrb[50].mxu0  ;;  %v2841_v19 = vpop.f32.mrb[50].mxu1 }
 0x16c   : > { %v1594_v20 = vmax.f32 %v1466_v22, %v1530_v11  ;;  %v1034_v44 = vadd.f32 %v2745_v8, %v3290_v6  ;;  %v1354_v34 = vadd.f32 %v2841_v19, %v3290_v6  ;;  %v1028_v49 = vpop.f32.mrb[51].mxu0  ;;  %v1348_v29 = vpop.f32.mrb[51].mxu1  ;;  %v1771_v31 = vcombine.low %v3610_v30, %v3633_v54 }
 0x16d   : > { %v2065_v25 = vcombine.low %v3553_v5, %v1632_v18  ;;  %v2066_v12 = vcombine.high %v3553_v5, %v1632_v18  ;;  %v3644_v56 = vmax.f32 %v1589_v37, %v1591_v10  ;;  %v1593_v21 = vmax.f32 %v1465_v15, %v1529_v48 }
 0x16e   : > { %v1468_v38 = vmax.f32 %v1034_v44, 0.0  ;;  %v1532_v2 = vmax.f32 %v1354_v34, 0.0  ;;  %v1029_v45 = vadd.f32 %v3290_v6, %v1028_v49  ;;  %v1349_v58 = vadd.f32 %v3290_v6, %v1348_v29 }
 0x16f   : > { %v3649_v24 = vrot.slane %v1777_v36, %v3347_v4  ;;  %v3652_v23 = vrot.slane %v2065_v25, %v3347_v4  ;;  %v1793_v41 = vcombine.low %v3556_v16, %v3644_v56  ;;  %v1794_v5 = vcombine.high %v3556_v16, %v3644_v56  ;;  %2187 = vrot.lane.b32.xlu0 %v1770_v43, %s2944_s16  ;;  %v2748_v37 = vpop.f32.mrb[52].mxu0  ;;  %v2844_v0 = vpop.f32.mrb[52].mxu1 }
 0x170   : > { %v1596_v50 = vmax.f32 %v1468_v38, %v1532_v2  ;;  %v1467_v55 = vmax.f32 %v1029_v45, 0.0  ;;  %v1531_v7 = vmax.f32 %v1349_v58, 0.0  ;;  %v1044_v14 = vadd.f32 %v2748_v37, %v3290_v6  ;;  %v1038_v36 = vpop.f32.mrb[53].mxu0  ;;  %v1358_v27 = vpop.f32.mrb[53].mxu1 }
 0x171   : > { %v3661_v53 = vrot.slane %v2066_v12, %v3347_v4  ;;  %v3664_v61 = vrot.slane %v1793_v41, %v3347_v4  ;;  %v1364_v52 = vadd.f32 %v2844_v0, %v3290_v6  ;;  %v1039_v16 = vadd.f32 %v3290_v6, %v1038_v36 }
 0x172   : > { %v3668_v43 = vmax.f32 %v1594_v20, %v1596_v50  ;;  %v1595_v60 = vmax.f32 %v1467_v55, %v1531_v7  ;;  %v1470_v22 = vmax.f32 %v1044_v14, 0.0  ;;  %v1359_v11 = vadd.f32 %v3290_v6, %v1358_v27  ;;  %v3677_v20 = vld [vmem:[#allocation2] ss:$0 sm:$0xff] }
 0x173   : > { %2195 = vrot.lane.b32.xlu0 %v1771_v31, %s2945_s17  ;;  %v1534_v18 = vmax.f32 %v1364_v52, 0.0  ;;  %v1469_v10 = vmax.f32 %v1039_v16, 0.0  ;;  %v1768_v15 = vrot.slane %v1754_v33, %v3433_v9  ;;  %v2751_v48 = vpop.f32.mrb[54].mxu0  ;;  %v2847_v8 = vpop.f32.mrb[54].mxu1  ;;  %v1772_v19 = vcombine.high %v3610_v30, %v3633_v54 }
 0x174   : > { %v3675_v44 = vmax.f32 %v1593_v21, %v1595_v60  ;;  %v1533_v34 = vmax.f32 %v1359_v11, 0.0  ;;  %v1054_v49 = vadd.f32 %v3677_v20, %v2751_v48  ;;  %v1374_v6 = vadd.f32 %v3677_v20, %v2847_v8  ;;  %v1048_v29 = vpop.f32.mrb[55].mxu0  ;;  %v1368_v31 = vpop.f32.mrb[55].mxu1 }
 0x175   : > { %v1598_v25 = vmax.f32 %v1470_v22, %v1534_v18  ;;  %v1775_v12 = vcombine.low %v3616_v47, %v1768_v15  ;;  %v1049_v33 = vadd.f32 %v3677_v20, %v1048_v29  ;;  %v1369_v56 = vadd.f32 %v3677_v20, %v1368_v31 }
 0x176   : > { %v1597_v38 = vmax.f32 %v1469_v10, %v1533_v34  ;;  %v1472_v30 = vmax.f32 %v1054_v49, 0.0  ;;  %v1536_v54 = vmax.f32 %v1374_v6, 0.0  ;;  %v1776_v21 = vcombine.high %v3616_v47, %v1768_v15 }
 0x177   : > { %2219 = vrot.lane.b32.xlu0 %v1775_v12, %s2945_s17  ;;  %v1471_v2 = vmax.f32 %v1049_v33, 0.0  ;;  %v1535_v45 = vmax.f32 %v1369_v56, 0.0  ;;  %v2754_v58 = vpop.f32.mrb[56].mxu0  ;;  %v2850_v41 = vpop.f32.mrb[56].mxu1  ;;  %v2113_v37 = vcombine.low %v3619_v51, %v3652_v23  ;;  %v1841_v0 = vcombine.low %v3649_v24, %v3664_v61 }
 0x178   : > { %v1600_v50 = vmax.f32 %v1472_v30, %v1536_v54  ;;  %v1064_v55 = vadd.f32 %v3677_v20, %v2754_v58  ;;  %v1384_v7 = vadd.f32 %v3677_v20, %v2850_v41  ;;  %v1058_v14 = vpop.f32.mrb[57].mxu0  ;;  %v1378_v36 = vpop.f32.mrb[57].mxu1  ;;  %v2129_v47 = vcombine.low %v3622_v57, %v3661_v53 }
 0x179   : > { %v1599_v27 = vmax.f32 %v1471_v2, %v1535_v45  ;;  %v1059_v52 = vadd.f32 %v3677_v20, %v1058_v14  ;;  %v1379_v16 = vadd.f32 %v3677_v20, %v1378_v36  ;;  %v3697_v60 = vrot.slane %v1794_v5, %v3347_v4 }
 0x17a   : > { %v3699_v22 = vmax.f32 %v1598_v25, %v1600_v50  ;;  %v1474_v11 = vmax.f32 %v1064_v55, 0.0  ;;  %v1538_v18 = vmax.f32 %v1384_v7, 0.0  ;;  %v3705_v10 = vrot.slane %v1778_v32, %v3347_v4 }
 0x17b   : > { %v3707_v15 = vmax.f32 %v1597_v38, %v1599_v27  ;;  %2203 = vrot.lane.b32.xlu0 %v1772_v19, %s2946_s18  ;;  %v1473_v48 = vmax.f32 %v1059_v52, 0.0  ;;  %v1537_v8 = vmax.f32 %v1379_v16, 0.0  ;;  %v2757_v34 = vpop.f32.mrb[58].mxu0  ;;  %v2853_v49 = vpop.f32.mrb[58].mxu1  ;;  %v2048_v26 = vcombine.high %v3477_v1, %v3583_v59 }
 0x17c   : > { %v1602_v5 = vmax.f32 %v1474_v11, %v1538_v18  ;;  %v1074_v6 = vadd.f32 %v3677_v20, %v2757_v34  ;;  %v1394_v29 = vadd.f32 %v3677_v20, %v2853_v49  ;;  %v1068_v31 = vpop.f32.mrb[59].mxu0  ;;  %v1388_v25 = vpop.f32.mrb[59].mxu1  ;;  %v2114_v19 = vcombine.high %v3619_v51, %v3652_v23 }
 0x17d   : > { %v1601_v17 = vmax.f32 %v1473_v48, %v1537_v8  ;;  %v1069_v32 = vadd.f32 %v3677_v20, %v1068_v31  ;;  %v1389_v12 = vadd.f32 %v3677_v20, %v1388_v25  ;;  %v2130_v38 = vcombine.high %v3622_v57, %v3661_v53 }
 0x17e   : > { %v1476_v33 = vmax.f32 %v1074_v6, 0.0  ;;  %v1540_v56 = vmax.f32 %v1394_v29, 0.0  ;;  %v1857_v30 = vcombine.low %v3705_v10, %v3697_v60  ;;  %v1842_v41 = vcombine.high %v3649_v24, %v3664_v61 }
 0x17f   : > { %2227 = vrot.lane.b32.xlu0 %v1776_v21, %s2946_s18  ;;  %v1475_v54 = vmax.f32 %v1069_v32, 0.0  ;;  %v1539_v2 = vmax.f32 %v1389_v12, 0.0  ;;  %v2760_v45 = vpop.f32.mrb[60].mxu0  ;;  %v2856_v58 = vpop.f32.mrb[60].mxu1  ;;  %v1858_v29 = vcombine.high %v3705_v10, %v3697_v60  ;;  %v3763_v51 = vrot.slane %v2129_v47, %v3433_v9 }
 0x180   : > { %v1604_v50 = vmax.f32 %v1476_v33, %v1540_v56  ;;  %v1084_v55 = vadd.f32 %v3677_v20, %v2760_v45  ;;  %v1404_v7 = vadd.f32 %v3677_v20, %v2856_v58  ;;  %v1078_v14 = vpop.f32.mrb[61].mxu0  ;;  %v1398_v36 = vpop.f32.mrb[61].mxu1  ;;  %v2128_v23 = vrot.slane %v2114_v19, %v3433_v9 }
 0x181   : > { %v1603_v27 = vmax.f32 %v1475_v54, %v1539_v2  ;;  %v1079_v52 = vadd.f32 %v3677_v20, %v1078_v14  ;;  %v1399_v16 = vadd.f32 %v3677_v20, %v1398_v36  ;;  %v1769_v14 = vcombine.low %v3480_v3, %v3588_v62 }
 0x182   : > { %v1638_v21 = vmax.f32 %v1602_v5, %v1604_v50  ;;  %v1478_v11 = vmax.f32 %v1084_v55, 0.0  ;;  %v1542_v18 = vmax.f32 %v1404_v7, 0.0  ;;  %v3774_v57 = vrot.slane %v1857_v30, %v3433_v9 }
 0x183   : > { %v1637_v48 = vmax.f32 %v1601_v17, %v1603_v27  ;;  %v1477_v8 = vmax.f32 %v1079_v52, 0.0  ;;  %v1541_v34 = vmax.f32 %v1399_v16, 0.0  ;;  %v2763_v49 = vpop.f32.mrb[62].mxu0  ;;  %v2859_v6 = vpop.f32.mrb[62].mxu1  ;;  %v3747_v27 = vrot.slane %v2113_v37, %v3433_v9 }
 0x184   : > { %v2081_v31 = vcombine.low %v3668_v43, %v1638_v21  ;;  %v2082_v25 = vcombine.high %v3668_v43, %v1638_v21  ;;  %v1606_v32 = vmax.f32 %v1478_v11, %v1542_v18  ;;  %v1094_v12 = vadd.f32 %v3677_v20, %v2763_v49  ;;  %v1088_v33 = vpop.f32.mrb[63].mxu0  ;;  %v1408_v56 = vpop.f32.mrb[63].mxu1 }
 0x185   : > { %v1809_v5 = vcombine.low %v3675_v44, %v1637_v48  ;;  %v1810_v17 = vcombine.high %v3675_v44, %v1637_v48  ;;  %v1605_v54 = vmax.f32 %v1477_v8, %v1541_v34  ;;  %v1414_v2 = vadd.f32 %v3677_v20, %v2859_v6 }
 0x186   : > { %v1480_v45 = vmax.f32 %v1094_v12, 0.0  ;;  %v1089_v58 = vadd.f32 %v3677_v20, %v1088_v33  ;;  %v1409_v10 = vadd.f32 %v3677_v20, %v1408_v56  ;;  %v2045_v43 = vcombine.low %v3454_v42, %v3560_v13 }
 0x187   : > { %v1544_v60 = vmax.f32 %v1414_v2, 0.0  ;;  %v3755_v21 = vrot.slane %v1841_v0, %v3433_v9  ;;  %v2089_v11 = vrot.slane %v2081_v31, %v3347_v4  ;;  %v2096_v18 = vrot.slane %v2082_v25, %v3347_v4 }
 0x188   : > { %v1479_v50 = vmax.f32 %v1089_v58, 0.0  ;;  %v1543_v7 = vmax.f32 %v1409_v10, 0.0  ;;  %v1817_v0 = vrot.slane %v1809_v5, %v3347_v4  ;;  %v1824_v48 = vrot.slane %v1810_v17, %v3347_v4 }
 0x189   : > { %v1608_v55 = vmax.f32 %v1480_v45, %v1544_v60  ;;  %v2144_v8 = vrot.slane %v2130_v38, %v3433_v9  ;;  %v1856_v31 = vrot.slane %v1842_v41, %v3433_v9 }
 0x18a   : > { %v1607_v44 = vmax.f32 %v1479_v50, %v1543_v7 }
 0x18b   : > { %v1640_v36 = vmax.f32 %v1606_v32, %v1608_v55 }
 0x18c   : > { %v1639_v16 = vmax.f32 %v1605_v54, %v1607_v44 }
 0x18d   : > { %v2097_v52 = vcombine.low %v3699_v22, %v1640_v36  ;;  %v2098_v20 = vcombine.high %v3699_v22, %v1640_v36 }
 0x18e   : > { %v1825_v24 = vcombine.low %v3707_v15, %v1639_v16  ;;  %v1826_v61 = vcombine.high %v3707_v15, %v1639_v16  ;;  %v1872_v15 = vrot.slane %v1858_v29, %v3433_v9 }
 0x18f   : > { %v2105_v37 = vrot.slane %v2097_v52, %v3347_v4  ;;  %v2112_v22 = vrot.slane %v2098_v20, %v3347_v4 }
 0x190   : > { %v1833_v53 = vrot.slane %v1825_v24, %v3347_v4  ;;  %v1840_v47 = vrot.slane %v1826_v61, %v3347_v4 }
 0x191   : > { %v2145_v19 = vcombine.low %v2089_v11, %v2105_v37  ;;  %v2161_v34 = vcombine.low %v2096_v18, %v2112_v22  ;;  %v2146_v49 = vcombine.high %v2089_v11, %v2105_v37  ;;  %v2162_v6 = vcombine.high %v2096_v18, %v2112_v22 }
 0x192   : > { %v1873_v32 = vcombine.low %v1817_v0, %v1833_v53  ;;  %v1889_v30 = vcombine.low %v1824_v48, %v1840_v47  ;;  %v1874_v33 = vcombine.high %v1817_v0, %v1833_v53  ;;  %v1890_v56 = vcombine.high %v1824_v48, %v1840_v47 }
 0x193   : > { %v3781_v25 = vrot.slane %v2145_v19, %v3433_v9  ;;  %v3784_v38 = vrot.slane %v2161_v34, %v3433_v9  ;;  %v2160_v12 = vrot.slane %v2146_v49, %v3433_v9  ;;  %v2176_v4 = vrot.slane %v2162_v6, %v3433_v9 }
 0x194   : > { %v3791_v41 = vrot.slane %v1873_v32, %v3433_v9  ;;  %v3796_v17 = vrot.slane %v1889_v30, %v3433_v9  ;;  %v1888_v58 = vrot.slane %v1874_v33, %v3433_v9  ;;  %v1904_v50 = vrot.slane %v1890_v56, %v3433_v9 }
 0x195   : > { %v2178_v5 = vcombine.high %v3747_v27, %v3781_v25  ;;  %v2182_v29 = vcombine.high %v3763_v51, %v3784_v38  ;;  %v2179_v54 = vcombine.low %v2128_v23, %v2160_v12  ;;  %v2183_v2 = vcombine.low %v2144_v8, %v2176_v4 }
 0x196   : > { %v2180_v45 = vcombine.high %v2128_v23, %v2160_v12  ;;  %v1906_v60 = vcombine.high %v3755_v21, %v3791_v41  ;;  %v1910_v10 = vcombine.high %v3774_v57, %v3796_v17  ;;  %v2184_v55 = vcombine.high %v2144_v8, %v2176_v4 }
 0x197   : > { %2237 = vrot.lane.b32.xlu1 %v2178_v5, %s2944_s16  ;;  %v1907_v7 = vcombine.low %v1856_v31, %v1888_v58  ;;  %v1908_v36 = vcombine.high %v1856_v31, %v1888_v58  ;;  %v2177_v44 = vcombine.low %v3747_v27, %v3781_v25  ;;  %v1905_v52 = vcombine.low %v3755_v21, %v3791_v41 }
 0x198   : > { %2189 = vrot.lane.b32.xlu0 %v1906_v60, %s2944_s16  ;;  %v1911_v20 = vcombine.low %v1872_v15, %v1904_v50  ;;  %v1912_v16 = vcombine.high %v1872_v15, %v1904_v50  ;;  %v2181_v11 = vcombine.low %v3763_v51, %v3784_v38  ;;  %v1909_v18 = vcombine.low %v3774_v57, %v3796_v17 }
 0x19b   : > { %2261 = vrot.lane.b32.xlu1 %v2182_v29, %s2944_s16 }
 0x19c   : > { %2275 = vrot.lane.b32.xlu0 %v2048_v26, %s2946_s18 }
 0x19f   : > { %2245 = vrot.lane.b32.xlu1 %v2179_v54, %s2945_s17 }
 0x1a3   : > { %2269 = vrot.lane.b32.xlu1 %v2183_v2, %s2945_s17 }
 0x1a7   : > { %2253 = vrot.lane.b32.xlu1 %v2180_v45, %s2946_s18 }
 0x1ab   : > { %2213 = vrot.lane.b32.xlu1 %v1910_v10, %s2944_s16 }
 0x1af   : > { %2197 = vrot.lane.b32.xlu1 %v1907_v7, %s2945_s17 }
 0x1b3   : > { %2221 = vrot.lane.b32.xlu1 %v1911_v20, %s2945_s17 }
 0x1b7   : > { %2205 = vrot.lane.b32.xlu1 %v1908_v36, %s2946_s18 }
 0x1bb   : > { %2229 = vrot.lane.b32.xlu1 %v1912_v16, %s2946_s18 }
 0x1bf   : > { %2277 = vrot.lane.b32.xlu1 %v2184_v55, %s2946_s18 }
 0x1ca   : > { %v2236_v9 = vpop.permute.xlu0 %2235 }
 0x1cb   : > { %v2296_v27 = vsel %vm2281_vm4, %v2041_v40, %v2236_v9 }
 0x1cd   : > { %v2212_v46 = vpop.permute.xlu1 %2211 }
 0x1ce   : > { %v2290_v53 = vsel %vm2281_vm4, %v1773_v63, %v2212_v46 }
 0x1d1   : > { %v2260_v1 = vpop.permute.xlu0 %2259 }
 0x1d2   : > { %v2302_v49 = vsel %vm2281_vm4, %v2045_v43, %v2260_v1 }
 0x1d5   : > { %v2244_v59 = vpop.permute.xlu0 %2243 }
 0x1d6   : > { %v2298_v23 = vsel %vm2284_vm5, %v2296_v27, %v2244_v59 }
 0x1d9   : > { %v2268_v26 = vpop.permute.xlu0 %2267 }
 0x1da   : > { %v2304_v6 = vsel %vm2284_vm5, %v2302_v49, %v2268_v26 }
 0x1dd   : > { %v2252_v37 = vpop.permute.xlu0 %2251 }
 0x1de   : > { %v2300_v22 = vsel %vm2287_vm6, %v2298_v23, %v2252_v37 }
 0x1df   : > { %2310 = vst [vmem:[%s3836_s22 + $0x10] sm:$0xff] %v2300_v22 }
 0x1e1   : > { %v2188_v24 = vpop.permute.xlu0 %2187 }
 0x1e2   : > { %v2282_v28 = vsel %vm2281_vm4, %v1769_v14, %v2188_v24 }
 0x1e5   : > { %v2196_v61 = vpop.permute.xlu0 %2195 }
 0x1e6   : > { %v2285_v40 = vsel %vm2284_vm5, %v2282_v28, %v2196_v61 }
 0x1e9   : > { %v2220_v0 = vpop.permute.xlu0 %2219 }
 0x1ea   : > { %v2292_v47 = vsel %vm2284_vm5, %v2290_v53, %v2220_v0 }
 0x1ed   : > { %v2204_v48 = vpop.permute.xlu0 %2203 }
 0x1ee   : > { %v2288_v8 = vsel %vm2287_vm6, %v2285_v40, %v2204_v48 }
 0x1ef   : > { %2308 = vst [vmem:[%s3836_s22] sm:$0xff] %v2288_v8 }
 0x1f1   : > { %v2228_v19 = vpop.permute.xlu0 %2227 }
 0x1f2   : > { %v2294_v3 = vsel %vm2287_vm6, %v2292_v47, %v2228_v19 }
 0x1f3   : > { %2309 = vst [vmem:[%s3836_s22 + $0x8] sm:$0xff] %v2294_v3 }
 0x209   : > { %v2238_v62 = vpop.permute.xlu1 %2237 }
 0x20a   : > { %v2190_v14 = vpop.permute.xlu0 %2189  ;;  %v2297_v15 = vsel %vm2281_vm4, %v2177_v44, %v2238_v62 }
 0x20b   : > { %v2283_v12 = vsel %vm2281_vm4, %v1905_v52, %v2190_v14 }
 0x20d   : > { %v2262_v34 = vpop.permute.xlu1 %2261 }
 0x20e   : > { %v2276_v35 = vpop.permute.xlu0 %2275  ;;  %v2303_v21 = vsel %vm2281_vm4, %v2181_v11, %v2262_v34 }
 0x20f   : > { %v2306_v39 = vsel %vm2287_vm6, %v2304_v6, %v2276_v35 }
 0x210   : > { %2311 = vst [vmem:[%s3836_s22 + $0x18] sm:$0xff] %v2306_v39 }
 0x211   : > { %v2246_v63 = vpop.permute.xlu1 %2245 }
 0x212   : > { %v2299_v25 = vsel %vm2284_vm5, %v2297_v15, %v2246_v63 }
 0x215   : > { %v2270_v31 = vpop.permute.xlu1 %2269 }
 0x216   : > { %v2305_v41 = vsel %vm2284_vm5, %v2303_v21, %v2270_v31 }
 0x219   : > { %v2254_v32 = vpop.permute.xlu1 %2253 }
 0x21a   : > { %v2301_v30 = vsel %vm2287_vm6, %v2299_v25, %v2254_v32 }
 0x21b   : > { %2314 = vst [vmem:[%s3836_s22 + $0x30] sm:$0xff] %v2301_v30 }
 0x21d   : > { %v2214_v42 = vpop.permute.xlu1 %2213 }
 0x21e   : > { %v2291_v5 = vsel %vm2281_vm4, %v1909_v18, %v2214_v42 }
 0x221   : > { %v2198_v13 = vpop.permute.xlu1 %2197 }
 0x222   : > { %v2286_v4 = vsel %vm2284_vm5, %v2283_v12, %v2198_v13 }
 0x225   : > { %v2222_v43 = vpop.permute.xlu1 %2221 }
 0x226   : > { %v2293_v29 = vsel %vm2284_vm5, %v2291_v5, %v2222_v43 }
 0x229   : > { %v2206_v33 = vpop.permute.xlu1 %2205 }
 0x22a   : > { %v2289_v56 = vsel %vm2287_vm6, %v2286_v4, %v2206_v33 }
 0x22b   : > { %2312 = vst [vmem:[%s3836_s22 + $0x20] sm:$0xff] %v2289_v56 }
 0x22d   : > { %v2230_v54 = vpop.permute.xlu1 %2229 }
 0x22e   : > { %v2295_v2 = vsel %vm2287_vm6, %v2293_v29, %v2230_v54 }
 0x22f   : > { %2313 = vst [vmem:[%s3836_s22 + $0x28] sm:$0xff] %v2295_v2 }
 0x231   : > { %v2278_v45 = vpop.permute.xlu1 %2277 }
 0x232   : > { %v2307_v58 = vsel %vm2287_vm6, %v2305_v41, %v2278_v45 }
 0x233   : > { %2315 = vst [vmem:[%s3836_s22 + $0x38] sm:$0xff] %v2307_v58 }
 0x234 PF: > { %s14_s12 = sadd.s32 1, %s2938_s12  }
 0x235   : > { %p11_p2 = scmp.ge.s32.totalorder %s14_s12, 4  }
 0x237   :  { %13 = sbr.rel (!%p11_p2) target bundleno = 1 (0x1), region = 67 }
 0x23e   :  { %2337 = vsyncpa [#allocation3], 1 }
 0x23f   :  { %2339 = vsyncpa [#allocation3 + $0x1], 1 }

// kernel: cnn_cifar_forward.4
= control target key start
LH: loop header
LB: loop body
LE: loop exit
PB: predicated region body
PF: predicated region fallthrough
CT: control target
= control target key end

     0   :  { %s1398_s12 = smov 0   ;;  %s1823_s0 = inlined_call_operand.vmem [shape: f32[2,256,288], index: 0, kind: input, shape index: {}]   ;;  %s1824_s1 = inlined_call_operand.vmem [shape: f32[288,64], index: 1, kind: input, shape index: {}]   ;;  %s1825_s2 = inlined_call_operand.vmem [shape: f32[1,64], index: 2, kind: input, shape index: {}]   ;;  %s1826_s3 = inlined_call_operand.vmem [shape: f32[2,8,512], index: 3, kind: output, shape index: {}]  }
   0x1 LB: > { %s1129_s13 = sadd.s32 4294967295, %s1372_s12   ;;  %p1133_p0 = scmp.ge.s32.totalorder %s1372_s12, 1  ;;  %s1372_s12 = sphi %s1398_s12, %s13_s12  }
   0x2   : > { %p137_p1 = scmp.lt.s32.totalorder %s1372_s12, 3 }
   0x4   : > { %p138_p2 = pnand %p1133_p0, %p137_p1 }
   0x5   : > { %v267_v0 = vld [vmem:[%s1824_s1] sm:$0xff] (!%p138_p2)  ;;  %v268_v1 = vld [vmem:[%s1824_s1 + $0x8] sm:$0xff] (!%p138_p2)  ;;  %v269_v2 = vld [vmem:[%s1824_s1 + $0x10] sm:$0xff] (!%p138_p2)  ;;  %p161_p3 = scmp.lt.s32.totalorder (!%p138_p2), %s1129_s13, 1  ;;  %v1374_v3 = vmov (!%p138_p2), 0.0|0.0   ;;  %vm310_vm0 = vcmask (!%p138_p2), 261120  }
   0x6   : > { %141 = sbr.rel (%p138_p2) target bundleno = 516 (0x204), region = 32  ;;  %1265 = vmatprep.subr.bf16.mxu0 (!%p138_p2), %v1374_v3  ;;  %1321 = vmatprep.subr.bf16.mxu1 (!%p138_p2), %v1374_v3  ;;  %v1266_v4 = vpack.c.bf16 (!%p138_p2), %v268_v1, %v267_v0  ;;  %v270_v5 = vld [vmem:[%s1824_s1 + $0x18] sm:$0xff] (!%p138_p2)  ;;  %v271_v7 = vld [vmem:[%s1824_s1 + $0x20] sm:$0xff] (!%p138_p2)  ;;  %v272_v8 = vld [vmem:[%s1824_s1 + $0x28] sm:$0xff] (!%p138_p2)  ;;  %s1377_s18 = smov (!%p138_p2), 64   ;;  %vm1065_vm1 = vcmask (!%p138_p2), 523264  }
   0x7   : > { %v1269_v6 = vpack.c.bf16 (!%p138_p2), %v270_v5, %v269_v2  ;;  %v1272_v9 = vpack.c.bf16 (!%p138_p2), %v272_v8, %v271_v7  ;;  %v273_v10 = vld [vmem:[%s1824_s1 + $0x30] sm:$0xff] (!%p138_p2)  ;;  %v274_v11 = vld [vmem:[%s1824_s1 + $0x38] sm:$0xff] (!%p138_p2)  ;;  %v275_v15 = vld [vmem:[%s1824_s1 + $0x40] sm:$0xff] (!%p138_p2) }
   0x8   : > { %1267 = vmatpush1.bf16.msra.mxu0 (!%p138_p2), %v1266_v4  ;;  %1337 = vmatpush1.bf16.msra.mxu1 (!%p138_p2), %v1266_v4  ;;  %v1275_v13 = vpack.c.bf16 (!%p138_p2), %v274_v11, %v273_v10  ;;  %v276_v16 = vld [vmem:[%s1824_s1 + $0x48] sm:$0xff] (!%p138_p2)  ;;  %v277_v18 = vld [vmem:[%s1824_s1 + $0x50] sm:$0xff] (!%p138_p2)  ;;  %v278_v19 = vld [vmem:[%s1824_s1 + $0x58] sm:$0xff] (!%p138_p2) }
   0x9   : > { %1268 = vmatprep.subr.bf16.mxu0 (!%p138_p2), %v1374_v3  ;;  %1322 = vmatprep.subr.bf16.mxu1 (!%p138_p2), %v1374_v3  ;;  %v1278_v17 = vpack.c.bf16 (!%p138_p2), %v276_v16, %v275_v15  ;;  %v1281_v20 = vpack.c.bf16 (!%p138_p2), %v278_v19, %v277_v18  ;;  %v279_v21 = vld [vmem:[%s1824_s1 + $0x60] sm:$0xff] (!%p138_p2)  ;;  %v280_v22 = vld [vmem:[%s1824_s1 + $0x68] sm:$0xff] (!%p138_p2)  ;;  %v281_v24 = vld [vmem:[%s1824_s1 + $0x70] sm:$0xff] (!%p138_p2) }
   0xa   : > { %v1284_v23 = vpack.c.bf16 (!%p138_p2), %v280_v22, %v279_v21  ;;  %v282_v25 = vld [vmem:[%s1824_s1 + $0x78] sm:$0xff] (!%p138_p2)  ;;  %v283_v27 = vld [vmem:[%s1824_s1 + $0x80] sm:$0xff] (!%p138_p2)  ;;  %v284_v28 = vld [vmem:[%s1824_s1 + $0x88] sm:$0xff] (!%p138_p2) }
   0xb   : > { %v1287_v26 = vpack.c.bf16 (!%p138_p2), %v282_v25, %v281_v24  ;;  %v1290_v29 = vpack.c.bf16 (!%p138_p2), %v284_v28, %v283_v27  ;;  %v285_v30 = vld [vmem:[%s1824_s1 + $0x90] sm:$0xff] (!%p138_p2)  ;;  %v286_v31 = vld [vmem:[%s1824_s1 + $0x98] sm:$0xff] (!%p138_p2)  ;;  %v287_v33 = vld [vmem:[%s1824_s1 + $0xa0] sm:$0xff] (!%p138_p2) }
   0xc   : > { %1270 = vmatpush1.bf16.msra.mxu0 (!%p138_p2), %v1269_v6  ;;  %1338 = vmatpush1.bf16.msra.mxu1 (!%p138_p2), %v1269_v6  ;;  %v1293_v32 = vpack.c.bf16 (!%p138_p2), %v286_v31, %v285_v30  ;;  %v288_v34 = vld [vmem:[%s1824_s1 + $0xa8] sm:$0xff] (!%p138_p2)  ;;  %v289_v36 = vld [vmem:[%s1824_s1 + $0xb0] sm:$0xff] (!%p138_p2)  ;;  %v290_v37 = vld [vmem:[%s1824_s1 + $0xb8] sm:$0xff] (!%p138_p2) }
   0xd   : > { %s1828_s13 = smov (!%p161_p3, %s1129_s13), 1  ;;  %1271 = vmatprep.subr.bf16.mxu0 %v1374_v3  ;;  %1323 = vmatprep.subr.bf16.mxu1 %v1374_v3  ;;  %v1296_v35 = vpack.c.bf16 %v288_v34, %v287_v33  ;;  %v1299_v38 = vpack.c.bf16 %v290_v37, %v289_v36  ;;  %v291_v39 = vld [vmem:[%s1824_s1 + $0xc0] sm:$0xff]  ;;  %v292_v40 = vld [vmem:[%s1824_s1 + $0xc8] sm:$0xff]  ;;  %v293_v42 = vld [vmem:[%s1824_s1 + $0xd0] sm:$0xff] }
   0xe   : > { %s1353_s26 = smul.u32 768, %s1828_s13  ;;  %v1302_v41 = vpack.c.bf16 %v292_v40, %v291_v39  ;;  %v294_v43 = vld [vmem:[%s1824_s1 + $0xd8] sm:$0xff]  ;;  %v295_v45 = vld [vmem:[%s1824_s1 + $0xe0] sm:$0xff]  ;;  %v296_v46 = vld [vmem:[%s1824_s1 + $0xe8] sm:$0xff]  ;;  %s1172_s19 = sshll.u32 %s1828_s13, 5 }
   0xf   : > { %v1305_v44 = vpack.c.bf16 %v294_v43, %v293_v42  ;;  %v1308_v47 = vpack.c.bf16 %v296_v46, %v295_v45  ;;  %v297_v48 = vld [vmem:[%s1824_s1 + $0xf0] sm:$0xff]  ;;  %v298_v49 = vld [vmem:[%s1824_s1 + $0xf8] sm:$0xff]  ;;  %v299_v50 = vld [vmem:[%s1824_s1 + $0x100] sm:$0xff]  ;;  %s170_s22 = scalar_lea.vmem %s1826_s3, %s1172_s19 }
  0x10   : > { %s1434_s29 = scalar_lea.vmem %s1823_s0, %s1353_s26  ;;  %1273 = vmatpush1.bf16.msra.mxu0 %v1272_v9  ;;  %1339 = vmatpush1.bf16.msra.mxu1 %v1272_v9  ;;  %v300_v51 = vld [vmem:[%s1824_s1 + $0x108] sm:$0xff]  ;;  %v1311_v52 = vpack.c.bf16 %v298_v49, %v297_v48  ;;  %v301_v54 = vld [vmem:[%s1824_s1 + $0x110] sm:$0xff]  ;;  %v302_v55 = vld [vmem:[%s1824_s1 + $0x118] sm:$0xff] }
  0x11   : > { %v172_v12 = vld [vmem:[%s1434_s29 + $0x8] sm:$0xff]  ;;  %1274 = vmatprep.subr.bf16.mxu0 %v1374_v3  ;;  %1324 = vmatprep.subr.bf16.mxu1 %v1374_v3  ;;  %v1313_v53 = vpack.c.bf16 %v300_v51, %v299_v50  ;;  %v171_v56 = vld [vmem:[%s1434_s29] sm:$0xff]  ;;  %v1317_v59 = vpack.c.bf16 %v302_v55, %v301_v54  ;;  %v174_v61 = vld [vmem:[%s1434_s29 + $0x18] sm:$0xff] }
  0x12   : > { %v244_v14 = vld [vmem:[%s1434_s29 + $0x248] sm:$0xff]  ;;  %471 = vmatprep.mubr.f32.mxu0 %v172_v12  ;;  %v243_v57 = vld [vmem:[%s1434_s29 + $0x240] sm:$0xff]  ;;  %v246_v62 = vld [vmem:[%s1434_s29 + $0x258] sm:$0xff] }
  0x13   : > { %591 = vmatprep.mubr.f32.mxu1 %v244_v14  ;;  %v175_v58 = vld [vmem:[%s1434_s29 + $0x20] sm:$0xff]  ;;  %v178_v63 = vld [vmem:[%s1434_s29 + $0x38] sm:$0xff]  ;;  %v177_v1 = vld [vmem:[%s1434_s29 + $0x30] sm:$0xff] }
  0x14   : > { %1276 = vmatpush1.bf16.msra.mxu0 %v1275_v13  ;;  %1340 = vmatpush1.bf16.msra.mxu1 %v1275_v13  ;;  %v247_v60 = vld [vmem:[%s1434_s29 + $0x260] sm:$0xff]  ;;  %v250_v0 = vld [vmem:[%s1434_s29 + $0x278] sm:$0xff]  ;;  %v249_v2 = vld [vmem:[%s1434_s29 + $0x270] sm:$0xff] }
  0x15   : > { %1277 = vmatprep.subr.bf16.mxu0 %v1374_v3  ;;  %1325 = vmatprep.subr.bf16.mxu1 %v1374_v3  ;;  %v253_v4 = vld [vmem:[%s1434_s29 + $0x290] sm:$0xff]  ;;  %v180_v5 = vld [vmem:[%s1434_s29 + $0x48] sm:$0xff]  ;;  %v183_v9 = vld [vmem:[%s1434_s29 + $0x60] sm:$0xff] }
  0x16   : > { %v252_v6 = vld [vmem:[%s1434_s29 + $0x288] sm:$0xff]  ;;  %v255_v10 = vld [vmem:[%s1434_s29 + $0x2a0] sm:$0xff]  ;;  %v186_v13 = vld [vmem:[%s1434_s29 + $0x78] sm:$0xff] }
  0x17   : > { %v184_v7 = vld [vmem:[%s1434_s29 + $0x68] sm:$0xff]  ;;  %v187_v11 = vld [vmem:[%s1434_s29 + $0x80] sm:$0xff]  ;;  %v258_v14 = vld [vmem:[%s1434_s29 + $0x2b8] sm:$0xff] }
  0x18   : > { %1279 = vmatpush1.bf16.msra.mxu0 %v1278_v17  ;;  %1341 = vmatpush1.bf16.msra.mxu1 %v1278_v17  ;;  %v256_v8 = vld [vmem:[%s1434_s29 + $0x2a8] sm:$0xff]  ;;  %v259_v12 = vld [vmem:[%s1434_s29 + $0x2c0] sm:$0xff]  ;;  %v190_v15 = vld [vmem:[%s1434_s29 + $0x98] sm:$0xff] }
  0x19   : > { %1280 = vmatprep.subr.bf16.mxu0 %v1374_v3  ;;  %1326 = vmatprep.subr.bf16.mxu1 %v1374_v3  ;;  %v262_v16 = vld [vmem:[%s1434_s29 + $0x2d8] sm:$0xff]  ;;  %v189_v17 = vld [vmem:[%s1434_s29 + $0x90] sm:$0xff]  ;;  %v192_v21 = vld [vmem:[%s1434_s29 + $0xa8] sm:$0xff] }
  0x1a   : > { %v261_v18 = vld [vmem:[%s1434_s29 + $0x2d0] sm:$0xff]  ;;  %v264_v22 = vld [vmem:[%s1434_s29 + $0x2e8] sm:$0xff]  ;;  %v195_v25 = vld [vmem:[%s1434_s29 + $0xc0] sm:$0xff] }
  0x1b   : > { %v193_v19 = vld [vmem:[%s1434_s29 + $0xb0] sm:$0xff]  ;;  %v199_v27 = vld [vmem:[%s1434_s29 + $0xe0] sm:$0xff]  ;;  %v182_v30 = vld [vmem:[%s1434_s29 + $0x58] sm:$0xff] }
  0x1c   : > { %1282 = vmatpush1.bf16.msra.mxu0 %v1281_v20  ;;  %1342 = vmatpush1.bf16.msra.mxu1 %v1281_v20  ;;  %v265_v20 = vld [vmem:[%s1434_s29 + $0x2f0] sm:$0xff]  ;;  %v179_v28 = vld [vmem:[%s1434_s29 + $0x40] sm:$0xff]  ;;  %v202_v31 = vld [vmem:[%s1434_s29 + $0xf8] sm:$0xff] }
  0x1d   : > { %1283 = vmatprep.subr.bf16.mxu0 %v1374_v3  ;;  %1327 = vmatprep.subr.bf16.mxu1 %v1374_v3  ;;  %v173_v24 = vld [vmem:[%s1434_s29 + $0x10] sm:$0xff]  ;;  %v188_v34 = vld [vmem:[%s1434_s29 + $0x88] sm:$0xff]  ;;  %v191_v36 = vld [vmem:[%s1434_s29 + $0xa0] sm:$0xff] }
  0x1e   : > { %v201_v33 = vld [vmem:[%s1434_s29 + $0xf0] sm:$0xff]  ;;  %v204_v37 = vld [vmem:[%s1434_s29 + $0x108] sm:$0xff]  ;;  %v211_v43 = vld [vmem:[%s1434_s29 + $0x140] sm:$0xff] }
  0x1f   : > { %v208_v39 = vld [vmem:[%s1434_s29 + $0x128] sm:$0xff]  ;;  %v197_v40 = vld [vmem:[%s1434_s29 + $0xd0] sm:$0xff]  ;;  %v210_v45 = vld [vmem:[%s1434_s29 + $0x138] sm:$0xff] }
  0x20   : > { %1285 = vmatpush1.bf16.msra.mxu0 %v1284_v23  ;;  %1343 = vmatpush1.bf16.msra.mxu1 %v1284_v23  ;;  %v196_v23 = vld [vmem:[%s1434_s29 + $0xc8] sm:$0xff]  ;;  %v206_v46 = vld [vmem:[%s1434_s29 + $0x118] sm:$0xff]  ;;  %v209_v48 = vld [vmem:[%s1434_s29 + $0x130] sm:$0xff] }
  0x21   : > { %1286 = vmatprep.subr.bf16.mxu0 %v1374_v3  ;;  %1328 = vmatprep.subr.bf16.mxu1 %v1374_v3  ;;  %v200_v42 = vld [vmem:[%s1434_s29 + $0xe8] sm:$0xff]  ;;  %v213_v49 = vld [vmem:[%s1434_s29 + $0x150] sm:$0xff]  ;;  %v218_v54 = vld [vmem:[%s1434_s29 + $0x178] sm:$0xff] }
  0x22   : > { %v212_v50 = vld [vmem:[%s1434_s29 + $0x148] sm:$0xff]  ;;  %v217_v51 = vld [vmem:[%s1434_s29 + $0x170] sm:$0xff] }
  0x23   : > { %v220_v55 = vld [vmem:[%s1434_s29 + $0x188] sm:$0xff] }
  0x24   : > { %1288 = vmatpush1.bf16.msra.mxu0 %v1287_v26  ;;  %1344 = vmatpush1.bf16.msra.mxu1 %v1287_v26  ;;  %v176_v26 = vld [vmem:[%s1434_s29 + $0x28] sm:$0xff] }
  0x25   : > { %1289 = vmatprep.subr.bf16.mxu0 %v1374_v3  ;;  %1329 = vmatprep.subr.bf16.mxu1 %v1374_v3 }
  0x28   : > { %1291 = vmatpush1.bf16.msra.mxu0 %v1290_v29  ;;  %1345 = vmatpush1.bf16.msra.mxu1 %v1290_v29  ;;  %v198_v29 = vld [vmem:[%s1434_s29 + $0xd8] sm:$0xff] }
  0x29   : > { %1292 = vmatprep.subr.bf16.mxu0 %v1374_v3  ;;  %1330 = vmatprep.subr.bf16.mxu1 %v1374_v3 }
  0x2c   : > { %1294 = vmatpush1.bf16.msra.mxu0 %v1293_v32  ;;  %1346 = vmatpush1.bf16.msra.mxu1 %v1293_v32  ;;  %v185_v32 = vld [vmem:[%s1434_s29 + $0x70] sm:$0xff] }
  0x2d   : > { %1295 = vmatprep.subr.bf16.mxu0 %v1374_v3  ;;  %1331 = vmatprep.subr.bf16.mxu1 %v1374_v3 }
  0x30   : > { %1297 = vmatpush1.bf16.msra.mxu0 %v1296_v35  ;;  %1347 = vmatpush1.bf16.msra.mxu1 %v1296_v35  ;;  %v205_v35 = vld [vmem:[%s1434_s29 + $0x110] sm:$0xff] }
  0x31   : > { %1298 = vmatprep.subr.bf16.mxu0 %v1374_v3  ;;  %1332 = vmatprep.subr.bf16.mxu1 %v1374_v3 }
  0x34   : > { %1300 = vmatpush1.bf16.msra.mxu0 %v1299_v38  ;;  %1348 = vmatpush1.bf16.msra.mxu1 %v1299_v38  ;;  %v194_v38 = vld [vmem:[%s1434_s29 + $0xb8] sm:$0xff] }
  0x35   : > { %1301 = vmatprep.subr.bf16.mxu0 %v1374_v3  ;;  %1333 = vmatprep.subr.bf16.mxu1 %v1374_v3 }
  0x38   : > { %1303 = vmatpush1.bf16.msra.mxu0 %v1302_v41  ;;  %1349 = vmatpush1.bf16.msra.mxu1 %v1302_v41  ;;  %v207_v41 = vld [vmem:[%s1434_s29 + $0x120] sm:$0xff] }
  0x39   : > { %1304 = vmatprep.subr.bf16.mxu0 %v1374_v3  ;;  %1334 = vmatprep.subr.bf16.mxu1 %v1374_v3 }
  0x3c   : > { %1306 = vmatpush1.bf16.msra.mxu0 %v1305_v44  ;;  %1350 = vmatpush1.bf16.msra.mxu1 %v1305_v44  ;;  %v203_v44 = vld [vmem:[%s1434_s29 + $0x100] sm:$0xff] }
  0x3d   : > { %1307 = vmatprep.subr.bf16.mxu0 %v1374_v3  ;;  %1335 = vmatprep.subr.bf16.mxu1 %v1374_v3 }
  0x40   : > { %1309 = vmatpush1.bf16.msra.mxu0 %v1308_v47  ;;  %1351 = vmatpush1.bf16.msra.mxu1 %v1308_v47  ;;  %v214_v47 = vld [vmem:[%s1434_s29 + $0x158] sm:$0xff] }
  0x41   : > { %1310 = vmatprep.subr.bf16.mxu0 %v1374_v3  ;;  %1336 = vmatprep.subr.bf16.mxu1 %v1374_v3  ;;  %v181_v3 = vld [vmem:[%s1434_s29 + $0x50] sm:$0xff] }
  0x44   : > { %1312 = vmatpush1.bf16.msra.mxu0 %v1311_v52  ;;  %1352 = vmatpush1.bf16.msra.mxu1 %v1311_v52  ;;  %v215_v52 = vld [vmem:[%s1434_s29 + $0x160] sm:$0xff] }
  0x45   : > { %1314 = vmatprep.subr.bf16.mxu1 %v1313_v53 }
  0x47   : > { %472 = vmatmul.mubr.f32.vlgmr.msra.gmra.mrb[0].mxu0 %v171_v56  ;;  %592 = vmatmul.mubr.f32.vlgmr.msra.gmra.mrb[0].mxu1 %v243_v57  ;;  %v221_v56 = vld [vmem:[%s1434_s29 + $0x190] sm:$0xff]  ;;  %v219_v57 = vld [vmem:[%s1434_s29 + $0x180] sm:$0xff] }
  0x48   : > { %1316 = vmatpush3.bf16.msra.mxu1 %v1313_v53  ;;  %476 = vmatprep.mubr.f32.mxu0 %v175_v58  ;;  %v216_v53 = vld [vmem:[%s1434_s29 + $0x168] sm:$0xff] }
  0x49   : > { %596 = vmatprep.mubr.f32.mxu1 %v247_v60  ;;  %1318 = vmatprep.subr.bf16.mxu1 %v1317_v59  ;;  %v224_v58 = vld [vmem:[%s1434_s29 + $0x1a8] sm:$0xff]  ;;  %v227_v60 = vld [vmem:[%s1434_s29 + $0x1c0] sm:$0xff] }
  0x4b   : > { %477 = vmatmul.mubr.f32.gmra.mrb[2].mxu0 %v174_v61  ;;  %597 = vmatmul.mubr.f32.gmra.mrb[2].mxu1 %v246_v62  ;;  %v222_v61 = vld [vmem:[%s1434_s29 + $0x198] sm:$0xff] }
  0x4c   : > { %481 = vmatprep.mubr.f32.mxu0 %v178_v63  ;;  %601 = vmatprep.mubr.f32.mxu1 %v250_v0  ;;  %v230_v62 = vld [vmem:[%s1434_s29 + $0x1d8] sm:$0xff]  ;;  %v233_v0 = vld [vmem:[%s1434_s29 + $0x1f0] sm:$0xff] }
  0x4d   : > { %1320 = vmatpush3.bf16.msra.mxu1 %v1317_v59  ;;  %v223_v59 = vld [vmem:[%s1434_s29 + $0x1a0] sm:$0xff]  ;;  %v226_v63 = vld [vmem:[%s1434_s29 + $0x1b8] sm:$0xff] }
  0x4f   : > { %482 = vmatmul.mubr.f32.gmra.mrb[4].mxu0 %v177_v1  ;;  %602 = vmatmul.mubr.f32.gmra.mrb[4].mxu1 %v249_v2  ;;  %v225_v1 = vld [vmem:[%s1434_s29 + $0x1b0] sm:$0xff]  ;;  %v236_v2 = vld [vmem:[%s1434_s29 + $0x208] sm:$0xff] }
  0x50   : > { %486 = vmatprep.mubr.f32.mxu0 %v181_v3  ;;  %606 = vmatprep.mubr.f32.mxu1 %v253_v4  ;;  %v229_v3 = vld [vmem:[%s1434_s29 + $0x1d0] sm:$0xff]  ;;  %v239_v4 = vld [vmem:[%s1434_s29 + $0x220] sm:$0xff] }
  0x53   : > { %487 = vmatmul.mubr.f32.gmra.mrb[6].mxu0 %v180_v5  ;;  %607 = vmatmul.mubr.f32.gmra.mrb[6].mxu1 %v252_v6  ;;  %v228_v5 = vld [vmem:[%s1434_s29 + $0x1c8] sm:$0xff]  ;;  %v242_v6 = vld [vmem:[%s1434_s29 + $0x238] sm:$0xff] }
  0x54   : > { %491 = vmatprep.mubr.f32.mxu0 %v184_v7  ;;  %611 = vmatprep.mubr.f32.mxu1 %v256_v8  ;;  %v232_v7 = vld [vmem:[%s1434_s29 + $0x1e8] sm:$0xff]  ;;  %v245_v8 = vld [vmem:[%s1434_s29 + $0x250] sm:$0xff] }
  0x57   : > { %492 = vmatmul.mubr.f32.gmra.mrb[8].mxu0 %v183_v9  ;;  %612 = vmatmul.mubr.f32.gmra.mrb[8].mxu1 %v255_v10  ;;  %v231_v9 = vld [vmem:[%s1434_s29 + $0x1e0] sm:$0xff]  ;;  %v248_v10 = vld [vmem:[%s1434_s29 + $0x268] sm:$0xff] }
  0x58   : > { %496 = vmatprep.mubr.f32.mxu0 %v187_v11  ;;  %616 = vmatprep.mubr.f32.mxu1 %v259_v12  ;;  %v235_v11 = vld [vmem:[%s1434_s29 + $0x200] sm:$0xff] }
  0x59   : > { %v251_v12 = vld [vmem:[%s1434_s29 + $0x280] sm:$0xff] }
  0x5b   : > { %497 = vmatmul.mubr.f32.gmra.mrb[10].mxu0 %v186_v13  ;;  %617 = vmatmul.mubr.f32.gmra.mrb[10].mxu1 %v258_v14  ;;  %v234_v13 = vld [vmem:[%s1434_s29 + $0x1f8] sm:$0xff] }
  0x5c   : > { %501 = vmatprep.mubr.f32.mxu0 %v190_v15  ;;  %621 = vmatprep.mubr.f32.mxu1 %v262_v16  ;;  %v254_v14 = vld [vmem:[%s1434_s29 + $0x298] sm:$0xff]  ;;  %v257_v16 = vld [vmem:[%s1434_s29 + $0x2b0] sm:$0xff] }
  0x5d   : > { %v238_v15 = vld [vmem:[%s1434_s29 + $0x218] sm:$0xff] }
  0x5f   : > { %502 = vmatmul.mubr.f32.gmra.mrb[12].mxu0 %v189_v17  ;;  %622 = vmatmul.mubr.f32.gmra.mrb[12].mxu1 %v261_v18  ;;  %v237_v17 = vld [vmem:[%s1434_s29 + $0x210] sm:$0xff]  ;;  %v260_v18 = vld [vmem:[%s1434_s29 + $0x2c8] sm:$0xff] }
  0x60   : > { %506 = vmatprep.mubr.f32.mxu0 %v193_v19  ;;  %626 = vmatprep.mubr.f32.mxu1 %v265_v20  ;;  %v241_v19 = vld [vmem:[%s1434_s29 + $0x230] sm:$0xff]  ;;  %v263_v20 = vld [vmem:[%s1434_s29 + $0x2e0] sm:$0xff] }
  0x63   : > { %507 = vmatmul.mubr.f32.gmra.mrb[14].mxu0 %v192_v21  ;;  %627 = vmatmul.mubr.f32.gmra.mrb[14].mxu1 %v264_v22  ;;  %v240_v21 = vld [vmem:[%s1434_s29 + $0x228] sm:$0xff]  ;;  %v266_v22 = vld [vmem:[%s1434_s29 + $0x2f8] sm:$0xff] }
  0x64   : > { %511 = vmatprep.mubr.f32.mxu0 %v196_v23  ;;  %1217 = vmatprep.mubr.msk.f32.mxu1 %vm310_vm0, %v173_v24 }
  0x67   : > { %512 = vmatmul.mubr.f32.gmra.mrb[16].mxu0 %v195_v25  ;;  %1218 = vmatmul.mubr.msk.f32.vlgmr.msra.gmra.mrb[16].mxu1 %vm310_vm0, %v176_v26 }
  0x68   : > { %516 = vmatprep.mubr.f32.mxu0 %v199_v27  ;;  %1220 = vmatprep.mubr.msk.f32.mxu1 %vm310_vm0, %v179_v28 }
  0x6b   : > { %517 = vmatmul.mubr.f32.gmra.mrb[18].mxu0 %v198_v29  ;;  %1221 = vmatmul.mubr.msk.f32.gmra.mrb[18].mxu1 %vm310_vm0, %v182_v30 }
  0x6c   : > { %521 = vmatprep.mubr.f32.mxu0 %v202_v31  ;;  %1223 = vmatprep.mubr.msk.f32.mxu1 %vm310_vm0, %v185_v32 }
  0x6f   : > { %522 = vmatmul.mubr.f32.gmra.mrb[20].mxu0 %v201_v33  ;;  %1224 = vmatmul.mubr.msk.f32.gmra.mrb[20].mxu1 %vm310_vm0, %v188_v34 }
  0x70   : > { %526 = vmatprep.mubr.f32.mxu0 %v205_v35  ;;  %1226 = vmatprep.mubr.msk.f32.mxu1 %vm310_vm0, %v191_v36 }
  0x73   : > { %527 = vmatmul.mubr.f32.gmra.mrb[22].mxu0 %v204_v37  ;;  %1227 = vmatmul.mubr.msk.f32.gmra.mrb[22].mxu1 %vm310_vm0, %v194_v38 }
  0x74   : > { %531 = vmatprep.mubr.f32.mxu0 %v208_v39  ;;  %1229 = vmatprep.mubr.msk.f32.mxu1 %vm310_vm0, %v197_v40 }
  0x77   : > { %532 = vmatmul.mubr.f32.gmra.mrb[24].mxu0 %v207_v41  ;;  %1230 = vmatmul.mubr.msk.f32.gmra.mrb[24].mxu1 %vm310_vm0, %v200_v42 }
  0x78   : > { %536 = vmatprep.mubr.f32.mxu0 %v211_v43  ;;  %1232 = vmatprep.mubr.msk.f32.mxu1 %vm310_vm0, %v203_v44 }
  0x7b   : > { %537 = vmatmul.mubr.f32.gmra.mrb[26].mxu0 %v210_v45  ;;  %1233 = vmatmul.mubr.msk.f32.gmra.mrb[26].mxu1 %vm310_vm0, %v206_v46 }
  0x7c   : > { %541 = vmatprep.mubr.f32.mxu0 %v214_v47  ;;  %1235 = vmatprep.mubr.msk.f32.mxu1 %vm310_vm0, %v209_v48 }
  0x7f   : > { %542 = vmatmul.mubr.f32.gmra.mrb[28].mxu0 %v213_v49  ;;  %1236 = vmatmul.mubr.msk.f32.gmra.mrb[28].mxu1 %vm310_vm0, %v212_v50 }
  0x80   : > { %546 = vmatprep.mubr.f32.mxu0 %v217_v51  ;;  %1238 = vmatprep.mubr.msk.f32.mxu1 %vm310_vm0, %v215_v52 }
  0x83   : > { %547 = vmatmul.mubr.f32.gmra.mrb[30].mxu0 %v216_v53  ;;  %1239 = vmatmul.mubr.msk.f32.gmra.mrb[30].mxu1 %vm310_vm0, %v218_v54  ;;  %v1701_v53 = vld [vmem:[%s1825_s2] ss:$0 sm:$0xff] }
  0x84   : > { %551 = vmatprep.mubr.f32.mxu0 %v220_v55  ;;  %1241 = vmatprep.mubr.msk.f32.mxu1 %vm310_vm0, %v221_v56 }
  0x87   : > { %552 = vmatmul.mubr.f32.gmra.mrb[32].mxu0 %v219_v57  ;;  %1242 = vmatmul.mubr.msk.f32.gmra.mrb[32].mxu1 %vm310_vm0, %v224_v58 }
  0x88   : > { %556 = vmatprep.mubr.f32.mxu0 %v223_v59  ;;  %1244 = vmatprep.mubr.msk.f32.mxu1 %vm310_vm0, %v227_v60 }
  0x8b   : > { %557 = vmatmul.mubr.f32.gmra.mrb[34].mxu0 %v222_v61  ;;  %1245 = vmatmul.mubr.msk.f32.gmra.mrb[34].mxu1 %vm310_vm0, %v230_v62 }
  0x8c   : > { %561 = vmatprep.mubr.f32.mxu0 %v226_v63  ;;  %1247 = vmatprep.mubr.msk.f32.mxu1 %vm310_vm0, %v233_v0 }
  0x8f   : > { %562 = vmatmul.mubr.f32.gmra.mrb[36].mxu0 %v225_v1  ;;  %1248 = vmatmul.mubr.msk.f32.gmra.mrb[36].mxu1 %vm310_vm0, %v236_v2 }
  0x90   : > { %566 = vmatprep.mubr.f32.mxu0 %v229_v3  ;;  %1250 = vmatprep.mubr.msk.f32.mxu1 %vm310_vm0, %v239_v4 }
  0x93   : > { %567 = vmatmul.mubr.f32.gmra.mrb[38].mxu0 %v228_v5  ;;  %1251 = vmatmul.mubr.msk.f32.gmra.mrb[38].mxu1 %vm310_vm0, %v242_v6 }
  0x94   : > { %571 = vmatprep.mubr.f32.mxu0 %v232_v7  ;;  %1253 = vmatprep.mubr.msk.f32.mxu1 %vm310_vm0, %v245_v8 }
  0x97   : > { %572 = vmatmul.mubr.f32.gmra.mrb[40].mxu0 %v231_v9  ;;  %1254 = vmatmul.mubr.msk.f32.gmra.mrb[40].mxu1 %vm310_vm0, %v248_v10 }
  0x98   : > { %576 = vmatprep.mubr.f32.mxu0 %v235_v11  ;;  %1256 = vmatprep.mubr.msk.f32.mxu1 %vm310_vm0, %v251_v12 }
  0x9b   : > { %577 = vmatmul.mubr.f32.gmra.mrb[42].mxu0 %v234_v13  ;;  %1257 = vmatmul.mubr.msk.f32.gmra.mrb[42].mxu1 %vm310_vm0, %v254_v14 }
  0x9c   : > { %581 = vmatprep.mubr.f32.mxu0 %v238_v15  ;;  %1259 = vmatprep.mubr.msk.f32.mxu1 %vm310_vm0, %v257_v16 }
  0x9f   : > { %582 = vmatmul.mubr.f32.gmra.mrb[44].mxu0 %v237_v17  ;;  %1260 = vmatmul.mubr.msk.f32.gmra.mrb[44].mxu1 %vm310_vm0, %v260_v18 }
  0xa0   : > { %586 = vmatprep.mubr.f32.mxu0 %v241_v19  ;;  %1262 = vmatprep.mubr.msk.f32.mxu1 %vm310_vm0, %v263_v20 }
  0xa3   : > { %587 = vmatmul.mubr.f32.gmra.mrb[46].mxu0 %v240_v21  ;;  %1263 = vmatmul.mubr.msk.f32.gmra.mrb[46].mxu1 %vm310_vm0, %v266_v22 }
 0x11a   : > { %v473_v23 = vpop.f32.mrb[0].mxu0  ;;  %v1682_v24 = vpop.f32.mrb[0].mxu1 }
 0x11b   : > { %v475_v25 = vpop.f32.mrb[1].mxu0  ;;  %v595_v26 = vpop.f32.mrb[1].mxu1  ;;  %v474_v57 = vadd.f32 %v1701_v53, %v473_v23 }
 0x11e   : > { %v478_v27 = vpop.f32.mrb[2].mxu0  ;;  %v1684_v28 = vpop.f32.mrb[2].mxu1 }
 0x11f   : > { %v480_v29 = vpop.f32.mrb[3].mxu0  ;;  %v600_v30 = vpop.f32.mrb[3].mxu1  ;;  %v479_v56 = vadd.f32 %v1701_v53, %v478_v27 }
 0x122   : > { %v483_v31 = vpop.f32.mrb[4].mxu0  ;;  %v1686_v32 = vpop.f32.mrb[4].mxu1 }
 0x123   : > { %v485_v33 = vpop.f32.mrb[5].mxu0  ;;  %v605_v34 = vpop.f32.mrb[5].mxu1  ;;  %v484_v1 = vadd.f32 %v1701_v53, %v483_v31 }
 0x126   : > { %v488_v35 = vpop.f32.mrb[6].mxu0  ;;  %v1688_v36 = vpop.f32.mrb[6].mxu1 }
 0x127   : > { %v490_v37 = vpop.f32.mrb[7].mxu0  ;;  %v610_v38 = vpop.f32.mrb[7].mxu1  ;;  %v489_v0 = vadd.f32 %v1701_v53, %v488_v35 }
 0x12a   : > { %v493_v39 = vpop.f32.mrb[8].mxu0  ;;  %v1690_v40 = vpop.f32.mrb[8].mxu1 }
 0x12b   : > { %v495_v41 = vpop.f32.mrb[9].mxu0  ;;  %v615_v42 = vpop.f32.mrb[9].mxu1  ;;  %v494_v9 = vadd.f32 %v1701_v53, %v493_v39 }
 0x12e   : > { %v498_v43 = vpop.f32.mrb[10].mxu0  ;;  %v1692_v44 = vpop.f32.mrb[10].mxu1 }
 0x12f   : > { %v500_v45 = vpop.f32.mrb[11].mxu0  ;;  %v620_v46 = vpop.f32.mrb[11].mxu1  ;;  %v499_v8 = vadd.f32 %v1701_v53, %v498_v43 }
 0x132   : > { %v503_v47 = vpop.f32.mrb[12].mxu0  ;;  %v1694_v48 = vpop.f32.mrb[12].mxu1 }
 0x133   : > { %v505_v49 = vpop.f32.mrb[13].mxu0  ;;  %v625_v50 = vpop.f32.mrb[13].mxu1  ;;  %v504_v17 = vadd.f32 %v1701_v53, %v503_v47 }
 0x136   : > { %v508_v51 = vpop.f32.mrb[14].mxu0  ;;  %v1696_v52 = vpop.f32.mrb[14].mxu1 }
 0x137   : > { %v510_v54 = vpop.f32.mrb[15].mxu0  ;;  %v630_v55 = vpop.f32.mrb[15].mxu1  ;;  %v509_v16 = vadd.f32 %v1701_v53, %v508_v51 }
 0x13a   : > { %v513_v58 = vpop.f32.mrb[16].mxu0  ;;  %v1219_v59 = vpop.f32.mrb[16].mxu1 }
 0x13b   : > { %v1705_v60 = vadd.f32 %v1219_v59, %v479_v56  ;;  %v515_v61 = vpop.f32.mrb[17].mxu0  ;;  %v698_v62 = vpop.f32.mrb[17].mxu1  ;;  %v514_v26 = vadd.f32 %v1701_v53, %v513_v58 }
 0x13c   : > { %v1707_v63 = vadd.f32 %v698_v62, %v474_v57 }
 0x13e   : > { %v518_v2 = vpop.f32.mrb[18].mxu0  ;;  %v1222_v3 = vpop.f32.mrb[18].mxu1 }
 0x13f   : > { %v1711_v4 = vadd.f32 %v1222_v3, %v489_v0  ;;  %v520_v5 = vpop.f32.mrb[19].mxu0  ;;  %v708_v6 = vpop.f32.mrb[19].mxu1  ;;  %v519_v25 = vadd.f32 %v1701_v53, %v518_v2 }
 0x140   : > { %v1713_v7 = vadd.f32 %v708_v6, %v484_v1 }
 0x142   : > { %v523_v10 = vpop.f32.mrb[20].mxu0  ;;  %v1225_v11 = vpop.f32.mrb[20].mxu1 }
 0x143   : > { %v1717_v12 = vadd.f32 %v1225_v11, %v499_v8  ;;  %v525_v13 = vpop.f32.mrb[21].mxu0  ;;  %v718_v14 = vpop.f32.mrb[21].mxu1  ;;  %v524_v37 = vadd.f32 %v1701_v53, %v523_v10 }
 0x144   : > { %v1719_v15 = vadd.f32 %v718_v14, %v494_v9  ;;  %v857_v14 = vmax.f32 %v1707_v63, 0.0 }
 0x146   : > { %v528_v18 = vpop.f32.mrb[22].mxu0  ;;  %v1228_v19 = vpop.f32.mrb[22].mxu1 }
 0x147   : > { %v1723_v20 = vadd.f32 %v1228_v19, %v509_v16  ;;  %v530_v21 = vpop.f32.mrb[23].mxu0  ;;  %v728_v22 = vpop.f32.mrb[23].mxu1  ;;  %v529_v35 = vadd.f32 %v1701_v53, %v528_v18 }
 0x148   : > { %v1725_v23 = vadd.f32 %v728_v22, %v504_v17 }
 0x14a   : > { %v533_v27 = vpop.f32.mrb[24].mxu0  ;;  %v1231_v29 = vpop.f32.mrb[24].mxu1 }
 0x14b   : > { %v1729_v30 = vadd.f32 %v1231_v29, %v519_v25  ;;  %v535_v31 = vpop.f32.mrb[25].mxu0  ;;  %v738_v33 = vpop.f32.mrb[25].mxu1  ;;  %v534_v47 = vadd.f32 %v1701_v53, %v533_v27  ;;  %v858_v27 = vmax.f32 %v1705_v60, 0.0  ;;  %v599_v60 = vadd.f32 %v1701_v53, %v1684_v28 }
 0x14c   : > { %v1731_v34 = vadd.f32 %v738_v33, %v514_v26  ;;  %v604_v28 = vadd.f32 %v1701_v53, %v1686_v32 }
 0x14e   : > { %v538_v38 = vpop.f32.mrb[26].mxu0  ;;  %v1234_v39 = vpop.f32.mrb[26].mxu1 }
 0x14f   : > { %v1735_v41 = vadd.f32 %v1234_v39, %v529_v35  ;;  %v540_v42 = vpop.f32.mrb[27].mxu0  ;;  %v748_v43 = vpop.f32.mrb[27].mxu1  ;;  %v539_v46 = vadd.f32 %v1701_v53, %v538_v38 }
 0x150   : > { %v1737_v45 = vadd.f32 %v748_v43, %v524_v37  ;;  %v859_v42 = vmax.f32 %v1713_v7, 0.0 }
 0x152   : > { %v543_v49 = vpop.f32.mrb[28].mxu0  ;;  %v1237_v50 = vpop.f32.mrb[28].mxu1 }
 0x153   : > { %v1741_v51 = vadd.f32 %v1237_v50, %v539_v46  ;;  %v545_v54 = vpop.f32.mrb[29].mxu0  ;;  %v758_v55 = vpop.f32.mrb[29].mxu1  ;;  %v544_v57 = vadd.f32 %v1701_v53, %v543_v49 }
 0x154   : > { %v1743_v56 = vadd.f32 %v758_v55, %v534_v47 }
 0x156   : > { %v548_v58 = vpop.f32.mrb[30].mxu0  ;;  %v1240_v59 = vpop.f32.mrb[30].mxu1 }
 0x157   : > { %v549_v61 = vadd.f32 %v1701_v53, %v548_v58  ;;  %v550_v62 = vpop.f32.mrb[31].mxu0  ;;  %v768_v0 = vpop.f32.mrb[31].mxu1 }
 0x158   : > { %v1747_v1 = vadd.f32 %v768_v0, %v544_v57  ;;  %v594_v57 = vadd.f32 %v1701_v53, %v1682_v24  ;;  %v918_v62 = vlaneseq  ;;  %v860_v0 = vmax.f32 %v1711_v4, 0.0 }
 0x159   : > { %v1749_v2 = vadd.f32 %v1240_v59, %v549_v61  ;;  %v1375_v61 = vmov 1983009808   ;;  %v609_v24 = vadd.f32 %v1701_v53, %v1688_v36 }
 0x15a   : > { %v553_v3 = vpop.f32.mrb[32].mxu0  ;;  %v1243_v5 = vpop.f32.mrb[32].mxu1  ;;  %v1768_v7 = vunpack.c.l.s4 %v1375_v61 }
 0x15b   : > { %v554_v6 = vadd.f32 %v1701_v53, %v553_v3  ;;  %v555_v8 = vpop.f32.mrb[33].mxu0  ;;  %v778_v9 = vpop.f32.mrb[33].mxu1 }
 0x15d   : > { %v779_v10 = vadd.f32 %v778_v9, %v554_v6 }
 0x15e   : > { %v558_v11 = vpop.f32.mrb[34].mxu0  ;;  %v1246_v13 = vpop.f32.mrb[34].mxu1 }
 0x15f   : > { %v873_v16 = vmax.f32 %v779_v10, 0.0  ;;  %v559_v17 = vadd.f32 %v1701_v53, %v558_v11  ;;  %v560_v18 = vpop.f32.mrb[35].mxu0  ;;  %v788_v19 = vpop.f32.mrb[35].mxu1  ;;  %v1376_v11 = vmov 1934713408  }
 0x160   : > { %v614_v18 = vadd.f32 %v1701_v53, %v1690_v40 }
 0x161   : > { %v889_v21 = vmax.f32 %v857_v14, %v873_v16  ;;  %v784_v22 = vadd.f32 %v1243_v5, %v559_v17  ;;  %v866_v14 = vmax.f32 %v1729_v30, 0.0 }
 0x162   : > { %v563_v25 = vpop.f32.mrb[36].mxu0  ;;  %v1249_v26 = vpop.f32.mrb[36].mxu1 }
 0x163   : > { %v874_v29 = vmax.f32 %v784_v22, 0.0  ;;  %v564_v31 = vadd.f32 %v1701_v53, %v563_v25  ;;  %v565_v33 = vpop.f32.mrb[37].mxu0  ;;  %v798_v35 = vpop.f32.mrb[37].mxu1 }
 0x165   : > { %v890_v37 = vmax.f32 %v858_v27, %v874_v29  ;;  %v789_v38 = vadd.f32 %v788_v19, %v564_v31  ;;  %v861_v19 = vmax.f32 %v1719_v15, 0.0  ;;  %v624_v15 = vadd.f32 %v1701_v53, %v1694_v48 }
 0x166   : > { %v568_v39 = vpop.f32.mrb[38].mxu0  ;;  %v1756_v63 = vpop.f32.mrb[38].mxu1 }
 0x167   : > { %v1759_v43 = vmax.f32 %v889_v21, %v890_v37  ;;  %v875_v46 = vmax.f32 %v789_v38, 0.0  ;;  %v569_v47 = vadd.f32 %v1701_v53, %v568_v39  ;;  %v570_v49 = vpop.f32.mrb[39].mxu0  ;;  %v1762_v50 = vpop.f32.mrb[39].mxu1  ;;  %v865_v21 = vmax.f32 %v1731_v34, 0.0 }
 0x168   : > { %v868_v34 = vmax.f32 %v1735_v41, 0.0  ;;  %v629_v41 = vadd.f32 %v1701_v53, %v1696_v52 }
 0x169   : > { %v891_v54 = vmax.f32 %v859_v42, %v875_v46  ;;  %v794_v55 = vadd.f32 %v1246_v13, %v569_v47  ;;  %v1776_v13 = vunpack.c.l.s4 %v1376_v11  ;;  %v867_v46 = vmax.f32 %v1737_v45, 0.0 }
 0x16a   : > { %v573_v58 = vpop.f32.mrb[40].mxu0  ;;  %v1255_v59 = vpop.f32.mrb[40].mxu1 }
 0x16b   : > { %v876_v3 = vmax.f32 %v794_v55, 0.0  ;;  %v574_v5 = vadd.f32 %v1701_v53, %v573_v58  ;;  %v824_v6 = vadd.f32 %v1255_v59, %v599_v60  ;;  %v575_v8 = vpop.f32.mrb[41].mxu0  ;;  %v818_v9 = vpop.f32.mrb[41].mxu1 }
 0x16c   : > { %v819_v10 = vadd.f32 %v818_v9, %v594_v57  ;;  %v869_v9 = vmax.f32 %v1743_v56, 0.0 }
 0x16d   : > { %v892_v16 = vmax.f32 %v860_v0, %v876_v3  ;;  %v799_v4 = vadd.f32 %v798_v35, %v574_v5  ;;  %v882_v17 = vmax.f32 %v824_v6, 0.0  ;;  %v619_v35 = vadd.f32 %v1701_v53, %v1692_v44 }
 0x16e   : > { %v881_v32 = vmax.f32 %v819_v10, 0.0  ;;  %v578_v22 = vpop.f32.mrb[42].mxu0  ;;  %v1258_v25 = vpop.f32.mrb[42].mxu1  ;;  %v862_v44 = vmax.f32 %v1717_v12, 0.0  ;;  %v870_v3 = vmax.f32 %v1741_v51, 0.0  ;;  %v863_v12 = vmax.f32 %v1725_v23, 0.0 }
 0x16f   : > { %v1783_v36 = vmax.f32 %v891_v54, %v892_v16  ;;  %v877_v27 = vmax.f32 %v799_v4, 0.0  ;;  %v898_v29 = vmax.f32 %v866_v14, %v882_v17  ;;  %v579_v31 = vadd.f32 %v1701_v53, %v578_v22  ;;  %v580_v30 = vpop.f32.mrb[43].mxu0  ;;  %v828_v33 = vpop.f32.mrb[43].mxu1 }
 0x170   : > { %v897_v37 = vmax.f32 %v865_v21, %v881_v32  ;;  %v834_v40 = vadd.f32 %v1258_v25, %v609_v24  ;;  %v829_v38 = vadd.f32 %v828_v33, %v604_v28  ;;  %v871_v51 = vmax.f32 %v1747_v1, 0.0 }
 0x171   : > { %v893_v39 = vmax.f32 %v861_v19, %v877_v27  ;;  %v804_v42 = vadd.f32 %v1249_v26, %v579_v31  ;;  %v872_v25 = vmax.f32 %v1749_v2, 0.0  ;;  %v917_v1 = vunpack.c.0.s8 %v1768_v7 }
 0x172   : > { %v1792_v47 = vmax.f32 %v897_v37, %v898_v29  ;;  %v884_v49 = vmax.f32 %v834_v40, 0.0  ;;  %v883_v60 = vmax.f32 %v829_v38, 0.0  ;;  %v583_v54 = vpop.f32.mrb[44].mxu0  ;;  %v1261_v55 = vpop.f32.mrb[44].mxu1  ;;  %v919_v33 = vshrl.u32 %v918_v62, 7 }
 0x173   : > { %v878_v57 = vmax.f32 %v804_v42, 0.0  ;;  %v584_v58 = vadd.f32 %v1701_v53, %v583_v54  ;;  %v844_v59 = vadd.f32 %v1261_v55, %v619_v35  ;;  %v585_v61 = vpop.f32.mrb[45].mxu0  ;;  %v838_v48 = vpop.f32.mrb[45].mxu1 }
 0x174   : > { %v900_v26 = vmax.f32 %v868_v34, %v884_v49  ;;  %v899_v0 = vmax.f32 %v867_v46, %v883_v60  ;;  %v839_v45 = vadd.f32 %v838_v48, %v614_v18  ;;  %v920_v34 = vsub.s32 %v917_v1, %v919_v33 }
 0x175   : > { %v894_v5 = vmax.f32 %v862_v44, %v878_v57  ;;  %v809_v6 = vadd.f32 %v1762_v50, %v584_v58  ;;  %v886_v8 = vmax.f32 %v844_v59, 0.0 }
 0x176   : > { %v910_v28 = vmax.f32 %v899_v0, %v900_v26  ;;  %v885_v24 = vmax.f32 %v839_v45, 0.0  ;;  %v588_v10 = vpop.f32.mrb[46].mxu0  ;;  %v1264_v11 = vpop.f32.mrb[46].mxu1 }
 0x177   : > { %v907_v14 = vmax.f32 %v893_v39, %v894_v5  ;;  %v879_v16 = vmax.f32 %v809_v6, 0.0  ;;  %v902_v52 = vmax.f32 %v870_v3, %v886_v8  ;;  %v589_v4 = vadd.f32 %v1701_v53, %v588_v10  ;;  %v590_v17 = vpop.f32.mrb[47].mxu0  ;;  %v848_v18 = vpop.f32.mrb[47].mxu1 }
 0x178   : > { %v901_v19 = vmax.f32 %v869_v9, %v885_v24  ;;  %v854_v50 = vadd.f32 %v1264_v11, %v629_v41  ;;  %v849_v21 = vadd.f32 %v848_v18, %v624_v15  ;;  %v864_v53 = vmax.f32 %v1723_v20, 0.0 }
 0x179   : > { %v913_v23 = vcombine.low %v1759_v43, %v907_v14  ;;  %v914_v56 = vcombine.high %v1759_v43, %v907_v14  ;;  %v895_v32 = vmax.f32 %v863_v12, %v879_v16  ;;  %v814_v22 = vadd.f32 %v1756_v63, %v589_v4 }
 0x17a   : > { %v911_v27 = vmax.f32 %v901_v19, %v902_v52  ;;  %v888_v29 = vmax.f32 %v854_v50, 0.0  ;;  %v887_v31 = vmax.f32 %v849_v21, 0.0  ;;  %v981_v63 = vunpack.c.0.s8 %v1776_v13 }
 0x17b   : > { %v880_v30 = vmax.f32 %v814_v22, 0.0  ;;  %v921_v44 = vrot.slane %v913_v23, %v920_v34 }
 0x17c   : > { %v945_v35 = vcombine.low %v1792_v47, %v911_v27  ;;  %v946_v37 = vcombine.high %v1792_v47, %v911_v27  ;;  %v904_v43 = vmax.f32 %v872_v25, %v888_v29  ;;  %v903_v40 = vmax.f32 %v871_v51, %v887_v31 }
 0x17d   : > { %v896_v38 = vmax.f32 %v864_v53, %v880_v30  ;;  %v984_v46 = vsub.s32 %v981_v63, %v919_v33  ;;  %v928_v47 = vrot.slane %v914_v56, %v920_v34 }
 0x17e   : > { %v912_v2 = vmax.f32 %v903_v40, %v904_v43  ;;  %v960_v62 = vrot.slane %v946_v37, %v920_v34  ;;  %v953_v60 = vrot.slane %v945_v35, %v920_v34 }
 0x17f   : > { %v908_v15 = vmax.f32 %v895_v32, %v896_v38 }
 0x180   : > { %v961_v39 = vcombine.low %v910_v28, %v912_v2  ;;  %v962_v42 = vcombine.high %v910_v28, %v912_v2 }
 0x181   : > { %v929_v20 = vcombine.low %v1783_v36, %v908_v15  ;;  %v930_v7 = vcombine.high %v1783_v36, %v908_v15 }
 0x182   : > { %v976_v49 = vrot.slane %v962_v42, %v920_v34  ;;  %v969_v54 = vrot.slane %v961_v39, %v920_v34 }
 0x183   : > { %v944_v55 = vrot.slane %v930_v7, %v920_v34  ;;  %v937_v57 = vrot.slane %v929_v20, %v920_v34 }
 0x184   : > { %v1025_v58 = vcombine.low %v960_v62, %v976_v49  ;;  %v1009_v13 = vcombine.low %v953_v60, %v969_v54  ;;  %v1026_v59 = vcombine.high %v960_v62, %v976_v49  ;;  %v1010_v61 = vcombine.high %v953_v60, %v969_v54 }
 0x185   : > { %v993_v48 = vcombine.low %v928_v47, %v944_v55  ;;  %v977_v41 = vcombine.low %v921_v44, %v937_v57  ;;  %v994_v26 = vcombine.high %v928_v47, %v944_v55  ;;  %v978_v0 = vcombine.high %v921_v44, %v937_v57 }
 0x186   : > { %v1033_v45 = vrot.slane %v1025_v58, %v984_v46  ;;  %v1017_v3 = vrot.slane %v1009_v13, %v984_v46  ;;  %v1040_v36 = vrot.slane %v1026_v59, %v984_v46  ;;  %v1024_v5 = vrot.slane %v1010_v61, %v984_v46 }
 0x187   : > { %v1001_v6 = vrot.slane %v993_v48, %v984_v46  ;;  %v985_v8 = vrot.slane %v977_v41, %v984_v46  ;;  %v1008_v12 = vrot.slane %v994_v26, %v984_v46  ;;  %v992_v9 = vrot.slane %v978_v0, %v984_v46 }
 0x189   : > { %v1046_v28 = vcombine.high %v1001_v6, %v1033_v45  ;;  %v1045_v24 = vcombine.low %v1001_v6, %v1033_v45  ;;  %v1042_v10 = vcombine.high %v985_v8, %v1017_v3  ;;  %v1041_v11 = vcombine.low %v985_v8, %v1017_v3 }
 0x18a   : > { %v1048_v14 = vcombine.high %v1008_v12, %v1040_v36  ;;  %v1044_v16 = vcombine.high %v992_v9, %v1024_v5  ;;  %v1047_v52 = vcombine.low %v1008_v12, %v1040_v36  ;;  %v1043_v4 = vcombine.low %v992_v9, %v1024_v5 }
 0x18b   : > { %1058 = vrot.lane.b32.xlu1 %v1046_v28, %s1377_s18  ;;  %1050 = vrot.lane.b32.xlu0 %v1042_v10, %s1377_s18 }
 0x18f   : > { %1062 = vrot.lane.b32.xlu1 %v1048_v14, %s1377_s18  ;;  %1054 = vrot.lane.b32.xlu0 %v1044_v16, %s1377_s18 }
 0x1fd   : > { %v1059_v17 = vpop.permute.xlu1 %1058  ;;  %v1051_v18 = vpop.permute.xlu0 %1050 }
 0x1fe   : > { %v1068_v51 = vsel %vm1065_vm1, %v1045_v24, %v1059_v17  ;;  %v1066_v19 = vsel %vm1065_vm1, %v1041_v11, %v1051_v18 }
 0x1ff   : > { %1072 = vst [vmem:[%s170_s22 + $0x10] sm:$0xff] %v1068_v51  ;;  %1070 = vst [vmem:[%s170_s22] sm:$0xff] %v1066_v19 }
 0x201   : > { %v1063_v50 = vpop.permute.xlu1 %1062  ;;  %v1055_v21 = vpop.permute.xlu0 %1054 }
 0x202   : > { %v1069_v23 = vsel %vm1065_vm1, %v1047_v52, %v1063_v50  ;;  %v1067_v56 = vsel %vm1065_vm1, %v1043_v4, %v1055_v21 }
 0x203   : > { %1073 = vst [vmem:[%s170_s22 + $0x18] sm:$0xff] %v1069_v23  ;;  %1071 = vst [vmem:[%s170_s22 + $0x8] sm:$0xff] %v1067_v56 }
 0x204 PF: > { %s13_s12 = sadd.s32 1, %s1372_s12  }
 0x205   : > { %p10_p4 = scmp.ge.s32.totalorder %s13_s12, 4  }
 0x207   :  { %12 = sbr.rel (!%p10_p4) target bundleno = 1 (0x1), region = 62 }

// kernel: cnn_cifar_forward.5
= control target key start
LH: loop header
LB: loop body
LE: loop exit
PB: predicated region body
PF: predicated region fallthrough
CT: control target
= control target key end

     0   :  { %10 = vsyncpa [#allocation5], 0  ;;  %s10304_s18 = smov 0   ;;  %s10306_s19 = smov 0   ;;  %s12138_s0 = inlined_call_operand.vmem [shape: bf16[2,4096], index: 0, kind: input, shape index: {}]   ;;  %s12139_s1 = inlined_call_operand.vmem [shape: bf16[4096,512], index: 1, kind: input, shape index: {}]   ;;  %s12140_s2 = inlined_call_operand.vmem [shape: f32[1,512], index: 2, kind: input, shape index: {}]   ;;  %s12141_s3 = inlined_call_operand.vmem [shape: bf16[512,128], index: 3, kind: input, shape index: {}]   ;;  %s12142_s4 = inlined_call_operand.vmem [shape: f32[1,128], index: 4, kind: input, shape index: {}]   ;;  %s12143_s5 = inlined_call_operand.hbm [shape: f32[2,128], index: 5, kind: output, shape index: {}]  }
   0x1   :  { %s10308_s20 = smov 0   ;;  %s10310_s21 = smov 0  }
   0x2   :  { %s10312_s22 = smov 0  }
   0x3 LB: > { %s8734_s23 = sadd.s32 4294967295, %s10269_s22   ;;  %s25_s24 = sadd.s32 1, %s10265_s21  ;;  %s10269_s22 = sphi %s10312_s22, %s16_s22   ;;  %s10265_s21 = sphi %s10310_s21, %s12148_s21   ;;  %s10261_s20 = sphi %s10308_s20, %s12147_s20   ;;  %s10257_s19 = sphi %s10306_s19, %s12146_s19   ;;  %s10253_s18 = sphi %s10304_s18, %s12145_s18  }
   0x4   : > { %p26_p0 = scmp.ge.s32.totalorder %s25_s24, 2  ;;  %p68_p1 = scmp.ne.s32.totalorder %s10257_s19, %s10253_s18 }
   0x5   : > { %p69_p2 = scmp.eq.s32.totalorder %s10269_s22, 0  ;;  %s61_s26 = sadd.s32 1, %s10257_s19 }
   0x6   : > { %s12150_s24 = smov (%p26_p0, %s25_s24), 0  ;;  %p8737_p5 = scmp.ge.s32.totalorder %s10269_s22, 2 }
   0x7   : > { %p70_p3 = por %p69_p2, %p68_p1  ;;  %s58_s25 = ssub.s32 %s10265_s21, %s12150_s24 }
   0x8   : > { %p59_p4 = scmp.eq.s32.totalorder %s58_s25, 0  ;;  %203 = sbr.rel (%p8737_p5) target bundleno = 275 (0x113), region = 24 }
   0xa   : > { %s10340_s27 = scalar_select %p59_p4, %s10257_s19, %s61_s26  }
   0xf   : > { %206 = sbr.rel (!%p70_p3) target bundleno = 275 (0x113), region = 28  ;;  %s208_s28 = sand.u32 (%p70_p3), 1, %s10257_s19  }
  0x10   : > { %s9281_s29 = sshll.u32 (%p70_p3), %s10265_s21, 3  ;;  %s8738_s30 = sshll.u32 (%p70_p3), %s208_s28, 12 }
  0x11   : > { %s10348_s8 = scalar_lea.vmem (%p70_p3), %s12139_s1, %s9281_s29  ;;  %s10353_s9 = scalar_lea.vmem (%p70_p3), [#allocation3], %s8738_s30 }
  0x12   : > { %v1266_v0 = vld [vmem:[%s10348_s8] sm:$0xff] (%p70_p3)  ;;  %v1268_v1 = vld [vmem:[%s10348_s8 + $0x10] sm:$0xff] (%p70_p3) }
  0x13   : > { %v1270_v2 = vld [vmem:[%s10348_s8 + $0x20] sm:$0xff] (%p70_p3)  ;;  %1267 = vst [vmem:[%s10353_s9] sm:$0xff] (%p70_p3), %v1266_v0  ;;  %1269 = vst [vmem:[%s10353_s9 + $0x8] sm:$0xff] (%p70_p3), %v1268_v1  ;;  %v1272_v3 = vld [vmem:[%s10348_s8 + $0x30] sm:$0xff] (%p70_p3) }
  0x14   : > { %1271 = vst [vmem:[%s10353_s9 + $0x10] sm:$0xff] (%p70_p3), %v1270_v2  ;;  %v1274_v4 = vld [vmem:[%s10348_s8 + $0x40] sm:$0xff] (%p70_p3)  ;;  %v1276_v5 = vld [vmem:[%s10348_s8 + $0x50] sm:$0xff] (%p70_p3)  ;;  %1273 = vst [vmem:[%s10353_s9 + $0x18] sm:$0xff] (%p70_p3), %v1272_v3 }
  0x15   : > { %1275 = vst [vmem:[%s10353_s9 + $0x20] sm:$0xff] (%p70_p3), %v1274_v4  ;;  %1277 = vst [vmem:[%s10353_s9 + $0x28] sm:$0xff] (%p70_p3), %v1276_v5  ;;  %v1278_v6 = vld [vmem:[%s10348_s8 + $0x60] sm:$0xff] (%p70_p3)  ;;  %v1280_v7 = vld [vmem:[%s10348_s8 + $0x70] sm:$0xff] (%p70_p3) }
  0x16   : > { %v1282_v8 = vld [vmem:[%s10348_s8 + $0x80] sm:$0xff]  ;;  %1279 = vst [vmem:[%s10353_s9 + $0x30] sm:$0xff] %v1278_v6  ;;  %1281 = vst [vmem:[%s10353_s9 + $0x38] sm:$0xff] %v1280_v7  ;;  %v1284_v9 = vld [vmem:[%s10348_s8 + $0x90] sm:$0xff] }
  0x17   : > { %1283 = vst [vmem:[%s10353_s9 + $0x40] sm:$0xff] %v1282_v8  ;;  %v1286_v10 = vld [vmem:[%s10348_s8 + $0xa0] sm:$0xff]  ;;  %v1288_v11 = vld [vmem:[%s10348_s8 + $0xb0] sm:$0xff]  ;;  %1285 = vst [vmem:[%s10353_s9 + $0x48] sm:$0xff] %v1284_v9 }
  0x18   : > { %1287 = vst [vmem:[%s10353_s9 + $0x50] sm:$0xff] %v1286_v10  ;;  %1289 = vst [vmem:[%s10353_s9 + $0x58] sm:$0xff] %v1288_v11  ;;  %v1290_v12 = vld [vmem:[%s10348_s8 + $0xc0] sm:$0xff]  ;;  %v1292_v13 = vld [vmem:[%s10348_s8 + $0xd0] sm:$0xff] }
  0x19   : > { %v1294_v14 = vld [vmem:[%s10348_s8 + $0xe0] sm:$0xff]  ;;  %1291 = vst [vmem:[%s10353_s9 + $0x60] sm:$0xff] %v1290_v12  ;;  %1293 = vst [vmem:[%s10353_s9 + $0x68] sm:$0xff] %v1292_v13  ;;  %v1296_v15 = vld [vmem:[%s10348_s8 + $0xf0] sm:$0xff] }
  0x1a   : > { %1295 = vst [vmem:[%s10353_s9 + $0x70] sm:$0xff] %v1294_v14  ;;  %v1298_v16 = vld [vmem:[%s10348_s8 + $0x100] sm:$0xff]  ;;  %v1300_v17 = vld [vmem:[%s10348_s8 + $0x110] sm:$0xff]  ;;  %1297 = vst [vmem:[%s10353_s9 + $0x78] sm:$0xff] %v1296_v15 }
  0x1b   : > { %1299 = vst [vmem:[%s10353_s9 + $0x80] sm:$0xff] %v1298_v16  ;;  %1301 = vst [vmem:[%s10353_s9 + $0x88] sm:$0xff] %v1300_v17  ;;  %v1302_v18 = vld [vmem:[%s10348_s8 + $0x120] sm:$0xff]  ;;  %v1304_v19 = vld [vmem:[%s10348_s8 + $0x130] sm:$0xff] }
  0x1c   : > { %v1306_v20 = vld [vmem:[%s10348_s8 + $0x140] sm:$0xff]  ;;  %1303 = vst [vmem:[%s10353_s9 + $0x90] sm:$0xff] %v1302_v18  ;;  %1305 = vst [vmem:[%s10353_s9 + $0x98] sm:$0xff] %v1304_v19  ;;  %v1308_v21 = vld [vmem:[%s10348_s8 + $0x150] sm:$0xff] }
  0x1d   : > { %1307 = vst [vmem:[%s10353_s9 + $0xa0] sm:$0xff] %v1306_v20  ;;  %v1310_v22 = vld [vmem:[%s10348_s8 + $0x160] sm:$0xff]  ;;  %v1312_v23 = vld [vmem:[%s10348_s8 + $0x170] sm:$0xff]  ;;  %1309 = vst [vmem:[%s10353_s9 + $0xa8] sm:$0xff] %v1308_v21 }
  0x1e   : > { %1311 = vst [vmem:[%s10353_s9 + $0xb0] sm:$0xff] %v1310_v22  ;;  %1313 = vst [vmem:[%s10353_s9 + $0xb8] sm:$0xff] %v1312_v23  ;;  %v1314_v24 = vld [vmem:[%s10348_s8 + $0x180] sm:$0xff]  ;;  %v1316_v25 = vld [vmem:[%s10348_s8 + $0x190] sm:$0xff] }
  0x1f   : > { %v1318_v26 = vld [vmem:[%s10348_s8 + $0x1a0] sm:$0xff]  ;;  %1315 = vst [vmem:[%s10353_s9 + $0xc0] sm:$0xff] %v1314_v24  ;;  %1317 = vst [vmem:[%s10353_s9 + $0xc8] sm:$0xff] %v1316_v25  ;;  %v1320_v27 = vld [vmem:[%s10348_s8 + $0x1b0] sm:$0xff] }
  0x20   : > { %1319 = vst [vmem:[%s10353_s9 + $0xd0] sm:$0xff] %v1318_v26  ;;  %v1322_v28 = vld [vmem:[%s10348_s8 + $0x1c0] sm:$0xff]  ;;  %v1324_v29 = vld [vmem:[%s10348_s8 + $0x1d0] sm:$0xff]  ;;  %1321 = vst [vmem:[%s10353_s9 + $0xd8] sm:$0xff] %v1320_v27 }
  0x21   : > { %1323 = vst [vmem:[%s10353_s9 + $0xe0] sm:$0xff] %v1322_v28  ;;  %1325 = vst [vmem:[%s10353_s9 + $0xe8] sm:$0xff] %v1324_v29  ;;  %v1326_v30 = vld [vmem:[%s10348_s8 + $0x1e0] sm:$0xff]  ;;  %v1328_v31 = vld [vmem:[%s10348_s8 + $0x1f0] sm:$0xff] }
  0x22   : > { %v1330_v32 = vld [vmem:[%s10348_s8 + $0x200] sm:$0xff]  ;;  %1327 = vst [vmem:[%s10353_s9 + $0xf0] sm:$0xff] %v1326_v30  ;;  %1329 = vst [vmem:[%s10353_s9 + $0xf8] sm:$0xff] %v1328_v31  ;;  %v1332_v33 = vld [vmem:[%s10348_s8 + $0x210] sm:$0xff] }
  0x23   : > { %1331 = vst [vmem:[%s10353_s9 + $0x100] sm:$0xff] %v1330_v32  ;;  %v1334_v34 = vld [vmem:[%s10348_s8 + $0x220] sm:$0xff]  ;;  %v1336_v35 = vld [vmem:[%s10348_s8 + $0x230] sm:$0xff]  ;;  %1333 = vst [vmem:[%s10353_s9 + $0x108] sm:$0xff] %v1332_v33 }
  0x24   : > { %1335 = vst [vmem:[%s10353_s9 + $0x110] sm:$0xff] %v1334_v34  ;;  %1337 = vst [vmem:[%s10353_s9 + $0x118] sm:$0xff] %v1336_v35  ;;  %v1338_v36 = vld [vmem:[%s10348_s8 + $0x240] sm:$0xff]  ;;  %v1340_v37 = vld [vmem:[%s10348_s8 + $0x250] sm:$0xff] }
  0x25   : > { %v1342_v38 = vld [vmem:[%s10348_s8 + $0x260] sm:$0xff]  ;;  %1339 = vst [vmem:[%s10353_s9 + $0x120] sm:$0xff] %v1338_v36  ;;  %1341 = vst [vmem:[%s10353_s9 + $0x128] sm:$0xff] %v1340_v37  ;;  %v1344_v39 = vld [vmem:[%s10348_s8 + $0x270] sm:$0xff] }
  0x26   : > { %1343 = vst [vmem:[%s10353_s9 + $0x130] sm:$0xff] %v1342_v38  ;;  %v1346_v40 = vld [vmem:[%s10348_s8 + $0x280] sm:$0xff]  ;;  %v1348_v41 = vld [vmem:[%s10348_s8 + $0x290] sm:$0xff]  ;;  %1345 = vst [vmem:[%s10353_s9 + $0x138] sm:$0xff] %v1344_v39 }
  0x27   : > { %1347 = vst [vmem:[%s10353_s9 + $0x140] sm:$0xff] %v1346_v40  ;;  %1349 = vst [vmem:[%s10353_s9 + $0x148] sm:$0xff] %v1348_v41  ;;  %v1350_v42 = vld [vmem:[%s10348_s8 + $0x2a0] sm:$0xff]  ;;  %v1352_v43 = vld [vmem:[%s10348_s8 + $0x2b0] sm:$0xff] }
  0x28   : > { %v1354_v44 = vld [vmem:[%s10348_s8 + $0x2c0] sm:$0xff]  ;;  %1351 = vst [vmem:[%s10353_s9 + $0x150] sm:$0xff] %v1350_v42  ;;  %1353 = vst [vmem:[%s10353_s9 + $0x158] sm:$0xff] %v1352_v43  ;;  %v1356_v45 = vld [vmem:[%s10348_s8 + $0x2d0] sm:$0xff] }
  0x29   : > { %1355 = vst [vmem:[%s10353_s9 + $0x160] sm:$0xff] %v1354_v44  ;;  %v1358_v46 = vld [vmem:[%s10348_s8 + $0x2e0] sm:$0xff]  ;;  %v1360_v47 = vld [vmem:[%s10348_s8 + $0x2f0] sm:$0xff]  ;;  %1357 = vst [vmem:[%s10353_s9 + $0x168] sm:$0xff] %v1356_v45 }
  0x2a   : > { %1359 = vst [vmem:[%s10353_s9 + $0x170] sm:$0xff] %v1358_v46  ;;  %1361 = vst [vmem:[%s10353_s9 + $0x178] sm:$0xff] %v1360_v47  ;;  %v1362_v48 = vld [vmem:[%s10348_s8 + $0x300] sm:$0xff]  ;;  %v1364_v49 = vld [vmem:[%s10348_s8 + $0x310] sm:$0xff] }
  0x2b   : > { %v1366_v50 = vld [vmem:[%s10348_s8 + $0x320] sm:$0xff]  ;;  %1363 = vst [vmem:[%s10353_s9 + $0x180] sm:$0xff] %v1362_v48  ;;  %1365 = vst [vmem:[%s10353_s9 + $0x188] sm:$0xff] %v1364_v49  ;;  %v1368_v51 = vld [vmem:[%s10348_s8 + $0x330] sm:$0xff] }
  0x2c   : > { %1367 = vst [vmem:[%s10353_s9 + $0x190] sm:$0xff] %v1366_v50  ;;  %v1370_v52 = vld [vmem:[%s10348_s8 + $0x340] sm:$0xff]  ;;  %v1372_v53 = vld [vmem:[%s10348_s8 + $0x350] sm:$0xff]  ;;  %1369 = vst [vmem:[%s10353_s9 + $0x198] sm:$0xff] %v1368_v51 }
  0x2d   : > { %1371 = vst [vmem:[%s10353_s9 + $0x1a0] sm:$0xff] %v1370_v52  ;;  %1373 = vst [vmem:[%s10353_s9 + $0x1a8] sm:$0xff] %v1372_v53  ;;  %v1374_v54 = vld [vmem:[%s10348_s8 + $0x360] sm:$0xff]  ;;  %v1376_v55 = vld [vmem:[%s10348_s8 + $0x370] sm:$0xff] }
  0x2e   : > { %v1378_v56 = vld [vmem:[%s10348_s8 + $0x380] sm:$0xff]  ;;  %1375 = vst [vmem:[%s10353_s9 + $0x1b0] sm:$0xff] %v1374_v54  ;;  %1377 = vst [vmem:[%s10353_s9 + $0x1b8] sm:$0xff] %v1376_v55  ;;  %v1380_v57 = vld [vmem:[%s10348_s8 + $0x390] sm:$0xff] }
  0x2f   : > { %1379 = vst [vmem:[%s10353_s9 + $0x1c0] sm:$0xff] %v1378_v56  ;;  %v1382_v58 = vld [vmem:[%s10348_s8 + $0x3a0] sm:$0xff]  ;;  %v1384_v59 = vld [vmem:[%s10348_s8 + $0x3b0] sm:$0xff]  ;;  %1381 = vst [vmem:[%s10353_s9 + $0x1c8] sm:$0xff] %v1380_v57 }
  0x30   : > { %1383 = vst [vmem:[%s10353_s9 + $0x1d0] sm:$0xff] %v1382_v58  ;;  %1385 = vst [vmem:[%s10353_s9 + $0x1d8] sm:$0xff] %v1384_v59  ;;  %v1386_v60 = vld [vmem:[%s10348_s8 + $0x3c0] sm:$0xff]  ;;  %v1388_v61 = vld [vmem:[%s10348_s8 + $0x3d0] sm:$0xff] }
  0x31   : > { %v1390_v62 = vld [vmem:[%s10348_s8 + $0x3e0] sm:$0xff]  ;;  %1387 = vst [vmem:[%s10353_s9 + $0x1e0] sm:$0xff] %v1386_v60  ;;  %1389 = vst [vmem:[%s10353_s9 + $0x1e8] sm:$0xff] %v1388_v61  ;;  %v1392_v63 = vld [vmem:[%s10348_s8 + $0x3f0] sm:$0xff] }
  0x32   : > { %1391 = vst [vmem:[%s10353_s9 + $0x1f0] sm:$0xff] %v1390_v62  ;;  %v1394_v0 = vld [vmem:[%s10348_s8 + $0x400] sm:$0xff]  ;;  %v1396_v1 = vld [vmem:[%s10348_s8 + $0x410] sm:$0xff]  ;;  %1393 = vst [vmem:[%s10353_s9 + $0x1f8] sm:$0xff] %v1392_v63 }
  0x33   : > { %1395 = vst [vmem:[%s10353_s9 + $0x200] sm:$0xff] %v1394_v0  ;;  %1397 = vst [vmem:[%s10353_s9 + $0x208] sm:$0xff] %v1396_v1  ;;  %v1398_v2 = vld [vmem:[%s10348_s8 + $0x420] sm:$0xff]  ;;  %v1400_v3 = vld [vmem:[%s10348_s8 + $0x430] sm:$0xff] }
  0x34   : > { %v1402_v4 = vld [vmem:[%s10348_s8 + $0x440] sm:$0xff]  ;;  %1399 = vst [vmem:[%s10353_s9 + $0x210] sm:$0xff] %v1398_v2  ;;  %1401 = vst [vmem:[%s10353_s9 + $0x218] sm:$0xff] %v1400_v3  ;;  %v1404_v5 = vld [vmem:[%s10348_s8 + $0x450] sm:$0xff] }
  0x35   : > { %1403 = vst [vmem:[%s10353_s9 + $0x220] sm:$0xff] %v1402_v4  ;;  %v1406_v6 = vld [vmem:[%s10348_s8 + $0x460] sm:$0xff]  ;;  %v1408_v7 = vld [vmem:[%s10348_s8 + $0x470] sm:$0xff]  ;;  %1405 = vst [vmem:[%s10353_s9 + $0x228] sm:$0xff] %v1404_v5 }
  0x36   : > { %1407 = vst [vmem:[%s10353_s9 + $0x230] sm:$0xff] %v1406_v6  ;;  %1409 = vst [vmem:[%s10353_s9 + $0x238] sm:$0xff] %v1408_v7  ;;  %v1410_v8 = vld [vmem:[%s10348_s8 + $0x480] sm:$0xff]  ;;  %v1412_v9 = vld [vmem:[%s10348_s8 + $0x490] sm:$0xff] }
  0x37   : > { %v1414_v10 = vld [vmem:[%s10348_s8 + $0x4a0] sm:$0xff]  ;;  %1411 = vst [vmem:[%s10353_s9 + $0x240] sm:$0xff] %v1410_v8  ;;  %1413 = vst [vmem:[%s10353_s9 + $0x248] sm:$0xff] %v1412_v9  ;;  %v1416_v11 = vld [vmem:[%s10348_s8 + $0x4b0] sm:$0xff] }
  0x38   : > { %1415 = vst [vmem:[%s10353_s9 + $0x250] sm:$0xff] %v1414_v10  ;;  %v1418_v12 = vld [vmem:[%s10348_s8 + $0x4c0] sm:$0xff]  ;;  %v1420_v13 = vld [vmem:[%s10348_s8 + $0x4d0] sm:$0xff]  ;;  %1417 = vst [vmem:[%s10353_s9 + $0x258] sm:$0xff] %v1416_v11 }
  0x39   : > { %1419 = vst [vmem:[%s10353_s9 + $0x260] sm:$0xff] %v1418_v12  ;;  %1421 = vst [vmem:[%s10353_s9 + $0x268] sm:$0xff] %v1420_v13  ;;  %v1422_v14 = vld [vmem:[%s10348_s8 + $0x4e0] sm:$0xff]  ;;  %v1424_v15 = vld [vmem:[%s10348_s8 + $0x4f0] sm:$0xff] }
  0x3a   : > { %v1426_v16 = vld [vmem:[%s10348_s8 + $0x500] sm:$0xff]  ;;  %1423 = vst [vmem:[%s10353_s9 + $0x270] sm:$0xff] %v1422_v14  ;;  %1425 = vst [vmem:[%s10353_s9 + $0x278] sm:$0xff] %v1424_v15  ;;  %v1428_v17 = vld [vmem:[%s10348_s8 + $0x510] sm:$0xff] }
  0x3b   : > { %1427 = vst [vmem:[%s10353_s9 + $0x280] sm:$0xff] %v1426_v16  ;;  %v1430_v18 = vld [vmem:[%s10348_s8 + $0x520] sm:$0xff]  ;;  %v1432_v19 = vld [vmem:[%s10348_s8 + $0x530] sm:$0xff]  ;;  %1429 = vst [vmem:[%s10353_s9 + $0x288] sm:$0xff] %v1428_v17 }
  0x3c   : > { %1431 = vst [vmem:[%s10353_s9 + $0x290] sm:$0xff] %v1430_v18  ;;  %1433 = vst [vmem:[%s10353_s9 + $0x298] sm:$0xff] %v1432_v19  ;;  %v1434_v20 = vld [vmem:[%s10348_s8 + $0x540] sm:$0xff]  ;;  %v1436_v21 = vld [vmem:[%s10348_s8 + $0x550] sm:$0xff] }
  0x3d   : > { %v1438_v22 = vld [vmem:[%s10348_s8 + $0x560] sm:$0xff]  ;;  %1435 = vst [vmem:[%s10353_s9 + $0x2a0] sm:$0xff] %v1434_v20  ;;  %1437 = vst [vmem:[%s10353_s9 + $0x2a8] sm:$0xff] %v1436_v21  ;;  %v1440_v23 = vld [vmem:[%s10348_s8 + $0x570] sm:$0xff] }
  0x3e   : > { %1439 = vst [vmem:[%s10353_s9 + $0x2b0] sm:$0xff] %v1438_v22  ;;  %v1442_v24 = vld [vmem:[%s10348_s8 + $0x580] sm:$0xff]  ;;  %v1444_v25 = vld [vmem:[%s10348_s8 + $0x590] sm:$0xff]  ;;  %1441 = vst [vmem:[%s10353_s9 + $0x2b8] sm:$0xff] %v1440_v23 }
  0x3f   : > { %1443 = vst [vmem:[%s10353_s9 + $0x2c0] sm:$0xff] %v1442_v24  ;;  %1445 = vst [vmem:[%s10353_s9 + $0x2c8] sm:$0xff] %v1444_v25  ;;  %v1446_v26 = vld [vmem:[%s10348_s8 + $0x5a0] sm:$0xff]  ;;  %v1448_v27 = vld [vmem:[%s10348_s8 + $0x5b0] sm:$0xff] }
  0x40   : > { %v1450_v28 = vld [vmem:[%s10348_s8 + $0x5c0] sm:$0xff]  ;;  %1447 = vst [vmem:[%s10353_s9 + $0x2d0] sm:$0xff] %v1446_v26  ;;  %1449 = vst [vmem:[%s10353_s9 + $0x2d8] sm:$0xff] %v1448_v27  ;;  %v1452_v29 = vld [vmem:[%s10348_s8 + $0x5d0] sm:$0xff] }
  0x41   : > { %1451 = vst [vmem:[%s10353_s9 + $0x2e0] sm:$0xff] %v1450_v28  ;;  %v1454_v30 = vld [vmem:[%s10348_s8 + $0x5e0] sm:$0xff]  ;;  %v1456_v31 = vld [vmem:[%s10348_s8 + $0x5f0] sm:$0xff]  ;;  %1453 = vst [vmem:[%s10353_s9 + $0x2e8] sm:$0xff] %v1452_v29 }
  0x42   : > { %1455 = vst [vmem:[%s10353_s9 + $0x2f0] sm:$0xff] %v1454_v30  ;;  %1457 = vst [vmem:[%s10353_s9 + $0x2f8] sm:$0xff] %v1456_v31  ;;  %v1458_v32 = vld [vmem:[%s10348_s8 + $0x600] sm:$0xff]  ;;  %v1460_v33 = vld [vmem:[%s10348_s8 + $0x610] sm:$0xff] }
  0x43   : > { %v1462_v34 = vld [vmem:[%s10348_s8 + $0x620] sm:$0xff]  ;;  %1459 = vst [vmem:[%s10353_s9 + $0x300] sm:$0xff] %v1458_v32  ;;  %1461 = vst [vmem:[%s10353_s9 + $0x308] sm:$0xff] %v1460_v33  ;;  %v1464_v35 = vld [vmem:[%s10348_s8 + $0x630] sm:$0xff] }
  0x44   : > { %1463 = vst [vmem:[%s10353_s9 + $0x310] sm:$0xff] %v1462_v34  ;;  %v1466_v36 = vld [vmem:[%s10348_s8 + $0x640] sm:$0xff]  ;;  %v1468_v37 = vld [vmem:[%s10348_s8 + $0x650] sm:$0xff]  ;;  %1465 = vst [vmem:[%s10353_s9 + $0x318] sm:$0xff] %v1464_v35 }
  0x45   : > { %1467 = vst [vmem:[%s10353_s9 + $0x320] sm:$0xff] %v1466_v36  ;;  %1469 = vst [vmem:[%s10353_s9 + $0x328] sm:$0xff] %v1468_v37  ;;  %v1470_v38 = vld [vmem:[%s10348_s8 + $0x660] sm:$0xff]  ;;  %v1472_v39 = vld [vmem:[%s10348_s8 + $0x670] sm:$0xff] }
  0x46   : > { %v1474_v40 = vld [vmem:[%s10348_s8 + $0x680] sm:$0xff]  ;;  %1471 = vst [vmem:[%s10353_s9 + $0x330] sm:$0xff] %v1470_v38  ;;  %1473 = vst [vmem:[%s10353_s9 + $0x338] sm:$0xff] %v1472_v39  ;;  %v1476_v41 = vld [vmem:[%s10348_s8 + $0x690] sm:$0xff] }
  0x47   : > { %1475 = vst [vmem:[%s10353_s9 + $0x340] sm:$0xff] %v1474_v40  ;;  %v1478_v42 = vld [vmem:[%s10348_s8 + $0x6a0] sm:$0xff]  ;;  %v1480_v43 = vld [vmem:[%s10348_s8 + $0x6b0] sm:$0xff]  ;;  %1477 = vst [vmem:[%s10353_s9 + $0x348] sm:$0xff] %v1476_v41 }
  0x48   : > { %1479 = vst [vmem:[%s10353_s9 + $0x350] sm:$0xff] %v1478_v42  ;;  %1481 = vst [vmem:[%s10353_s9 + $0x358] sm:$0xff] %v1480_v43  ;;  %v1482_v44 = vld [vmem:[%s10348_s8 + $0x6c0] sm:$0xff]  ;;  %v1484_v45 = vld [vmem:[%s10348_s8 + $0x6d0] sm:$0xff] }
  0x49   : > { %v1486_v46 = vld [vmem:[%s10348_s8 + $0x6e0] sm:$0xff]  ;;  %1483 = vst [vmem:[%s10353_s9 + $0x360] sm:$0xff] %v1482_v44  ;;  %1485 = vst [vmem:[%s10353_s9 + $0x368] sm:$0xff] %v1484_v45  ;;  %v1488_v47 = vld [vmem:[%s10348_s8 + $0x6f0] sm:$0xff] }
  0x4a   : > { %1487 = vst [vmem:[%s10353_s9 + $0x370] sm:$0xff] %v1486_v46  ;;  %v1490_v48 = vld [vmem:[%s10348_s8 + $0x700] sm:$0xff]  ;;  %v1492_v49 = vld [vmem:[%s10348_s8 + $0x710] sm:$0xff]  ;;  %1489 = vst [vmem:[%s10353_s9 + $0x378] sm:$0xff] %v1488_v47 }
  0x4b   : > { %1491 = vst [vmem:[%s10353_s9 + $0x380] sm:$0xff] %v1490_v48  ;;  %1493 = vst [vmem:[%s10353_s9 + $0x388] sm:$0xff] %v1492_v49  ;;  %v1494_v50 = vld [vmem:[%s10348_s8 + $0x720] sm:$0xff]  ;;  %v1496_v51 = vld [vmem:[%s10348_s8 + $0x730] sm:$0xff] }
  0x4c   : > { %v1498_v52 = vld [vmem:[%s10348_s8 + $0x740] sm:$0xff]  ;;  %1495 = vst [vmem:[%s10353_s9 + $0x390] sm:$0xff] %v1494_v50  ;;  %1497 = vst [vmem:[%s10353_s9 + $0x398] sm:$0xff] %v1496_v51  ;;  %v1500_v53 = vld [vmem:[%s10348_s8 + $0x750] sm:$0xff] }
  0x4d   : > { %1499 = vst [vmem:[%s10353_s9 + $0x3a0] sm:$0xff] %v1498_v52  ;;  %v1502_v54 = vld [vmem:[%s10348_s8 + $0x760] sm:$0xff]  ;;  %v1504_v55 = vld [vmem:[%s10348_s8 + $0x770] sm:$0xff]  ;;  %1501 = vst [vmem:[%s10353_s9 + $0x3a8] sm:$0xff] %v1500_v53 }
  0x4e   : > { %1503 = vst [vmem:[%s10353_s9 + $0x3b0] sm:$0xff] %v1502_v54  ;;  %1505 = vst [vmem:[%s10353_s9 + $0x3b8] sm:$0xff] %v1504_v55  ;;  %v1506_v56 = vld [vmem:[%s10348_s8 + $0x780] sm:$0xff]  ;;  %v1508_v57 = vld [vmem:[%s10348_s8 + $0x790] sm:$0xff] }
  0x4f   : > { %v1510_v58 = vld [vmem:[%s10348_s8 + $0x7a0] sm:$0xff]  ;;  %1507 = vst [vmem:[%s10353_s9 + $0x3c0] sm:$0xff] %v1506_v56  ;;  %1509 = vst [vmem:[%s10353_s9 + $0x3c8] sm:$0xff] %v1508_v57  ;;  %v1512_v59 = vld [vmem:[%s10348_s8 + $0x7b0] sm:$0xff] }
  0x50   : > { %1511 = vst [vmem:[%s10353_s9 + $0x3d0] sm:$0xff] %v1510_v58  ;;  %v1514_v60 = vld [vmem:[%s10348_s8 + $0x7c0] sm:$0xff]  ;;  %v1516_v61 = vld [vmem:[%s10348_s8 + $0x7d0] sm:$0xff]  ;;  %1513 = vst [vmem:[%s10353_s9 + $0x3d8] sm:$0xff] %v1512_v59 }
  0x51   : > { %1515 = vst [vmem:[%s10353_s9 + $0x3e0] sm:$0xff] %v1514_v60  ;;  %1517 = vst [vmem:[%s10353_s9 + $0x3e8] sm:$0xff] %v1516_v61  ;;  %v1518_v62 = vld [vmem:[%s10348_s8 + $0x7e0] sm:$0xff]  ;;  %v1520_v63 = vld [vmem:[%s10348_s8 + $0x7f0] sm:$0xff] }
  0x52   : > { %v1522_v0 = vld [vmem:[%s10348_s8 + $0x800] sm:$0xff]  ;;  %1519 = vst [vmem:[%s10353_s9 + $0x3f0] sm:$0xff] %v1518_v62  ;;  %1521 = vst [vmem:[%s10353_s9 + $0x3f8] sm:$0xff] %v1520_v63  ;;  %v1524_v1 = vld [vmem:[%s10348_s8 + $0x810] sm:$0xff] }
  0x53   : > { %1523 = vst [vmem:[%s10353_s9 + $0x400] sm:$0xff] %v1522_v0  ;;  %v1526_v2 = vld [vmem:[%s10348_s8 + $0x820] sm:$0xff]  ;;  %v1528_v3 = vld [vmem:[%s10348_s8 + $0x830] sm:$0xff]  ;;  %1525 = vst [vmem:[%s10353_s9 + $0x408] sm:$0xff] %v1524_v1 }
  0x54   : > { %1527 = vst [vmem:[%s10353_s9 + $0x410] sm:$0xff] %v1526_v2  ;;  %1529 = vst [vmem:[%s10353_s9 + $0x418] sm:$0xff] %v1528_v3  ;;  %v1530_v4 = vld [vmem:[%s10348_s8 + $0x840] sm:$0xff]  ;;  %v1532_v5 = vld [vmem:[%s10348_s8 + $0x850] sm:$0xff] }
  0x55   : > { %v1534_v6 = vld [vmem:[%s10348_s8 + $0x860] sm:$0xff]  ;;  %1531 = vst [vmem:[%s10353_s9 + $0x420] sm:$0xff] %v1530_v4  ;;  %1533 = vst [vmem:[%s10353_s9 + $0x428] sm:$0xff] %v1532_v5  ;;  %v1536_v7 = vld [vmem:[%s10348_s8 + $0x870] sm:$0xff] }
  0x56   : > { %1535 = vst [vmem:[%s10353_s9 + $0x430] sm:$0xff] %v1534_v6  ;;  %v1538_v8 = vld [vmem:[%s10348_s8 + $0x880] sm:$0xff]  ;;  %v1540_v9 = vld [vmem:[%s10348_s8 + $0x890] sm:$0xff]  ;;  %1537 = vst [vmem:[%s10353_s9 + $0x438] sm:$0xff] %v1536_v7 }
  0x57   : > { %1539 = vst [vmem:[%s10353_s9 + $0x440] sm:$0xff] %v1538_v8  ;;  %1541 = vst [vmem:[%s10353_s9 + $0x448] sm:$0xff] %v1540_v9  ;;  %v1542_v10 = vld [vmem:[%s10348_s8 + $0x8a0] sm:$0xff]  ;;  %v1544_v11 = vld [vmem:[%s10348_s8 + $0x8b0] sm:$0xff] }
  0x58   : > { %v1546_v12 = vld [vmem:[%s10348_s8 + $0x8c0] sm:$0xff]  ;;  %1543 = vst [vmem:[%s10353_s9 + $0x450] sm:$0xff] %v1542_v10  ;;  %1545 = vst [vmem:[%s10353_s9 + $0x458] sm:$0xff] %v1544_v11  ;;  %v1548_v13 = vld [vmem:[%s10348_s8 + $0x8d0] sm:$0xff] }
  0x59   : > { %1547 = vst [vmem:[%s10353_s9 + $0x460] sm:$0xff] %v1546_v12  ;;  %v1550_v14 = vld [vmem:[%s10348_s8 + $0x8e0] sm:$0xff]  ;;  %v1552_v15 = vld [vmem:[%s10348_s8 + $0x8f0] sm:$0xff]  ;;  %1549 = vst [vmem:[%s10353_s9 + $0x468] sm:$0xff] %v1548_v13 }
  0x5a   : > { %1551 = vst [vmem:[%s10353_s9 + $0x470] sm:$0xff] %v1550_v14  ;;  %1553 = vst [vmem:[%s10353_s9 + $0x478] sm:$0xff] %v1552_v15  ;;  %v1554_v16 = vld [vmem:[%s10348_s8 + $0x900] sm:$0xff]  ;;  %v1556_v17 = vld [vmem:[%s10348_s8 + $0x910] sm:$0xff] }
  0x5b   : > { %v1558_v18 = vld [vmem:[%s10348_s8 + $0x920] sm:$0xff]  ;;  %1555 = vst [vmem:[%s10353_s9 + $0x480] sm:$0xff] %v1554_v16  ;;  %1557 = vst [vmem:[%s10353_s9 + $0x488] sm:$0xff] %v1556_v17  ;;  %v1560_v19 = vld [vmem:[%s10348_s8 + $0x930] sm:$0xff] }
  0x5c   : > { %1559 = vst [vmem:[%s10353_s9 + $0x490] sm:$0xff] %v1558_v18  ;;  %v1562_v20 = vld [vmem:[%s10348_s8 + $0x940] sm:$0xff]  ;;  %v1564_v21 = vld [vmem:[%s10348_s8 + $0x950] sm:$0xff]  ;;  %1561 = vst [vmem:[%s10353_s9 + $0x498] sm:$0xff] %v1560_v19 }
  0x5d   : > { %1563 = vst [vmem:[%s10353_s9 + $0x4a0] sm:$0xff] %v1562_v20  ;;  %1565 = vst [vmem:[%s10353_s9 + $0x4a8] sm:$0xff] %v1564_v21  ;;  %v1566_v22 = vld [vmem:[%s10348_s8 + $0x960] sm:$0xff]  ;;  %v1568_v23 = vld [vmem:[%s10348_s8 + $0x970] sm:$0xff] }
  0x5e   : > { %v1570_v24 = vld [vmem:[%s10348_s8 + $0x980] sm:$0xff]  ;;  %1567 = vst [vmem:[%s10353_s9 + $0x4b0] sm:$0xff] %v1566_v22  ;;  %1569 = vst [vmem:[%s10353_s9 + $0x4b8] sm:$0xff] %v1568_v23  ;;  %v1572_v25 = vld [vmem:[%s10348_s8 + $0x990] sm:$0xff] }
  0x5f   : > { %1571 = vst [vmem:[%s10353_s9 + $0x4c0] sm:$0xff] %v1570_v24  ;;  %v1574_v26 = vld [vmem:[%s10348_s8 + $0x9a0] sm:$0xff]  ;;  %v1576_v27 = vld [vmem:[%s10348_s8 + $0x9b0] sm:$0xff]  ;;  %1573 = vst [vmem:[%s10353_s9 + $0x4c8] sm:$0xff] %v1572_v25 }
  0x60   : > { %1575 = vst [vmem:[%s10353_s9 + $0x4d0] sm:$0xff] %v1574_v26  ;;  %1577 = vst [vmem:[%s10353_s9 + $0x4d8] sm:$0xff] %v1576_v27  ;;  %v1578_v28 = vld [vmem:[%s10348_s8 + $0x9c0] sm:$0xff]  ;;  %v1580_v29 = vld [vmem:[%s10348_s8 + $0x9d0] sm:$0xff] }
  0x61   : > { %v1582_v30 = vld [vmem:[%s10348_s8 + $0x9e0] sm:$0xff]  ;;  %1579 = vst [vmem:[%s10353_s9 + $0x4e0] sm:$0xff] %v1578_v28  ;;  %1581 = vst [vmem:[%s10353_s9 + $0x4e8] sm:$0xff] %v1580_v29  ;;  %v1584_v31 = vld [vmem:[%s10348_s8 + $0x9f0] sm:$0xff] }
  0x62   : > { %1583 = vst [vmem:[%s10353_s9 + $0x4f0] sm:$0xff] %v1582_v30  ;;  %v1586_v32 = vld [vmem:[%s10348_s8 + $0xa00] sm:$0xff]  ;;  %v1588_v33 = vld [vmem:[%s10348_s8 + $0xa10] sm:$0xff]  ;;  %1585 = vst [vmem:[%s10353_s9 + $0x4f8] sm:$0xff] %v1584_v31 }
  0x63   : > { %1587 = vst [vmem:[%s10353_s9 + $0x500] sm:$0xff] %v1586_v32  ;;  %1589 = vst [vmem:[%s10353_s9 + $0x508] sm:$0xff] %v1588_v33  ;;  %v1590_v34 = vld [vmem:[%s10348_s8 + $0xa20] sm:$0xff]  ;;  %v1592_v35 = vld [vmem:[%s10348_s8 + $0xa30] sm:$0xff] }
  0x64   : > { %v1594_v36 = vld [vmem:[%s10348_s8 + $0xa40] sm:$0xff]  ;;  %1591 = vst [vmem:[%s10353_s9 + $0x510] sm:$0xff] %v1590_v34  ;;  %1593 = vst [vmem:[%s10353_s9 + $0x518] sm:$0xff] %v1592_v35  ;;  %v1596_v37 = vld [vmem:[%s10348_s8 + $0xa50] sm:$0xff] }
  0x65   : > { %1595 = vst [vmem:[%s10353_s9 + $0x520] sm:$0xff] %v1594_v36  ;;  %v1598_v38 = vld [vmem:[%s10348_s8 + $0xa60] sm:$0xff]  ;;  %v1600_v39 = vld [vmem:[%s10348_s8 + $0xa70] sm:$0xff]  ;;  %1597 = vst [vmem:[%s10353_s9 + $0x528] sm:$0xff] %v1596_v37 }
  0x66   : > { %1599 = vst [vmem:[%s10353_s9 + $0x530] sm:$0xff] %v1598_v38  ;;  %1601 = vst [vmem:[%s10353_s9 + $0x538] sm:$0xff] %v1600_v39  ;;  %v1602_v40 = vld [vmem:[%s10348_s8 + $0xa80] sm:$0xff]  ;;  %v1604_v41 = vld [vmem:[%s10348_s8 + $0xa90] sm:$0xff] }
  0x67   : > { %v1606_v42 = vld [vmem:[%s10348_s8 + $0xaa0] sm:$0xff]  ;;  %1603 = vst [vmem:[%s10353_s9 + $0x540] sm:$0xff] %v1602_v40  ;;  %1605 = vst [vmem:[%s10353_s9 + $0x548] sm:$0xff] %v1604_v41  ;;  %v1608_v43 = vld [vmem:[%s10348_s8 + $0xab0] sm:$0xff] }
  0x68   : > { %1607 = vst [vmem:[%s10353_s9 + $0x550] sm:$0xff] %v1606_v42  ;;  %v1610_v44 = vld [vmem:[%s10348_s8 + $0xac0] sm:$0xff]  ;;  %v1612_v45 = vld [vmem:[%s10348_s8 + $0xad0] sm:$0xff]  ;;  %1609 = vst [vmem:[%s10353_s9 + $0x558] sm:$0xff] %v1608_v43 }
  0x69   : > { %1611 = vst [vmem:[%s10353_s9 + $0x560] sm:$0xff] %v1610_v44  ;;  %1613 = vst [vmem:[%s10353_s9 + $0x568] sm:$0xff] %v1612_v45  ;;  %v1614_v46 = vld [vmem:[%s10348_s8 + $0xae0] sm:$0xff]  ;;  %v1616_v47 = vld [vmem:[%s10348_s8 + $0xaf0] sm:$0xff] }
  0x6a   : > { %v1618_v48 = vld [vmem:[%s10348_s8 + $0xb00] sm:$0xff]  ;;  %1615 = vst [vmem:[%s10353_s9 + $0x570] sm:$0xff] %v1614_v46  ;;  %1617 = vst [vmem:[%s10353_s9 + $0x578] sm:$0xff] %v1616_v47  ;;  %v1620_v49 = vld [vmem:[%s10348_s8 + $0xb10] sm:$0xff] }
  0x6b   : > { %1619 = vst [vmem:[%s10353_s9 + $0x580] sm:$0xff] %v1618_v48  ;;  %v1622_v50 = vld [vmem:[%s10348_s8 + $0xb20] sm:$0xff]  ;;  %v1624_v51 = vld [vmem:[%s10348_s8 + $0xb30] sm:$0xff]  ;;  %1621 = vst [vmem:[%s10353_s9 + $0x588] sm:$0xff] %v1620_v49 }
  0x6c   : > { %1623 = vst [vmem:[%s10353_s9 + $0x590] sm:$0xff] %v1622_v50  ;;  %1625 = vst [vmem:[%s10353_s9 + $0x598] sm:$0xff] %v1624_v51  ;;  %v1626_v52 = vld [vmem:[%s10348_s8 + $0xb40] sm:$0xff]  ;;  %v1628_v53 = vld [vmem:[%s10348_s8 + $0xb50] sm:$0xff] }
  0x6d   : > { %v1630_v54 = vld [vmem:[%s10348_s8 + $0xb60] sm:$0xff]  ;;  %1627 = vst [vmem:[%s10353_s9 + $0x5a0] sm:$0xff] %v1626_v52  ;;  %1629 = vst [vmem:[%s10353_s9 + $0x5a8] sm:$0xff] %v1628_v53  ;;  %v1632_v55 = vld [vmem:[%s10348_s8 + $0xb70] sm:$0xff] }
  0x6e   : > { %1631 = vst [vmem:[%s10353_s9 + $0x5b0] sm:$0xff] %v1630_v54  ;;  %v1634_v56 = vld [vmem:[%s10348_s8 + $0xb80] sm:$0xff]  ;;  %v1636_v57 = vld [vmem:[%s10348_s8 + $0xb90] sm:$0xff]  ;;  %1633 = vst [vmem:[%s10353_s9 + $0x5b8] sm:$0xff] %v1632_v55 }
  0x6f   : > { %1635 = vst [vmem:[%s10353_s9 + $0x5c0] sm:$0xff] %v1634_v56  ;;  %1637 = vst [vmem:[%s10353_s9 + $0x5c8] sm:$0xff] %v1636_v57  ;;  %v1638_v58 = vld [vmem:[%s10348_s8 + $0xba0] sm:$0xff]  ;;  %v1640_v59 = vld [vmem:[%s10348_s8 + $0xbb0] sm:$0xff] }
  0x70   : > { %v1642_v60 = vld [vmem:[%s10348_s8 + $0xbc0] sm:$0xff]  ;;  %1639 = vst [vmem:[%s10353_s9 + $0x5d0] sm:$0xff] %v1638_v58  ;;  %1641 = vst [vmem:[%s10353_s9 + $0x5d8] sm:$0xff] %v1640_v59  ;;  %v1644_v61 = vld [vmem:[%s10348_s8 + $0xbd0] sm:$0xff] }
  0x71   : > { %1643 = vst [vmem:[%s10353_s9 + $0x5e0] sm:$0xff] %v1642_v60  ;;  %v1646_v62 = vld [vmem:[%s10348_s8 + $0xbe0] sm:$0xff]  ;;  %v1648_v63 = vld [vmem:[%s10348_s8 + $0xbf0] sm:$0xff]  ;;  %1645 = vst [vmem:[%s10353_s9 + $0x5e8] sm:$0xff] %v1644_v61 }
  0x72   : > { %1647 = vst [vmem:[%s10353_s9 + $0x5f0] sm:$0xff] %v1646_v62  ;;  %1649 = vst [vmem:[%s10353_s9 + $0x5f8] sm:$0xff] %v1648_v63  ;;  %v1650_v0 = vld [vmem:[%s10348_s8 + $0xc00] sm:$0xff]  ;;  %v1652_v1 = vld [vmem:[%s10348_s8 + $0xc10] sm:$0xff] }
  0x73   : > { %v1654_v2 = vld [vmem:[%s10348_s8 + $0xc20] sm:$0xff]  ;;  %1651 = vst [vmem:[%s10353_s9 + $0x600] sm:$0xff] %v1650_v0  ;;  %1653 = vst [vmem:[%s10353_s9 + $0x608] sm:$0xff] %v1652_v1  ;;  %v1656_v3 = vld [vmem:[%s10348_s8 + $0xc30] sm:$0xff] }
  0x74   : > { %1655 = vst [vmem:[%s10353_s9 + $0x610] sm:$0xff] %v1654_v2  ;;  %v1658_v4 = vld [vmem:[%s10348_s8 + $0xc40] sm:$0xff]  ;;  %v1660_v5 = vld [vmem:[%s10348_s8 + $0xc50] sm:$0xff]  ;;  %1657 = vst [vmem:[%s10353_s9 + $0x618] sm:$0xff] %v1656_v3 }
  0x75   : > { %1659 = vst [vmem:[%s10353_s9 + $0x620] sm:$0xff] %v1658_v4  ;;  %1661 = vst [vmem:[%s10353_s9 + $0x628] sm:$0xff] %v1660_v5  ;;  %v1662_v6 = vld [vmem:[%s10348_s8 + $0xc60] sm:$0xff]  ;;  %v1664_v7 = vld [vmem:[%s10348_s8 + $0xc70] sm:$0xff] }
  0x76   : > { %v1666_v8 = vld [vmem:[%s10348_s8 + $0xc80] sm:$0xff]  ;;  %1663 = vst [vmem:[%s10353_s9 + $0x630] sm:$0xff] %v1662_v6  ;;  %1665 = vst [vmem:[%s10353_s9 + $0x638] sm:$0xff] %v1664_v7  ;;  %v1668_v9 = vld [vmem:[%s10348_s8 + $0xc90] sm:$0xff] }
  0x77   : > { %1667 = vst [vmem:[%s10353_s9 + $0x640] sm:$0xff] %v1666_v8  ;;  %v1670_v10 = vld [vmem:[%s10348_s8 + $0xca0] sm:$0xff]  ;;  %v1672_v11 = vld [vmem:[%s10348_s8 + $0xcb0] sm:$0xff]  ;;  %1669 = vst [vmem:[%s10353_s9 + $0x648] sm:$0xff] %v1668_v9 }
  0x78   : > { %1671 = vst [vmem:[%s10353_s9 + $0x650] sm:$0xff] %v1670_v10  ;;  %1673 = vst [vmem:[%s10353_s9 + $0x658] sm:$0xff] %v1672_v11  ;;  %v1674_v12 = vld [vmem:[%s10348_s8 + $0xcc0] sm:$0xff]  ;;  %v1676_v13 = vld [vmem:[%s10348_s8 + $0xcd0] sm:$0xff] }
  0x79   : > { %v1678_v14 = vld [vmem:[%s10348_s8 + $0xce0] sm:$0xff]  ;;  %1675 = vst [vmem:[%s10353_s9 + $0x660] sm:$0xff] %v1674_v12  ;;  %1677 = vst [vmem:[%s10353_s9 + $0x668] sm:$0xff] %v1676_v13  ;;  %v1680_v15 = vld [vmem:[%s10348_s8 + $0xcf0] sm:$0xff] }
  0x7a   : > { %1679 = vst [vmem:[%s10353_s9 + $0x670] sm:$0xff] %v1678_v14  ;;  %v1682_v16 = vld [vmem:[%s10348_s8 + $0xd00] sm:$0xff]  ;;  %v1684_v17 = vld [vmem:[%s10348_s8 + $0xd10] sm:$0xff]  ;;  %1681 = vst [vmem:[%s10353_s9 + $0x678] sm:$0xff] %v1680_v15 }
  0x7b   : > { %1683 = vst [vmem:[%s10353_s9 + $0x680] sm:$0xff] %v1682_v16  ;;  %1685 = vst [vmem:[%s10353_s9 + $0x688] sm:$0xff] %v1684_v17  ;;  %v1686_v18 = vld [vmem:[%s10348_s8 + $0xd20] sm:$0xff]  ;;  %v1688_v19 = vld [vmem:[%s10348_s8 + $0xd30] sm:$0xff] }
  0x7c   : > { %v1690_v20 = vld [vmem:[%s10348_s8 + $0xd40] sm:$0xff]  ;;  %1687 = vst [vmem:[%s10353_s9 + $0x690] sm:$0xff] %v1686_v18  ;;  %1689 = vst [vmem:[%s10353_s9 + $0x698] sm:$0xff] %v1688_v19  ;;  %v1692_v21 = vld [vmem:[%s10348_s8 + $0xd50] sm:$0xff] }
  0x7d   : > { %1691 = vst [vmem:[%s10353_s9 + $0x6a0] sm:$0xff] %v1690_v20  ;;  %v1694_v22 = vld [vmem:[%s10348_s8 + $0xd60] sm:$0xff]  ;;  %v1696_v23 = vld [vmem:[%s10348_s8 + $0xd70] sm:$0xff]  ;;  %1693 = vst [vmem:[%s10353_s9 + $0x6a8] sm:$0xff] %v1692_v21 }
  0x7e   : > { %1695 = vst [vmem:[%s10353_s9 + $0x6b0] sm:$0xff] %v1694_v22  ;;  %1697 = vst [vmem:[%s10353_s9 + $0x6b8] sm:$0xff] %v1696_v23  ;;  %v1698_v24 = vld [vmem:[%s10348_s8 + $0xd80] sm:$0xff]  ;;  %v1700_v25 = vld [vmem:[%s10348_s8 + $0xd90] sm:$0xff] }
  0x7f   : > { %v1702_v26 = vld [vmem:[%s10348_s8 + $0xda0] sm:$0xff]  ;;  %1699 = vst [vmem:[%s10353_s9 + $0x6c0] sm:$0xff] %v1698_v24  ;;  %1701 = vst [vmem:[%s10353_s9 + $0x6c8] sm:$0xff] %v1700_v25  ;;  %v1704_v27 = vld [vmem:[%s10348_s8 + $0xdb0] sm:$0xff] }
  0x80   : > { %1703 = vst [vmem:[%s10353_s9 + $0x6d0] sm:$0xff] %v1702_v26  ;;  %v1706_v28 = vld [vmem:[%s10348_s8 + $0xdc0] sm:$0xff]  ;;  %v1708_v29 = vld [vmem:[%s10348_s8 + $0xdd0] sm:$0xff]  ;;  %1705 = vst [vmem:[%s10353_s9 + $0x6d8] sm:$0xff] %v1704_v27 }
  0x81   : > { %1707 = vst [vmem:[%s10353_s9 + $0x6e0] sm:$0xff] %v1706_v28  ;;  %1709 = vst [vmem:[%s10353_s9 + $0x6e8] sm:$0xff] %v1708_v29  ;;  %v1710_v30 = vld [vmem:[%s10348_s8 + $0xde0] sm:$0xff]  ;;  %v1712_v31 = vld [vmem:[%s10348_s8 + $0xdf0] sm:$0xff] }
  0x82   : > { %v1714_v32 = vld [vmem:[%s10348_s8 + $0xe00] sm:$0xff]  ;;  %1711 = vst [vmem:[%s10353_s9 + $0x6f0] sm:$0xff] %v1710_v30  ;;  %1713 = vst [vmem:[%s10353_s9 + $0x6f8] sm:$0xff] %v1712_v31  ;;  %v1716_v33 = vld [vmem:[%s10348_s8 + $0xe10] sm:$0xff] }
  0x83   : > { %1715 = vst [vmem:[%s10353_s9 + $0x700] sm:$0xff] %v1714_v32  ;;  %v1718_v34 = vld [vmem:[%s10348_s8 + $0xe20] sm:$0xff]  ;;  %v1720_v35 = vld [vmem:[%s10348_s8 + $0xe30] sm:$0xff]  ;;  %1717 = vst [vmem:[%s10353_s9 + $0x708] sm:$0xff] %v1716_v33 }
  0x84   : > { %1719 = vst [vmem:[%s10353_s9 + $0x710] sm:$0xff] %v1718_v34  ;;  %1721 = vst [vmem:[%s10353_s9 + $0x718] sm:$0xff] %v1720_v35  ;;  %v1722_v36 = vld [vmem:[%s10348_s8 + $0xe40] sm:$0xff]  ;;  %v1724_v37 = vld [vmem:[%s10348_s8 + $0xe50] sm:$0xff] }
  0x85   : > { %v1726_v38 = vld [vmem:[%s10348_s8 + $0xe60] sm:$0xff]  ;;  %1723 = vst [vmem:[%s10353_s9 + $0x720] sm:$0xff] %v1722_v36  ;;  %1725 = vst [vmem:[%s10353_s9 + $0x728] sm:$0xff] %v1724_v37  ;;  %v1728_v39 = vld [vmem:[%s10348_s8 + $0xe70] sm:$0xff] }
  0x86   : > { %1727 = vst [vmem:[%s10353_s9 + $0x730] sm:$0xff] %v1726_v38  ;;  %v1730_v40 = vld [vmem:[%s10348_s8 + $0xe80] sm:$0xff]  ;;  %v1732_v41 = vld [vmem:[%s10348_s8 + $0xe90] sm:$0xff]  ;;  %1729 = vst [vmem:[%s10353_s9 + $0x738] sm:$0xff] %v1728_v39 }
  0x87   : > { %1731 = vst [vmem:[%s10353_s9 + $0x740] sm:$0xff] %v1730_v40  ;;  %1733 = vst [vmem:[%s10353_s9 + $0x748] sm:$0xff] %v1732_v41  ;;  %v1734_v42 = vld [vmem:[%s10348_s8 + $0xea0] sm:$0xff]  ;;  %v1736_v43 = vld [vmem:[%s10348_s8 + $0xeb0] sm:$0xff] }
  0x88   : > { %v1738_v44 = vld [vmem:[%s10348_s8 + $0xec0] sm:$0xff]  ;;  %1735 = vst [vmem:[%s10353_s9 + $0x750] sm:$0xff] %v1734_v42  ;;  %1737 = vst [vmem:[%s10353_s9 + $0x758] sm:$0xff] %v1736_v43  ;;  %v1740_v45 = vld [vmem:[%s10348_s8 + $0xed0] sm:$0xff] }
  0x89   : > { %1739 = vst [vmem:[%s10353_s9 + $0x760] sm:$0xff] %v1738_v44  ;;  %v1742_v46 = vld [vmem:[%s10348_s8 + $0xee0] sm:$0xff]  ;;  %v1744_v47 = vld [vmem:[%s10348_s8 + $0xef0] sm:$0xff]  ;;  %1741 = vst [vmem:[%s10353_s9 + $0x768] sm:$0xff] %v1740_v45 }
  0x8a   : > { %1743 = vst [vmem:[%s10353_s9 + $0x770] sm:$0xff] %v1742_v46  ;;  %1745 = vst [vmem:[%s10353_s9 + $0x778] sm:$0xff] %v1744_v47  ;;  %v1746_v48 = vld [vmem:[%s10348_s8 + $0xf00] sm:$0xff]  ;;  %v1748_v49 = vld [vmem:[%s10348_s8 + $0xf10] sm:$0xff] }
  0x8b   : > { %v1750_v50 = vld [vmem:[%s10348_s8 + $0xf20] sm:$0xff]  ;;  %1747 = vst [vmem:[%s10353_s9 + $0x780] sm:$0xff] %v1746_v48  ;;  %1749 = vst [vmem:[%s10353_s9 + $0x788] sm:$0xff] %v1748_v49  ;;  %v1752_v51 = vld [vmem:[%s10348_s8 + $0xf30] sm:$0xff] }
  0x8c   : > { %1751 = vst [vmem:[%s10353_s9 + $0x790] sm:$0xff] %v1750_v50  ;;  %v1754_v52 = vld [vmem:[%s10348_s8 + $0xf40] sm:$0xff]  ;;  %v1756_v53 = vld [vmem:[%s10348_s8 + $0xf50] sm:$0xff]  ;;  %1753 = vst [vmem:[%s10353_s9 + $0x798] sm:$0xff] %v1752_v51 }
  0x8d   : > { %1755 = vst [vmem:[%s10353_s9 + $0x7a0] sm:$0xff] %v1754_v52  ;;  %1757 = vst [vmem:[%s10353_s9 + $0x7a8] sm:$0xff] %v1756_v53  ;;  %v1758_v54 = vld [vmem:[%s10348_s8 + $0xf60] sm:$0xff]  ;;  %v1760_v55 = vld [vmem:[%s10348_s8 + $0xf70] sm:$0xff] }
  0x8e   : > { %v1762_v56 = vld [vmem:[%s10348_s8 + $0xf80] sm:$0xff]  ;;  %1759 = vst [vmem:[%s10353_s9 + $0x7b0] sm:$0xff] %v1758_v54  ;;  %1761 = vst [vmem:[%s10353_s9 + $0x7b8] sm:$0xff] %v1760_v55  ;;  %v1764_v57 = vld [vmem:[%s10348_s8 + $0xf90] sm:$0xff] }
  0x8f   : > { %1763 = vst [vmem:[%s10353_s9 + $0x7c0] sm:$0xff] %v1762_v56  ;;  %v1766_v58 = vld [vmem:[%s10348_s8 + $0xfa0] sm:$0xff]  ;;  %v1768_v59 = vld [vmem:[%s10348_s8 + $0xfb0] sm:$0xff]  ;;  %1765 = vst [vmem:[%s10353_s9 + $0x7c8] sm:$0xff] %v1764_v57 }
  0x90   : > { %1767 = vst [vmem:[%s10353_s9 + $0x7d0] sm:$0xff] %v1766_v58  ;;  %1769 = vst [vmem:[%s10353_s9 + $0x7d8] sm:$0xff] %v1768_v59  ;;  %v1770_v60 = vld [vmem:[%s10348_s8 + $0xfc0] sm:$0xff]  ;;  %v1772_v61 = vld [vmem:[%s10348_s8 + $0xfd0] sm:$0xff] }
  0x91   : > { %v1774_v62 = vld [vmem:[%s10348_s8 + $0xfe0] sm:$0xff]  ;;  %1771 = vst [vmem:[%s10353_s9 + $0x7e0] sm:$0xff] %v1770_v60  ;;  %1773 = vst [vmem:[%s10353_s9 + $0x7e8] sm:$0xff] %v1772_v61  ;;  %v1776_v63 = vld [vmem:[%s10348_s8 + $0xff0] sm:$0xff] }
  0x92   : > { %1775 = vst [vmem:[%s10353_s9 + $0x7f0] sm:$0xff] %v1774_v62  ;;  %v1778_v0 = vld [vmem:[%s10348_s8 + $0x1000] sm:$0xff]  ;;  %v1780_v1 = vld [vmem:[%s10348_s8 + $0x1010] sm:$0xff]  ;;  %1777 = vst [vmem:[%s10353_s9 + $0x7f8] sm:$0xff] %v1776_v63 }
  0x93   : > { %1779 = vst [vmem:[%s10353_s9 + $0x800] sm:$0xff] %v1778_v0  ;;  %1781 = vst [vmem:[%s10353_s9 + $0x808] sm:$0xff] %v1780_v1  ;;  %v1782_v2 = vld [vmem:[%s10348_s8 + $0x1020] sm:$0xff]  ;;  %v1784_v3 = vld [vmem:[%s10348_s8 + $0x1030] sm:$0xff] }
  0x94   : > { %v1786_v4 = vld [vmem:[%s10348_s8 + $0x1040] sm:$0xff]  ;;  %1783 = vst [vmem:[%s10353_s9 + $0x810] sm:$0xff] %v1782_v2  ;;  %1785 = vst [vmem:[%s10353_s9 + $0x818] sm:$0xff] %v1784_v3  ;;  %v1788_v5 = vld [vmem:[%s10348_s8 + $0x1050] sm:$0xff] }
  0x95   : > { %1787 = vst [vmem:[%s10353_s9 + $0x820] sm:$0xff] %v1786_v4  ;;  %v1790_v6 = vld [vmem:[%s10348_s8 + $0x1060] sm:$0xff]  ;;  %v1792_v7 = vld [vmem:[%s10348_s8 + $0x1070] sm:$0xff]  ;;  %1789 = vst [vmem:[%s10353_s9 + $0x828] sm:$0xff] %v1788_v5 }
  0x96   : > { %1791 = vst [vmem:[%s10353_s9 + $0x830] sm:$0xff] %v1790_v6  ;;  %1793 = vst [vmem:[%s10353_s9 + $0x838] sm:$0xff] %v1792_v7  ;;  %v1794_v8 = vld [vmem:[%s10348_s8 + $0x1080] sm:$0xff]  ;;  %v1796_v9 = vld [vmem:[%s10348_s8 + $0x1090] sm:$0xff] }
  0x97   : > { %v1798_v10 = vld [vmem:[%s10348_s8 + $0x10a0] sm:$0xff]  ;;  %1795 = vst [vmem:[%s10353_s9 + $0x840] sm:$0xff] %v1794_v8  ;;  %1797 = vst [vmem:[%s10353_s9 + $0x848] sm:$0xff] %v1796_v9  ;;  %v1800_v11 = vld [vmem:[%s10348_s8 + $0x10b0] sm:$0xff] }
  0x98   : > { %1799 = vst [vmem:[%s10353_s9 + $0x850] sm:$0xff] %v1798_v10  ;;  %v1802_v12 = vld [vmem:[%s10348_s8 + $0x10c0] sm:$0xff]  ;;  %v1804_v13 = vld [vmem:[%s10348_s8 + $0x10d0] sm:$0xff]  ;;  %1801 = vst [vmem:[%s10353_s9 + $0x858] sm:$0xff] %v1800_v11 }
  0x99   : > { %1803 = vst [vmem:[%s10353_s9 + $0x860] sm:$0xff] %v1802_v12  ;;  %1805 = vst [vmem:[%s10353_s9 + $0x868] sm:$0xff] %v1804_v13  ;;  %v1806_v14 = vld [vmem:[%s10348_s8 + $0x10e0] sm:$0xff]  ;;  %v1808_v15 = vld [vmem:[%s10348_s8 + $0x10f0] sm:$0xff] }
  0x9a   : > { %v1810_v16 = vld [vmem:[%s10348_s8 + $0x1100] sm:$0xff]  ;;  %1807 = vst [vmem:[%s10353_s9 + $0x870] sm:$0xff] %v1806_v14  ;;  %1809 = vst [vmem:[%s10353_s9 + $0x878] sm:$0xff] %v1808_v15  ;;  %v1812_v17 = vld [vmem:[%s10348_s8 + $0x1110] sm:$0xff] }
  0x9b   : > { %1811 = vst [vmem:[%s10353_s9 + $0x880] sm:$0xff] %v1810_v16  ;;  %v1814_v18 = vld [vmem:[%s10348_s8 + $0x1120] sm:$0xff]  ;;  %v1816_v19 = vld [vmem:[%s10348_s8 + $0x1130] sm:$0xff]  ;;  %1813 = vst [vmem:[%s10353_s9 + $0x888] sm:$0xff] %v1812_v17 }
  0x9c   : > { %1815 = vst [vmem:[%s10353_s9 + $0x890] sm:$0xff] %v1814_v18  ;;  %1817 = vst [vmem:[%s10353_s9 + $0x898] sm:$0xff] %v1816_v19  ;;  %v1818_v20 = vld [vmem:[%s10348_s8 + $0x1140] sm:$0xff]  ;;  %v1820_v21 = vld [vmem:[%s10348_s8 + $0x1150] sm:$0xff] }
  0x9d   : > { %v1822_v22 = vld [vmem:[%s10348_s8 + $0x1160] sm:$0xff]  ;;  %1819 = vst [vmem:[%s10353_s9 + $0x8a0] sm:$0xff] %v1818_v20  ;;  %1821 = vst [vmem:[%s10353_s9 + $0x8a8] sm:$0xff] %v1820_v21  ;;  %v1824_v23 = vld [vmem:[%s10348_s8 + $0x1170] sm:$0xff] }
  0x9e   : > { %1823 = vst [vmem:[%s10353_s9 + $0x8b0] sm:$0xff] %v1822_v22  ;;  %v1826_v24 = vld [vmem:[%s10348_s8 + $0x1180] sm:$0xff]  ;;  %v1828_v25 = vld [vmem:[%s10348_s8 + $0x1190] sm:$0xff]  ;;  %1825 = vst [vmem:[%s10353_s9 + $0x8b8] sm:$0xff] %v1824_v23 }
  0x9f   : > { %1827 = vst [vmem:[%s10353_s9 + $0x8c0] sm:$0xff] %v1826_v24  ;;  %1829 = vst [vmem:[%s10353_s9 + $0x8c8] sm:$0xff] %v1828_v25  ;;  %v1830_v26 = vld [vmem:[%s10348_s8 + $0x11a0] sm:$0xff]  ;;  %v1832_v27 = vld [vmem:[%s10348_s8 + $0x11b0] sm:$0xff] }
  0xa0   : > { %v1834_v28 = vld [vmem:[%s10348_s8 + $0x11c0] sm:$0xff]  ;;  %1831 = vst [vmem:[%s10353_s9 + $0x8d0] sm:$0xff] %v1830_v26  ;;  %1833 = vst [vmem:[%s10353_s9 + $0x8d8] sm:$0xff] %v1832_v27  ;;  %v1836_v29 = vld [vmem:[%s10348_s8 + $0x11d0] sm:$0xff] }
  0xa1   : > { %1835 = vst [vmem:[%s10353_s9 + $0x8e0] sm:$0xff] %v1834_v28  ;;  %v1838_v30 = vld [vmem:[%s10348_s8 + $0x11e0] sm:$0xff]  ;;  %v1840_v31 = vld [vmem:[%s10348_s8 + $0x11f0] sm:$0xff]  ;;  %1837 = vst [vmem:[%s10353_s9 + $0x8e8] sm:$0xff] %v1836_v29 }
  0xa2   : > { %1839 = vst [vmem:[%s10353_s9 + $0x8f0] sm:$0xff] %v1838_v30  ;;  %1841 = vst [vmem:[%s10353_s9 + $0x8f8] sm:$0xff] %v1840_v31  ;;  %v1842_v32 = vld [vmem:[%s10348_s8 + $0x1200] sm:$0xff]  ;;  %v1844_v33 = vld [vmem:[%s10348_s8 + $0x1210] sm:$0xff] }
  0xa3   : > { %v1846_v34 = vld [vmem:[%s10348_s8 + $0x1220] sm:$0xff]  ;;  %1843 = vst [vmem:[%s10353_s9 + $0x900] sm:$0xff] %v1842_v32  ;;  %1845 = vst [vmem:[%s10353_s9 + $0x908] sm:$0xff] %v1844_v33  ;;  %v1848_v35 = vld [vmem:[%s10348_s8 + $0x1230] sm:$0xff] }
  0xa4   : > { %1847 = vst [vmem:[%s10353_s9 + $0x910] sm:$0xff] %v1846_v34  ;;  %v1850_v36 = vld [vmem:[%s10348_s8 + $0x1240] sm:$0xff]  ;;  %v1852_v37 = vld [vmem:[%s10348_s8 + $0x1250] sm:$0xff]  ;;  %1849 = vst [vmem:[%s10353_s9 + $0x918] sm:$0xff] %v1848_v35 }
  0xa5   : > { %1851 = vst [vmem:[%s10353_s9 + $0x920] sm:$0xff] %v1850_v36  ;;  %1853 = vst [vmem:[%s10353_s9 + $0x928] sm:$0xff] %v1852_v37  ;;  %v1854_v38 = vld [vmem:[%s10348_s8 + $0x1260] sm:$0xff]  ;;  %v1856_v39 = vld [vmem:[%s10348_s8 + $0x1270] sm:$0xff] }
  0xa6   : > { %v1858_v40 = vld [vmem:[%s10348_s8 + $0x1280] sm:$0xff]  ;;  %1855 = vst [vmem:[%s10353_s9 + $0x930] sm:$0xff] %v1854_v38  ;;  %1857 = vst [vmem:[%s10353_s9 + $0x938] sm:$0xff] %v1856_v39  ;;  %v1860_v41 = vld [vmem:[%s10348_s8 + $0x1290] sm:$0xff] }
  0xa7   : > { %1859 = vst [vmem:[%s10353_s9 + $0x940] sm:$0xff] %v1858_v40  ;;  %v1862_v42 = vld [vmem:[%s10348_s8 + $0x12a0] sm:$0xff]  ;;  %v1864_v43 = vld [vmem:[%s10348_s8 + $0x12b0] sm:$0xff]  ;;  %1861 = vst [vmem:[%s10353_s9 + $0x948] sm:$0xff] %v1860_v41 }
  0xa8   : > { %1863 = vst [vmem:[%s10353_s9 + $0x950] sm:$0xff] %v1862_v42  ;;  %1865 = vst [vmem:[%s10353_s9 + $0x958] sm:$0xff] %v1864_v43  ;;  %v1866_v44 = vld [vmem:[%s10348_s8 + $0x12c0] sm:$0xff]  ;;  %v1868_v45 = vld [vmem:[%s10348_s8 + $0x12d0] sm:$0xff] }
  0xa9   : > { %v1870_v46 = vld [vmem:[%s10348_s8 + $0x12e0] sm:$0xff]  ;;  %1867 = vst [vmem:[%s10353_s9 + $0x960] sm:$0xff] %v1866_v44  ;;  %1869 = vst [vmem:[%s10353_s9 + $0x968] sm:$0xff] %v1868_v45  ;;  %v1872_v47 = vld [vmem:[%s10348_s8 + $0x12f0] sm:$0xff] }
  0xaa   : > { %1871 = vst [vmem:[%s10353_s9 + $0x970] sm:$0xff] %v1870_v46  ;;  %v1874_v48 = vld [vmem:[%s10348_s8 + $0x1300] sm:$0xff]  ;;  %v1876_v49 = vld [vmem:[%s10348_s8 + $0x1310] sm:$0xff]  ;;  %1873 = vst [vmem:[%s10353_s9 + $0x978] sm:$0xff] %v1872_v47 }
  0xab   : > { %1875 = vst [vmem:[%s10353_s9 + $0x980] sm:$0xff] %v1874_v48  ;;  %1877 = vst [vmem:[%s10353_s9 + $0x988] sm:$0xff] %v1876_v49  ;;  %v1878_v50 = vld [vmem:[%s10348_s8 + $0x1320] sm:$0xff]  ;;  %v1880_v51 = vld [vmem:[%s10348_s8 + $0x1330] sm:$0xff] }
  0xac   : > { %v1882_v52 = vld [vmem:[%s10348_s8 + $0x1340] sm:$0xff]  ;;  %1879 = vst [vmem:[%s10353_s9 + $0x990] sm:$0xff] %v1878_v50  ;;  %1881 = vst [vmem:[%s10353_s9 + $0x998] sm:$0xff] %v1880_v51  ;;  %v1884_v53 = vld [vmem:[%s10348_s8 + $0x1350] sm:$0xff] }
  0xad   : > { %1883 = vst [vmem:[%s10353_s9 + $0x9a0] sm:$0xff] %v1882_v52  ;;  %v1886_v54 = vld [vmem:[%s10348_s8 + $0x1360] sm:$0xff]  ;;  %v1888_v55 = vld [vmem:[%s10348_s8 + $0x1370] sm:$0xff]  ;;  %1885 = vst [vmem:[%s10353_s9 + $0x9a8] sm:$0xff] %v1884_v53 }
  0xae   : > { %1887 = vst [vmem:[%s10353_s9 + $0x9b0] sm:$0xff] %v1886_v54  ;;  %1889 = vst [vmem:[%s10353_s9 + $0x9b8] sm:$0xff] %v1888_v55  ;;  %v1890_v56 = vld [vmem:[%s10348_s8 + $0x1380] sm:$0xff]  ;;  %v1892_v57 = vld [vmem:[%s10348_s8 + $0x1390] sm:$0xff] }
  0xaf   : > { %v1894_v58 = vld [vmem:[%s10348_s8 + $0x13a0] sm:$0xff]  ;;  %1891 = vst [vmem:[%s10353_s9 + $0x9c0] sm:$0xff] %v1890_v56  ;;  %1893 = vst [vmem:[%s10353_s9 + $0x9c8] sm:$0xff] %v1892_v57  ;;  %v1896_v59 = vld [vmem:[%s10348_s8 + $0x13b0] sm:$0xff] }
  0xb0   : > { %1895 = vst [vmem:[%s10353_s9 + $0x9d0] sm:$0xff] %v1894_v58  ;;  %v1898_v60 = vld [vmem:[%s10348_s8 + $0x13c0] sm:$0xff]  ;;  %v1900_v61 = vld [vmem:[%s10348_s8 + $0x13d0] sm:$0xff]  ;;  %1897 = vst [vmem:[%s10353_s9 + $0x9d8] sm:$0xff] %v1896_v59 }
  0xb1   : > { %1899 = vst [vmem:[%s10353_s9 + $0x9e0] sm:$0xff] %v1898_v60  ;;  %1901 = vst [vmem:[%s10353_s9 + $0x9e8] sm:$0xff] %v1900_v61  ;;  %v1902_v62 = vld [vmem:[%s10348_s8 + $0x13e0] sm:$0xff]  ;;  %v1904_v63 = vld [vmem:[%s10348_s8 + $0x13f0] sm:$0xff] }
  0xb2   : > { %v1906_v0 = vld [vmem:[%s10348_s8 + $0x1400] sm:$0xff]  ;;  %1903 = vst [vmem:[%s10353_s9 + $0x9f0] sm:$0xff] %v1902_v62  ;;  %1905 = vst [vmem:[%s10353_s9 + $0x9f8] sm:$0xff] %v1904_v63  ;;  %v1908_v1 = vld [vmem:[%s10348_s8 + $0x1410] sm:$0xff] }
  0xb3   : > { %1907 = vst [vmem:[%s10353_s9 + $0xa00] sm:$0xff] %v1906_v0  ;;  %v1910_v2 = vld [vmem:[%s10348_s8 + $0x1420] sm:$0xff]  ;;  %v1912_v3 = vld [vmem:[%s10348_s8 + $0x1430] sm:$0xff]  ;;  %1909 = vst [vmem:[%s10353_s9 + $0xa08] sm:$0xff] %v1908_v1 }
  0xb4   : > { %1911 = vst [vmem:[%s10353_s9 + $0xa10] sm:$0xff] %v1910_v2  ;;  %1913 = vst [vmem:[%s10353_s9 + $0xa18] sm:$0xff] %v1912_v3  ;;  %v1914_v4 = vld [vmem:[%s10348_s8 + $0x1440] sm:$0xff]  ;;  %v1916_v5 = vld [vmem:[%s10348_s8 + $0x1450] sm:$0xff] }
  0xb5   : > { %v1918_v6 = vld [vmem:[%s10348_s8 + $0x1460] sm:$0xff]  ;;  %1915 = vst [vmem:[%s10353_s9 + $0xa20] sm:$0xff] %v1914_v4  ;;  %1917 = vst [vmem:[%s10353_s9 + $0xa28] sm:$0xff] %v1916_v5  ;;  %v1920_v7 = vld [vmem:[%s10348_s8 + $0x1470] sm:$0xff] }
  0xb6   : > { %1919 = vst [vmem:[%s10353_s9 + $0xa30] sm:$0xff] %v1918_v6  ;;  %v1922_v8 = vld [vmem:[%s10348_s8 + $0x1480] sm:$0xff]  ;;  %v1924_v9 = vld [vmem:[%s10348_s8 + $0x1490] sm:$0xff]  ;;  %1921 = vst [vmem:[%s10353_s9 + $0xa38] sm:$0xff] %v1920_v7 }
  0xb7   : > { %1923 = vst [vmem:[%s10353_s9 + $0xa40] sm:$0xff] %v1922_v8  ;;  %1925 = vst [vmem:[%s10353_s9 + $0xa48] sm:$0xff] %v1924_v9  ;;  %v1926_v10 = vld [vmem:[%s10348_s8 + $0x14a0] sm:$0xff]  ;;  %v1928_v11 = vld [vmem:[%s10348_s8 + $0x14b0] sm:$0xff] }
  0xb8   : > { %v1930_v12 = vld [vmem:[%s10348_s8 + $0x14c0] sm:$0xff]  ;;  %1927 = vst [vmem:[%s10353_s9 + $0xa50] sm:$0xff] %v1926_v10  ;;  %1929 = vst [vmem:[%s10353_s9 + $0xa58] sm:$0xff] %v1928_v11  ;;  %v1932_v13 = vld [vmem:[%s10348_s8 + $0x14d0] sm:$0xff] }
  0xb9   : > { %1931 = vst [vmem:[%s10353_s9 + $0xa60] sm:$0xff] %v1930_v12  ;;  %v1934_v14 = vld [vmem:[%s10348_s8 + $0x14e0] sm:$0xff]  ;;  %v1936_v15 = vld [vmem:[%s10348_s8 + $0x14f0] sm:$0xff]  ;;  %1933 = vst [vmem:[%s10353_s9 + $0xa68] sm:$0xff] %v1932_v13 }
  0xba   : > { %1935 = vst [vmem:[%s10353_s9 + $0xa70] sm:$0xff] %v1934_v14  ;;  %1937 = vst [vmem:[%s10353_s9 + $0xa78] sm:$0xff] %v1936_v15  ;;  %v1938_v16 = vld [vmem:[%s10348_s8 + $0x1500] sm:$0xff]  ;;  %v1940_v17 = vld [vmem:[%s10348_s8 + $0x1510] sm:$0xff] }
  0xbb   : > { %v1942_v18 = vld [vmem:[%s10348_s8 + $0x1520] sm:$0xff]  ;;  %1939 = vst [vmem:[%s10353_s9 + $0xa80] sm:$0xff] %v1938_v16  ;;  %1941 = vst [vmem:[%s10353_s9 + $0xa88] sm:$0xff] %v1940_v17  ;;  %v1944_v19 = vld [vmem:[%s10348_s8 + $0x1530] sm:$0xff] }
  0xbc   : > { %1943 = vst [vmem:[%s10353_s9 + $0xa90] sm:$0xff] %v1942_v18  ;;  %v1946_v20 = vld [vmem:[%s10348_s8 + $0x1540] sm:$0xff]  ;;  %v1948_v21 = vld [vmem:[%s10348_s8 + $0x1550] sm:$0xff]  ;;  %1945 = vst [vmem:[%s10353_s9 + $0xa98] sm:$0xff] %v1944_v19 }
  0xbd   : > { %1947 = vst [vmem:[%s10353_s9 + $0xaa0] sm:$0xff] %v1946_v20  ;;  %1949 = vst [vmem:[%s10353_s9 + $0xaa8] sm:$0xff] %v1948_v21  ;;  %v1950_v22 = vld [vmem:[%s10348_s8 + $0x1560] sm:$0xff]  ;;  %v1952_v23 = vld [vmem:[%s10348_s8 + $0x1570] sm:$0xff] }
  0xbe   : > { %v1954_v24 = vld [vmem:[%s10348_s8 + $0x1580] sm:$0xff]  ;;  %1951 = vst [vmem:[%s10353_s9 + $0xab0] sm:$0xff] %v1950_v22  ;;  %1953 = vst [vmem:[%s10353_s9 + $0xab8] sm:$0xff] %v1952_v23  ;;  %v1956_v25 = vld [vmem:[%s10348_s8 + $0x1590] sm:$0xff] }
  0xbf   : > { %1955 = vst [vmem:[%s10353_s9 + $0xac0] sm:$0xff] %v1954_v24  ;;  %v1958_v26 = vld [vmem:[%s10348_s8 + $0x15a0] sm:$0xff]  ;;  %v1960_v27 = vld [vmem:[%s10348_s8 + $0x15b0] sm:$0xff]  ;;  %1957 = vst [vmem:[%s10353_s9 + $0xac8] sm:$0xff] %v1956_v25 }
  0xc0   : > { %1959 = vst [vmem:[%s10353_s9 + $0xad0] sm:$0xff] %v1958_v26  ;;  %1961 = vst [vmem:[%s10353_s9 + $0xad8] sm:$0xff] %v1960_v27  ;;  %v1962_v28 = vld [vmem:[%s10348_s8 + $0x15c0] sm:$0xff]  ;;  %v1964_v29 = vld [vmem:[%s10348_s8 + $0x15d0] sm:$0xff] }
  0xc1   : > { %v1966_v30 = vld [vmem:[%s10348_s8 + $0x15e0] sm:$0xff]  ;;  %1963 = vst [vmem:[%s10353_s9 + $0xae0] sm:$0xff] %v1962_v28  ;;  %1965 = vst [vmem:[%s10353_s9 + $0xae8] sm:$0xff] %v1964_v29  ;;  %v1968_v31 = vld [vmem:[%s10348_s8 + $0x15f0] sm:$0xff] }
  0xc2   : > { %1967 = vst [vmem:[%s10353_s9 + $0xaf0] sm:$0xff] %v1966_v30  ;;  %v1970_v32 = vld [vmem:[%s10348_s8 + $0x1600] sm:$0xff]  ;;  %v1972_v33 = vld [vmem:[%s10348_s8 + $0x1610] sm:$0xff]  ;;  %1969 = vst [vmem:[%s10353_s9 + $0xaf8] sm:$0xff] %v1968_v31 }
  0xc3   : > { %1971 = vst [vmem:[%s10353_s9 + $0xb00] sm:$0xff] %v1970_v32  ;;  %1973 = vst [vmem:[%s10353_s9 + $0xb08] sm:$0xff] %v1972_v33  ;;  %v1974_v34 = vld [vmem:[%s10348_s8 + $0x1620] sm:$0xff]  ;;  %v1976_v35 = vld [vmem:[%s10348_s8 + $0x1630] sm:$0xff] }
  0xc4   : > { %v1978_v36 = vld [vmem:[%s10348_s8 + $0x1640] sm:$0xff]  ;;  %1975 = vst [vmem:[%s10353_s9 + $0xb10] sm:$0xff] %v1974_v34  ;;  %1977 = vst [vmem:[%s10353_s9 + $0xb18] sm:$0xff] %v1976_v35  ;;  %v1980_v37 = vld [vmem:[%s10348_s8 + $0x1650] sm:$0xff] }
  0xc5   : > { %1979 = vst [vmem:[%s10353_s9 + $0xb20] sm:$0xff] %v1978_v36  ;;  %v1982_v38 = vld [vmem:[%s10348_s8 + $0x1660] sm:$0xff]  ;;  %v1984_v39 = vld [vmem:[%s10348_s8 + $0x1670] sm:$0xff]  ;;  %1981 = vst [vmem:[%s10353_s9 + $0xb28] sm:$0xff] %v1980_v37 }
  0xc6   : > { %1983 = vst [vmem:[%s10353_s9 + $0xb30] sm:$0xff] %v1982_v38  ;;  %1985 = vst [vmem:[%s10353_s9 + $0xb38] sm:$0xff] %v1984_v39  ;;  %v1986_v40 = vld [vmem:[%s10348_s8 + $0x1680] sm:$0xff]  ;;  %v1988_v41 = vld [vmem:[%s10348_s8 + $0x1690] sm:$0xff] }
  0xc7   : > { %v1990_v42 = vld [vmem:[%s10348_s8 + $0x16a0] sm:$0xff]  ;;  %1987 = vst [vmem:[%s10353_s9 + $0xb40] sm:$0xff] %v1986_v40  ;;  %1989 = vst [vmem:[%s10353_s9 + $0xb48] sm:$0xff] %v1988_v41  ;;  %v1992_v43 = vld [vmem:[%s10348_s8 + $0x16b0] sm:$0xff] }
  0xc8   : > { %1991 = vst [vmem:[%s10353_s9 + $0xb50] sm:$0xff] %v1990_v42  ;;  %v1994_v44 = vld [vmem:[%s10348_s8 + $0x16c0] sm:$0xff]  ;;  %v1996_v45 = vld [vmem:[%s10348_s8 + $0x16d0] sm:$0xff]  ;;  %1993 = vst [vmem:[%s10353_s9 + $0xb58] sm:$0xff] %v1992_v43 }
  0xc9   : > { %1995 = vst [vmem:[%s10353_s9 + $0xb60] sm:$0xff] %v1994_v44  ;;  %1997 = vst [vmem:[%s10353_s9 + $0xb68] sm:$0xff] %v1996_v45  ;;  %v1998_v46 = vld [vmem:[%s10348_s8 + $0x16e0] sm:$0xff]  ;;  %v2000_v47 = vld [vmem:[%s10348_s8 + $0x16f0] sm:$0xff] }
  0xca   : > { %v2002_v48 = vld [vmem:[%s10348_s8 + $0x1700] sm:$0xff]  ;;  %1999 = vst [vmem:[%s10353_s9 + $0xb70] sm:$0xff] %v1998_v46  ;;  %2001 = vst [vmem:[%s10353_s9 + $0xb78] sm:$0xff] %v2000_v47  ;;  %v2004_v49 = vld [vmem:[%s10348_s8 + $0x1710] sm:$0xff] }
  0xcb   : > { %2003 = vst [vmem:[%s10353_s9 + $0xb80] sm:$0xff] %v2002_v48  ;;  %v2006_v50 = vld [vmem:[%s10348_s8 + $0x1720] sm:$0xff]  ;;  %v2008_v51 = vld [vmem:[%s10348_s8 + $0x1730] sm:$0xff]  ;;  %2005 = vst [vmem:[%s10353_s9 + $0xb88] sm:$0xff] %v2004_v49 }
  0xcc   : > { %2007 = vst [vmem:[%s10353_s9 + $0xb90] sm:$0xff] %v2006_v50  ;;  %2009 = vst [vmem:[%s10353_s9 + $0xb98] sm:$0xff] %v2008_v51  ;;  %v2010_v52 = vld [vmem:[%s10348_s8 + $0x1740] sm:$0xff]  ;;  %v2012_v53 = vld [vmem:[%s10348_s8 + $0x1750] sm:$0xff] }
  0xcd   : > { %v2014_v54 = vld [vmem:[%s10348_s8 + $0x1760] sm:$0xff]  ;;  %2011 = vst [vmem:[%s10353_s9 + $0xba0] sm:$0xff] %v2010_v52  ;;  %2013 = vst [vmem:[%s10353_s9 + $0xba8] sm:$0xff] %v2012_v53  ;;  %v2016_v55 = vld [vmem:[%s10348_s8 + $0x1770] sm:$0xff] }
  0xce   : > { %2015 = vst [vmem:[%s10353_s9 + $0xbb0] sm:$0xff] %v2014_v54  ;;  %v2018_v56 = vld [vmem:[%s10348_s8 + $0x1780] sm:$0xff]  ;;  %v2020_v57 = vld [vmem:[%s10348_s8 + $0x1790] sm:$0xff]  ;;  %2017 = vst [vmem:[%s10353_s9 + $0xbb8] sm:$0xff] %v2016_v55 }
  0xcf   : > { %2019 = vst [vmem:[%s10353_s9 + $0xbc0] sm:$0xff] %v2018_v56  ;;  %2021 = vst [vmem:[%s10353_s9 + $0xbc8] sm:$0xff] %v2020_v57  ;;  %v2022_v58 = vld [vmem:[%s10348_s8 + $0x17a0] sm:$0xff]  ;;  %v2024_v59 = vld [vmem:[%s10348_s8 + $0x17b0] sm:$0xff] }
  0xd0   : > { %v2026_v60 = vld [vmem:[%s10348_s8 + $0x17c0] sm:$0xff]  ;;  %2023 = vst [vmem:[%s10353_s9 + $0xbd0] sm:$0xff] %v2022_v58  ;;  %2025 = vst [vmem:[%s10353_s9 + $0xbd8] sm:$0xff] %v2024_v59  ;;  %v2028_v61 = vld [vmem:[%s10348_s8 + $0x17d0] sm:$0xff] }
  0xd1   : > { %2027 = vst [vmem:[%s10353_s9 + $0xbe0] sm:$0xff] %v2026_v60  ;;  %v2030_v62 = vld [vmem:[%s10348_s8 + $0x17e0] sm:$0xff]  ;;  %v2032_v63 = vld [vmem:[%s10348_s8 + $0x17f0] sm:$0xff]  ;;  %2029 = vst [vmem:[%s10353_s9 + $0xbe8] sm:$0xff] %v2028_v61 }
  0xd2   : > { %2031 = vst [vmem:[%s10353_s9 + $0xbf0] sm:$0xff] %v2030_v62  ;;  %2033 = vst [vmem:[%s10353_s9 + $0xbf8] sm:$0xff] %v2032_v63  ;;  %v2034_v0 = vld [vmem:[%s10348_s8 + $0x1800] sm:$0xff]  ;;  %v2036_v1 = vld [vmem:[%s10348_s8 + $0x1810] sm:$0xff] }
  0xd3   : > { %v2038_v2 = vld [vmem:[%s10348_s8 + $0x1820] sm:$0xff]  ;;  %2035 = vst [vmem:[%s10353_s9 + $0xc00] sm:$0xff] %v2034_v0  ;;  %2037 = vst [vmem:[%s10353_s9 + $0xc08] sm:$0xff] %v2036_v1  ;;  %v2040_v3 = vld [vmem:[%s10348_s8 + $0x1830] sm:$0xff] }
  0xd4   : > { %2039 = vst [vmem:[%s10353_s9 + $0xc10] sm:$0xff] %v2038_v2  ;;  %v2042_v4 = vld [vmem:[%s10348_s8 + $0x1840] sm:$0xff]  ;;  %v2044_v5 = vld [vmem:[%s10348_s8 + $0x1850] sm:$0xff]  ;;  %2041 = vst [vmem:[%s10353_s9 + $0xc18] sm:$0xff] %v2040_v3 }
  0xd5   : > { %2043 = vst [vmem:[%s10353_s9 + $0xc20] sm:$0xff] %v2042_v4  ;;  %2045 = vst [vmem:[%s10353_s9 + $0xc28] sm:$0xff] %v2044_v5  ;;  %v2046_v6 = vld [vmem:[%s10348_s8 + $0x1860] sm:$0xff]  ;;  %v2048_v7 = vld [vmem:[%s10348_s8 + $0x1870] sm:$0xff] }
  0xd6   : > { %v2050_v8 = vld [vmem:[%s10348_s8 + $0x1880] sm:$0xff]  ;;  %2047 = vst [vmem:[%s10353_s9 + $0xc30] sm:$0xff] %v2046_v6  ;;  %2049 = vst [vmem:[%s10353_s9 + $0xc38] sm:$0xff] %v2048_v7  ;;  %v2052_v9 = vld [vmem:[%s10348_s8 + $0x1890] sm:$0xff] }
  0xd7   : > { %2051 = vst [vmem:[%s10353_s9 + $0xc40] sm:$0xff] %v2050_v8  ;;  %v2054_v10 = vld [vmem:[%s10348_s8 + $0x18a0] sm:$0xff]  ;;  %v2056_v11 = vld [vmem:[%s10348_s8 + $0x18b0] sm:$0xff]  ;;  %2053 = vst [vmem:[%s10353_s9 + $0xc48] sm:$0xff] %v2052_v9 }
  0xd8   : > { %2055 = vst [vmem:[%s10353_s9 + $0xc50] sm:$0xff] %v2054_v10  ;;  %2057 = vst [vmem:[%s10353_s9 + $0xc58] sm:$0xff] %v2056_v11  ;;  %v2058_v12 = vld [vmem:[%s10348_s8 + $0x18c0] sm:$0xff]  ;;  %v2060_v13 = vld [vmem:[%s10348_s8 + $0x18d0] sm:$0xff] }
  0xd9   : > { %v2062_v14 = vld [vmem:[%s10348_s8 + $0x18e0] sm:$0xff]  ;;  %2059 = vst [vmem:[%s10353_s9 + $0xc60] sm:$0xff] %v2058_v12  ;;  %2061 = vst [vmem:[%s10353_s9 + $0xc68] sm:$0xff] %v2060_v13  ;;  %v2064_v15 = vld [vmem:[%s10348_s8 + $0x18f0] sm:$0xff] }
  0xda   : > { %2063 = vst [vmem:[%s10353_s9 + $0xc70] sm:$0xff] %v2062_v14  ;;  %v2066_v16 = vld [vmem:[%s10348_s8 + $0x1900] sm:$0xff]  ;;  %v2068_v17 = vld [vmem:[%s10348_s8 + $0x1910] sm:$0xff]  ;;  %2065 = vst [vmem:[%s10353_s9 + $0xc78] sm:$0xff] %v2064_v15 }
  0xdb   : > { %2067 = vst [vmem:[%s10353_s9 + $0xc80] sm:$0xff] %v2066_v16  ;;  %2069 = vst [vmem:[%s10353_s9 + $0xc88] sm:$0xff] %v2068_v17  ;;  %v2070_v18 = vld [vmem:[%s10348_s8 + $0x1920] sm:$0xff]  ;;  %v2072_v19 = vld [vmem:[%s10348_s8 + $0x1930] sm:$0xff] }
  0xdc   : > { %v2074_v20 = vld [vmem:[%s10348_s8 + $0x1940] sm:$0xff]  ;;  %2071 = vst [vmem:[%s10353_s9 + $0xc90] sm:$0xff] %v2070_v18  ;;  %2073 = vst [vmem:[%s10353_s9 + $0xc98] sm:$0xff] %v2072_v19  ;;  %v2076_v21 = vld [vmem:[%s10348_s8 + $0x1950] sm:$0xff] }
  0xdd   : > { %2075 = vst [vmem:[%s10353_s9 + $0xca0] sm:$0xff] %v2074_v20  ;;  %v2078_v22 = vld [vmem:[%s10348_s8 + $0x1960] sm:$0xff]  ;;  %v2080_v23 = vld [vmem:[%s10348_s8 + $0x1970] sm:$0xff]  ;;  %2077 = vst [vmem:[%s10353_s9 + $0xca8] sm:$0xff] %v2076_v21 }
  0xde   : > { %2079 = vst [vmem:[%s10353_s9 + $0xcb0] sm:$0xff] %v2078_v22  ;;  %2081 = vst [vmem:[%s10353_s9 + $0xcb8] sm:$0xff] %v2080_v23  ;;  %v2082_v24 = vld [vmem:[%s10348_s8 + $0x1980] sm:$0xff]  ;;  %v2084_v25 = vld [vmem:[%s10348_s8 + $0x1990] sm:$0xff] }
  0xdf   : > { %v2086_v26 = vld [vmem:[%s10348_s8 + $0x19a0] sm:$0xff]  ;;  %2083 = vst [vmem:[%s10353_s9 + $0xcc0] sm:$0xff] %v2082_v24  ;;  %2085 = vst [vmem:[%s10353_s9 + $0xcc8] sm:$0xff] %v2084_v25  ;;  %v2088_v27 = vld [vmem:[%s10348_s8 + $0x19b0] sm:$0xff] }
  0xe0   : > { %2087 = vst [vmem:[%s10353_s9 + $0xcd0] sm:$0xff] %v2086_v26  ;;  %v2090_v28 = vld [vmem:[%s10348_s8 + $0x19c0] sm:$0xff]  ;;  %v2092_v29 = vld [vmem:[%s10348_s8 + $0x19d0] sm:$0xff]  ;;  %2089 = vst [vmem:[%s10353_s9 + $0xcd8] sm:$0xff] %v2088_v27 }
  0xe1   : > { %2091 = vst [vmem:[%s10353_s9 + $0xce0] sm:$0xff] %v2090_v28  ;;  %2093 = vst [vmem:[%s10353_s9 + $0xce8] sm:$0xff] %v2092_v29  ;;  %v2094_v30 = vld [vmem:[%s10348_s8 + $0x19e0] sm:$0xff]  ;;  %v2096_v31 = vld [vmem:[%s10348_s8 + $0x19f0] sm:$0xff] }
  0xe2   : > { %v2098_v32 = vld [vmem:[%s10348_s8 + $0x1a00] sm:$0xff]  ;;  %2095 = vst [vmem:[%s10353_s9 + $0xcf0] sm:$0xff] %v2094_v30  ;;  %2097 = vst [vmem:[%s10353_s9 + $0xcf8] sm:$0xff] %v2096_v31  ;;  %v2100_v33 = vld [vmem:[%s10348_s8 + $0x1a10] sm:$0xff] }
  0xe3   : > { %2099 = vst [vmem:[%s10353_s9 + $0xd00] sm:$0xff] %v2098_v32  ;;  %v2102_v34 = vld [vmem:[%s10348_s8 + $0x1a20] sm:$0xff]  ;;  %v2104_v35 = vld [vmem:[%s10348_s8 + $0x1a30] sm:$0xff]  ;;  %2101 = vst [vmem:[%s10353_s9 + $0xd08] sm:$0xff] %v2100_v33 }
  0xe4   : > { %2103 = vst [vmem:[%s10353_s9 + $0xd10] sm:$0xff] %v2102_v34  ;;  %2105 = vst [vmem:[%s10353_s9 + $0xd18] sm:$0xff] %v2104_v35  ;;  %v2106_v36 = vld [vmem:[%s10348_s8 + $0x1a40] sm:$0xff]  ;;  %v2108_v37 = vld [vmem:[%s10348_s8 + $0x1a50] sm:$0xff] }
  0xe5   : > { %v2110_v38 = vld [vmem:[%s10348_s8 + $0x1a60] sm:$0xff]  ;;  %2107 = vst [vmem:[%s10353_s9 + $0xd20] sm:$0xff] %v2106_v36  ;;  %2109 = vst [vmem:[%s10353_s9 + $0xd28] sm:$0xff] %v2108_v37  ;;  %v2112_v39 = vld [vmem:[%s10348_s8 + $0x1a70] sm:$0xff] }
  0xe6   : > { %2111 = vst [vmem:[%s10353_s9 + $0xd30] sm:$0xff] %v2110_v38  ;;  %v2114_v40 = vld [vmem:[%s10348_s8 + $0x1a80] sm:$0xff]  ;;  %v2116_v41 = vld [vmem:[%s10348_s8 + $0x1a90] sm:$0xff]  ;;  %2113 = vst [vmem:[%s10353_s9 + $0xd38] sm:$0xff] %v2112_v39 }
  0xe7   : > { %2115 = vst [vmem:[%s10353_s9 + $0xd40] sm:$0xff] %v2114_v40  ;;  %2117 = vst [vmem:[%s10353_s9 + $0xd48] sm:$0xff] %v2116_v41  ;;  %v2118_v42 = vld [vmem:[%s10348_s8 + $0x1aa0] sm:$0xff]  ;;  %v2120_v43 = vld [vmem:[%s10348_s8 + $0x1ab0] sm:$0xff] }
  0xe8   : > { %v2122_v44 = vld [vmem:[%s10348_s8 + $0x1ac0] sm:$0xff]  ;;  %2119 = vst [vmem:[%s10353_s9 + $0xd50] sm:$0xff] %v2118_v42  ;;  %2121 = vst [vmem:[%s10353_s9 + $0xd58] sm:$0xff] %v2120_v43  ;;  %v2124_v45 = vld [vmem:[%s10348_s8 + $0x1ad0] sm:$0xff] }
  0xe9   : > { %2123 = vst [vmem:[%s10353_s9 + $0xd60] sm:$0xff] %v2122_v44  ;;  %v2126_v46 = vld [vmem:[%s10348_s8 + $0x1ae0] sm:$0xff]  ;;  %v2128_v47 = vld [vmem:[%s10348_s8 + $0x1af0] sm:$0xff]  ;;  %2125 = vst [vmem:[%s10353_s9 + $0xd68] sm:$0xff] %v2124_v45 }
  0xea   : > { %2127 = vst [vmem:[%s10353_s9 + $0xd70] sm:$0xff] %v2126_v46  ;;  %2129 = vst [vmem:[%s10353_s9 + $0xd78] sm:$0xff] %v2128_v47  ;;  %v2130_v48 = vld [vmem:[%s10348_s8 + $0x1b00] sm:$0xff]  ;;  %v2132_v49 = vld [vmem:[%s10348_s8 + $0x1b10] sm:$0xff] }
  0xeb   : > { %v2134_v50 = vld [vmem:[%s10348_s8 + $0x1b20] sm:$0xff]  ;;  %2131 = vst [vmem:[%s10353_s9 + $0xd80] sm:$0xff] %v2130_v48  ;;  %2133 = vst [vmem:[%s10353_s9 + $0xd88] sm:$0xff] %v2132_v49  ;;  %v2136_v51 = vld [vmem:[%s10348_s8 + $0x1b30] sm:$0xff] }
  0xec   : > { %2135 = vst [vmem:[%s10353_s9 + $0xd90] sm:$0xff] %v2134_v50  ;;  %v2138_v52 = vld [vmem:[%s10348_s8 + $0x1b40] sm:$0xff]  ;;  %v2140_v53 = vld [vmem:[%s10348_s8 + $0x1b50] sm:$0xff]  ;;  %2137 = vst [vmem:[%s10353_s9 + $0xd98] sm:$0xff] %v2136_v51 }
  0xed   : > { %2139 = vst [vmem:[%s10353_s9 + $0xda0] sm:$0xff] %v2138_v52  ;;  %2141 = vst [vmem:[%s10353_s9 + $0xda8] sm:$0xff] %v2140_v53  ;;  %v2142_v54 = vld [vmem:[%s10348_s8 + $0x1b60] sm:$0xff]  ;;  %v2144_v55 = vld [vmem:[%s10348_s8 + $0x1b70] sm:$0xff] }
  0xee   : > { %v2146_v56 = vld [vmem:[%s10348_s8 + $0x1b80] sm:$0xff]  ;;  %2143 = vst [vmem:[%s10353_s9 + $0xdb0] sm:$0xff] %v2142_v54  ;;  %2145 = vst [vmem:[%s10353_s9 + $0xdb8] sm:$0xff] %v2144_v55  ;;  %v2148_v57 = vld [vmem:[%s10348_s8 + $0x1b90] sm:$0xff] }
  0xef   : > { %2147 = vst [vmem:[%s10353_s9 + $0xdc0] sm:$0xff] %v2146_v56  ;;  %v2150_v58 = vld [vmem:[%s10348_s8 + $0x1ba0] sm:$0xff]  ;;  %v2152_v59 = vld [vmem:[%s10348_s8 + $0x1bb0] sm:$0xff]  ;;  %2149 = vst [vmem:[%s10353_s9 + $0xdc8] sm:$0xff] %v2148_v57 }
  0xf0   : > { %2151 = vst [vmem:[%s10353_s9 + $0xdd0] sm:$0xff] %v2150_v58  ;;  %2153 = vst [vmem:[%s10353_s9 + $0xdd8] sm:$0xff] %v2152_v59  ;;  %v2154_v60 = vld [vmem:[%s10348_s8 + $0x1bc0] sm:$0xff]  ;;  %v2156_v61 = vld [vmem:[%s10348_s8 + $0x1bd0] sm:$0xff] }
  0xf1   : > { %v2158_v62 = vld [vmem:[%s10348_s8 + $0x1be0] sm:$0xff]  ;;  %2155 = vst [vmem:[%s10353_s9 + $0xde0] sm:$0xff] %v2154_v60  ;;  %2157 = vst [vmem:[%s10353_s9 + $0xde8] sm:$0xff] %v2156_v61  ;;  %v2160_v63 = vld [vmem:[%s10348_s8 + $0x1bf0] sm:$0xff] }
  0xf2   : > { %2159 = vst [vmem:[%s10353_s9 + $0xdf0] sm:$0xff] %v2158_v62  ;;  %v2162_v0 = vld [vmem:[%s10348_s8 + $0x1c00] sm:$0xff]  ;;  %v2164_v1 = vld [vmem:[%s10348_s8 + $0x1c10] sm:$0xff]  ;;  %2161 = vst [vmem:[%s10353_s9 + $0xdf8] sm:$0xff] %v2160_v63 }
  0xf3   : > { %2163 = vst [vmem:[%s10353_s9 + $0xe00] sm:$0xff] %v2162_v0  ;;  %2165 = vst [vmem:[%s10353_s9 + $0xe08] sm:$0xff] %v2164_v1  ;;  %v2166_v2 = vld [vmem:[%s10348_s8 + $0x1c20] sm:$0xff]  ;;  %v2168_v3 = vld [vmem:[%s10348_s8 + $0x1c30] sm:$0xff] }
  0xf4   : > { %v2170_v4 = vld [vmem:[%s10348_s8 + $0x1c40] sm:$0xff]  ;;  %2167 = vst [vmem:[%s10353_s9 + $0xe10] sm:$0xff] %v2166_v2  ;;  %2169 = vst [vmem:[%s10353_s9 + $0xe18] sm:$0xff] %v2168_v3  ;;  %v2172_v5 = vld [vmem:[%s10348_s8 + $0x1c50] sm:$0xff] }
  0xf5   : > { %2171 = vst [vmem:[%s10353_s9 + $0xe20] sm:$0xff] %v2170_v4  ;;  %v2174_v6 = vld [vmem:[%s10348_s8 + $0x1c60] sm:$0xff]  ;;  %v2176_v7 = vld [vmem:[%s10348_s8 + $0x1c70] sm:$0xff]  ;;  %2173 = vst [vmem:[%s10353_s9 + $0xe28] sm:$0xff] %v2172_v5 }
  0xf6   : > { %2175 = vst [vmem:[%s10353_s9 + $0xe30] sm:$0xff] %v2174_v6  ;;  %2177 = vst [vmem:[%s10353_s9 + $0xe38] sm:$0xff] %v2176_v7  ;;  %v2178_v8 = vld [vmem:[%s10348_s8 + $0x1c80] sm:$0xff]  ;;  %v2180_v9 = vld [vmem:[%s10348_s8 + $0x1c90] sm:$0xff] }
  0xf7   : > { %v2182_v10 = vld [vmem:[%s10348_s8 + $0x1ca0] sm:$0xff]  ;;  %2179 = vst [vmem:[%s10353_s9 + $0xe40] sm:$0xff] %v2178_v8  ;;  %2181 = vst [vmem:[%s10353_s9 + $0xe48] sm:$0xff] %v2180_v9  ;;  %v2184_v11 = vld [vmem:[%s10348_s8 + $0x1cb0] sm:$0xff] }
  0xf8   : > { %2183 = vst [vmem:[%s10353_s9 + $0xe50] sm:$0xff] %v2182_v10  ;;  %v2186_v12 = vld [vmem:[%s10348_s8 + $0x1cc0] sm:$0xff]  ;;  %v2188_v13 = vld [vmem:[%s10348_s8 + $0x1cd0] sm:$0xff]  ;;  %2185 = vst [vmem:[%s10353_s9 + $0xe58] sm:$0xff] %v2184_v11 }
  0xf9   : > { %2187 = vst [vmem:[%s10353_s9 + $0xe60] sm:$0xff] %v2186_v12  ;;  %2189 = vst [vmem:[%s10353_s9 + $0xe68] sm:$0xff] %v2188_v13  ;;  %v2190_v14 = vld [vmem:[%s10348_s8 + $0x1ce0] sm:$0xff]  ;;  %v2192_v15 = vld [vmem:[%s10348_s8 + $0x1cf0] sm:$0xff] }
  0xfa   : > { %v2194_v16 = vld [vmem:[%s10348_s8 + $0x1d00] sm:$0xff]  ;;  %2191 = vst [vmem:[%s10353_s9 + $0xe70] sm:$0xff] %v2190_v14  ;;  %2193 = vst [vmem:[%s10353_s9 + $0xe78] sm:$0xff] %v2192_v15  ;;  %v2196_v17 = vld [vmem:[%s10348_s8 + $0x1d10] sm:$0xff] }
  0xfb   : > { %2195 = vst [vmem:[%s10353_s9 + $0xe80] sm:$0xff] %v2194_v16  ;;  %v2198_v18 = vld [vmem:[%s10348_s8 + $0x1d20] sm:$0xff]  ;;  %v2200_v19 = vld [vmem:[%s10348_s8 + $0x1d30] sm:$0xff]  ;;  %2197 = vst [vmem:[%s10353_s9 + $0xe88] sm:$0xff] %v2196_v17 }
  0xfc   : > { %2199 = vst [vmem:[%s10353_s9 + $0xe90] sm:$0xff] %v2198_v18  ;;  %2201 = vst [vmem:[%s10353_s9 + $0xe98] sm:$0xff] %v2200_v19  ;;  %v2202_v20 = vld [vmem:[%s10348_s8 + $0x1d40] sm:$0xff]  ;;  %v2204_v21 = vld [vmem:[%s10348_s8 + $0x1d50] sm:$0xff] }
  0xfd   : > { %v2206_v22 = vld [vmem:[%s10348_s8 + $0x1d60] sm:$0xff]  ;;  %2203 = vst [vmem:[%s10353_s9 + $0xea0] sm:$0xff] %v2202_v20  ;;  %2205 = vst [vmem:[%s10353_s9 + $0xea8] sm:$0xff] %v2204_v21  ;;  %v2208_v23 = vld [vmem:[%s10348_s8 + $0x1d70] sm:$0xff] }
  0xfe   : > { %2207 = vst [vmem:[%s10353_s9 + $0xeb0] sm:$0xff] %v2206_v22  ;;  %v2210_v24 = vld [vmem:[%s10348_s8 + $0x1d80] sm:$0xff]  ;;  %v2212_v25 = vld [vmem:[%s10348_s8 + $0x1d90] sm:$0xff]  ;;  %2209 = vst [vmem:[%s10353_s9 + $0xeb8] sm:$0xff] %v2208_v23 }
  0xff   : > { %2211 = vst [vmem:[%s10353_s9 + $0xec0] sm:$0xff] %v2210_v24  ;;  %2213 = vst [vmem:[%s10353_s9 + $0xec8] sm:$0xff] %v2212_v25  ;;  %v2214_v26 = vld [vmem:[%s10348_s8 + $0x1da0] sm:$0xff]  ;;  %v2216_v27 = vld [vmem:[%s10348_s8 + $0x1db0] sm:$0xff] }
 0x100   : > { %v2218_v28 = vld [vmem:[%s10348_s8 + $0x1dc0] sm:$0xff]  ;;  %2215 = vst [vmem:[%s10353_s9 + $0xed0] sm:$0xff] %v2214_v26  ;;  %2217 = vst [vmem:[%s10353_s9 + $0xed8] sm:$0xff] %v2216_v27  ;;  %v2220_v29 = vld [vmem:[%s10348_s8 + $0x1dd0] sm:$0xff] }
 0x101   : > { %2219 = vst [vmem:[%s10353_s9 + $0xee0] sm:$0xff] %v2218_v28  ;;  %v2222_v30 = vld [vmem:[%s10348_s8 + $0x1de0] sm:$0xff]  ;;  %v2224_v31 = vld [vmem:[%s10348_s8 + $0x1df0] sm:$0xff]  ;;  %2221 = vst [vmem:[%s10353_s9 + $0xee8] sm:$0xff] %v2220_v29 }
 0x102   : > { %2223 = vst [vmem:[%s10353_s9 + $0xef0] sm:$0xff] %v2222_v30  ;;  %2225 = vst [vmem:[%s10353_s9 + $0xef8] sm:$0xff] %v2224_v31  ;;  %v2226_v32 = vld [vmem:[%s10348_s8 + $0x1e00] sm:$0xff]  ;;  %v2228_v33 = vld [vmem:[%s10348_s8 + $0x1e10] sm:$0xff] }
 0x103   : > { %v2230_v34 = vld [vmem:[%s10348_s8 + $0x1e20] sm:$0xff]  ;;  %2227 = vst [vmem:[%s10353_s9 + $0xf00] sm:$0xff] %v2226_v32  ;;  %2229 = vst [vmem:[%s10353_s9 + $0xf08] sm:$0xff] %v2228_v33  ;;  %v2232_v35 = vld [vmem:[%s10348_s8 + $0x1e30] sm:$0xff] }
 0x104   : > { %2231 = vst [vmem:[%s10353_s9 + $0xf10] sm:$0xff] %v2230_v34  ;;  %v2234_v36 = vld [vmem:[%s10348_s8 + $0x1e40] sm:$0xff]  ;;  %v2236_v37 = vld [vmem:[%s10348_s8 + $0x1e50] sm:$0xff]  ;;  %2233 = vst [vmem:[%s10353_s9 + $0xf18] sm:$0xff] %v2232_v35 }
 0x105   : > { %2235 = vst [vmem:[%s10353_s9 + $0xf20] sm:$0xff] %v2234_v36  ;;  %2237 = vst [vmem:[%s10353_s9 + $0xf28] sm:$0xff] %v2236_v37  ;;  %v2238_v38 = vld [vmem:[%s10348_s8 + $0x1e60] sm:$0xff]  ;;  %v2240_v39 = vld [vmem:[%s10348_s8 + $0x1e70] sm:$0xff] }
 0x106   : > { %v2242_v40 = vld [vmem:[%s10348_s8 + $0x1e80] sm:$0xff]  ;;  %2239 = vst [vmem:[%s10353_s9 + $0xf30] sm:$0xff] %v2238_v38  ;;  %2241 = vst [vmem:[%s10353_s9 + $0xf38] sm:$0xff] %v2240_v39  ;;  %v2244_v41 = vld [vmem:[%s10348_s8 + $0x1e90] sm:$0xff] }
 0x107   : > { %2243 = vst [vmem:[%s10353_s9 + $0xf40] sm:$0xff] %v2242_v40  ;;  %v2246_v42 = vld [vmem:[%s10348_s8 + $0x1ea0] sm:$0xff]  ;;  %v2248_v43 = vld [vmem:[%s10348_s8 + $0x1eb0] sm:$0xff]  ;;  %2245 = vst [vmem:[%s10353_s9 + $0xf48] sm:$0xff] %v2244_v41 }
 0x108   : > { %2247 = vst [vmem:[%s10353_s9 + $0xf50] sm:$0xff] %v2246_v42  ;;  %2249 = vst [vmem:[%s10353_s9 + $0xf58] sm:$0xff] %v2248_v43  ;;  %v2250_v44 = vld [vmem:[%s10348_s8 + $0x1ec0] sm:$0xff]  ;;  %v2252_v45 = vld [vmem:[%s10348_s8 + $0x1ed0] sm:$0xff] }
 0x109   : > { %v2254_v46 = vld [vmem:[%s10348_s8 + $0x1ee0] sm:$0xff]  ;;  %2251 = vst [vmem:[%s10353_s9 + $0xf60] sm:$0xff] %v2250_v44  ;;  %2253 = vst [vmem:[%s10353_s9 + $0xf68] sm:$0xff] %v2252_v45  ;;  %v2256_v47 = vld [vmem:[%s10348_s8 + $0x1ef0] sm:$0xff] }
 0x10a   : > { %2255 = vst [vmem:[%s10353_s9 + $0xf70] sm:$0xff] %v2254_v46  ;;  %v2258_v48 = vld [vmem:[%s10348_s8 + $0x1f00] sm:$0xff]  ;;  %v2260_v49 = vld [vmem:[%s10348_s8 + $0x1f10] sm:$0xff]  ;;  %2257 = vst [vmem:[%s10353_s9 + $0xf78] sm:$0xff] %v2256_v47 }
 0x10b   : > { %2259 = vst [vmem:[%s10353_s9 + $0xf80] sm:$0xff] %v2258_v48  ;;  %2261 = vst [vmem:[%s10353_s9 + $0xf88] sm:$0xff] %v2260_v49  ;;  %v2262_v50 = vld [vmem:[%s10348_s8 + $0x1f20] sm:$0xff]  ;;  %v2264_v51 = vld [vmem:[%s10348_s8 + $0x1f30] sm:$0xff] }
 0x10c   : > { %v2266_v52 = vld [vmem:[%s10348_s8 + $0x1f40] sm:$0xff]  ;;  %2263 = vst [vmem:[%s10353_s9 + $0xf90] sm:$0xff] %v2262_v50  ;;  %2265 = vst [vmem:[%s10353_s9 + $0xf98] sm:$0xff] %v2264_v51  ;;  %v2268_v53 = vld [vmem:[%s10348_s8 + $0x1f50] sm:$0xff] }
 0x10d   : > { %2267 = vst [vmem:[%s10353_s9 + $0xfa0] sm:$0xff] %v2266_v52  ;;  %v2270_v54 = vld [vmem:[%s10348_s8 + $0x1f60] sm:$0xff]  ;;  %v2272_v55 = vld [vmem:[%s10348_s8 + $0x1f70] sm:$0xff]  ;;  %2269 = vst [vmem:[%s10353_s9 + $0xfa8] sm:$0xff] %v2268_v53 }
 0x10e   : > { %2271 = vst [vmem:[%s10353_s9 + $0xfb0] sm:$0xff] %v2270_v54  ;;  %2273 = vst [vmem:[%s10353_s9 + $0xfb8] sm:$0xff] %v2272_v55  ;;  %v2274_v56 = vld [vmem:[%s10348_s8 + $0x1f80] sm:$0xff]  ;;  %v2276_v57 = vld [vmem:[%s10348_s8 + $0x1f90] sm:$0xff] }
 0x10f   : > { %v2278_v58 = vld [vmem:[%s10348_s8 + $0x1fa0] sm:$0xff]  ;;  %2275 = vst [vmem:[%s10353_s9 + $0xfc0] sm:$0xff] %v2274_v56  ;;  %2277 = vst [vmem:[%s10353_s9 + $0xfc8] sm:$0xff] %v2276_v57  ;;  %v2280_v59 = vld [vmem:[%s10348_s8 + $0x1fb0] sm:$0xff] }
 0x110   : > { %2279 = vst [vmem:[%s10353_s9 + $0xfd0] sm:$0xff] %v2278_v58  ;;  %v2282_v60 = vld [vmem:[%s10348_s8 + $0x1fc0] sm:$0xff]  ;;  %v2284_v61 = vld [vmem:[%s10348_s8 + $0x1fd0] sm:$0xff]  ;;  %2281 = vst [vmem:[%s10353_s9 + $0xfd8] sm:$0xff] %v2280_v59 }
 0x111   : > { %2283 = vst [vmem:[%s10353_s9 + $0xfe0] sm:$0xff] %v2282_v60  ;;  %2285 = vst [vmem:[%s10353_s9 + $0xfe8] sm:$0xff] %v2284_v61  ;;  %v2286_v62 = vld [vmem:[%s10348_s8 + $0x1fe0] sm:$0xff]  ;;  %v2288_v63 = vld [vmem:[%s10348_s8 + $0x1ff0] sm:$0xff] }
 0x112   : > { %2287 = vst [vmem:[%s10353_s9 + $0xff0] sm:$0xff] %v2286_v62  ;;  %2289 = vst [vmem:[%s10353_s9 + $0xff8] sm:$0xff] %v2288_v63 }
 0x113 PF: > { %p8741_p6 = scmp.ge.s32.totalorder %s10269_s22, 1  ;;  %p4395_p7 = scmp.lt.s32.totalorder %s10269_s22, 3 }
 0x115   : > { %p4396_p8 = pnand %p8741_p6, %p4395_p7 }
 0x116   : > { %s4402_s10 = sand.u32 (!%p4396_p8), 1, %s10253_s18   ;;  %s8743_s11 = sshll.u32 (!%p4396_p8), %s10261_s20, 1 }
 0x117   : > { %4399 = sbr.rel (%p4396_p8) target bundleno = 1283 (0x503), region = 88  ;;  %s8742_s12 = sshll.u32 (!%p4396_p8), %s4402_s10, 12 }
 0x118   : > { %p4443_p9 = scmp.lt.s32.totalorder (!%p4396_p8), %s8743_s11, 3  ;;  %s8744_s13 = sshll.u32 (!%p4396_p8), %s10261_s20, 5 }
 0x119   : > { %p4448_p10 = scmp.lt.s32.totalorder (!%p4396_p8), %s8744_s13, 63  ;;  %s11392_s18 = scalar_lea.vmem (!%p4396_p8), [#allocation3], %s8742_s12 }
 0x11a   : > { %p8746_p11 = scmp.ne.s32.totalorder (!%p4396_p8), %s10261_s20, 0 }
 0x11e   : > { %s12152_s11 = smov (!%p4443_p9, %s8743_s11), 3  ;;  %s12154_s13 = smov (!%p4448_p10, %s8744_s13), 63 }
 0x11f   : > { %s4445_s16 = scalar_lea.vmem %s12140_s2, %s12152_s11  ;;  %s8745_s17 = sshll.u32 %s12154_s13, 2  ;;  %v10271_v0 = vmov (!%p8746_p11), 0.0  }
 0x120   : > { %s11390_s28 = scalar_lea.vmem %s12141_s3, %s8745_s17  ;;  %4457 = sbr.rel (%p8746_p11) target bundleno = 295 (0x127), region = 96  ;;  %4458 = vst [vmem:[#allocation2] sm:$0x3] (!%p8746_p11), %v10271_v0 }
 0x127 PF: > { %v9413_v1 = vld [vmem:[%s11392_s18 + $0x4] ss:$8 sps:$4 sm:$0xff]   ;;  %v9417_v3 = vld [vmem:[%s11392_s18] ss:$8 sps:$4 sm:$0xff]   ;;  %v9419_v5 = vld [vmem:[%s11392_s18 + $0x14] ss:$8 sps:$4 sm:$0xff]   ;;  %v4977_v37 = vlaneseq }
 0x128   : > { %v9415_v2 = vld [vmem:[%s11392_s18 + $0x804] ss:$8 sps:$4 sm:$0xff]   ;;  %7779 = vmatprep.subr.bf16.mxu1 %v9413_v1  ;;  %v9418_v4 = vld [vmem:[%s11392_s18 + $0x800] ss:$8 sps:$4 sm:$0xff]   ;;  %v9421_v6 = vld [vmem:[%s11392_s18 + $0x814] ss:$8 sps:$4 sm:$0xff]  }
 0x129   : > { %8107 = vmatprep.subr.bf16.mxu0 %v9415_v2  ;;  %7780 = vmatpush1.bf16.msra.mxu1 %v9417_v3  ;;  %v9423_v7 = vld [vmem:[%s11392_s18 + $0x10] ss:$8 sps:$4 sm:$0xff]   ;;  %v9425_v9 = vld [vmem:[%s11392_s18 + $0x24] ss:$8 sps:$4 sm:$0xff]   ;;  %v9429_v11 = vld [vmem:[%s11392_s18 + $0x20] ss:$8 sps:$4 sm:$0xff]  }
 0x12a   : > { %8108 = vmatpush1.bf16.msra.mxu0 %v9418_v4  ;;  %7781 = vmatprep.subr.bf16.mxu1 %v9419_v5  ;;  %v9424_v8 = vld [vmem:[%s11392_s18 + $0x810] ss:$8 sps:$4 sm:$0xff]   ;;  %v9427_v10 = vld [vmem:[%s11392_s18 + $0x824] ss:$8 sps:$4 sm:$0xff]   ;;  %v9430_v12 = vld [vmem:[%s11392_s18 + $0x820] ss:$8 sps:$4 sm:$0xff]  }
 0x12b   : > { %8109 = vmatprep.subr.bf16.mxu0 %v9421_v6  ;;  %v9431_v13 = vld [vmem:[%s11392_s18 + $0x34] ss:$8 sps:$4 sm:$0xff]   ;;  %v9435_v15 = vld [vmem:[%s11392_s18 + $0x30] ss:$8 sps:$4 sm:$0xff]   ;;  %v9437_v17 = vld [vmem:[%s11392_s18 + $0x44] ss:$8 sps:$4 sm:$0xff]  }
 0x12c   : > { %v9433_v14 = vld [vmem:[%s11392_s18 + $0x834] ss:$8 sps:$4 sm:$0xff]   ;;  %v9436_v16 = vld [vmem:[%s11392_s18 + $0x830] ss:$8 sps:$4 sm:$0xff]   ;;  %v9439_v18 = vld [vmem:[%s11392_s18 + $0x844] ss:$8 sps:$4 sm:$0xff]  }
 0x12d   : > { %7782 = vmatpush1.bf16.msra.mxu1 %v9423_v7  ;;  %v9441_v19 = vld [vmem:[%s11392_s18 + $0x40] ss:$8 sps:$4 sm:$0xff]   ;;  %v9443_v21 = vld [vmem:[%s11392_s18 + $0x54] ss:$8 sps:$4 sm:$0xff]   ;;  %v9447_v23 = vld [vmem:[%s11392_s18 + $0x50] ss:$8 sps:$4 sm:$0xff]  }
 0x12e   : > { %8110 = vmatpush1.bf16.msra.mxu0 %v9424_v8  ;;  %7783 = vmatprep.subr.bf16.mxu1 %v9425_v9  ;;  %v9442_v20 = vld [vmem:[%s11392_s18 + $0x840] ss:$8 sps:$4 sm:$0xff]   ;;  %v9445_v22 = vld [vmem:[%s11392_s18 + $0x854] ss:$8 sps:$4 sm:$0xff]   ;;  %v9448_v24 = vld [vmem:[%s11392_s18 + $0x850] ss:$8 sps:$4 sm:$0xff]  }
 0x12f   : > { %8111 = vmatprep.subr.bf16.mxu0 %v9427_v10  ;;  %v9449_v25 = vld [vmem:[%s11392_s18 + $0x64] ss:$8 sps:$4 sm:$0xff]   ;;  %v9453_v27 = vld [vmem:[%s11392_s18 + $0x60] ss:$8 sps:$4 sm:$0xff]   ;;  %v9455_v29 = vld [vmem:[%s11392_s18 + $0x74] ss:$8 sps:$4 sm:$0xff]  }
 0x130   : > { %v9451_v26 = vld [vmem:[%s11392_s18 + $0x864] ss:$8 sps:$4 sm:$0xff]   ;;  %v9454_v28 = vld [vmem:[%s11392_s18 + $0x860] ss:$8 sps:$4 sm:$0xff]   ;;  %v9457_v30 = vld [vmem:[%s11392_s18 + $0x874] ss:$8 sps:$4 sm:$0xff]  }
 0x131   : > { %7784 = vmatpush1.bf16.msra.mxu1 %v9429_v11  ;;  %v9459_v31 = vld [vmem:[%s11392_s18 + $0x70] ss:$8 sps:$4 sm:$0xff]   ;;  %v9461_v33 = vld [vmem:[%s11392_s18 + $0x84] ss:$8 sps:$4 sm:$0xff]   ;;  %v9465_v35 = vld [vmem:[%s11392_s18 + $0x80] ss:$8 sps:$4 sm:$0xff]  }
 0x132   : > { %8112 = vmatpush1.bf16.msra.mxu0 %v9430_v12  ;;  %7785 = vmatprep.subr.bf16.mxu1 %v9431_v13  ;;  %v9460_v32 = vld [vmem:[%s11392_s18 + $0x870] ss:$8 sps:$4 sm:$0xff]   ;;  %v9463_v34 = vld [vmem:[%s11392_s18 + $0x884] ss:$8 sps:$4 sm:$0xff]   ;;  %v9466_v36 = vld [vmem:[%s11392_s18 + $0x880] ss:$8 sps:$4 sm:$0xff]  }
 0x133   : > { %8113 = vmatprep.subr.bf16.mxu0 %v9433_v14  ;;  %v10272_v38 = vmov 1966171168   ;;  %v9467_v40 = vld [vmem:[%s11392_s18 + $0x94] ss:$8 sps:$4 sm:$0xff]   ;;  %v9471_v42 = vld [vmem:[%s11392_s18 + $0x90] ss:$8 sps:$4 sm:$0xff]  }
 0x134   : > { %v4993_v39 = vunpack.c.l.s4 %v10272_v38  ;;  %v9469_v41 = vld [vmem:[%s11392_s18 + $0x894] ss:$8 sps:$4 sm:$0xff]   ;;  %v11434_v43 = vshrl.u32 %v4977_v37, 7  ;;  %v9472_v45 = vld [vmem:[%s11392_s18 + $0x890] ss:$8 sps:$4 sm:$0xff]   ;;  %p9275_p12 = scmp.ne.s32.totalorder %s10261_s20, 1 }
 0x135   : > { %7786 = vmatpush1.bf16.msra.mxu1 %v9435_v15  ;;  %v9473_v46 = vld [vmem:[%s11392_s18 + $0xa4] ss:$8 sps:$4 sm:$0xff]   ;;  %v9477_v48 = vld [vmem:[%s11392_s18 + $0xa0] ss:$8 sps:$4 sm:$0xff]   ;;  %v9479_v51 = vld [vmem:[%s11392_s18 + $0xb4] ss:$8 sps:$4 sm:$0xff]  }
 0x136   : > { %8114 = vmatpush1.bf16.msra.mxu0 %v9436_v16  ;;  %7787 = vmatprep.subr.bf16.mxu1 %v9437_v17  ;;  %v4994_v44 = vunpack.c.0.s8 %v4993_v39  ;;  %v9475_v47 = vld [vmem:[%s11392_s18 + $0x8a4] ss:$8 sps:$4 sm:$0xff]   ;;  %v9478_v49 = vld [vmem:[%s11392_s18 + $0x8a0] ss:$8 sps:$4 sm:$0xff]   ;;  %v9481_v52 = vld [vmem:[%s11392_s18 + $0x8b4] ss:$8 sps:$4 sm:$0xff]  }
 0x137   : > { %8115 = vmatprep.subr.bf16.mxu0 %v9439_v18  ;;  %v11449_v53 = vld [vmem:[%s12138_s0] sm:$0xff]  ;;  %v9483_v54 = vld [vmem:[%s11392_s18 + $0xb0] ss:$8 sps:$4 sm:$0xff]  }
 0x138   : > { %v11442_v50 = vsub.s32 %v4994_v44, %v11434_v43  ;;  %v9484_v56 = vld [vmem:[%s11392_s18 + $0x8b0] ss:$8 sps:$4 sm:$0xff]   ;;  %v9485_v58 = vld [vmem:[%s11392_s18 + $0xc4] ss:$8 sps:$4 sm:$0xff]   ;;  %v9489_v0 = vld [vmem:[%s11392_s18 + $0xc0] ss:$8 sps:$4 sm:$0xff]  }
 0x139   : > { %7788 = vmatpush1.bf16.msra.mxu1 %v9441_v19  ;;  %v11458_v57 = vld [vmem:[%s12138_s0 + $0x10] sm:$0xff]  ;;  %v9490_v1 = vld [vmem:[%s11392_s18 + $0x8c0] ss:$8 sps:$4 sm:$0xff]  }
 0x13a   : > { %8116 = vmatpush1.bf16.msra.mxu0 %v9442_v20  ;;  %7789 = vmatprep.subr.bf16.mxu1 %v9443_v21  ;;  %v4998_v55 = vrot.slane %v11449_v53, %v11442_v50  ;;  %v9487_v59 = vld [vmem:[%s11392_s18 + $0x8c4] ss:$8 sps:$4 sm:$0xff]   ;;  %v5096_v61 = vrot.slane %v11458_v57, %v11442_v50  ;;  %v9491_v2 = vld [vmem:[%s11392_s18 + $0xd4] ss:$8 sps:$4 sm:$0xff]   ;;  %v9495_v5 = vld [vmem:[%s11392_s18 + $0xd0] ss:$8 sps:$4 sm:$0xff]  }
 0x13b   : > { %8117 = vmatprep.subr.bf16.mxu0 %v9445_v22  ;;  %v9493_v3 = vld [vmem:[%s11392_s18 + $0x8d4] ss:$8 sps:$4 sm:$0xff]   ;;  %v9496_v6 = vld [vmem:[%s11392_s18 + $0x8d0] ss:$8 sps:$4 sm:$0xff]   ;;  %v9497_v7 = vld [vmem:[%s11392_s18 + $0xe4] ss:$8 sps:$4 sm:$0xff]  }
 0x13c   : > { %v5006_v60 = vcombine.high %v4998_v55, %v4998_v55  ;;  %v5104_v63 = vcombine.high %v5096_v61, %v5096_v61  ;;  %v9499_v8 = vld [vmem:[%s11392_s18 + $0x8e4] ss:$8 sps:$4 sm:$0xff]   ;;  %v9501_v9 = vld [vmem:[%s11392_s18 + $0xe0] ss:$8 sps:$4 sm:$0xff]   ;;  %v9503_v11 = vld [vmem:[%s11392_s18 + $0xf4] ss:$8 sps:$4 sm:$0xff]   ;;  %v11483_v17 = vrot.slane %v4998_v55, %v11442_v50  ;;  %v11486_v18 = vrot.slane %v5096_v61, %v11442_v50 }
 0x13d   : > { %7790 = vmatpush1.bf16.msra.mxu1 %v9447_v23  ;;  %v9502_v10 = vld [vmem:[%s11392_s18 + $0x8e0] ss:$8 sps:$4 sm:$0xff]   ;;  %v9505_v12 = vld [vmem:[%s11392_s18 + $0x8f4] ss:$8 sps:$4 sm:$0xff]   ;;  %v9507_v13 = vld [vmem:[%s11392_s18 + $0xf0] ss:$8 sps:$4 sm:$0xff]  }
 0x13e   : > { %8118 = vmatpush1.bf16.msra.mxu0 %v9448_v24  ;;  %7791 = vmatprep.subr.bf16.mxu1 %v9449_v25  ;;  %v5028_v62 = vrot.slane %v5006_v60, %v11442_v50  ;;  %v5126_v4 = vrot.slane %v5104_v63, %v11442_v50  ;;  %v9508_v14 = vld [vmem:[%s11392_s18 + $0x8f0] ss:$8 sps:$4 sm:$0xff]   ;;  %v9512_v15 = vld [vmem:[%s11392_s18 + $0x104] ss:$8 sps:$4 sm:$0xff]   ;;  %v9510_v19 = vld [vmem:[%s11392_s18 + $0x100] ss:$8 sps:$4 sm:$0xff]  }
 0x13f   : > { %8119 = vmatprep.subr.bf16.mxu0 %v9451_v26  ;;  %v9516_v16 = vld [vmem:[%s11392_s18 + $0x904] ss:$8 sps:$4 sm:$0xff]   ;;  %v9514_v20 = vld [vmem:[%s11392_s18 + $0x900] ss:$8 sps:$4 sm:$0xff]   ;;  %v9519_v21 = vld [vmem:[%s11392_s18 + $0x114] ss:$8 sps:$4 sm:$0xff]  }
 0x140   : > { %7811 = vmatprep.mubr.bf16.mxu1 %v5028_v62  ;;  %8139 = vmatprep.mubr.bf16.mxu0 %v5126_v4  ;;  %v9522_v22 = vld [vmem:[%s11392_s18 + $0x914] ss:$8 sps:$4 sm:$0xff]   ;;  %v5038_v23 = vcombine.high %v5028_v62, %v5028_v62  ;;  %v5136_v24 = vcombine.high %v5126_v4, %v5126_v4  ;;  %v9517_v25 = vld [vmem:[%s11392_s18 + $0x110] ss:$8 sps:$4 sm:$0xff]   ;;  %v9535_v37 = vld [vmem:[%s11392_s18 + $0x140] ss:$8 sps:$4 sm:$0xff]  }
 0x141   : > { %7792 = vmatpush1.bf16.msra.mxu1 %v9453_v27  ;;  %v9520_v26 = vld [vmem:[%s11392_s18 + $0x910] ss:$8 sps:$4 sm:$0xff]   ;;  %v9525_v27 = vld [vmem:[%s11392_s18 + $0x124] ss:$8 sps:$4 sm:$0xff]   ;;  %v9538_v38 = vld [vmem:[%s11392_s18 + $0x940] ss:$8 sps:$4 sm:$0xff]  }
 0x142   : > { %8120 = vmatpush1.bf16.msra.mxu0 %v9454_v28  ;;  %7793 = vmatprep.subr.bf16.mxu1 %v9455_v29  ;;  %v9528_v28 = vld [vmem:[%s11392_s18 + $0x924] ss:$8 sps:$4 sm:$0xff]   ;;  %v9523_v29 = vld [vmem:[%s11392_s18 + $0x120] ss:$8 sps:$4 sm:$0xff]   ;;  %v9543_v39 = vld [vmem:[%s11392_s18 + $0x154] ss:$8 sps:$4 sm:$0xff]  }
 0x143   : > { %8121 = vmatprep.subr.bf16.mxu0 %v9457_v30  ;;  %v9526_v30 = vld [vmem:[%s11392_s18 + $0x920] ss:$8 sps:$4 sm:$0xff]   ;;  %v9549_v44 = vld [vmem:[%s11392_s18 + $0x164] ss:$8 sps:$4 sm:$0xff]   ;;  %v9570_v60 = vld [vmem:[%s11392_s18 + $0x994] ss:$8 sps:$4 sm:$0xff]  }
 0x144   : > { %v9564_v55 = vld [vmem:[%s11392_s18 + $0x984] ss:$8 sps:$4 sm:$0xff]   ;;  %v9565_v61 = vld [vmem:[%s11392_s18 + $0x190] ss:$8 sps:$4 sm:$0xff]   ;;  %v9582_v4 = vld [vmem:[%s11392_s18 + $0x9b4] ss:$8 sps:$4 sm:$0xff]  }
 0x145   : > { %7794 = vmatpush1.bf16.msra.mxu1 %v9459_v31  ;;  %v9531_v31 = vld [vmem:[%s11392_s18 + $0x134] ss:$8 sps:$4 sm:$0xff]   ;;  %v9568_v62 = vld [vmem:[%s11392_s18 + $0x990] ss:$8 sps:$4 sm:$0xff]   ;;  %v9573_v63 = vld [vmem:[%s11392_s18 + $0x1a4] ss:$8 sps:$4 sm:$0xff]  }
 0x146   : > { %8122 = vmatpush1.bf16.msra.mxu0 %v9460_v32  ;;  %7795 = vmatprep.subr.bf16.mxu1 %v9461_v33  ;;  %v9534_v32 = vld [vmem:[%s11392_s18 + $0x934] ss:$8 sps:$4 sm:$0xff]   ;;  %v9529_v33 = vld [vmem:[%s11392_s18 + $0x130] ss:$8 sps:$4 sm:$0xff]  }
 0x147   : > { %8123 = vmatprep.subr.bf16.mxu0 %v9463_v34  ;;  %v9532_v34 = vld [vmem:[%s11392_s18 + $0x930] ss:$8 sps:$4 sm:$0xff]  }
 0x149   : > { %7796 = vmatpush1.bf16.msra.mxu1 %v9465_v35  ;;  %v9537_v35 = vld [vmem:[%s11392_s18 + $0x144] ss:$8 sps:$4 sm:$0xff]  }
 0x14a   : > { %8124 = vmatpush1.bf16.msra.mxu0 %v9466_v36  ;;  %7797 = vmatprep.subr.bf16.mxu1 %v9467_v40  ;;  %v9540_v36 = vld [vmem:[%s11392_s18 + $0x944] ss:$8 sps:$4 sm:$0xff]   ;;  %v9546_v40 = vld [vmem:[%s11392_s18 + $0x954] ss:$8 sps:$4 sm:$0xff]  }
 0x14b   : > { %8125 = vmatprep.subr.bf16.mxu0 %v9469_v41  ;;  %v9541_v41 = vld [vmem:[%s11392_s18 + $0x150] ss:$8 sps:$4 sm:$0xff]  }
 0x14d   : > { %7798 = vmatpush1.bf16.msra.mxu1 %v9471_v42  ;;  %v9544_v42 = vld [vmem:[%s11392_s18 + $0x950] ss:$8 sps:$4 sm:$0xff]  }
 0x14e   : > { %8126 = vmatpush1.bf16.msra.mxu0 %v9472_v45  ;;  %7799 = vmatprep.subr.bf16.mxu1 %v9473_v46  ;;  %v9552_v45 = vld [vmem:[%s11392_s18 + $0x964] ss:$8 sps:$4 sm:$0xff]   ;;  %v9547_v46 = vld [vmem:[%s11392_s18 + $0x160] ss:$8 sps:$4 sm:$0xff]  }
 0x14f   : > { %8127 = vmatprep.subr.bf16.mxu0 %v9475_v47  ;;  %v9550_v47 = vld [vmem:[%s11392_s18 + $0x960] ss:$8 sps:$4 sm:$0xff]  }
 0x151   : > { %7800 = vmatpush1.bf16.msra.mxu1 %v9477_v48  ;;  %v9555_v48 = vld [vmem:[%s11392_s18 + $0x174] ss:$8 sps:$4 sm:$0xff]  }
 0x152   : > { %8128 = vmatpush1.bf16.msra.mxu0 %v9478_v49  ;;  %7801 = vmatprep.subr.bf16.mxu1 %v9479_v51  ;;  %v9558_v49 = vld [vmem:[%s11392_s18 + $0x974] ss:$8 sps:$4 sm:$0xff]   ;;  %v9553_v51 = vld [vmem:[%s11392_s18 + $0x170] ss:$8 sps:$4 sm:$0xff]  }
 0x153   : > { %8129 = vmatprep.subr.bf16.mxu0 %v9481_v52  ;;  %v9556_v52 = vld [vmem:[%s11392_s18 + $0x970] ss:$8 sps:$4 sm:$0xff]  }
 0x155   : > { %7802 = vmatpush1.bf16.msra.mxu1 %v9483_v54  ;;  %v9561_v54 = vld [vmem:[%s11392_s18 + $0x184] ss:$8 sps:$4 sm:$0xff]  }
 0x156   : > { %8130 = vmatpush1.bf16.msra.mxu0 %v9484_v56  ;;  %7803 = vmatprep.subr.bf16.mxu1 %v9485_v58  ;;  %v9559_v56 = vld [vmem:[%s11392_s18 + $0x180] ss:$8 sps:$4 sm:$0xff]  }
 0x157   : > { %8131 = vmatprep.subr.bf16.mxu0 %v9487_v59  ;;  %v9562_v58 = vld [vmem:[%s11392_s18 + $0x980] ss:$8 sps:$4 sm:$0xff]   ;;  %v9567_v59 = vld [vmem:[%s11392_s18 + $0x194] ss:$8 sps:$4 sm:$0xff]  }
 0x159   : > { %7804 = vmatpush1.bf16.msra.mxu1 %v9489_v0  ;;  %v9576_v0 = vld [vmem:[%s11392_s18 + $0x9a4] ss:$8 sps:$4 sm:$0xff]  }
 0x15a   : > { %8132 = vmatpush1.bf16.msra.mxu0 %v9490_v1  ;;  %7805 = vmatprep.subr.bf16.mxu1 %v9491_v2  ;;  %v9571_v1 = vld [vmem:[%s11392_s18 + $0x1a0] ss:$8 sps:$4 sm:$0xff]  }
 0x15b   : > { %8133 = vmatprep.subr.bf16.mxu0 %v9493_v3  ;;  %v9574_v2 = vld [vmem:[%s11392_s18 + $0x9a0] ss:$8 sps:$4 sm:$0xff]   ;;  %v9579_v3 = vld [vmem:[%s11392_s18 + $0x1b4] ss:$8 sps:$4 sm:$0xff]  }
 0x15d   : > { %7806 = vmatpush1.bf16.msra.mxu1 %v9495_v5  ;;  %v9577_v5 = vld [vmem:[%s11392_s18 + $0x1b0] ss:$8 sps:$4 sm:$0xff]  }
 0x15e   : > { %8134 = vmatpush1.bf16.msra.mxu0 %v9496_v6  ;;  %7807 = vmatprep.subr.bf16.mxu1 %v9497_v7  ;;  %v9580_v6 = vld [vmem:[%s11392_s18 + $0x9b0] ss:$8 sps:$4 sm:$0xff]   ;;  %v9585_v7 = vld [vmem:[%s11392_s18 + $0x1c4] ss:$8 sps:$4 sm:$0xff]  }
 0x15f   : > { %8135 = vmatprep.subr.bf16.mxu0 %v9499_v8  ;;  %v9588_v8 = vld [vmem:[%s11392_s18 + $0x9c4] ss:$8 sps:$4 sm:$0xff]  }
 0x161   : > { %7808 = vmatpush1.bf16.msra.mxu1 %v9501_v9  ;;  %v9583_v9 = vld [vmem:[%s11392_s18 + $0x1c0] ss:$8 sps:$4 sm:$0xff]  }
 0x162   : > { %8136 = vmatpush1.bf16.msra.mxu0 %v9502_v10  ;;  %7809 = vmatprep.subr.bf16.mxu1 %v9503_v11  ;;  %v9586_v10 = vld [vmem:[%s11392_s18 + $0x9c0] ss:$8 sps:$4 sm:$0xff]   ;;  %v9591_v11 = vld [vmem:[%s11392_s18 + $0x1d4] ss:$8 sps:$4 sm:$0xff]  }
 0x163   : > { %8137 = vmatprep.subr.bf16.mxu0 %v9505_v12  ;;  %v9594_v12 = vld [vmem:[%s11392_s18 + $0x9d4] ss:$8 sps:$4 sm:$0xff]  }
 0x165   : > { %7810 = vmatpush1.bf16.msra.mxu1 %v9507_v13  ;;  %v9589_v13 = vld [vmem:[%s11392_s18 + $0x1d0] ss:$8 sps:$4 sm:$0xff]  }
 0x166   : > { %8138 = vmatpush1.bf16.msra.mxu0 %v9508_v14  ;;  %7820 = vmatprep.subr.bf16.mxu1 %v9512_v15  ;;  %v9592_v14 = vld [vmem:[%s11392_s18 + $0x9d0] ss:$8 sps:$4 sm:$0xff]   ;;  %v9597_v15 = vld [vmem:[%s11392_s18 + $0x1e4] ss:$8 sps:$4 sm:$0xff]  }
 0x167   : > { %8148 = vmatprep.subr.bf16.mxu0 %v9516_v16  ;;  %v9600_v16 = vld [vmem:[%s11392_s18 + $0x9e4] ss:$8 sps:$4 sm:$0xff]  }
 0x168   : > { %7812 = vmatmul.mubr.bf16.vlgmr.msra.gmra.mrb[0].mxu1 %v11483_v17 }
 0x169   : > { %8140 = vmatmul.mubr.bf16.vlgmr.msra.gmra.mrb[0].mxu0 %v11486_v18  ;;  %7821 = vmatpush1.bf16.msra.mxu1 %v9510_v19  ;;  %v4991_v19 = vcombine.high %v11449_v53, %v11449_v53  ;;  %v9601_v53 = vld [vmem:[%s11392_s18 + $0x1f0] ss:$8 sps:$4 sm:$0xff]  }
 0x16a   : > { %8149 = vmatpush1.bf16.msra.mxu0 %v9514_v20  ;;  %7822 = vmatprep.subr.bf16.mxu1 %v9519_v21  ;;  %v5089_v20 = vcombine.high %v11458_v57, %v11458_v57  ;;  %v9595_v21 = vld [vmem:[%s11392_s18 + $0x1e0] ss:$8 sps:$4 sm:$0xff]   ;;  %v9604_v57 = vld [vmem:[%s11392_s18 + $0x9f0] ss:$8 sps:$4 sm:$0xff]  }
 0x16b   : > { %8150 = vmatprep.subr.bf16.mxu0 %v9522_v22  ;;  %7852 = vmatprep.mubr.bf16.mxu1 %v5038_v23  ;;  %v9598_v22 = vld [vmem:[%s11392_s18 + $0x9e0] ss:$8 sps:$4 sm:$0xff]   ;;  %v9603_v23 = vld [vmem:[%s11392_s18 + $0x1f4] ss:$8 sps:$4 sm:$0xff]  }
 0x16c   : > { %8180 = vmatprep.mubr.bf16.mxu0 %v5136_v24  ;;  %v9606_v24 = vld [vmem:[%s11392_s18 + $0x9f4] ss:$8 sps:$4 sm:$0xff]  }
 0x16d   : > { %7823 = vmatpush1.bf16.msra.mxu1 %v9517_v25  ;;  %v11555_v25 = vrot.slane %v4991_v19, %v11442_v50  ;;  %v9673_v19 = vld [vmem:[%s11392_s18 + $0x2b0] ss:$8 sps:$4 sm:$0xff]  }
 0x16e   : > { %8151 = vmatpush1.bf16.msra.mxu0 %v9520_v26  ;;  %7824 = vmatprep.subr.bf16.mxu1 %v9525_v27  ;;  %v11558_v26 = vrot.slane %v5089_v20, %v11442_v50  ;;  %v9609_v27 = vld [vmem:[%s11392_s18 + $0x204] ss:$8 sps:$4 sm:$0xff]   ;;  %v9676_v20 = vld [vmem:[%s11392_s18 + $0xab0] ss:$8 sps:$4 sm:$0xff]  }
 0x16f   : > { %8152 = vmatprep.subr.bf16.mxu0 %v9528_v28  ;;  %v9612_v28 = vld [vmem:[%s11392_s18 + $0xa04] ss:$8 sps:$4 sm:$0xff]  }
 0x171   : > { %7825 = vmatpush1.bf16.msra.mxu1 %v9523_v29  ;;  %v5007_v29 = vcombine.high %v11555_v25, %v11555_v25 }
 0x172   : > { %8153 = vmatpush1.bf16.msra.mxu0 %v9526_v30  ;;  %7826 = vmatprep.subr.bf16.mxu1 %v9531_v31  ;;  %v5105_v30 = vcombine.high %v11558_v26, %v11558_v26  ;;  %v5036_v31 = vcombine.high %v11483_v17, %v11483_v17 }
 0x173   : > { %8154 = vmatprep.subr.bf16.mxu0 %v9534_v32  ;;  %v5134_v32 = vcombine.high %v11486_v18, %v11486_v18  ;;  %v9613_v18 = vld [vmem:[%s11392_s18 + $0x210] ss:$8 sps:$4 sm:$0xff]  }
 0x174   : > { %v11580_v17 = vrot.slane %v5105_v30, %v11442_v50  ;;  %v9696_v30 = vld [vmem:[%s11392_s18 + $0xae4] ss:$8 sps:$4 sm:$0xff]  }
 0x175   : > { %7827 = vmatpush1.bf16.msra.mxu1 %v9529_v33  ;;  %v9607_v33 = vld [vmem:[%s11392_s18 + $0x200] ss:$8 sps:$4 sm:$0xff]  }
 0x176   : > { %8155 = vmatpush1.bf16.msra.mxu0 %v9532_v34  ;;  %7828 = vmatprep.subr.bf16.mxu1 %v9537_v35  ;;  %v9610_v34 = vld [vmem:[%s11392_s18 + $0xa00] ss:$8 sps:$4 sm:$0xff]   ;;  %v9615_v35 = vld [vmem:[%s11392_s18 + $0x214] ss:$8 sps:$4 sm:$0xff]  }
 0x177   : > { %8156 = vmatprep.subr.bf16.mxu0 %v9540_v36  ;;  %v9618_v36 = vld [vmem:[%s11392_s18 + $0xa14] ss:$8 sps:$4 sm:$0xff]  }
 0x179   : > { %7829 = vmatpush1.bf16.msra.mxu1 %v9535_v37  ;;  %v11577_v37 = vrot.slane %v5007_v29, %v11442_v50  ;;  %v9693_v29 = vld [vmem:[%s11392_s18 + $0x2e4] ss:$8 sps:$4 sm:$0xff]  }
 0x17a   : > { %8157 = vmatpush1.bf16.msra.mxu0 %v9538_v38  ;;  %7830 = vmatprep.subr.bf16.mxu1 %v9543_v39  ;;  %v9616_v38 = vld [vmem:[%s11392_s18 + $0xa10] ss:$8 sps:$4 sm:$0xff]   ;;  %v9621_v39 = vld [vmem:[%s11392_s18 + $0x224] ss:$8 sps:$4 sm:$0xff]  }
 0x17b   : > { %8158 = vmatprep.subr.bf16.mxu0 %v9546_v40  ;;  %v9624_v40 = vld [vmem:[%s11392_s18 + $0xa24] ss:$8 sps:$4 sm:$0xff]  }
 0x17d   : > { %7831 = vmatpush1.bf16.msra.mxu1 %v9541_v41  ;;  %v9619_v41 = vld [vmem:[%s11392_s18 + $0x220] ss:$8 sps:$4 sm:$0xff]  }
 0x17e   : > { %8159 = vmatpush1.bf16.msra.mxu0 %v9544_v42  ;;  %7832 = vmatprep.subr.bf16.mxu1 %v9549_v44  ;;  %v9622_v42 = vld [vmem:[%s11392_s18 + $0xa20] ss:$8 sps:$4 sm:$0xff]   ;;  %v9627_v44 = vld [vmem:[%s11392_s18 + $0x234] ss:$8 sps:$4 sm:$0xff]  }
 0x17f   : > { %8160 = vmatprep.subr.bf16.mxu0 %v9552_v45  ;;  %v9630_v45 = vld [vmem:[%s11392_s18 + $0xa34] ss:$8 sps:$4 sm:$0xff]  }
 0x181   : > { %7833 = vmatpush1.bf16.msra.mxu1 %v9547_v46  ;;  %v9625_v46 = vld [vmem:[%s11392_s18 + $0x230] ss:$8 sps:$4 sm:$0xff]  }
 0x182   : > { %8161 = vmatpush1.bf16.msra.mxu0 %v9550_v47  ;;  %7834 = vmatprep.subr.bf16.mxu1 %v9555_v48  ;;  %v9628_v47 = vld [vmem:[%s11392_s18 + $0xa30] ss:$8 sps:$4 sm:$0xff]   ;;  %v9633_v48 = vld [vmem:[%s11392_s18 + $0x244] ss:$8 sps:$4 sm:$0xff]  }
 0x183   : > { %8162 = vmatprep.subr.bf16.mxu0 %v9558_v49  ;;  %v9636_v49 = vld [vmem:[%s11392_s18 + $0xa44] ss:$8 sps:$4 sm:$0xff]  }
 0x185   : > { %7835 = vmatpush1.bf16.msra.mxu1 %v9553_v51  ;;  %v9631_v51 = vld [vmem:[%s11392_s18 + $0x240] ss:$8 sps:$4 sm:$0xff]  }
 0x186   : > { %8163 = vmatpush1.bf16.msra.mxu0 %v9556_v52  ;;  %7836 = vmatprep.subr.bf16.mxu1 %v9561_v54  ;;  %v9634_v52 = vld [vmem:[%s11392_s18 + $0xa40] ss:$8 sps:$4 sm:$0xff]   ;;  %v9639_v54 = vld [vmem:[%s11392_s18 + $0x254] ss:$8 sps:$4 sm:$0xff]  }
 0x187   : > { %8164 = vmatprep.subr.bf16.mxu0 %v9564_v55  ;;  %v9642_v55 = vld [vmem:[%s11392_s18 + $0xa54] ss:$8 sps:$4 sm:$0xff]  }
 0x189   : > { %7837 = vmatpush1.bf16.msra.mxu1 %v9559_v56  ;;  %v9637_v56 = vld [vmem:[%s11392_s18 + $0x250] ss:$8 sps:$4 sm:$0xff]  }
 0x18a   : > { %8165 = vmatpush1.bf16.msra.mxu0 %v9562_v58  ;;  %7838 = vmatprep.subr.bf16.mxu1 %v9567_v59  ;;  %v9640_v58 = vld [vmem:[%s11392_s18 + $0xa50] ss:$8 sps:$4 sm:$0xff]   ;;  %v9645_v59 = vld [vmem:[%s11392_s18 + $0x264] ss:$8 sps:$4 sm:$0xff]  }
 0x18b   : > { %8166 = vmatprep.subr.bf16.mxu0 %v9570_v60  ;;  %v9648_v60 = vld [vmem:[%s11392_s18 + $0xa64] ss:$8 sps:$4 sm:$0xff]  }
 0x18d   : > { %7839 = vmatpush1.bf16.msra.mxu1 %v9565_v61  ;;  %v9643_v61 = vld [vmem:[%s11392_s18 + $0x260] ss:$8 sps:$4 sm:$0xff]  }
 0x18e   : > { %8167 = vmatpush1.bf16.msra.mxu0 %v9568_v62  ;;  %7840 = vmatprep.subr.bf16.mxu1 %v9573_v63  ;;  %v9646_v62 = vld [vmem:[%s11392_s18 + $0xa60] ss:$8 sps:$4 sm:$0xff]   ;;  %v9651_v63 = vld [vmem:[%s11392_s18 + $0x274] ss:$8 sps:$4 sm:$0xff]  }
 0x18f   : > { %8168 = vmatprep.subr.bf16.mxu0 %v9576_v0  ;;  %v9654_v0 = vld [vmem:[%s11392_s18 + $0xa74] ss:$8 sps:$4 sm:$0xff]  }
 0x191   : > { %7841 = vmatpush1.bf16.msra.mxu1 %v9571_v1  ;;  %v9649_v1 = vld [vmem:[%s11392_s18 + $0x270] ss:$8 sps:$4 sm:$0xff]  }
 0x192   : > { %8169 = vmatpush1.bf16.msra.mxu0 %v9574_v2  ;;  %7842 = vmatprep.subr.bf16.mxu1 %v9579_v3  ;;  %v9652_v2 = vld [vmem:[%s11392_s18 + $0xa70] ss:$8 sps:$4 sm:$0xff]   ;;  %v9657_v3 = vld [vmem:[%s11392_s18 + $0x284] ss:$8 sps:$4 sm:$0xff]  }
 0x193   : > { %8170 = vmatprep.subr.bf16.mxu0 %v9582_v4  ;;  %v9660_v4 = vld [vmem:[%s11392_s18 + $0xa84] ss:$8 sps:$4 sm:$0xff]  }
 0x195   : > { %7843 = vmatpush1.bf16.msra.mxu1 %v9577_v5  ;;  %v9655_v5 = vld [vmem:[%s11392_s18 + $0x280] ss:$8 sps:$4 sm:$0xff]  }
 0x196   : > { %8171 = vmatpush1.bf16.msra.mxu0 %v9580_v6  ;;  %7844 = vmatprep.subr.bf16.mxu1 %v9585_v7  ;;  %v9658_v6 = vld [vmem:[%s11392_s18 + $0xa80] ss:$8 sps:$4 sm:$0xff]   ;;  %v9663_v7 = vld [vmem:[%s11392_s18 + $0x294] ss:$8 sps:$4 sm:$0xff]  }
 0x197   : > { %8172 = vmatprep.subr.bf16.mxu0 %v9588_v8  ;;  %v9666_v8 = vld [vmem:[%s11392_s18 + $0xa94] ss:$8 sps:$4 sm:$0xff]  }
 0x199   : > { %7845 = vmatpush1.bf16.msra.mxu1 %v9583_v9  ;;  %v9661_v9 = vld [vmem:[%s11392_s18 + $0x290] ss:$8 sps:$4 sm:$0xff]  }
 0x19a   : > { %8173 = vmatpush1.bf16.msra.mxu0 %v9586_v10  ;;  %7846 = vmatprep.subr.bf16.mxu1 %v9591_v11  ;;  %v9664_v10 = vld [vmem:[%s11392_s18 + $0xa90] ss:$8 sps:$4 sm:$0xff]   ;;  %v9669_v11 = vld [vmem:[%s11392_s18 + $0x2a4] ss:$8 sps:$4 sm:$0xff]  }
 0x19b   : > { %8174 = vmatprep.subr.bf16.mxu0 %v9594_v12  ;;  %v9672_v12 = vld [vmem:[%s11392_s18 + $0xaa4] ss:$8 sps:$4 sm:$0xff]  }
 0x19d   : > { %7847 = vmatpush1.bf16.msra.mxu1 %v9589_v13  ;;  %v9667_v13 = vld [vmem:[%s11392_s18 + $0x2a0] ss:$8 sps:$4 sm:$0xff]  }
 0x19e   : > { %8175 = vmatpush1.bf16.msra.mxu0 %v9592_v14  ;;  %7848 = vmatprep.subr.bf16.mxu1 %v9597_v15  ;;  %v9670_v14 = vld [vmem:[%s11392_s18 + $0xaa0] ss:$8 sps:$4 sm:$0xff]   ;;  %v9675_v15 = vld [vmem:[%s11392_s18 + $0x2b4] ss:$8 sps:$4 sm:$0xff]  }
 0x19f   : > { %8176 = vmatprep.subr.bf16.mxu0 %v9600_v16  ;;  %v9678_v16 = vld [vmem:[%s11392_s18 + $0xab4] ss:$8 sps:$4 sm:$0xff]  }
 0x1a1   : > { %7849 = vmatpush1.bf16.msra.mxu1 %v9595_v21  ;;  %v9681_v21 = vld [vmem:[%s11392_s18 + $0x2c4] ss:$8 sps:$4 sm:$0xff]  }
 0x1a2   : > { %8177 = vmatpush1.bf16.msra.mxu0 %v9598_v22  ;;  %7850 = vmatprep.subr.bf16.mxu1 %v9603_v23  ;;  %v9684_v22 = vld [vmem:[%s11392_s18 + $0xac4] ss:$8 sps:$4 sm:$0xff]   ;;  %v9679_v23 = vld [vmem:[%s11392_s18 + $0x2c0] ss:$8 sps:$4 sm:$0xff]  }
 0x1a3   : > { %8178 = vmatprep.subr.bf16.mxu0 %v9606_v24  ;;  %v9682_v24 = vld [vmem:[%s11392_s18 + $0xac0] ss:$8 sps:$4 sm:$0xff]  }
 0x1a5   : > { %7851 = vmatpush1.bf16.msra.mxu1 %v9601_v53  ;;  %v9687_v53 = vld [vmem:[%s11392_s18 + $0x2d4] ss:$8 sps:$4 sm:$0xff]  }
 0x1a6   : > { %8179 = vmatpush1.bf16.msra.mxu0 %v9604_v57  ;;  %7861 = vmatprep.subr.bf16.mxu1 %v9609_v27  ;;  %v9690_v57 = vld [vmem:[%s11392_s18 + $0xad4] ss:$8 sps:$4 sm:$0xff]   ;;  %v9685_v27 = vld [vmem:[%s11392_s18 + $0x2d0] ss:$8 sps:$4 sm:$0xff]  }
 0x1a7   : > { %8189 = vmatprep.subr.bf16.mxu0 %v9612_v28  ;;  %v9688_v28 = vld [vmem:[%s11392_s18 + $0xad0] ss:$8 sps:$4 sm:$0xff]  }
 0x1a8   : > { %7853 = vmatmul.mubr.bf16.vlgmr.msra.gmra.mrb[0].mxu1 %v5036_v31  ;;  %v9691_v31 = vld [vmem:[%s11392_s18 + $0x2e0] ss:$8 sps:$4 sm:$0xff]  }
 0x1a9   : > { %8181 = vmatmul.mubr.bf16.vlgmr.msra.gmra.mrb[0].mxu0 %v5134_v32  ;;  %7862 = vmatpush1.bf16.msra.mxu1 %v9607_v33  ;;  %v9694_v32 = vld [vmem:[%s11392_s18 + $0xae0] ss:$8 sps:$4 sm:$0xff]   ;;  %v9699_v33 = vld [vmem:[%s11392_s18 + $0x2f4] ss:$8 sps:$4 sm:$0xff]  }
 0x1aa   : > { %8190 = vmatpush1.bf16.msra.mxu0 %v9610_v34  ;;  %7863 = vmatprep.subr.bf16.mxu1 %v9615_v35  ;;  %v9702_v34 = vld [vmem:[%s11392_s18 + $0xaf4] ss:$8 sps:$4 sm:$0xff]   ;;  %v9697_v35 = vld [vmem:[%s11392_s18 + $0x2f0] ss:$8 sps:$4 sm:$0xff]  }
 0x1ab   : > { %8191 = vmatprep.subr.bf16.mxu0 %v9618_v36  ;;  %7893 = vmatprep.mubr.bf16.mxu1 %v11577_v37  ;;  %v9700_v36 = vld [vmem:[%s11392_s18 + $0xaf0] ss:$8 sps:$4 sm:$0xff]  }
 0x1ac   : > { %8221 = vmatprep.mubr.bf16.mxu0 %v11580_v17 }
 0x1ad   : > { %7864 = vmatpush1.bf16.msra.mxu1 %v9613_v18  ;;  %v9705_v18 = vld [vmem:[%s11392_s18 + $0x304] ss:$8 sps:$4 sm:$0xff]  }
 0x1ae   : > { %8192 = vmatpush1.bf16.msra.mxu0 %v9616_v38  ;;  %7865 = vmatprep.subr.bf16.mxu1 %v9621_v39  ;;  %v9708_v38 = vld [vmem:[%s11392_s18 + $0xb04] ss:$8 sps:$4 sm:$0xff]   ;;  %v11646_v39 = vrot.slane %v11555_v25, %v11442_v50  ;;  %v5039_v25 = vcombine.high %v11577_v37, %v11577_v37 }
 0x1af   : > { %8193 = vmatprep.subr.bf16.mxu0 %v9624_v40  ;;  %v11650_v40 = vrot.slane %v11558_v26, %v11442_v50  ;;  %v9709_v26 = vld [vmem:[%s11392_s18 + $0x310] ss:$8 sps:$4 sm:$0xff]   ;;  %v9717_v37 = vld [vmem:[%s11392_s18 + $0x324] ss:$8 sps:$4 sm:$0xff]  }
 0x1b1   : > { %7866 = vmatpush1.bf16.msra.mxu1 %v9619_v41  ;;  %v9703_v41 = vld [vmem:[%s11392_s18 + $0x300] ss:$8 sps:$4 sm:$0xff]  }
 0x1b2   : > { %8194 = vmatpush1.bf16.msra.mxu0 %v9622_v42  ;;  %7867 = vmatprep.subr.bf16.mxu1 %v9627_v44  ;;  %v9706_v42 = vld [vmem:[%s11392_s18 + $0xb00] ss:$8 sps:$4 sm:$0xff]   ;;  %v9711_v44 = vld [vmem:[%s11392_s18 + $0x314] ss:$8 sps:$4 sm:$0xff]  }
 0x1b3   : > { %8195 = vmatprep.subr.bf16.mxu0 %v9630_v45  ;;  %v9714_v45 = vld [vmem:[%s11392_s18 + $0xb14] ss:$8 sps:$4 sm:$0xff]  }
 0x1b5   : > { %7868 = vmatpush1.bf16.msra.mxu1 %v9625_v46  ;;  %v5137_v46 = vcombine.high %v11580_v17, %v11580_v17  ;;  %v9715_v17 = vld [vmem:[%s11392_s18 + $0x320] ss:$8 sps:$4 sm:$0xff]  }
 0x1b6   : > { %8196 = vmatpush1.bf16.msra.mxu0 %v9628_v47  ;;  %7869 = vmatprep.subr.bf16.mxu1 %v9633_v48  ;;  %v9712_v47 = vld [vmem:[%s11392_s18 + $0xb10] ss:$8 sps:$4 sm:$0xff]   ;;  %v9720_v48 = vld [vmem:[%s11392_s18 + $0xb24] ss:$8 sps:$4 sm:$0xff]  }
 0x1b7   : > { %8197 = vmatprep.subr.bf16.mxu0 %v9636_v49  ;;  %v9718_v49 = vld [vmem:[%s11392_s18 + $0xb20] ss:$8 sps:$4 sm:$0xff]  }
 0x1b9   : > { %7870 = vmatpush1.bf16.msra.mxu1 %v9631_v51  ;;  %v9723_v51 = vld [vmem:[%s11392_s18 + $0x334] ss:$8 sps:$4 sm:$0xff]  }
 0x1ba   : > { %8198 = vmatpush1.bf16.msra.mxu0 %v9634_v52  ;;  %7871 = vmatprep.subr.bf16.mxu1 %v9639_v54  ;;  %v9726_v52 = vld [vmem:[%s11392_s18 + $0xb34] ss:$8 sps:$4 sm:$0xff]   ;;  %v9721_v54 = vld [vmem:[%s11392_s18 + $0x330] ss:$8 sps:$4 sm:$0xff]  }
 0x1bb   : > { %8199 = vmatprep.subr.bf16.mxu0 %v9642_v55  ;;  %v9724_v55 = vld [vmem:[%s11392_s18 + $0xb30] ss:$8 sps:$4 sm:$0xff]  }
 0x1bd   : > { %7872 = vmatpush1.bf16.msra.mxu1 %v9637_v56  ;;  %v9729_v56 = vld [vmem:[%s11392_s18 + $0x344] ss:$8 sps:$4 sm:$0xff]  }
 0x1be   : > { %8200 = vmatpush1.bf16.msra.mxu0 %v9640_v58  ;;  %7873 = vmatprep.subr.bf16.mxu1 %v9645_v59  ;;  %v9732_v58 = vld [vmem:[%s11392_s18 + $0xb44] ss:$8 sps:$4 sm:$0xff]   ;;  %v9727_v59 = vld [vmem:[%s11392_s18 + $0x340] ss:$8 sps:$4 sm:$0xff]  }
 0x1bf   : > { %8201 = vmatprep.subr.bf16.mxu0 %v9648_v60  ;;  %v9730_v60 = vld [vmem:[%s11392_s18 + $0xb40] ss:$8 sps:$4 sm:$0xff]  }
 0x1c1   : > { %7874 = vmatpush1.bf16.msra.mxu1 %v9643_v61  ;;  %v9735_v61 = vld [vmem:[%s11392_s18 + $0x354] ss:$8 sps:$4 sm:$0xff]  }
 0x1c2   : > { %8202 = vmatpush1.bf16.msra.mxu0 %v9646_v62  ;;  %7875 = vmatprep.subr.bf16.mxu1 %v9651_v63  ;;  %v9738_v62 = vld [vmem:[%s11392_s18 + $0xb54] ss:$8 sps:$4 sm:$0xff]   ;;  %v9733_v63 = vld [vmem:[%s11392_s18 + $0x350] ss:$8 sps:$4 sm:$0xff]  }
 0x1c3   : > { %8203 = vmatprep.subr.bf16.mxu0 %v9654_v0  ;;  %v9736_v0 = vld [vmem:[%s11392_s18 + $0xb50] ss:$8 sps:$4 sm:$0xff]  }
 0x1c5   : > { %7876 = vmatpush1.bf16.msra.mxu1 %v9649_v1  ;;  %v9741_v1 = vld [vmem:[%s11392_s18 + $0x364] ss:$8 sps:$4 sm:$0xff]  }
 0x1c6   : > { %8204 = vmatpush1.bf16.msra.mxu0 %v9652_v2  ;;  %7877 = vmatprep.subr.bf16.mxu1 %v9657_v3  ;;  %v9744_v2 = vld [vmem:[%s11392_s18 + $0xb64] ss:$8 sps:$4 sm:$0xff]   ;;  %v9739_v3 = vld [vmem:[%s11392_s18 + $0x360] ss:$8 sps:$4 sm:$0xff]  }
 0x1c7   : > { %8205 = vmatprep.subr.bf16.mxu0 %v9660_v4  ;;  %v9742_v4 = vld [vmem:[%s11392_s18 + $0xb60] ss:$8 sps:$4 sm:$0xff]  }
 0x1c9   : > { %7878 = vmatpush1.bf16.msra.mxu1 %v9655_v5  ;;  %v9747_v5 = vld [vmem:[%s11392_s18 + $0x374] ss:$8 sps:$4 sm:$0xff]  }
 0x1ca   : > { %8206 = vmatpush1.bf16.msra.mxu0 %v9658_v6  ;;  %7879 = vmatprep.subr.bf16.mxu1 %v9663_v7  ;;  %v9750_v6 = vld [vmem:[%s11392_s18 + $0xb74] ss:$8 sps:$4 sm:$0xff]   ;;  %v9745_v7 = vld [vmem:[%s11392_s18 + $0x370] ss:$8 sps:$4 sm:$0xff]  }
 0x1cb   : > { %8207 = vmatprep.subr.bf16.mxu0 %v9666_v8  ;;  %v9748_v8 = vld [vmem:[%s11392_s18 + $0xb70] ss:$8 sps:$4 sm:$0xff]  }
 0x1cd   : > { %7880 = vmatpush1.bf16.msra.mxu1 %v9661_v9  ;;  %v9753_v9 = vld [vmem:[%s11392_s18 + $0x384] ss:$8 sps:$4 sm:$0xff]  }
 0x1ce   : > { %8208 = vmatpush1.bf16.msra.mxu0 %v9664_v10  ;;  %7881 = vmatprep.subr.bf16.mxu1 %v9669_v11  ;;  %v9756_v10 = vld [vmem:[%s11392_s18 + $0xb84] ss:$8 sps:$4 sm:$0xff]   ;;  %v9751_v11 = vld [vmem:[%s11392_s18 + $0x380] ss:$8 sps:$4 sm:$0xff]  }
 0x1cf   : > { %8209 = vmatprep.subr.bf16.mxu0 %v9672_v12  ;;  %v9754_v12 = vld [vmem:[%s11392_s18 + $0xb80] ss:$8 sps:$4 sm:$0xff]  }
 0x1d1   : > { %7882 = vmatpush1.bf16.msra.mxu1 %v9667_v13  ;;  %v9759_v13 = vld [vmem:[%s11392_s18 + $0x394] ss:$8 sps:$4 sm:$0xff]  }
 0x1d2   : > { %8210 = vmatpush1.bf16.msra.mxu0 %v9670_v14  ;;  %7883 = vmatprep.subr.bf16.mxu1 %v9675_v15  ;;  %v9762_v14 = vld [vmem:[%s11392_s18 + $0xb94] ss:$8 sps:$4 sm:$0xff]   ;;  %v9757_v15 = vld [vmem:[%s11392_s18 + $0x390] ss:$8 sps:$4 sm:$0xff]  }
 0x1d3   : > { %8211 = vmatprep.subr.bf16.mxu0 %v9678_v16  ;;  %v9760_v16 = vld [vmem:[%s11392_s18 + $0xb90] ss:$8 sps:$4 sm:$0xff]  }
 0x1d5   : > { %7884 = vmatpush1.bf16.msra.mxu1 %v9673_v19  ;;  %v9765_v19 = vld [vmem:[%s11392_s18 + $0x3a4] ss:$8 sps:$4 sm:$0xff]  }
 0x1d6   : > { %8212 = vmatpush1.bf16.msra.mxu0 %v9676_v20  ;;  %7885 = vmatprep.subr.bf16.mxu1 %v9681_v21  ;;  %v9768_v20 = vld [vmem:[%s11392_s18 + $0xba4] ss:$8 sps:$4 sm:$0xff]   ;;  %v9763_v21 = vld [vmem:[%s11392_s18 + $0x3a0] ss:$8 sps:$4 sm:$0xff]  }
 0x1d7   : > { %8213 = vmatprep.subr.bf16.mxu0 %v9684_v22  ;;  %v9766_v22 = vld [vmem:[%s11392_s18 + $0xba0] ss:$8 sps:$4 sm:$0xff]  }
 0x1d9   : > { %7886 = vmatpush1.bf16.msra.mxu1 %v9679_v23  ;;  %v9771_v23 = vld [vmem:[%s11392_s18 + $0x3b4] ss:$8 sps:$4 sm:$0xff]  }
 0x1da   : > { %8214 = vmatpush1.bf16.msra.mxu0 %v9682_v24  ;;  %7887 = vmatprep.subr.bf16.mxu1 %v9687_v53  ;;  %v9774_v24 = vld [vmem:[%s11392_s18 + $0xbb4] ss:$8 sps:$4 sm:$0xff]   ;;  %v9769_v53 = vld [vmem:[%s11392_s18 + $0x3b0] ss:$8 sps:$4 sm:$0xff]  }
 0x1db   : > { %8215 = vmatprep.subr.bf16.mxu0 %v9690_v57  ;;  %v9772_v57 = vld [vmem:[%s11392_s18 + $0xbb0] ss:$8 sps:$4 sm:$0xff]  }
 0x1dd   : > { %7888 = vmatpush1.bf16.msra.mxu1 %v9685_v27  ;;  %v9777_v27 = vld [vmem:[%s11392_s18 + $0x3c4] ss:$8 sps:$4 sm:$0xff]  }
 0x1de   : > { %8216 = vmatpush1.bf16.msra.mxu0 %v9688_v28  ;;  %7889 = vmatprep.subr.bf16.mxu1 %v9693_v29  ;;  %v9780_v28 = vld [vmem:[%s11392_s18 + $0xbc4] ss:$8 sps:$4 sm:$0xff]   ;;  %v9775_v29 = vld [vmem:[%s11392_s18 + $0x3c0] ss:$8 sps:$4 sm:$0xff]  }
 0x1df   : > { %8217 = vmatprep.subr.bf16.mxu0 %v9696_v30  ;;  %v9778_v30 = vld [vmem:[%s11392_s18 + $0xbc0] ss:$8 sps:$4 sm:$0xff]  }
 0x1e1   : > { %7890 = vmatpush1.bf16.msra.mxu1 %v9691_v31  ;;  %v9783_v31 = vld [vmem:[%s11392_s18 + $0x3d4] ss:$8 sps:$4 sm:$0xff]  }
 0x1e2   : > { %8218 = vmatpush1.bf16.msra.mxu0 %v9694_v32  ;;  %7891 = vmatprep.subr.bf16.mxu1 %v9699_v33  ;;  %v9786_v32 = vld [vmem:[%s11392_s18 + $0xbd4] ss:$8 sps:$4 sm:$0xff]   ;;  %v9781_v33 = vld [vmem:[%s11392_s18 + $0x3d0] ss:$8 sps:$4 sm:$0xff]  }
 0x1e3   : > { %8219 = vmatprep.subr.bf16.mxu0 %v9702_v34  ;;  %v9784_v34 = vld [vmem:[%s11392_s18 + $0xbd0] ss:$8 sps:$4 sm:$0xff]  }
 0x1e5   : > { %7892 = vmatpush1.bf16.msra.mxu1 %v9697_v35  ;;  %v9789_v35 = vld [vmem:[%s11392_s18 + $0x3e4] ss:$8 sps:$4 sm:$0xff]  }
 0x1e6   : > { %8220 = vmatpush1.bf16.msra.mxu0 %v9700_v36  ;;  %7902 = vmatprep.subr.bf16.mxu1 %v9705_v18  ;;  %v9792_v36 = vld [vmem:[%s11392_s18 + $0xbe4] ss:$8 sps:$4 sm:$0xff]   ;;  %v9787_v18 = vld [vmem:[%s11392_s18 + $0x3e0] ss:$8 sps:$4 sm:$0xff]  }
 0x1e7   : > { %8230 = vmatprep.subr.bf16.mxu0 %v9708_v38  ;;  %v9790_v38 = vld [vmem:[%s11392_s18 + $0xbe0] ss:$8 sps:$4 sm:$0xff]  }
 0x1e8   : > { %7894 = vmatmul.mubr.bf16.vlgmr.msra.gmra.mrb[0].mxu1 %v11646_v39 }
 0x1e9   : > { %8222 = vmatmul.mubr.bf16.vlgmr.msra.gmra.mrb[0].mxu0 %v11650_v40  ;;  %7903 = vmatpush1.bf16.msra.mxu1 %v9703_v41  ;;  %v11719_v41 = vld [vmem:[%s12138_s0 + $0x8] sm:$0xff] }
 0x1ea   : > { %8231 = vmatpush1.bf16.msra.mxu0 %v9706_v42  ;;  %7904 = vmatprep.subr.bf16.mxu1 %v9711_v44  ;;  %v11724_v42 = vld [vmem:[%s12138_s0 + $0x18] sm:$0xff] }
 0x1eb   : > { %8232 = vmatprep.subr.bf16.mxu0 %v9714_v45  ;;  %7934 = vmatprep.mubr.bf16.mxu1 %v5039_v25  ;;  %v9795_v44 = vld [vmem:[%s11392_s18 + $0x3f4] ss:$8 sps:$4 sm:$0xff]   ;;  %v11730_v25 = vrot.slane %v11719_v41, %v11442_v50 }
 0x1ec   : > { %8262 = vmatprep.mubr.bf16.mxu0 %v5137_v46  ;;  %v9798_v45 = vld [vmem:[%s11392_s18 + $0xbf4] ss:$8 sps:$4 sm:$0xff]   ;;  %v11734_v46 = vrot.slane %v11724_v42, %v11442_v50 }
 0x1ed   : > { %7905 = vmatpush1.bf16.msra.mxu1 %v9709_v26  ;;  %v9793_v26 = vld [vmem:[%s11392_s18 + $0x3f0] ss:$8 sps:$4 sm:$0xff]  }
 0x1ee   : > { %8233 = vmatpush1.bf16.msra.mxu0 %v9712_v47  ;;  %7906 = vmatprep.subr.bf16.mxu1 %v9717_v37  ;;  %v9796_v47 = vld [vmem:[%s11392_s18 + $0xbf0] ss:$8 sps:$4 sm:$0xff]   ;;  %v9801_v37 = vld [vmem:[%s11392_s18 + $0x404] ss:$8 sps:$4 sm:$0xff]  }
 0x1ef   : > { %8234 = vmatprep.subr.bf16.mxu0 %v9720_v48  ;;  %v9804_v48 = vld [vmem:[%s11392_s18 + $0xc04] ss:$8 sps:$4 sm:$0xff]  }
 0x1f1   : > { %7907 = vmatpush1.bf16.msra.mxu1 %v9715_v17  ;;  %v5055_v17 = vcombine.high %v11730_v25, %v11730_v25 }
 0x1f2   : > { %8235 = vmatpush1.bf16.msra.mxu0 %v9718_v49  ;;  %7908 = vmatprep.subr.bf16.mxu1 %v9723_v51  ;;  %v5153_v49 = vcombine.high %v11734_v46, %v11734_v46  ;;  %v9799_v51 = vld [vmem:[%s11392_s18 + $0x400] ss:$8 sps:$4 sm:$0xff]  }
 0x1f3   : > { %8236 = vmatprep.subr.bf16.mxu0 %v9726_v52  ;;  %v9802_v52 = vld [vmem:[%s11392_s18 + $0xc00] ss:$8 sps:$4 sm:$0xff]  }
 0x1f5   : > { %7909 = vmatpush1.bf16.msra.mxu1 %v9721_v54  ;;  %v5037_v54 = vcombine.high %v11646_v39, %v11646_v39  ;;  %v9805_v39 = vld [vmem:[%s11392_s18 + $0x410] ss:$8 sps:$4 sm:$0xff]  }
 0x1f6   : > { %8237 = vmatpush1.bf16.msra.mxu0 %v9724_v55  ;;  %7910 = vmatprep.subr.bf16.mxu1 %v9729_v56  ;;  %v5135_v55 = vcombine.high %v11650_v40, %v11650_v40  ;;  %v9807_v56 = vld [vmem:[%s11392_s18 + $0x414] ss:$8 sps:$4 sm:$0xff]   ;;  %v9808_v40 = vld [vmem:[%s11392_s18 + $0xc10] ss:$8 sps:$4 sm:$0xff]  }
 0x1f7   : > { %8238 = vmatprep.subr.bf16.mxu0 %v9732_v58  ;;  %v9810_v58 = vld [vmem:[%s11392_s18 + $0xc14] ss:$8 sps:$4 sm:$0xff]  }
 0x1f9   : > { %7911 = vmatpush1.bf16.msra.mxu1 %v9727_v59  ;;  %v11753_v59 = vrot.slane %v5055_v17, %v11442_v50  ;;  %v9877_v17 = vld [vmem:[%s11392_s18 + $0x4d0] ss:$8 sps:$4 sm:$0xff]  }
 0x1fa   : > { %8239 = vmatpush1.bf16.msra.mxu0 %v9730_v60  ;;  %7912 = vmatprep.subr.bf16.mxu1 %v9735_v61  ;;  %v11756_v60 = vrot.slane %v5153_v49, %v11442_v50  ;;  %v9813_v61 = vld [vmem:[%s11392_s18 + $0x424] ss:$8 sps:$4 sm:$0xff]   ;;  %v9880_v49 = vld [vmem:[%s11392_s18 + $0xcd0] ss:$8 sps:$4 sm:$0xff]  }
 0x1fb   : > { %8240 = vmatprep.subr.bf16.mxu0 %v9738_v62  ;;  %v9816_v62 = vld [vmem:[%s11392_s18 + $0xc24] ss:$8 sps:$4 sm:$0xff]  }
 0x1fd   : > { %7913 = vmatpush1.bf16.msra.mxu1 %v9733_v63  ;;  %v9811_v63 = vld [vmem:[%s11392_s18 + $0x420] ss:$8 sps:$4 sm:$0xff]  }
 0x1fe   : > { %8241 = vmatpush1.bf16.msra.mxu0 %v9736_v0  ;;  %7914 = vmatprep.subr.bf16.mxu1 %v9741_v1  ;;  %v9814_v0 = vld [vmem:[%s11392_s18 + $0xc20] ss:$8 sps:$4 sm:$0xff]   ;;  %v9819_v1 = vld [vmem:[%s11392_s18 + $0x434] ss:$8 sps:$4 sm:$0xff]  }
 0x1ff   : > { %8242 = vmatprep.subr.bf16.mxu0 %v9744_v2  ;;  %v9822_v2 = vld [vmem:[%s11392_s18 + $0xc34] ss:$8 sps:$4 sm:$0xff]  }
 0x201   : > { %7915 = vmatpush1.bf16.msra.mxu1 %v9739_v3  ;;  %v9817_v3 = vld [vmem:[%s11392_s18 + $0x430] ss:$8 sps:$4 sm:$0xff]  }
 0x202   : > { %8243 = vmatpush1.bf16.msra.mxu0 %v9742_v4  ;;  %7916 = vmatprep.subr.bf16.mxu1 %v9747_v5  ;;  %v9820_v4 = vld [vmem:[%s11392_s18 + $0xc30] ss:$8 sps:$4 sm:$0xff]   ;;  %v9825_v5 = vld [vmem:[%s11392_s18 + $0x444] ss:$8 sps:$4 sm:$0xff]  }
 0x203   : > { %8244 = vmatprep.subr.bf16.mxu0 %v9750_v6  ;;  %v9828_v6 = vld [vmem:[%s11392_s18 + $0xc44] ss:$8 sps:$4 sm:$0xff]  }
 0x205   : > { %7917 = vmatpush1.bf16.msra.mxu1 %v9745_v7  ;;  %v9823_v7 = vld [vmem:[%s11392_s18 + $0x440] ss:$8 sps:$4 sm:$0xff]  }
 0x206   : > { %8245 = vmatpush1.bf16.msra.mxu0 %v9748_v8  ;;  %7918 = vmatprep.subr.bf16.mxu1 %v9753_v9  ;;  %v9826_v8 = vld [vmem:[%s11392_s18 + $0xc40] ss:$8 sps:$4 sm:$0xff]   ;;  %v9831_v9 = vld [vmem:[%s11392_s18 + $0x454] ss:$8 sps:$4 sm:$0xff]  }
 0x207   : > { %8246 = vmatprep.subr.bf16.mxu0 %v9756_v10  ;;  %v9834_v10 = vld [vmem:[%s11392_s18 + $0xc54] ss:$8 sps:$4 sm:$0xff]  }
 0x209   : > { %7919 = vmatpush1.bf16.msra.mxu1 %v9751_v11  ;;  %v9829_v11 = vld [vmem:[%s11392_s18 + $0x450] ss:$8 sps:$4 sm:$0xff]  }
 0x20a   : > { %8247 = vmatpush1.bf16.msra.mxu0 %v9754_v12  ;;  %7920 = vmatprep.subr.bf16.mxu1 %v9759_v13  ;;  %v9832_v12 = vld [vmem:[%s11392_s18 + $0xc50] ss:$8 sps:$4 sm:$0xff]   ;;  %v9837_v13 = vld [vmem:[%s11392_s18 + $0x464] ss:$8 sps:$4 sm:$0xff]  }
 0x20b   : > { %8248 = vmatprep.subr.bf16.mxu0 %v9762_v14  ;;  %v9840_v14 = vld [vmem:[%s11392_s18 + $0xc64] ss:$8 sps:$4 sm:$0xff]  }
 0x20d   : > { %7921 = vmatpush1.bf16.msra.mxu1 %v9757_v15  ;;  %v9835_v15 = vld [vmem:[%s11392_s18 + $0x460] ss:$8 sps:$4 sm:$0xff]  }
 0x20e   : > { %8249 = vmatpush1.bf16.msra.mxu0 %v9760_v16  ;;  %7922 = vmatprep.subr.bf16.mxu1 %v9765_v19  ;;  %v9838_v16 = vld [vmem:[%s11392_s18 + $0xc60] ss:$8 sps:$4 sm:$0xff]   ;;  %v9843_v19 = vld [vmem:[%s11392_s18 + $0x474] ss:$8 sps:$4 sm:$0xff]  }
 0x20f   : > { %8250 = vmatprep.subr.bf16.mxu0 %v9768_v20  ;;  %v9846_v20 = vld [vmem:[%s11392_s18 + $0xc74] ss:$8 sps:$4 sm:$0xff]  }
 0x211   : > { %7923 = vmatpush1.bf16.msra.mxu1 %v9763_v21  ;;  %v9841_v21 = vld [vmem:[%s11392_s18 + $0x470] ss:$8 sps:$4 sm:$0xff]  }
 0x212   : > { %8251 = vmatpush1.bf16.msra.mxu0 %v9766_v22  ;;  %7924 = vmatprep.subr.bf16.mxu1 %v9771_v23  ;;  %v9844_v22 = vld [vmem:[%s11392_s18 + $0xc70] ss:$8 sps:$4 sm:$0xff]   ;;  %v9849_v23 = vld [vmem:[%s11392_s18 + $0x484] ss:$8 sps:$4 sm:$0xff]  }
 0x213   : > { %8252 = vmatprep.subr.bf16.mxu0 %v9774_v24  ;;  %v9852_v24 = vld [vmem:[%s11392_s18 + $0xc84] ss:$8 sps:$4 sm:$0xff]  }
 0x215   : > { %7925 = vmatpush1.bf16.msra.mxu1 %v9769_v53  ;;  %v9847_v53 = vld [vmem:[%s11392_s18 + $0x480] ss:$8 sps:$4 sm:$0xff]  }
 0x216   : > { %8253 = vmatpush1.bf16.msra.mxu0 %v9772_v57  ;;  %7926 = vmatprep.subr.bf16.mxu1 %v9777_v27  ;;  %v9850_v57 = vld [vmem:[%s11392_s18 + $0xc80] ss:$8 sps:$4 sm:$0xff]   ;;  %v9855_v27 = vld [vmem:[%s11392_s18 + $0x494] ss:$8 sps:$4 sm:$0xff]  }
 0x217   : > { %8254 = vmatprep.subr.bf16.mxu0 %v9780_v28  ;;  %v9858_v28 = vld [vmem:[%s11392_s18 + $0xc94] ss:$8 sps:$4 sm:$0xff]  }
 0x219   : > { %7927 = vmatpush1.bf16.msra.mxu1 %v9775_v29  ;;  %v9853_v29 = vld [vmem:[%s11392_s18 + $0x490] ss:$8 sps:$4 sm:$0xff]  }
 0x21a   : > { %8255 = vmatpush1.bf16.msra.mxu0 %v9778_v30  ;;  %7928 = vmatprep.subr.bf16.mxu1 %v9783_v31  ;;  %v9856_v30 = vld [vmem:[%s11392_s18 + $0xc90] ss:$8 sps:$4 sm:$0xff]   ;;  %v9861_v31 = vld [vmem:[%s11392_s18 + $0x4a4] ss:$8 sps:$4 sm:$0xff]  }
 0x21b   : > { %8256 = vmatprep.subr.bf16.mxu0 %v9786_v32  ;;  %v9864_v32 = vld [vmem:[%s11392_s18 + $0xca4] ss:$8 sps:$4 sm:$0xff]  }
 0x21d   : > { %7929 = vmatpush1.bf16.msra.mxu1 %v9781_v33  ;;  %v9859_v33 = vld [vmem:[%s11392_s18 + $0x4a0] ss:$8 sps:$4 sm:$0xff]  }
 0x21e   : > { %8257 = vmatpush1.bf16.msra.mxu0 %v9784_v34  ;;  %7930 = vmatprep.subr.bf16.mxu1 %v9789_v35  ;;  %v9862_v34 = vld [vmem:[%s11392_s18 + $0xca0] ss:$8 sps:$4 sm:$0xff]   ;;  %v9867_v35 = vld [vmem:[%s11392_s18 + $0x4b4] ss:$8 sps:$4 sm:$0xff]  }
 0x21f   : > { %8258 = vmatprep.subr.bf16.mxu0 %v9792_v36  ;;  %v9870_v36 = vld [vmem:[%s11392_s18 + $0xcb4] ss:$8 sps:$4 sm:$0xff]  }
 0x221   : > { %7931 = vmatpush1.bf16.msra.mxu1 %v9787_v18  ;;  %v9865_v18 = vld [vmem:[%s11392_s18 + $0x4b0] ss:$8 sps:$4 sm:$0xff]  }
 0x222   : > { %8259 = vmatpush1.bf16.msra.mxu0 %v9790_v38  ;;  %7932 = vmatprep.subr.bf16.mxu1 %v9795_v44  ;;  %v9868_v38 = vld [vmem:[%s11392_s18 + $0xcb0] ss:$8 sps:$4 sm:$0xff]   ;;  %v9873_v44 = vld [vmem:[%s11392_s18 + $0x4c4] ss:$8 sps:$4 sm:$0xff]  }
 0x223   : > { %8260 = vmatprep.subr.bf16.mxu0 %v9798_v45  ;;  %v9876_v45 = vld [vmem:[%s11392_s18 + $0xcc4] ss:$8 sps:$4 sm:$0xff]  }
 0x225   : > { %7933 = vmatpush1.bf16.msra.mxu1 %v9793_v26  ;;  %v9871_v26 = vld [vmem:[%s11392_s18 + $0x4c0] ss:$8 sps:$4 sm:$0xff]  }
 0x226   : > { %8261 = vmatpush1.bf16.msra.mxu0 %v9796_v47  ;;  %7943 = vmatprep.subr.bf16.mxu1 %v9801_v37  ;;  %v9874_v47 = vld [vmem:[%s11392_s18 + $0xcc0] ss:$8 sps:$4 sm:$0xff]   ;;  %v9879_v37 = vld [vmem:[%s11392_s18 + $0x4d4] ss:$8 sps:$4 sm:$0xff]  }
 0x227   : > { %8271 = vmatprep.subr.bf16.mxu0 %v9804_v48  ;;  %v9882_v48 = vld [vmem:[%s11392_s18 + $0xcd4] ss:$8 sps:$4 sm:$0xff]  }
 0x228   : > { %7935 = vmatmul.mubr.bf16.vlgmr.msra.gmra.mrb[0].mxu1 %v5037_v54  ;;  %v9883_v54 = vld [vmem:[%s11392_s18 + $0x4e0] ss:$8 sps:$4 sm:$0xff]  }
 0x229   : > { %8263 = vmatmul.mubr.bf16.vlgmr.msra.gmra.mrb[0].mxu0 %v5135_v55  ;;  %7944 = vmatpush1.bf16.msra.mxu1 %v9799_v51  ;;  %v9885_v51 = vld [vmem:[%s11392_s18 + $0x4e4] ss:$8 sps:$4 sm:$0xff]   ;;  %v9886_v55 = vld [vmem:[%s11392_s18 + $0xce0] ss:$8 sps:$4 sm:$0xff]  }
 0x22a   : > { %8272 = vmatpush1.bf16.msra.mxu0 %v9802_v52  ;;  %7945 = vmatprep.subr.bf16.mxu1 %v9807_v56  ;;  %v9888_v52 = vld [vmem:[%s11392_s18 + $0xce4] ss:$8 sps:$4 sm:$0xff]   ;;  %v9891_v56 = vld [vmem:[%s11392_s18 + $0x4f4] ss:$8 sps:$4 sm:$0xff]  }
 0x22b   : > { %8273 = vmatprep.subr.bf16.mxu0 %v9810_v58  ;;  %7975 = vmatprep.mubr.bf16.mxu1 %v11753_v59  ;;  %v9894_v58 = vld [vmem:[%s11392_s18 + $0xcf4] ss:$8 sps:$4 sm:$0xff]  }
 0x22c   : > { %8303 = vmatprep.mubr.bf16.mxu0 %v11756_v60 }
 0x22d   : > { %7946 = vmatpush1.bf16.msra.mxu1 %v9805_v39  ;;  %v9889_v39 = vld [vmem:[%s11392_s18 + $0x4f0] ss:$8 sps:$4 sm:$0xff]  }
 0x22e   : > { %8274 = vmatpush1.bf16.msra.mxu0 %v9808_v40  ;;  %7947 = vmatprep.subr.bf16.mxu1 %v9813_v61  ;;  %v9892_v40 = vld [vmem:[%s11392_s18 + $0xcf0] ss:$8 sps:$4 sm:$0xff]   ;;  %v9897_v61 = vld [vmem:[%s11392_s18 + $0x504] ss:$8 sps:$4 sm:$0xff]  }
 0x22f   : > { %8275 = vmatprep.subr.bf16.mxu0 %v9816_v62  ;;  %v9900_v62 = vld [vmem:[%s11392_s18 + $0xd04] ss:$8 sps:$4 sm:$0xff]  }
 0x231   : > { %7948 = vmatpush1.bf16.msra.mxu1 %v9811_v63  ;;  %v11822_v63 = vrot.slane %v11730_v25, %v11442_v50  ;;  %v5087_v25 = vcombine.high %v11753_v59, %v11753_v59  ;;  %v9909_v59 = vld [vmem:[%s11392_s18 + $0x524] ss:$8 sps:$4 sm:$0xff]  }
 0x232   : > { %8276 = vmatpush1.bf16.msra.mxu0 %v9814_v0  ;;  %7949 = vmatprep.subr.bf16.mxu1 %v9819_v1  ;;  %v11826_v0 = vrot.slane %v11734_v46, %v11442_v50  ;;  %v9895_v1 = vld [vmem:[%s11392_s18 + $0x500] ss:$8 sps:$4 sm:$0xff]   ;;  %v9901_v46 = vld [vmem:[%s11392_s18 + $0x510] ss:$8 sps:$4 sm:$0xff]  }
 0x233   : > { %8277 = vmatprep.subr.bf16.mxu0 %v9822_v2  ;;  %v9898_v2 = vld [vmem:[%s11392_s18 + $0xd00] ss:$8 sps:$4 sm:$0xff]  }
 0x235   : > { %7950 = vmatpush1.bf16.msra.mxu1 %v9817_v3  ;;  %v9903_v3 = vld [vmem:[%s11392_s18 + $0x514] ss:$8 sps:$4 sm:$0xff]  }
 0x236   : > { %8278 = vmatpush1.bf16.msra.mxu0 %v9820_v4  ;;  %7951 = vmatprep.subr.bf16.mxu1 %v9825_v5  ;;  %v9906_v4 = vld [vmem:[%s11392_s18 + $0xd14] ss:$8 sps:$4 sm:$0xff]   ;;  %v5185_v5 = vcombine.high %v11756_v60, %v11756_v60  ;;  %v9907_v60 = vld [vmem:[%s11392_s18 + $0x520] ss:$8 sps:$4 sm:$0xff]  }
 0x237   : > { %8279 = vmatprep.subr.bf16.mxu0 %v9828_v6  ;;  %v9904_v6 = vld [vmem:[%s11392_s18 + $0xd10] ss:$8 sps:$4 sm:$0xff]  }
 0x239   : > { %7952 = vmatpush1.bf16.msra.mxu1 %v9823_v7  ;;  %v9912_v7 = vld [vmem:[%s11392_s18 + $0xd24] ss:$8 sps:$4 sm:$0xff]  }
 0x23a   : > { %8280 = vmatpush1.bf16.msra.mxu0 %v9826_v8  ;;  %7953 = vmatprep.subr.bf16.mxu1 %v9831_v9  ;;  %v9910_v8 = vld [vmem:[%s11392_s18 + $0xd20] ss:$8 sps:$4 sm:$0xff]   ;;  %v9915_v9 = vld [vmem:[%s11392_s18 + $0x534] ss:$8 sps:$4 sm:$0xff]  }
 0x23b   : > { %8281 = vmatprep.subr.bf16.mxu0 %v9834_v10  ;;  %v9918_v10 = vld [vmem:[%s11392_s18 + $0xd34] ss:$8 sps:$4 sm:$0xff]  }
 0x23d   : > { %7954 = vmatpush1.bf16.msra.mxu1 %v9829_v11  ;;  %v9913_v11 = vld [vmem:[%s11392_s18 + $0x530] ss:$8 sps:$4 sm:$0xff]  }
 0x23e   : > { %8282 = vmatpush1.bf16.msra.mxu0 %v9832_v12  ;;  %7955 = vmatprep.subr.bf16.mxu1 %v9837_v13  ;;  %v9916_v12 = vld [vmem:[%s11392_s18 + $0xd30] ss:$8 sps:$4 sm:$0xff]   ;;  %v9921_v13 = vld [vmem:[%s11392_s18 + $0x544] ss:$8 sps:$4 sm:$0xff]  }
 0x23f   : > { %8283 = vmatprep.subr.bf16.mxu0 %v9840_v14  ;;  %v9924_v14 = vld [vmem:[%s11392_s18 + $0xd44] ss:$8 sps:$4 sm:$0xff]  }
 0x241   : > { %7956 = vmatpush1.bf16.msra.mxu1 %v9835_v15  ;;  %v9919_v15 = vld [vmem:[%s11392_s18 + $0x540] ss:$8 sps:$4 sm:$0xff]  }
 0x242   : > { %8284 = vmatpush1.bf16.msra.mxu0 %v9838_v16  ;;  %7957 = vmatprep.subr.bf16.mxu1 %v9843_v19  ;;  %v9922_v16 = vld [vmem:[%s11392_s18 + $0xd40] ss:$8 sps:$4 sm:$0xff]   ;;  %v9927_v19 = vld [vmem:[%s11392_s18 + $0x554] ss:$8 sps:$4 sm:$0xff]  }
 0x243   : > { %8285 = vmatprep.subr.bf16.mxu0 %v9846_v20  ;;  %v9930_v20 = vld [vmem:[%s11392_s18 + $0xd54] ss:$8 sps:$4 sm:$0xff]  }
 0x245   : > { %7958 = vmatpush1.bf16.msra.mxu1 %v9841_v21  ;;  %v9925_v21 = vld [vmem:[%s11392_s18 + $0x550] ss:$8 sps:$4 sm:$0xff]  }
 0x246   : > { %8286 = vmatpush1.bf16.msra.mxu0 %v9844_v22  ;;  %7959 = vmatprep.subr.bf16.mxu1 %v9849_v23  ;;  %v9928_v22 = vld [vmem:[%s11392_s18 + $0xd50] ss:$8 sps:$4 sm:$0xff]   ;;  %v9933_v23 = vld [vmem:[%s11392_s18 + $0x564] ss:$8 sps:$4 sm:$0xff]  }
 0x247   : > { %8287 = vmatprep.subr.bf16.mxu0 %v9852_v24  ;;  %v9936_v24 = vld [vmem:[%s11392_s18 + $0xd64] ss:$8 sps:$4 sm:$0xff]  }
 0x249   : > { %7960 = vmatpush1.bf16.msra.mxu1 %v9847_v53  ;;  %v9931_v53 = vld [vmem:[%s11392_s18 + $0x560] ss:$8 sps:$4 sm:$0xff]  }
 0x24a   : > { %8288 = vmatpush1.bf16.msra.mxu0 %v9850_v57  ;;  %7961 = vmatprep.subr.bf16.mxu1 %v9855_v27  ;;  %v9934_v57 = vld [vmem:[%s11392_s18 + $0xd60] ss:$8 sps:$4 sm:$0xff]   ;;  %v9939_v27 = vld [vmem:[%s11392_s18 + $0x574] ss:$8 sps:$4 sm:$0xff]  }
 0x24b   : > { %8289 = vmatprep.subr.bf16.mxu0 %v9858_v28  ;;  %v9942_v28 = vld [vmem:[%s11392_s18 + $0xd74] ss:$8 sps:$4 sm:$0xff]  }
 0x24d   : > { %7962 = vmatpush1.bf16.msra.mxu1 %v9853_v29  ;;  %v9937_v29 = vld [vmem:[%s11392_s18 + $0x570] ss:$8 sps:$4 sm:$0xff]  }
 0x24e   : > { %8290 = vmatpush1.bf16.msra.mxu0 %v9856_v30  ;;  %7963 = vmatprep.subr.bf16.mxu1 %v9861_v31  ;;  %v9940_v30 = vld [vmem:[%s11392_s18 + $0xd70] ss:$8 sps:$4 sm:$0xff]   ;;  %v9945_v31 = vld [vmem:[%s11392_s18 + $0x584] ss:$8 sps:$4 sm:$0xff]  }
 0x24f   : > { %8291 = vmatprep.subr.bf16.mxu0 %v9864_v32  ;;  %v9948_v32 = vld [vmem:[%s11392_s18 + $0xd84] ss:$8 sps:$4 sm:$0xff]  }
 0x251   : > { %7964 = vmatpush1.bf16.msra.mxu1 %v9859_v33  ;;  %v9943_v33 = vld [vmem:[%s11392_s18 + $0x580] ss:$8 sps:$4 sm:$0xff]  }
 0x252   : > { %8292 = vmatpush1.bf16.msra.mxu0 %v9862_v34  ;;  %7965 = vmatprep.subr.bf16.mxu1 %v9867_v35  ;;  %v9946_v34 = vld [vmem:[%s11392_s18 + $0xd80] ss:$8 sps:$4 sm:$0xff]   ;;  %v9951_v35 = vld [vmem:[%s11392_s18 + $0x594] ss:$8 sps:$4 sm:$0xff]  }
 0x253   : > { %8293 = vmatprep.subr.bf16.mxu0 %v9870_v36  ;;  %v9954_v36 = vld [vmem:[%s11392_s18 + $0xd94] ss:$8 sps:$4 sm:$0xff]  }
 0x255   : > { %7966 = vmatpush1.bf16.msra.mxu1 %v9865_v18  ;;  %v9949_v18 = vld [vmem:[%s11392_s18 + $0x590] ss:$8 sps:$4 sm:$0xff]  }
 0x256   : > { %8294 = vmatpush1.bf16.msra.mxu0 %v9868_v38  ;;  %7967 = vmatprep.subr.bf16.mxu1 %v9873_v44  ;;  %v9952_v38 = vld [vmem:[%s11392_s18 + $0xd90] ss:$8 sps:$4 sm:$0xff]   ;;  %v9957_v44 = vld [vmem:[%s11392_s18 + $0x5a4] ss:$8 sps:$4 sm:$0xff]  }
 0x257   : > { %8295 = vmatprep.subr.bf16.mxu0 %v9876_v45  ;;  %v9960_v45 = vld [vmem:[%s11392_s18 + $0xda4] ss:$8 sps:$4 sm:$0xff]  }
 0x259   : > { %7968 = vmatpush1.bf16.msra.mxu1 %v9871_v26  ;;  %v9955_v26 = vld [vmem:[%s11392_s18 + $0x5a0] ss:$8 sps:$4 sm:$0xff]  }
 0x25a   : > { %8296 = vmatpush1.bf16.msra.mxu0 %v9874_v47  ;;  %7969 = vmatprep.subr.bf16.mxu1 %v9879_v37  ;;  %v9958_v47 = vld [vmem:[%s11392_s18 + $0xda0] ss:$8 sps:$4 sm:$0xff]   ;;  %v9963_v37 = vld [vmem:[%s11392_s18 + $0x5b4] ss:$8 sps:$4 sm:$0xff]  }
 0x25b   : > { %8297 = vmatprep.subr.bf16.mxu0 %v9882_v48  ;;  %v9966_v48 = vld [vmem:[%s11392_s18 + $0xdb4] ss:$8 sps:$4 sm:$0xff]  }
 0x25d   : > { %7970 = vmatpush1.bf16.msra.mxu1 %v9877_v17  ;;  %v9961_v17 = vld [vmem:[%s11392_s18 + $0x5b0] ss:$8 sps:$4 sm:$0xff]  }
 0x25e   : > { %8298 = vmatpush1.bf16.msra.mxu0 %v9880_v49  ;;  %7971 = vmatprep.subr.bf16.mxu1 %v9885_v51  ;;  %v9964_v49 = vld [vmem:[%s11392_s18 + $0xdb0] ss:$8 sps:$4 sm:$0xff]   ;;  %v9969_v51 = vld [vmem:[%s11392_s18 + $0x5c4] ss:$8 sps:$4 sm:$0xff]  }
 0x25f   : > { %8299 = vmatprep.subr.bf16.mxu0 %v9888_v52  ;;  %v9972_v52 = vld [vmem:[%s11392_s18 + $0xdc4] ss:$8 sps:$4 sm:$0xff]  }
 0x261   : > { %7972 = vmatpush1.bf16.msra.mxu1 %v9883_v54  ;;  %v9967_v54 = vld [vmem:[%s11392_s18 + $0x5c0] ss:$8 sps:$4 sm:$0xff]  }
 0x262   : > { %8300 = vmatpush1.bf16.msra.mxu0 %v9886_v55  ;;  %7973 = vmatprep.subr.bf16.mxu1 %v9891_v56  ;;  %v9970_v55 = vld [vmem:[%s11392_s18 + $0xdc0] ss:$8 sps:$4 sm:$0xff]   ;;  %v9975_v56 = vld [vmem:[%s11392_s18 + $0x5d4] ss:$8 sps:$4 sm:$0xff]  }
 0x263   : > { %8301 = vmatprep.subr.bf16.mxu0 %v9894_v58  ;;  %v9978_v58 = vld [vmem:[%s11392_s18 + $0xdd4] ss:$8 sps:$4 sm:$0xff]  }
 0x265   : > { %7974 = vmatpush1.bf16.msra.mxu1 %v9889_v39  ;;  %v9973_v39 = vld [vmem:[%s11392_s18 + $0x5d0] ss:$8 sps:$4 sm:$0xff]  }
 0x266   : > { %8302 = vmatpush1.bf16.msra.mxu0 %v9892_v40  ;;  %7984 = vmatprep.subr.bf16.mxu1 %v9897_v61  ;;  %v9976_v40 = vld [vmem:[%s11392_s18 + $0xdd0] ss:$8 sps:$4 sm:$0xff]   ;;  %v9981_v61 = vld [vmem:[%s11392_s18 + $0x5e4] ss:$8 sps:$4 sm:$0xff]  }
 0x267   : > { %8312 = vmatprep.subr.bf16.mxu0 %v9900_v62  ;;  %v9984_v62 = vld [vmem:[%s11392_s18 + $0xde4] ss:$8 sps:$4 sm:$0xff]  }
 0x268   : > { %7976 = vmatmul.mubr.bf16.vlgmr.msra.gmra.mrb[0].mxu1 %v11822_v63 }
 0x269   : > { %8304 = vmatmul.mubr.bf16.vlgmr.msra.gmra.mrb[0].mxu0 %v11826_v0  ;;  %7985 = vmatpush1.bf16.msra.mxu1 %v9895_v1  ;;  %v5040_v1 = vcombine.high %v11719_v41, %v11719_v41  ;;  %v9985_v41 = vld [vmem:[%s11392_s18 + $0x5f0] ss:$8 sps:$4 sm:$0xff]  }
 0x26a   : > { %8313 = vmatpush1.bf16.msra.mxu0 %v9898_v2  ;;  %7986 = vmatprep.subr.bf16.mxu1 %v9903_v3  ;;  %v5138_v2 = vcombine.high %v11724_v42, %v11724_v42  ;;  %v9979_v3 = vld [vmem:[%s11392_s18 + $0x5e0] ss:$8 sps:$4 sm:$0xff]   ;;  %v9988_v42 = vld [vmem:[%s11392_s18 + $0xdf0] ss:$8 sps:$4 sm:$0xff]  }
 0x26b   : > { %8314 = vmatprep.subr.bf16.mxu0 %v9906_v4  ;;  %8016 = vmatprep.mubr.bf16.mxu1 %v5087_v25  ;;  %v9982_v4 = vld [vmem:[%s11392_s18 + $0xde0] ss:$8 sps:$4 sm:$0xff]   ;;  %v9987_v25 = vld [vmem:[%s11392_s18 + $0x5f4] ss:$8 sps:$4 sm:$0xff]  }
 0x26c   : > { %8344 = vmatprep.mubr.bf16.mxu0 %v5185_v5  ;;  %v9990_v5 = vld [vmem:[%s11392_s18 + $0xdf4] ss:$8 sps:$4 sm:$0xff]  }
 0x26d   : > { %7987 = vmatpush1.bf16.msra.mxu1 %v9901_v46  ;;  %v11899_v46 = vrot.slane %v5040_v1, %v11442_v50  ;;  %v10057_v1 = vld [vmem:[%s11392_s18 + $0x6b0] ss:$8 sps:$4 sm:$0xff]  }
 0x26e   : > { %8315 = vmatpush1.bf16.msra.mxu0 %v9904_v6  ;;  %7988 = vmatprep.subr.bf16.mxu1 %v9909_v59  ;;  %v11902_v6 = vrot.slane %v5138_v2, %v11442_v50  ;;  %v9993_v59 = vld [vmem:[%s11392_s18 + $0x604] ss:$8 sps:$4 sm:$0xff]   ;;  %v10060_v2 = vld [vmem:[%s11392_s18 + $0xeb0] ss:$8 sps:$4 sm:$0xff]  }
 0x26f   : > { %8316 = vmatprep.subr.bf16.mxu0 %v9912_v7  ;;  %v9996_v7 = vld [vmem:[%s11392_s18 + $0xe04] ss:$8 sps:$4 sm:$0xff]  }
 0x271   : > { %7989 = vmatpush1.bf16.msra.mxu1 %v9907_v60  ;;  %v5056_v60 = vcombine.high %v11899_v46, %v11899_v46 }
 0x272   : > { %8317 = vmatpush1.bf16.msra.mxu0 %v9910_v8  ;;  %7990 = vmatprep.subr.bf16.mxu1 %v9915_v9  ;;  %v5154_v8 = vcombine.high %v11902_v6, %v11902_v6  ;;  %v5085_v9 = vcombine.high %v11822_v63, %v11822_v63 }
 0x273   : > { %8318 = vmatprep.subr.bf16.mxu0 %v9918_v10  ;;  %v5183_v10 = vcombine.high %v11826_v0, %v11826_v0  ;;  %v9997_v0 = vld [vmem:[%s11392_s18 + $0x610] ss:$8 sps:$4 sm:$0xff]  }
 0x274   : > { %v11924_v63 = vrot.slane %v5154_v8, %v11442_v50  ;;  %v10080_v8 = vld [vmem:[%s11392_s18 + $0xee4] ss:$8 sps:$4 sm:$0xff]  }
 0x275   : > { %7991 = vmatpush1.bf16.msra.mxu1 %v9913_v11  ;;  %v9991_v11 = vld [vmem:[%s11392_s18 + $0x600] ss:$8 sps:$4 sm:$0xff]  }
 0x276   : > { %8319 = vmatpush1.bf16.msra.mxu0 %v9916_v12  ;;  %7992 = vmatprep.subr.bf16.mxu1 %v9921_v13  ;;  %v9994_v12 = vld [vmem:[%s11392_s18 + $0xe00] ss:$8 sps:$4 sm:$0xff]   ;;  %v9999_v13 = vld [vmem:[%s11392_s18 + $0x614] ss:$8 sps:$4 sm:$0xff]  }
 0x277   : > { %8320 = vmatprep.subr.bf16.mxu0 %v9924_v14  ;;  %v10002_v14 = vld [vmem:[%s11392_s18 + $0xe14] ss:$8 sps:$4 sm:$0xff]  }
 0x279   : > { %7993 = vmatpush1.bf16.msra.mxu1 %v9919_v15  ;;  %v11921_v15 = vrot.slane %v5056_v60, %v11442_v50  ;;  %v10077_v60 = vld [vmem:[%s11392_s18 + $0x6e4] ss:$8 sps:$4 sm:$0xff]  }
 0x27a   : > { %8321 = vmatpush1.bf16.msra.mxu0 %v9922_v16  ;;  %7994 = vmatprep.subr.bf16.mxu1 %v9927_v19  ;;  %v10000_v16 = vld [vmem:[%s11392_s18 + $0xe10] ss:$8 sps:$4 sm:$0xff]   ;;  %v10005_v19 = vld [vmem:[%s11392_s18 + $0x624] ss:$8 sps:$4 sm:$0xff]  }
 0x27b   : > { %8322 = vmatprep.subr.bf16.mxu0 %v9930_v20  ;;  %v10008_v20 = vld [vmem:[%s11392_s18 + $0xe24] ss:$8 sps:$4 sm:$0xff]  }
 0x27d   : > { %7995 = vmatpush1.bf16.msra.mxu1 %v9925_v21  ;;  %v10003_v21 = vld [vmem:[%s11392_s18 + $0x620] ss:$8 sps:$4 sm:$0xff]  }
 0x27e   : > { %8323 = vmatpush1.bf16.msra.mxu0 %v9928_v22  ;;  %7996 = vmatprep.subr.bf16.mxu1 %v9933_v23  ;;  %v10006_v22 = vld [vmem:[%s11392_s18 + $0xe20] ss:$8 sps:$4 sm:$0xff]   ;;  %v10011_v23 = vld [vmem:[%s11392_s18 + $0x634] ss:$8 sps:$4 sm:$0xff]  }
 0x27f   : > { %8324 = vmatprep.subr.bf16.mxu0 %v9936_v24  ;;  %v10014_v24 = vld [vmem:[%s11392_s18 + $0xe34] ss:$8 sps:$4 sm:$0xff]  }
 0x281   : > { %7997 = vmatpush1.bf16.msra.mxu1 %v9931_v53  ;;  %v10009_v53 = vld [vmem:[%s11392_s18 + $0x630] ss:$8 sps:$4 sm:$0xff]  }
 0x282   : > { %8325 = vmatpush1.bf16.msra.mxu0 %v9934_v57  ;;  %7998 = vmatprep.subr.bf16.mxu1 %v9939_v27  ;;  %v10012_v57 = vld [vmem:[%s11392_s18 + $0xe30] ss:$8 sps:$4 sm:$0xff]   ;;  %v10017_v27 = vld [vmem:[%s11392_s18 + $0x644] ss:$8 sps:$4 sm:$0xff]  }
 0x283   : > { %8326 = vmatprep.subr.bf16.mxu0 %v9942_v28  ;;  %v10020_v28 = vld [vmem:[%s11392_s18 + $0xe44] ss:$8 sps:$4 sm:$0xff]  }
 0x285   : > { %7999 = vmatpush1.bf16.msra.mxu1 %v9937_v29  ;;  %v10015_v29 = vld [vmem:[%s11392_s18 + $0x640] ss:$8 sps:$4 sm:$0xff]  }
 0x286   : > { %8327 = vmatpush1.bf16.msra.mxu0 %v9940_v30  ;;  %8000 = vmatprep.subr.bf16.mxu1 %v9945_v31  ;;  %v10018_v30 = vld [vmem:[%s11392_s18 + $0xe40] ss:$8 sps:$4 sm:$0xff]   ;;  %v10023_v31 = vld [vmem:[%s11392_s18 + $0x654] ss:$8 sps:$4 sm:$0xff]  }
 0x287   : > { %8328 = vmatprep.subr.bf16.mxu0 %v9948_v32  ;;  %v10026_v32 = vld [vmem:[%s11392_s18 + $0xe54] ss:$8 sps:$4 sm:$0xff]  }
 0x289   : > { %8001 = vmatpush1.bf16.msra.mxu1 %v9943_v33  ;;  %v10021_v33 = vld [vmem:[%s11392_s18 + $0x650] ss:$8 sps:$4 sm:$0xff]  }
 0x28a   : > { %8329 = vmatpush1.bf16.msra.mxu0 %v9946_v34  ;;  %8002 = vmatprep.subr.bf16.mxu1 %v9951_v35  ;;  %v10024_v34 = vld [vmem:[%s11392_s18 + $0xe50] ss:$8 sps:$4 sm:$0xff]   ;;  %v10029_v35 = vld [vmem:[%s11392_s18 + $0x664] ss:$8 sps:$4 sm:$0xff]  }
 0x28b   : > { %8330 = vmatprep.subr.bf16.mxu0 %v9954_v36  ;;  %v10032_v36 = vld [vmem:[%s11392_s18 + $0xe64] ss:$8 sps:$4 sm:$0xff]  }
 0x28d   : > { %8003 = vmatpush1.bf16.msra.mxu1 %v9949_v18  ;;  %v10027_v18 = vld [vmem:[%s11392_s18 + $0x660] ss:$8 sps:$4 sm:$0xff]  }
 0x28e   : > { %8331 = vmatpush1.bf16.msra.mxu0 %v9952_v38  ;;  %8004 = vmatprep.subr.bf16.mxu1 %v9957_v44  ;;  %v10030_v38 = vld [vmem:[%s11392_s18 + $0xe60] ss:$8 sps:$4 sm:$0xff]   ;;  %v10035_v44 = vld [vmem:[%s11392_s18 + $0x674] ss:$8 sps:$4 sm:$0xff]  }
 0x28f   : > { %8332 = vmatprep.subr.bf16.mxu0 %v9960_v45  ;;  %v10038_v45 = vld [vmem:[%s11392_s18 + $0xe74] ss:$8 sps:$4 sm:$0xff]  }
 0x291   : > { %8005 = vmatpush1.bf16.msra.mxu1 %v9955_v26  ;;  %v10033_v26 = vld [vmem:[%s11392_s18 + $0x670] ss:$8 sps:$4 sm:$0xff]  }
 0x292   : > { %8333 = vmatpush1.bf16.msra.mxu0 %v9958_v47  ;;  %8006 = vmatprep.subr.bf16.mxu1 %v9963_v37  ;;  %v10036_v47 = vld [vmem:[%s11392_s18 + $0xe70] ss:$8 sps:$4 sm:$0xff]   ;;  %v10041_v37 = vld [vmem:[%s11392_s18 + $0x684] ss:$8 sps:$4 sm:$0xff]  }
 0x293   : > { %8334 = vmatprep.subr.bf16.mxu0 %v9966_v48  ;;  %v10044_v48 = vld [vmem:[%s11392_s18 + $0xe84] ss:$8 sps:$4 sm:$0xff]  }
 0x295   : > { %8007 = vmatpush1.bf16.msra.mxu1 %v9961_v17  ;;  %v10039_v17 = vld [vmem:[%s11392_s18 + $0x680] ss:$8 sps:$4 sm:$0xff]  }
 0x296   : > { %8335 = vmatpush1.bf16.msra.mxu0 %v9964_v49  ;;  %8008 = vmatprep.subr.bf16.mxu1 %v9969_v51  ;;  %v10042_v49 = vld [vmem:[%s11392_s18 + $0xe80] ss:$8 sps:$4 sm:$0xff]   ;;  %v10047_v51 = vld [vmem:[%s11392_s18 + $0x694] ss:$8 sps:$4 sm:$0xff]  }
 0x297   : > { %8336 = vmatprep.subr.bf16.mxu0 %v9972_v52  ;;  %v10050_v52 = vld [vmem:[%s11392_s18 + $0xe94] ss:$8 sps:$4 sm:$0xff]  }
 0x299   : > { %8009 = vmatpush1.bf16.msra.mxu1 %v9967_v54  ;;  %v10045_v54 = vld [vmem:[%s11392_s18 + $0x690] ss:$8 sps:$4 sm:$0xff]  }
 0x29a   : > { %8337 = vmatpush1.bf16.msra.mxu0 %v9970_v55  ;;  %8010 = vmatprep.subr.bf16.mxu1 %v9975_v56  ;;  %v10048_v55 = vld [vmem:[%s11392_s18 + $0xe90] ss:$8 sps:$4 sm:$0xff]   ;;  %v10053_v56 = vld [vmem:[%s11392_s18 + $0x6a4] ss:$8 sps:$4 sm:$0xff]  }
 0x29b   : > { %8338 = vmatprep.subr.bf16.mxu0 %v9978_v58  ;;  %v10056_v58 = vld [vmem:[%s11392_s18 + $0xea4] ss:$8 sps:$4 sm:$0xff]  }
 0x29d   : > { %8011 = vmatpush1.bf16.msra.mxu1 %v9973_v39  ;;  %v10051_v39 = vld [vmem:[%s11392_s18 + $0x6a0] ss:$8 sps:$4 sm:$0xff]  }
 0x29e   : > { %8339 = vmatpush1.bf16.msra.mxu0 %v9976_v40  ;;  %8012 = vmatprep.subr.bf16.mxu1 %v9981_v61  ;;  %v10054_v40 = vld [vmem:[%s11392_s18 + $0xea0] ss:$8 sps:$4 sm:$0xff]   ;;  %v10059_v61 = vld [vmem:[%s11392_s18 + $0x6b4] ss:$8 sps:$4 sm:$0xff]  }
 0x29f   : > { %8340 = vmatprep.subr.bf16.mxu0 %v9984_v62  ;;  %v10062_v62 = vld [vmem:[%s11392_s18 + $0xeb4] ss:$8 sps:$4 sm:$0xff]  }
 0x2a1   : > { %8013 = vmatpush1.bf16.msra.mxu1 %v9979_v3  ;;  %v10065_v3 = vld [vmem:[%s11392_s18 + $0x6c4] ss:$8 sps:$4 sm:$0xff]  }
 0x2a2   : > { %8341 = vmatpush1.bf16.msra.mxu0 %v9982_v4  ;;  %8014 = vmatprep.subr.bf16.mxu1 %v9987_v25  ;;  %v10068_v4 = vld [vmem:[%s11392_s18 + $0xec4] ss:$8 sps:$4 sm:$0xff]   ;;  %v10063_v25 = vld [vmem:[%s11392_s18 + $0x6c0] ss:$8 sps:$4 sm:$0xff]  }
 0x2a3   : > { %8342 = vmatprep.subr.bf16.mxu0 %v9990_v5  ;;  %v10066_v5 = vld [vmem:[%s11392_s18 + $0xec0] ss:$8 sps:$4 sm:$0xff]  }
 0x2a5   : > { %8015 = vmatpush1.bf16.msra.mxu1 %v9985_v41  ;;  %v10071_v41 = vld [vmem:[%s11392_s18 + $0x6d4] ss:$8 sps:$4 sm:$0xff]  }
 0x2a6   : > { %8343 = vmatpush1.bf16.msra.mxu0 %v9988_v42  ;;  %8025 = vmatprep.subr.bf16.mxu1 %v9993_v59  ;;  %v10074_v42 = vld [vmem:[%s11392_s18 + $0xed4] ss:$8 sps:$4 sm:$0xff]   ;;  %v10069_v59 = vld [vmem:[%s11392_s18 + $0x6d0] ss:$8 sps:$4 sm:$0xff]  }
 0x2a7   : > { %8353 = vmatprep.subr.bf16.mxu0 %v9996_v7  ;;  %v10072_v7 = vld [vmem:[%s11392_s18 + $0xed0] ss:$8 sps:$4 sm:$0xff]  }
 0x2a8   : > { %8017 = vmatmul.mubr.bf16.vlgmr.msra.gmra.mrb[0].mxu1 %v5085_v9  ;;  %v10075_v9 = vld [vmem:[%s11392_s18 + $0x6e0] ss:$8 sps:$4 sm:$0xff]  }
 0x2a9   : > { %8345 = vmatmul.mubr.bf16.vlgmr.msra.gmra.mrb[0].mxu0 %v5183_v10  ;;  %8026 = vmatpush1.bf16.msra.mxu1 %v9991_v11  ;;  %v10078_v10 = vld [vmem:[%s11392_s18 + $0xee0] ss:$8 sps:$4 sm:$0xff]   ;;  %v10083_v11 = vld [vmem:[%s11392_s18 + $0x6f4] ss:$8 sps:$4 sm:$0xff]  }
 0x2aa   : > { %8354 = vmatpush1.bf16.msra.mxu0 %v9994_v12  ;;  %8027 = vmatprep.subr.bf16.mxu1 %v9999_v13  ;;  %v10086_v12 = vld [vmem:[%s11392_s18 + $0xef4] ss:$8 sps:$4 sm:$0xff]   ;;  %v10081_v13 = vld [vmem:[%s11392_s18 + $0x6f0] ss:$8 sps:$4 sm:$0xff]  }
 0x2ab   : > { %8355 = vmatprep.subr.bf16.mxu0 %v10002_v14  ;;  %8057 = vmatprep.mubr.bf16.mxu1 %v11921_v15  ;;  %v10084_v14 = vld [vmem:[%s11392_s18 + $0xef0] ss:$8 sps:$4 sm:$0xff]  }
 0x2ac   : > { %8385 = vmatprep.mubr.bf16.mxu0 %v11924_v63 }
 0x2ad   : > { %8028 = vmatpush1.bf16.msra.mxu1 %v9997_v0  ;;  %v10090_v0 = vld [vmem:[%s11392_s18 + $0x704] ss:$8 sps:$4 sm:$0xff]  }
 0x2ae   : > { %8356 = vmatpush1.bf16.msra.mxu0 %v10000_v16  ;;  %8029 = vmatprep.subr.bf16.mxu1 %v10005_v19  ;;  %v10094_v16 = vld [vmem:[%s11392_s18 + $0xf04] ss:$8 sps:$4 sm:$0xff]   ;;  %v11990_v19 = vrot.slane %v11899_v46, %v11442_v50  ;;  %v5088_v46 = vcombine.high %v11921_v15, %v11921_v15 }
 0x2af   : > { %8357 = vmatprep.subr.bf16.mxu0 %v10008_v20  ;;  %v11994_v20 = vrot.slane %v11902_v6, %v11442_v50  ;;  %v10095_v50 = vld [vmem:[%s11392_s18 + $0x710] ss:$8 sps:$4 sm:$0xff]   ;;  %v10103_v15 = vld [vmem:[%s11392_s18 + $0x724] ss:$8 sps:$4 sm:$0xff]  }
 0x2b0   : > { %v10098_v6 = vld [vmem:[%s11392_s18 + $0xf10] ss:$8 sps:$4 sm:$0xff]  }
 0x2b1   : > { %8030 = vmatpush1.bf16.msra.mxu1 %v10003_v21  ;;  %v10088_v21 = vld [vmem:[%s11392_s18 + $0x700] ss:$8 sps:$4 sm:$0xff]  }
 0x2b2   : > { %8358 = vmatpush1.bf16.msra.mxu0 %v10006_v22  ;;  %8031 = vmatprep.subr.bf16.mxu1 %v10011_v23  ;;  %v10092_v22 = vld [vmem:[%s11392_s18 + $0xf00] ss:$8 sps:$4 sm:$0xff]   ;;  %v10097_v23 = vld [vmem:[%s11392_s18 + $0x714] ss:$8 sps:$4 sm:$0xff]  }
 0x2b3   : > { %8359 = vmatprep.subr.bf16.mxu0 %v10014_v24  ;;  %v10100_v24 = vld [vmem:[%s11392_s18 + $0xf14] ss:$8 sps:$4 sm:$0xff]  }
 0x2b5   : > { %8032 = vmatpush1.bf16.msra.mxu1 %v10009_v53  ;;  %v5186_v53 = vcombine.high %v11924_v63, %v11924_v63  ;;  %v10101_v63 = vld [vmem:[%s11392_s18 + $0x720] ss:$8 sps:$4 sm:$0xff]  }
 0x2b6   : > { %8360 = vmatpush1.bf16.msra.mxu0 %v10012_v57  ;;  %8033 = vmatprep.subr.bf16.mxu1 %v10017_v27  ;;  %v10106_v57 = vld [vmem:[%s11392_s18 + $0xf24] ss:$8 sps:$4 sm:$0xff]   ;;  %v10104_v27 = vld [vmem:[%s11392_s18 + $0xf20] ss:$8 sps:$4 sm:$0xff]  }
 0x2b7   : > { %8361 = vmatprep.subr.bf16.mxu0 %v10020_v28  ;;  %v10109_v28 = vld [vmem:[%s11392_s18 + $0x734] ss:$8 sps:$4 sm:$0xff]  }
 0x2b9   : > { %8034 = vmatpush1.bf16.msra.mxu1 %v10015_v29  ;;  %v10112_v29 = vld [vmem:[%s11392_s18 + $0xf34] ss:$8 sps:$4 sm:$0xff]  }
 0x2ba   : > { %8362 = vmatpush1.bf16.msra.mxu0 %v10018_v30  ;;  %8035 = vmatprep.subr.bf16.mxu1 %v10023_v31  ;;  %v10107_v30 = vld [vmem:[%s11392_s18 + $0x730] ss:$8 sps:$4 sm:$0xff]  }
 0x2bb   : > { %8363 = vmatprep.subr.bf16.mxu0 %v10026_v32  ;;  %v10110_v31 = vld [vmem:[%s11392_s18 + $0xf30] ss:$8 sps:$4 sm:$0xff]   ;;  %v10115_v32 = vld [vmem:[%s11392_s18 + $0x744] ss:$8 sps:$4 sm:$0xff]  }
 0x2bd   : > { %8036 = vmatpush1.bf16.msra.mxu1 %v10021_v33  ;;  %v10118_v33 = vld [vmem:[%s11392_s18 + $0xf44] ss:$8 sps:$4 sm:$0xff]  }
 0x2be   : > { %8364 = vmatpush1.bf16.msra.mxu0 %v10024_v34  ;;  %8037 = vmatprep.subr.bf16.mxu1 %v10029_v35  ;;  %v10113_v34 = vld [vmem:[%s11392_s18 + $0x740] ss:$8 sps:$4 sm:$0xff]  }
 0x2bf   : > { %8365 = vmatprep.subr.bf16.mxu0 %v10032_v36  ;;  %v10116_v35 = vld [vmem:[%s11392_s18 + $0xf40] ss:$8 sps:$4 sm:$0xff]   ;;  %v10121_v36 = vld [vmem:[%s11392_s18 + $0x754] ss:$8 sps:$4 sm:$0xff]  }
 0x2c1   : > { %8038 = vmatpush1.bf16.msra.mxu1 %v10027_v18  ;;  %v10124_v18 = vld [vmem:[%s11392_s18 + $0xf54] ss:$8 sps:$4 sm:$0xff]  }
 0x2c2   : > { %8366 = vmatpush1.bf16.msra.mxu0 %v10030_v38  ;;  %8039 = vmatprep.subr.bf16.mxu1 %v10035_v44  ;;  %v10119_v38 = vld [vmem:[%s11392_s18 + $0x750] ss:$8 sps:$4 sm:$0xff]  }
 0x2c3   : > { %8367 = vmatprep.subr.bf16.mxu0 %v10038_v45  ;;  %v10122_v44 = vld [vmem:[%s11392_s18 + $0xf50] ss:$8 sps:$4 sm:$0xff]   ;;  %v10127_v45 = vld [vmem:[%s11392_s18 + $0x764] ss:$8 sps:$4 sm:$0xff]  }
 0x2c5   : > { %8040 = vmatpush1.bf16.msra.mxu1 %v10033_v26  ;;  %v10130_v26 = vld [vmem:[%s11392_s18 + $0xf64] ss:$8 sps:$4 sm:$0xff]  }
 0x2c6   : > { %8368 = vmatpush1.bf16.msra.mxu0 %v10036_v47  ;;  %8041 = vmatprep.subr.bf16.mxu1 %v10041_v37  ;;  %v10125_v47 = vld [vmem:[%s11392_s18 + $0x760] ss:$8 sps:$4 sm:$0xff]  }
 0x2c7   : > { %8369 = vmatprep.subr.bf16.mxu0 %v10044_v48  ;;  %v10128_v37 = vld [vmem:[%s11392_s18 + $0xf60] ss:$8 sps:$4 sm:$0xff]   ;;  %v10133_v48 = vld [vmem:[%s11392_s18 + $0x774] ss:$8 sps:$4 sm:$0xff]  }
 0x2c9   : > { %8042 = vmatpush1.bf16.msra.mxu1 %v10039_v17  ;;  %v10136_v17 = vld [vmem:[%s11392_s18 + $0xf74] ss:$8 sps:$4 sm:$0xff]  }
 0x2ca   : > { %8370 = vmatpush1.bf16.msra.mxu0 %v10042_v49  ;;  %8043 = vmatprep.subr.bf16.mxu1 %v10047_v51  ;;  %v10131_v49 = vld [vmem:[%s11392_s18 + $0x770] ss:$8 sps:$4 sm:$0xff]  }
 0x2cb   : > { %8371 = vmatprep.subr.bf16.mxu0 %v10050_v52  ;;  %v10134_v51 = vld [vmem:[%s11392_s18 + $0xf70] ss:$8 sps:$4 sm:$0xff]   ;;  %v10139_v52 = vld [vmem:[%s11392_s18 + $0x784] ss:$8 sps:$4 sm:$0xff]  }
 0x2cd   : > { %8044 = vmatpush1.bf16.msra.mxu1 %v10045_v54  ;;  %v10142_v54 = vld [vmem:[%s11392_s18 + $0xf84] ss:$8 sps:$4 sm:$0xff]  }
 0x2ce   : > { %8372 = vmatpush1.bf16.msra.mxu0 %v10048_v55  ;;  %8045 = vmatprep.subr.bf16.mxu1 %v10053_v56  ;;  %v10137_v55 = vld [vmem:[%s11392_s18 + $0x780] ss:$8 sps:$4 sm:$0xff]  }
 0x2cf   : > { %8373 = vmatprep.subr.bf16.mxu0 %v10056_v58  ;;  %v10140_v56 = vld [vmem:[%s11392_s18 + $0xf80] ss:$8 sps:$4 sm:$0xff]   ;;  %v10145_v58 = vld [vmem:[%s11392_s18 + $0x794] ss:$8 sps:$4 sm:$0xff]  }
 0x2d1   : > { %8046 = vmatpush1.bf16.msra.mxu1 %v10051_v39  ;;  %v10148_v39 = vld [vmem:[%s11392_s18 + $0xf94] ss:$8 sps:$4 sm:$0xff]  }
 0x2d2   : > { %8374 = vmatpush1.bf16.msra.mxu0 %v10054_v40  ;;  %8047 = vmatprep.subr.bf16.mxu1 %v10059_v61  ;;  %v10143_v40 = vld [vmem:[%s11392_s18 + $0x790] ss:$8 sps:$4 sm:$0xff]  }
 0x2d3   : > { %8375 = vmatprep.subr.bf16.mxu0 %v10062_v62  ;;  %v10146_v61 = vld [vmem:[%s11392_s18 + $0xf90] ss:$8 sps:$4 sm:$0xff]   ;;  %v10151_v62 = vld [vmem:[%s11392_s18 + $0x7a4] ss:$8 sps:$4 sm:$0xff]  }
 0x2d5   : > { %8048 = vmatpush1.bf16.msra.mxu1 %v10057_v1  ;;  %v10154_v1 = vld [vmem:[%s11392_s18 + $0xfa4] ss:$8 sps:$4 sm:$0xff]  }
 0x2d6   : > { %8376 = vmatpush1.bf16.msra.mxu0 %v10060_v2  ;;  %8049 = vmatprep.subr.bf16.mxu1 %v10065_v3  ;;  %v10149_v2 = vld [vmem:[%s11392_s18 + $0x7a0] ss:$8 sps:$4 sm:$0xff]  }
 0x2d7   : > { %8377 = vmatprep.subr.bf16.mxu0 %v10068_v4  ;;  %v10152_v3 = vld [vmem:[%s11392_s18 + $0xfa0] ss:$8 sps:$4 sm:$0xff]   ;;  %v10157_v4 = vld [vmem:[%s11392_s18 + $0x7b4] ss:$8 sps:$4 sm:$0xff]  }
 0x2d9   : > { %8050 = vmatpush1.bf16.msra.mxu1 %v10063_v25  ;;  %v10160_v25 = vld [vmem:[%s11392_s18 + $0xfb4] ss:$8 sps:$4 sm:$0xff]  }
 0x2da   : > { %8378 = vmatpush1.bf16.msra.mxu0 %v10066_v5  ;;  %8051 = vmatprep.subr.bf16.mxu1 %v10071_v41  ;;  %v10155_v5 = vld [vmem:[%s11392_s18 + $0x7b0] ss:$8 sps:$4 sm:$0xff]  }
 0x2db   : > { %8379 = vmatprep.subr.bf16.mxu0 %v10074_v42  ;;  %v10158_v41 = vld [vmem:[%s11392_s18 + $0xfb0] ss:$8 sps:$4 sm:$0xff]   ;;  %v10163_v42 = vld [vmem:[%s11392_s18 + $0x7c4] ss:$8 sps:$4 sm:$0xff]  }
 0x2dd   : > { %8052 = vmatpush1.bf16.msra.mxu1 %v10069_v59  ;;  %v10166_v59 = vld [vmem:[%s11392_s18 + $0xfc4] ss:$8 sps:$4 sm:$0xff]  }
 0x2de   : > { %8380 = vmatpush1.bf16.msra.mxu0 %v10072_v7  ;;  %8053 = vmatprep.subr.bf16.mxu1 %v10077_v60  ;;  %v10161_v7 = vld [vmem:[%s11392_s18 + $0x7c0] ss:$8 sps:$4 sm:$0xff]  }
 0x2df   : > { %8381 = vmatprep.subr.bf16.mxu0 %v10080_v8  ;;  %v10164_v60 = vld [vmem:[%s11392_s18 + $0xfc0] ss:$8 sps:$4 sm:$0xff]   ;;  %v10169_v8 = vld [vmem:[%s11392_s18 + $0x7d4] ss:$8 sps:$4 sm:$0xff]  }
 0x2e1   : > { %8054 = vmatpush1.bf16.msra.mxu1 %v10075_v9  ;;  %v10172_v9 = vld [vmem:[%s11392_s18 + $0xfd4] ss:$8 sps:$4 sm:$0xff]  }
 0x2e2   : > { %8382 = vmatpush1.bf16.msra.mxu0 %v10078_v10  ;;  %8055 = vmatprep.subr.bf16.mxu1 %v10083_v11  ;;  %v10167_v10 = vld [vmem:[%s11392_s18 + $0x7d0] ss:$8 sps:$4 sm:$0xff]  }
 0x2e3   : > { %8383 = vmatprep.subr.bf16.mxu0 %v10086_v12  ;;  %v10170_v11 = vld [vmem:[%s11392_s18 + $0xfd0] ss:$8 sps:$4 sm:$0xff]   ;;  %v10175_v12 = vld [vmem:[%s11392_s18 + $0x7e4] ss:$8 sps:$4 sm:$0xff]  }
 0x2e5   : > { %8056 = vmatpush1.bf16.msra.mxu1 %v10081_v13  ;;  %v10178_v13 = vld [vmem:[%s11392_s18 + $0xfe4] ss:$8 sps:$4 sm:$0xff]  }
 0x2e6   : > { %8384 = vmatpush1.bf16.msra.mxu0 %v10084_v14  ;;  %8066 = vmatprep.subr.bf16.mxu1 %v10090_v0  ;;  %v10173_v14 = vld [vmem:[%s11392_s18 + $0x7e0] ss:$8 sps:$4 sm:$0xff]  }
 0x2e7   : > { %8394 = vmatprep.subr.bf16.mxu0 %v10094_v16  ;;  %v10176_v0 = vld [vmem:[%s11392_s18 + $0xfe0] ss:$8 sps:$4 sm:$0xff]   ;;  %v10181_v16 = vld [vmem:[%s11392_s18 + $0x7f4] ss:$8 sps:$4 sm:$0xff]  }
 0x2e8   : > { %8058 = vmatmul.mubr.bf16.vlgmr.msra.gmra.mrb[0].mxu1 %v11990_v19 }
 0x2e9   : > { %8386 = vmatmul.mubr.bf16.vlgmr.msra.gmra.mrb[0].mxu0 %v11994_v20  ;;  %8067 = vmatpush1.bf16.msra.mxu1 %v10088_v21  ;;  %v10184_v21 = vld [vmem:[%s11392_s18 + $0xff4] ss:$8 sps:$4 sm:$0xff]  }
 0x2ea   : > { %8395 = vmatpush1.bf16.msra.mxu0 %v10092_v22  ;;  %8068 = vmatprep.subr.bf16.mxu1 %v10097_v23  ;;  %v10179_v22 = vld [vmem:[%s11392_s18 + $0x7f0] ss:$8 sps:$4 sm:$0xff]  }
 0x2eb   : > { %8396 = vmatprep.subr.bf16.mxu0 %v10100_v24  ;;  %8098 = vmatprep.mubr.bf16.mxu1 %v5088_v46  ;;  %v10182_v23 = vld [vmem:[%s11392_s18 + $0xff0] ss:$8 sps:$4 sm:$0xff]   ;;  %v10185_v24 = vld [vmem:[%s11390_s28 + $0x40] sm:$0xff]   ;;  %v5086_v46 = vcombine.high %v11990_v19, %v11990_v19 }
 0x2ec   : > { %8426 = vmatprep.mubr.bf16.mxu0 %v5186_v53  ;;  %v5184_v53 = vcombine.high %v11994_v20, %v11994_v20  ;;  %v10189_v19 = vld [vmem:[%s11390_s28 + $0x50] sm:$0xff]   ;;  %v10191_v20 = vld [vmem:[%s11390_s28 + $0x58] sm:$0xff]  }
 0x2ed   : > { %8069 = vmatpush1.bf16.msra.mxu1 %v10095_v50  ;;  %v10186_v50 = vld [vmem:[%s11390_s28] sm:$0xff]  }
 0x2ee   : > { %8397 = vmatpush1.bf16.msra.mxu0 %v10098_v6  ;;  %8070 = vmatprep.subr.bf16.mxu1 %v10103_v15  ;;  %v10187_v6 = vld [vmem:[%s11390_s28 + $0x48] sm:$0xff]  }
 0x2ef   : > { %8398 = vmatprep.subr.bf16.mxu0 %v10106_v57  ;;  %v10188_v15 = vld [vmem:[%s11390_s28 + $0x8] sm:$0xff]   ;;  %v10190_v57 = vld [vmem:[%s11390_s28 + $0x10] sm:$0xff]  }
 0x2f1   : > { %8071 = vmatpush1.bf16.msra.mxu1 %v10101_v63  ;;  %v10192_v63 = vld [vmem:[%s11390_s28 + $0x18] sm:$0xff]  }
 0x2f2   : > { %8399 = vmatpush1.bf16.msra.mxu0 %v10104_v27  ;;  %8072 = vmatprep.subr.bf16.mxu1 %v10109_v28  ;;  %v10193_v27 = vld [vmem:[%s11390_s28 + $0x60] sm:$0xff]  }
 0x2f3   : > { %8400 = vmatprep.subr.bf16.mxu0 %v10112_v29  ;;  %v10194_v28 = vld [vmem:[%s11390_s28 + $0x20] sm:$0xff]   ;;  %v10195_v29 = vld [vmem:[%s11390_s28 + $0x68] sm:$0xff]  }
 0x2f5   : > { %8073 = vmatpush1.bf16.msra.mxu1 %v10107_v30  ;;  %v10196_v30 = vld [vmem:[%s11390_s28 + $0x28] sm:$0xff]  }
 0x2f6   : > { %8401 = vmatpush1.bf16.msra.mxu0 %v10110_v31  ;;  %8074 = vmatprep.subr.bf16.mxu1 %v10115_v32  ;;  %v10197_v31 = vld [vmem:[%s11390_s28 + $0x70] sm:$0xff]  }
 0x2f7   : > { %8402 = vmatprep.subr.bf16.mxu0 %v10118_v33  ;;  %v10198_v32 = vld [vmem:[%s11390_s28 + $0x30] sm:$0xff]   ;;  %v10199_v33 = vld [vmem:[%s11390_s28 + $0x78] sm:$0xff]  }
 0x2f9   : > { %8075 = vmatpush1.bf16.msra.mxu1 %v10113_v34  ;;  %v10200_v34 = vld [vmem:[%s11390_s28 + $0x38] sm:$0xff]  }
 0x2fa   : > { %8403 = vmatpush1.bf16.msra.mxu0 %v10116_v35  ;;  %8076 = vmatprep.subr.bf16.mxu1 %v10121_v36  ;;  %v4979_v35 = vsub.s32 0, %v11434_v43  ;;  %v4975_v36 = vld [vmem:[%s4445_s16] sm:$0x3] }
 0x2fb   : > { %8404 = vmatprep.subr.bf16.mxu0 %v10124_v18  ;;  %v4983_v18 = vsub.s32 1, %v11434_v43 }
 0x2fd   : > { %8077 = vmatpush1.bf16.msra.mxu1 %v10119_v38  ;;  %v4980_v38 = vrot.slane %v4975_v36, %v4979_v35 }
 0x2fe   : > { %8405 = vmatpush1.bf16.msra.mxu0 %v10122_v44  ;;  %8078 = vmatprep.subr.bf16.mxu1 %v10127_v45  ;;  %v4984_v44 = vrot.slane %v4975_v36, %v4983_v18 }
 0x2ff   : > { %8406 = vmatprep.subr.bf16.mxu0 %v10130_v26 }
 0x301   : > { %8079 = vmatpush1.bf16.msra.mxu1 %v10125_v47 }
 0x302   : > { %8407 = vmatpush1.bf16.msra.mxu0 %v10128_v37  ;;  %8080 = vmatprep.subr.bf16.mxu1 %v10133_v48 }
 0x303   : > { %8408 = vmatprep.subr.bf16.mxu0 %v10136_v17 }
 0x305   : > { %8081 = vmatpush1.bf16.msra.mxu1 %v10131_v49 }
 0x306   : > { %8409 = vmatpush1.bf16.msra.mxu0 %v10134_v51  ;;  %8082 = vmatprep.subr.bf16.mxu1 %v10139_v52 }
 0x307   : > { %8410 = vmatprep.subr.bf16.mxu0 %v10142_v54 }
 0x309   : > { %8083 = vmatpush1.bf16.msra.mxu1 %v10137_v55 }
 0x30a   : > { %8411 = vmatpush1.bf16.msra.mxu0 %v10140_v56  ;;  %8084 = vmatprep.subr.bf16.mxu1 %v10145_v58 }
 0x30b   : > { %8412 = vmatprep.subr.bf16.mxu0 %v10148_v39 }
 0x30d   : > { %8085 = vmatpush1.bf16.msra.mxu1 %v10143_v40 }
 0x30e   : > { %8413 = vmatpush1.bf16.msra.mxu0 %v10146_v61  ;;  %8086 = vmatprep.subr.bf16.mxu1 %v10151_v62  ;;  %v8437_v62 = vld [vmem:[#allocation2] sm:$0x3] }
 0x30f   : > { %8414 = vmatprep.subr.bf16.mxu0 %v10154_v1 }
 0x311   : > { %8087 = vmatpush1.bf16.msra.mxu1 %v10149_v2 }
 0x312   : > { %8415 = vmatpush1.bf16.msra.mxu0 %v10152_v3  ;;  %8088 = vmatprep.subr.bf16.mxu1 %v10157_v4 }
 0x313   : > { %8416 = vmatprep.subr.bf16.mxu0 %v10160_v25 }
 0x315   : > { %8089 = vmatpush1.bf16.msra.mxu1 %v10155_v5 }
 0x316   : > { %8417 = vmatpush1.bf16.msra.mxu0 %v10158_v41  ;;  %8090 = vmatprep.subr.bf16.mxu1 %v10163_v42  ;;  %v9276_v41 = vld [vmem:[%s12142_s4] ss:$0 sm:$0xff] (!%p9275_p12) }
 0x317   : > { %8418 = vmatprep.subr.bf16.mxu0 %v10166_v59 }
 0x319   : > { %8091 = vmatpush1.bf16.msra.mxu1 %v10161_v7 }
 0x31a   : > { %8419 = vmatpush1.bf16.msra.mxu0 %v10164_v60  ;;  %8092 = vmatprep.subr.bf16.mxu1 %v10169_v8 }
 0x31b   : > { %8420 = vmatprep.subr.bf16.mxu0 %v10172_v9 }
 0x31d   : > { %8093 = vmatpush1.bf16.msra.mxu1 %v10167_v10 }
 0x31e   : > { %8421 = vmatpush1.bf16.msra.mxu0 %v10170_v11  ;;  %8094 = vmatprep.subr.bf16.mxu1 %v10175_v12 }
 0x31f   : > { %8422 = vmatprep.subr.bf16.mxu0 %v10178_v13 }
 0x321   : > { %8095 = vmatpush1.bf16.msra.mxu1 %v10173_v14 }
 0x322   : > { %8423 = vmatpush1.bf16.msra.mxu0 %v10176_v0  ;;  %8096 = vmatprep.subr.bf16.mxu1 %v10181_v16 }
 0x323   : > { %8424 = vmatprep.subr.bf16.mxu0 %v10184_v21 }
 0x325   : > { %8097 = vmatpush1.bf16.msra.mxu1 %v10179_v22 }
 0x326   : > { %8425 = vmatpush1.bf16.msra.mxu0 %v10182_v23  ;;  %9282 = vmatprep.subr.bf16.mxu1 %v10185_v24 }
 0x328   : > { %8099 = vmatmul.mubr.bf16.vlgmr.msra.gmra.mrb[0].mxu1 %v5086_v46 }
 0x329   : > { %8427 = vmatmul.mubr.bf16.vlgmr.msra.gmra.mrb[0].mxu0 %v5184_v53  ;;  %9283 = vmatpush3.bf16.msra.mxu1 %v10186_v50 }
 0x32a   : > { %9284 = vmatprep.subr.bf16.mxu1 %v10187_v6 }
 0x32d   : > { %9285 = vmatpush3.bf16.msra.mxu1 %v10188_v15 }
 0x32e   : > { %9286 = vmatprep.subr.bf16.mxu1 %v10189_v19 }
 0x331   : > { %9287 = vmatpush3.bf16.msra.mxu1 %v10190_v57 }
 0x332   : > { %9288 = vmatprep.subr.bf16.mxu1 %v10191_v20 }
 0x335   : > { %9289 = vmatpush3.bf16.msra.mxu1 %v10192_v63 }
 0x336   : > { %9290 = vmatprep.subr.bf16.mxu1 %v10193_v27 }
 0x339   : > { %9291 = vmatpush3.bf16.msra.mxu1 %v10194_v28 }
 0x33a   : > { %9292 = vmatprep.subr.bf16.mxu1 %v10195_v29 }
 0x33d   : > { %9293 = vmatpush3.bf16.msra.mxu1 %v10196_v30 }
 0x33e   : > { %9294 = vmatprep.subr.bf16.mxu1 %v10197_v31 }
 0x341   : > { %9295 = vmatpush3.bf16.msra.mxu1 %v10198_v32 }
 0x342   : > { %9296 = vmatprep.subr.bf16.mxu1 %v10199_v33 }
 0x345   : > { %9297 = vmatpush3.bf16.msra.mxu1 %v10200_v34 }
 0x3fb   : > { %v8100_v45 = vpop.f32.mrb[0].mxu1 }
 0x3fc   : > { %v8428_v26 = vpop.f32.mrb[0].mxu0  ;;  %v9304_v47 = vadd.f32 %v8100_v45, %v4980_v38  ;;  %v8102_v37 = vpop.f32.mrb[1].mxu1 }
 0x3fd   : > { %v8430_v48 = vpop.f32.mrb[1].mxu0  ;;  %v9306_v17 = vadd.f32 %v8102_v37, %v4984_v44  ;;  %v8104_v49 = vpop.f32.mrb[2].mxu1 }
 0x3fe   : > { %v8432_v51 = vpop.f32.mrb[2].mxu0  ;;  %v9305_v52 = vadd.f32 %v9304_v47, %v8428_v26  ;;  %v8105_v54 = vpop.f32.mrb[3].mxu1 }
 0x3ff   : > { %v8433_v55 = vpop.f32.mrb[3].mxu0  ;;  %v9307_v56 = vadd.f32 %v9306_v17, %v8430_v48 }
 0x400   : > { %v8435_v58 = vmax.f32 %v9305_v52, 0.0 }
 0x401   : > { %v8436_v39 = vmax.f32 %v9307_v56, 0.0 }
 0x402   : > { %v8438_v61 = vpack.c.bf16 %v8435_v58, %v8435_v58 }
 0x403   : > { %v8439_v40 = vpack.c.bf16 %v8436_v39, %v8436_v39 }
 0x405   : > { %8600 = vmatprep.mubr.bf16.mxu1 %v8439_v40 }
 0x406   : > { %8601 = vmatmul.mubr.bf16.vlgmr.msra.gmra.mrb[4].mxu1 %v8438_v61 }
 0x4d9   : > { %v9298_v43 = vpop.f32.mrb[4].mxu1  ;;  %8613 = sbr.rel (%p9275_p12) target bundleno = 1258 (0x4ea), region = 100 }
 0x4da   : > { %v9299_v1 = vpop.f32.mrb[5].mxu1 }
 0x4db   : > { %v9300_v2 = vadd.f32 %v9299_v1, %v9298_v43  ;;  %v9301_v3 = vpop.f32.mrb[6].mxu1 }
 0x4dc   : > { %v9302_v4 = vpop.f32.mrb[7].mxu1 }
 0x4dd   : > { %v8608_v25 = vadd.f32 %v9300_v2, %v8437_v62 }
 0x4df   : > { %8609 = vst [vmem:[#allocation2] sm:$0x3] %v8608_v25 }
 0x4e6   : > { %v8614_v5 = vld [vmem:[#allocation2] sm:$0x3] }
 0x4e7   : > { %v8622_v42 = vadd.f32 %v9276_v41, %v8614_v5 }
 0x4e9   : > { %8623 = vst [vmem:[#allocation4] sm:$0x3] %v8622_v42 }
 0x4ea PF: > { %p12097_p13 = scmp.eq.s32.totalorder %s8734_s23, 1  ;;  %s10273_s17 = smov [#allocation4]  }
 0x4eb   : > { %s8633_s25 = sshll.u32 %s10273_s17, 4  ;;  %s8634_s25 = int_to_ptr.vmem [resolvable:$true] %s8633_s25 }
 0x4ec   : > { %s10201_s20 = scalar_lea.vmem %s8634_s25, 32  ;;  %p10208_p3 = scmp.lt.s32.totalorder %s8634_s25, %s8634_s25 }
 0x4ed   : > { %p10202_p0 = scmp.ne.s32.totalorder %s8634_s25, %s10201_s20  ;;  %p10209_p4 = scmp.lt.s32.totalorder %s10201_s20, %s10201_s20 }
 0x4ef   : > { %p10203_p1 = pnand %p10202_p0, %p12097_p13  ;;  %p10210_p5 = por %p10209_p4, %p10208_p3 }
 0x4f1   : > { %p10204_p2 = pneg %p10203_p1 }
 0x4f3   : > { %p10211_p6 = pnand %p10210_p5, %p10204_p2 }
 0x4f5   : > { %10214 = shalt.err (!%p10211_p6)
}
 0x4f6   : > { %s10215_s23 = scalar_lea.hbm %s12143_s5, 32 }
 0x4f7   : > { %p10216_p7 = scmp.ne.s32.totalorder %s12143_s5, %s10215_s23  ;;  %p10221_p10 = scmp.lt.u32.totalorder %s10215_s23, %s12143_s5 }
 0x4f9   : > { %p10217_p8 = pnand %p10216_p7, %p12097_p13 }
 0x4fb   : > { %p10218_p9 = pneg %p10217_p8 }
 0x4fd   : > { %p10223_p11 = pnand %p10221_p10, %p10218_p9 }
 0x4ff   : > { %10226 = shalt.err (!%p10223_p11)
}
 0x500   : > { %9365 = dma.vmem_to_hbm [thread:$0]  (%p12097_p13), %s8634_s25, 32, %s12143_s5, [#allocation5]  }
 0x501   : > { %10248 = dma.done.wait (%p12097_p13), [#allocation5], 32  }
 0x502   : > { %10250 = vsyncadd (%p12097_p13), [#allocation5], 4294967264 }
 0x503 PF: > { %s16_s22 = sadd.s32 1, %s10269_s22   ;;  %s12145_s18 = smov %s10257_s19 }
 0x504   : > { %p13_p12 = scmp.ge.s32.totalorder %s16_s22, 4   ;;  %s12146_s19 = smov %s10340_s27 }
 0x505   : > { %s12147_s20 = smov %s10265_s21  ;;  %s12148_s21 = smov %s12150_s24 }
 0x506   :  { %15 = sbr.rel (!%p13_p12) target bundleno = 3 (0x3), region = 148 }
 0x50d   :  { %8646 = vsyncpa [#allocation5], 1 }
 0x50e   :  { %8648 = vsyncpa [#allocation5 + $0x1], 1 }

</bundles_post_ra>
